<compile_context>
chip_gen: v7x
topology: tpu7x:2x2x1
jax: 0.10.0
libtpu: 0.0.40
codegen_flags: <defaults>
</compile_context>

<pallas_src>
import functools
import math

import jax
import jax.numpy as jnp
from jax.experimental import pallas as pl
from jax.experimental.pallas import tpu as pltpu


# ----------------------------------------------------------------------------
# Fused forward kernel (whole batch, single invocation)
# ----------------------------------------------------------------------------
def vl_fused_kernel(i_ref, q_ref,
                    w_in_ref, b_in_ref, w_out_ref, b_out_ref,
                    w1_ref, b1_ref, w2_ref, b2_ref, w3_ref, b3_ref,
                    o_ref, *, num_heads, num_stacked, add_residual):
    B, L_i, D = i_ref.shape
    L_q = q_ref.shape[1]
    dh = D // num_heads
    scale = 1.0 / math.sqrt(dh)
    S = num_stacked

    def mha(query, Lq, kv, Lk, idx):
        """nn.MultiheadAttention(batch_first=True) over the whole batch.

        query: (B*Lq, D) f32, or None for the torch zero-query path (Lq -> 1).
               If `query is kv` (self-attention), Q/K/V come from one matmul.
        kv:    (B*Lk, D) f32 used as both key and value.
        idx:   static module index into the stacked weight arrays.
        Returns (B*Lq_eff, D) f32.
        """
        w_in = w_in_ref[idx]       # (D, 3D) bf16, [Wq | Wk | Wv] in x @ W layout
        b_in = b_in_ref[idx]       # (1, 3D) f32
        w_out = w_out_ref[idx]     # (D, D)  bf16
        b_out = b_out_ref[idx]     # (1, D)  f32

        kv_b = kv.astype(jnp.bfloat16)
        if query is None:
            # zeros @ Wq + bq == bq  (matches torch.zeros((B, 1, D)) query)
            Lq = 1
            kvp = jnp.dot(kv_b, w_in[:, D:],
                          preferred_element_type=jnp.float32) + b_in[:, D:]
            qp = jnp.broadcast_to(b_in[:, :D], (B, D))                  # (B, D)
        elif query is kv:
            # Self-attention: one (rows, D) x (D, 3D) matmul gives Q, K, V.
            proj = jnp.dot(kv_b, w_in,
                           preferred_element_type=jnp.float32) + b_in
            qp = proj[:, :D]
            kvp = proj[:, D:]
        else:
            # Cross-attention: fuse Q and K/V projections into one MXU call by
            # sublane-stacking [query; kv] against the full in-proj weight.
            q_b = query.astype(jnp.bfloat16)
            stacked = jnp.concatenate([q_b, kv_b], axis=0)
            proj = jnp.dot(stacked, w_in, preferred_element_type=jnp.float32)
            nq = B * Lq
            qp = proj[:nq, :D] + b_in[:, :D]
            kvp = proj[nq:, D:] + b_in[:, D:]

        # Cast once before the head loop (not per head slice).
        qp_b = qp.astype(jnp.bfloat16)                                  # (B*Lq, D)
        kvp_b = kvp.astype(jnp.bfloat16)                                # (B*Lk, 2D)

        # TODO(synk): at D=768 the dh=192 head slices are not 128-lane aligned;
        # a lane-aligned repacking of w_in columns (mirrored in w_out rows) would
        # remove the per-head lane relayouts — not worth it at the toy D=32.
        out = jnp.broadcast_to(b_out, (B * Lq, D)).astype(jnp.float32)
        for h in range(num_heads):
            lo = h * dh
            ctx_rows = []
            for b in range(B):
                q_h = qp_b[b * Lq:(b + 1) * Lq, lo:lo + dh]             # (Lq, dh)
                k_h = kvp_b[b * Lk:(b + 1) * Lk, lo:lo + dh]            # (Lk, dh)
                v_h = kvp_b[b * Lk:(b + 1) * Lk, D + lo:D + lo + dh]    # (Lk, dh)
                scores = jax.lax.dot_general(
                    q_h, k_h, (((1,), (1,)), ((), ())),
                    preferred_element_type=jnp.float32) * scale         # (Lq, Lk)
                scores = scores - jnp.max(scores, axis=-1, keepdims=True)
                p = jnp.exp(scores)
                attn = p * pl.reciprocal(jnp.sum(p, axis=-1, keepdims=True),
                                         approx=True)
                ctx_rows.append(jnp.dot(attn.astype(jnp.bfloat16), v_h,
                                        preferred_element_type=jnp.float32))
            ctx_h = ctx_rows[0] if B == 1 else jnp.concatenate(ctx_rows, axis=0)
            # Per-head accumulation of the output projection (no lane concat):
            # sum_h ctx_h @ w_out[h*dh:(h+1)*dh, :] == concat(ctx_h) @ w_out.
            out = out + jnp.dot(ctx_h.astype(jnp.bfloat16), w_out[lo:lo + dh, :],
                                preferred_element_type=jnp.float32)
        return out

    # Module index layout inside the stacked weight arrays.
    idx_q2i = lambda st: 0 * S + st
    idx_i2q = lambda st: 1 * S + st
    idx_i = lambda st: 2 * S + st
    idx_q = lambda st: 3 * S + st
    idx_e = lambda st: 4 * S + st

    # Flatten batch into the sublane dim once; all activations stay 2D (B*L, D).
    i_e = i_ref[...].reshape(B * L_i, D)
    q_e = q_ref[...].reshape(B * L_q, D)
    Li_cur, Lq_cur = L_i, L_q

    # Criss-cross fusion stacks.
    for st in range(S):
        i_att = mha(i_e, Li_cur, q_e, Lq_cur, idx_q2i(st))   # query = i, kv = q
        q_att = mha(q_e, Lq_cur, i_e, Li_cur, idx_i2q(st))   # query = q, kv = i
        if st == 0:
            i_e = mha(None, 1, i_att, Li_cur, idx_i(st))     # zero query -> L=1
            q_e = mha(None, 1, q_att, Lq_cur, idx_q(st))
        else:
            i_e = mha(i_att, Li_cur, i_att, Li_cur, idx_i(st))   # self-attention
            q_e = mha(q_att, Lq_cur, q_att, Lq_cur, idx_q(st))
        Li_cur, Lq_cur = 1, 1

    # fusion_mode == 'mult'; post_concat dropout is an eval-mode identity.
    emb = i_e * q_e                                           # (B, D)

    # Embedding self-attention stacks (+ optional residual); dropout = identity.
    for st in range(S):
        if st == 0:
            new_emb = mha(None, 1, emb, 1, idx_e(st))
        else:
            new_emb = mha(emb, 1, emb, 1, idx_e(st))
        emb = (emb + new_emb) if add_residual else new_emb

    # FFN label classifier: Linear(D,D)+ReLU -> Linear(D,D/2)+ReLU -> Linear(D/2,C).
    x = jnp.maximum(jnp.dot(emb.astype(jnp.bfloat16), w1_ref[...],
                            preferred_element_type=jnp.float32) + b1_ref[...], 0.0)
    x = jnp.maximum(jnp.dot(x.astype(jnp.bfloat16), w2_ref[...],
                            preferred_element_type=jnp.float32) + b2_ref[...], 0.0)
    logits = jnp.dot(x.astype(jnp.bfloat16), w3_ref[...],
                     preferred_element_type=jnp.float32) + b3_ref[...]
    o_ref[...] = logits                    # (B, C_pad) lane-dense unmasked store


# ----------------------------------------------------------------------------
# Wrapper
# ----------------------------------------------------------------------------
def vl_model_forward(i_embeddings, q_embeddings, params, cfg):
    assert cfg['fusion_mode'] == 'mult'
    B, L_i, D = i_embeddings.shape
    L_q = q_embeddings.shape[1]
    S = cfg['num_stacked_attn']
    H = cfg['num_attn_heads']
    C = cfg['n_classes']
    assert D % H == 0
    C_pad = params['w3'].shape[1]          # lane-padded logits width (128)

    kernel = functools.partial(
        vl_fused_kernel, num_heads=H, num_stacked=S,
        add_residual=cfg['embed_attn__add_residual'])

    operands = (i_embeddings, q_embeddings,
                params['w_in'], params['b_in'], params['w_out'], params['b_out'],
                params['w1'], params['b1'], params['w2'], params['b2'],
                params['w3'], params['b3'])

    # Size the scoped VMEM limit from the actual single-buffered operand footprint
    # (+ headroom for f32 intermediates), instead of relying on the 16/32 MiB default.
    in_bytes = sum(int(a.size) * a.dtype.itemsize for a in operands)
    out_bytes = B * C_pad * 4
    vmem_limit = int(min(100 << 20, max(16 << 20, 3 * (in_bytes + out_bytes) + (4 << 20))))

    # Every operand is a constant / whole-array block: keep it resident in VMEM
    # with a single buffer (no grid -> no pipelining -> no double buffering).
    vmem_spec = pl.BlockSpec(memory_space=pltpu.MemorySpace.VMEM)

    out = pl.pallas_call(
        kernel,
        out_shape=jax.ShapeDtypeStruct((B, C_pad), jnp.float32),
        in_specs=[vmem_spec] * len(operands),
        out_specs=vmem_spec,
        compiler_params=pltpu.CompilerParams(vmem_limit_bytes=vmem_limit),
    )(*operands)
    return out[:, :C]


# ----------------------------------------------------------------------------
# Parameter init (deterministic, synthetic; torch layouts -> x @ W layouts)
# ----------------------------------------------------------------------------
def _init_mha(key, D):
    ks = jax.random.split(key, 4)
    std = 0.05
    in_w = jax.random.normal(ks[0], (3 * D, D), jnp.float32) * std   # torch in_proj_weight
    in_b = jax.random.normal(ks[1], (3 * D,), jnp.float32) * std     # torch in_proj_bias
    out_w = jax.random.normal(ks[2], (D, D), jnp.float32) * std      # torch out_proj.weight
    out_b = jax.random.normal(ks[3], (D,), jnp.float32) * std        # torch out_proj.bias
    return {'w_in': in_w.T, 'b_in': in_b.reshape(1, 3 * D),
            'w_out': out_w.T, 'b_out': out_b.reshape(1, D)}


def _init_linear(key, din, dout):
    k1, k2 = jax.random.split(key)
    std = 0.05
    w = jax.random.normal(k1, (dout, din), jnp.float32) * std        # torch Linear layout
    b = jax.random.normal(k2, (dout,), jnp.float32) * std
    return {'w': w.T, 'b': b.reshape(1, dout)}                       # pre-transposed


def init_params(key, cfg):
    D, S, C = cfg['embed_dim'], cfg['num_stacked_attn'], cfg['n_classes']
    C_pad = 128
    assert C <= C_pad

    # Stack order must match the kernel's module-index layout:
    # [attn_q2i x S, attn_i2q x S, attn_i x S, attn_q x S, attn_e x S]
    mods = []
    for _name in ['attn_q2i', 'attn_i2q', 'attn_i', 'attn_q', 'attn_e']:
        key, sub = jax.random.split(key)
        for sk in jax.random.split(sub, S):
            mods.append(_init_mha(sk, D))

    params = {
        'w_in': jnp.stack([m['w_in'] for m in mods]).astype(jnp.bfloat16),    # (5S, D, 3D)
        'b_in': jnp.stack([m['b_in'] for m in mods]),                         # (5S, 1, 3D) f32
        'w_out': jnp.stack([m['w_out'] for m in mods]).astype(jnp.bfloat16),  # (5S, D, D)
        'b_out': jnp.stack([m['b_out'] for m in mods]),                       # (5S, 1, D) f32
    }

    # FFN (fusion_mode != 'cat'): Linear(D,D)+ReLU, Linear(D,D//2)+ReLU, Linear(D//2,C)
    key, k1, k2, k3 = jax.random.split(key, 4)
    l1 = _init_linear(k1, D, D)
    l2 = _init_linear(k2, D, D // 2)
    l3 = _init_linear(k3, D // 2, C)
    # Pad the logits lane dim to 128 so the kernel's output store is unmasked.
    w3 = jnp.zeros((D // 2, C_pad), jnp.float32).at[:, :C].set(l3['w'])
    b3 = jnp.zeros((1, C_pad), jnp.float32).at[:, :C].set(l3['b'])
    params.update(
        w1=l1['w'].astype(jnp.bfloat16), b1=l1['b'],
        w2=l2['w'].astype(jnp.bfloat16), b2=l2['b'],
        w3=w3.astype(jnp.bfloat16), b3=b3,
    )
    return params


# ----------------------------------------------------------------------------
if __name__ == "__main__":
    cfg = {
        'fusion_mode': 'mult',
        'num_stacked_attn': 2,
        'num_attn_heads': 4,
        'embed_dim': 32,              # synthetic stand-in for the 768-d encoders
        'n_classes': 5,
        'embed_attn__add_residual': True,
        'label_classifier__use_bn': False,
    }
    B, L_img, L_txt = 2, 8, 8

    key = jax.random.PRNGKey(0)
    k_params, k_img, k_txt = jax.random.split(key, 3)
    params = init_params(k_params, cfg)

    # Synthetic encoder outputs (last_hidden_state of the image / text encoders).
    i_embeddings = jax.random.normal(k_img, (B, L_img, cfg['embed_dim']), jnp.float32)
    q_embeddings = jax.random.normal(k_txt, (B, L_txt, cfg['embed_dim']), jnp.float32)

    logits = vl_model_forward(i_embeddings, q_embeddings, params, cfg)
    jax.block_until_ready(logits)
    assert logits.shape == (B, cfg['n_classes'])
    assert bool(jnp.all(jnp.isfinite(logits)))
    print("KERNEL_OK")
</pallas_src>

<mosaic_0001>
module attributes {stable_mosaic.version = 11 : i64} {
  func.func @vl_fused_kernel(%arg0: memref<2x8x32xf32, #tpu.memory_space<vmem>>, %arg1: memref<2x8x32xf32, #tpu.memory_space<vmem>>, %arg2: memref<10x32x96xbf16, #tpu.memory_space<vmem>>, %arg3: memref<10x1x96xf32, #tpu.memory_space<vmem>>, %arg4: memref<10x32x32xbf16, #tpu.memory_space<vmem>>, %arg5: memref<10x1x32xf32, #tpu.memory_space<vmem>>, %arg6: memref<32x32xbf16, #tpu.memory_space<vmem>>, %arg7: memref<1x32xf32, #tpu.memory_space<vmem>>, %arg8: memref<32x16xbf16, #tpu.memory_space<vmem>>, %arg9: memref<1x16xf32, #tpu.memory_space<vmem>>, %arg10: memref<16x128xbf16, #tpu.memory_space<vmem>>, %arg11: memref<1x128xf32, #tpu.memory_space<vmem>>, %arg12: memref<2x128xf32, #tpu.memory_space<vmem>>) attributes {dimension_semantics = [], scalar_prefetch = 0 : i64, scratch_operands = 0 : i64, tpu.core_type = #tpu.core_type<tc>} {
    %c0 = arith.constant 0 : index
    %c0_0 = arith.constant 0 : index
    %c0_1 = arith.constant 0 : index
    %0 = vector.load %arg0[%c0, %c0_0, %c0_1] : memref<2x8x32xf32, #tpu.memory_space<vmem>>, vector<2x8x32xf32>
    %1 = vector.shape_cast %0 : vector<2x8x32xf32> to vector<16x32xf32>
    %c0_2 = arith.constant 0 : index
    %c0_3 = arith.constant 0 : index
    %c0_4 = arith.constant 0 : index
    %2 = vector.load %arg1[%c0_2, %c0_3, %c0_4] : memref<2x8x32xf32, #tpu.memory_space<vmem>>, vector<2x8x32xf32>
    %3 = vector.shape_cast %2 : vector<2x8x32xf32> to vector<16x32xf32>
    %c0_5 = arith.constant 0 : index
    %c0_6 = arith.constant 0 : index
    %c0_7 = arith.constant 0 : index
    %4 = vector.load %arg2[%c0_5, %c0_6, %c0_7] : memref<10x32x96xbf16, #tpu.memory_space<vmem>>, vector<1x32x96xbf16>
    %5 = vector.shape_cast %4 : vector<1x32x96xbf16> to vector<32x96xbf16>
    %c0_8 = arith.constant 0 : index
    %c0_9 = arith.constant 0 : index
    %c0_10 = arith.constant 0 : index
    %6 = vector.load %arg3[%c0_8, %c0_9, %c0_10] : memref<10x1x96xf32, #tpu.memory_space<vmem>>, vector<1x1x96xf32>
    %7 = vector.shape_cast %6 : vector<1x1x96xf32> to vector<1x96xf32>
    %c0_11 = arith.constant 0 : index
    %c0_12 = arith.constant 0 : index
    %c0_13 = arith.constant 0 : index
    %8 = vector.load %arg4[%c0_11, %c0_12, %c0_13] : memref<10x32x32xbf16, #tpu.memory_space<vmem>>, vector<1x32x32xbf16>
    %9 = vector.shape_cast %8 : vector<1x32x32xbf16> to vector<32x32xbf16>
    %c0_14 = arith.constant 0 : index
    %c0_15 = arith.constant 0 : index
    %c0_16 = arith.constant 0 : index
    %10 = vector.load %arg5[%c0_14, %c0_15, %c0_16] : memref<10x1x32xf32, #tpu.memory_space<vmem>>, vector<1x1x32xf32>
    %11 = vector.shape_cast %10 : vector<1x1x32xf32> to vector<1x32xf32>
    %12 = arith.truncf %3 : vector<16x32xf32> to vector<16x32xbf16>
    %13 = arith.truncf %1 : vector<16x32xf32> to vector<16x32xbf16>
    %14 = tpu.concatenate %13, %12 in 0 : vector<16x32xbf16>, vector<16x32xbf16> -> vector<32x32xbf16>
    %cst = arith.constant dense<0.000000e+00> : vector<32x96xf32>
    %15 = tpu.matmul %14, %5, %cst {dimension_numbers = #tpu.dot_dimension_numbers<[1], [0], [0], [1], [0, 0, 1, 1], [], []>} : vector<32x32xbf16>, vector<32x96xbf16>, vector<32x96xf32> -> vector<32x96xf32>
    %16 = vector.extract_strided_slice %15 {offsets = [0, 0], sizes = [16, 32], strides = [1, 1]} : vector<32x96xf32> to vector<16x32xf32>
    %17 = vector.extract_strided_slice %7 {offsets = [0, 0], sizes = [1, 32], strides = [1, 1]} : vector<1x96xf32> to vector<1x32xf32>
    %18 = vector.broadcast %17 : vector<1x32xf32> to vector<16x32xf32>
    %19 = arith.addf %16, %18 : vector<16x32xf32>
    %20 = vector.extract_strided_slice %15 {offsets = [16, 32], sizes = [16, 64], strides = [1, 1]} : vector<32x96xf32> to vector<16x64xf32>
    %21 = vector.extract_strided_slice %7 {offsets = [0, 32], sizes = [1, 64], strides = [1, 1]} : vector<1x96xf32> to vector<1x64xf32>
    %22 = vector.broadcast %21 : vector<1x64xf32> to vector<16x64xf32>
    %23 = arith.addf %20, %22 : vector<16x64xf32>
    %24 = arith.truncf %19 : vector<16x32xf32> to vector<16x32xbf16>
    %25 = arith.truncf %23 : vector<16x64xf32> to vector<16x64xbf16>
    %26 = vector.shape_cast %11 : vector<1x32xf32> to vector<1x32xf32>
    %27 = vector.broadcast %26 : vector<1x32xf32> to vector<16x32xf32>
    %28 = vector.extract_strided_slice %24 {offsets = [0, 0], sizes = [8, 8], strides = [1, 1]} : vector<16x32xbf16> to vector<8x8xbf16>
    %29 = vector.extract_strided_slice %25 {offsets = [0, 0], sizes = [8, 8], strides = [1, 1]} : vector<16x64xbf16> to vector<8x8xbf16>
    %30 = vector.extract_strided_slice %25 {offsets = [0, 32], sizes = [8, 8], strides = [1, 1]} : vector<16x64xbf16> to vector<8x8xbf16>
    %cst_17 = arith.constant dense<0.000000e+00> : vector<8x8xf32>
    %31 = tpu.matmul %28, %29, %cst_17 {dimension_numbers = #tpu.dot_dimension_numbers<[1], [1], [0], [0], [0, 0, 1, 0], [], []>} : vector<8x8xbf16>, vector<8x8xbf16>, vector<8x8xf32> -> vector<8x8xf32>
    %cst_18 = arith.constant 0.353553385 : f32
    %32 = vector.broadcast %cst_18 : f32 to vector<8x8xf32>
    %33 = arith.mulf %31, %32 : vector<8x8xf32>
    %cst_19 = arith.constant dense<0xFF800000> : vector<8xf32>
    %34 = vector.multi_reduction <maximumf>, %33, %cst_19 [1] : vector<8x8xf32> to vector<8xf32>
    %35 = vector.shape_cast %34 : vector<8xf32> to vector<8x1xf32>
    %36 = vector.broadcast %35 : vector<8x1xf32> to vector<8x8xf32>
    %37 = arith.subf %33, %36 : vector<8x8xf32>
    %38 = math.exp %37 : vector<8x8xf32>
    %cst_20 = arith.constant dense<0.000000e+00> : vector<8xf32>
    %39 = vector.multi_reduction <add>, %38, %cst_20 [1] : vector<8x8xf32> to vector<8xf32>
    %40 = vector.shape_cast %39 : vector<8xf32> to vector<8x1xf32>
    %41 = tpu.reciprocal %40 {approx = true} : vector<8x1xf32> -> vector<8x1xf32>
    %42 = vector.broadcast %41 : vector<8x1xf32> to vector<8x8xf32>
    %43 = arith.mulf %38, %42 : vector<8x8xf32>
    %44 = arith.truncf %43 : vector<8x8xf32> to vector<8x8xbf16>
    %cst_21 = arith.constant dense<0.000000e+00> : vector<8x8xf32>
    %45 = tpu.matmul %44, %30, %cst_21 {dimension_numbers = #tpu.dot_dimension_numbers<[1], [0], [0], [1], [0, 0, 1, 1], [], []>} : vector<8x8xbf16>, vector<8x8xbf16>, vector<8x8xf32> -> vector<8x8xf32>
    %46 = vector.extract_strided_slice %24 {offsets = [8, 0], sizes = [8, 8], strides = [1, 1]} : vector<16x32xbf16> to vector<8x8xbf16>
    %47 = vector.extract_strided_slice %25 {offsets = [8, 0], sizes = [8, 8], strides = [1, 1]} : vector<16x64xbf16> to vector<8x8xbf16>
    %48 = vector.extract_strided_slice %25 {offsets = [8, 32], sizes = [8, 8], strides = [1, 1]} : vector<16x64xbf16> to vector<8x8xbf16>
    %cst_22 = arith.constant dense<0.000000e+00> : vector<8x8xf32>
    %49 = tpu.matmul %46, %47, %cst_22 {dimension_numbers = #tpu.dot_dimension_numbers<[1], [1], [0], [0], [0, 0, 1, 0], [], []>} : vector<8x8xbf16>, vector<8x8xbf16>, vector<8x8xf32> -> vector<8x8xf32>
    %cst_23 = arith.constant 0.353553385 : f32
    %50 = vector.broadcast %cst_23 : f32 to vector<8x8xf32>
    %51 = arith.mulf %49, %50 : vector<8x8xf32>
    %cst_24 = arith.constant dense<0xFF800000> : vector<8xf32>
    %52 = vector.multi_reduction <maximumf>, %51, %cst_24 [1] : vector<8x8xf32> to vector<8xf32>
    %53 = vector.shape_cast %52 : vector<8xf32> to vector<8x1xf32>
    %54 = vector.broadcast %53 : vector<8x1xf32> to vector<8x8xf32>
    %55 = arith.subf %51, %54 : vector<8x8xf32>
    %56 = math.exp %55 : vector<8x8xf32>
    %cst_25 = arith.constant dense<0.000000e+00> : vector<8xf32>
    %57 = vector.multi_reduction <add>, %56, %cst_25 [1] : vector<8x8xf32> to vector<8xf32>
    %58 = vector.shape_cast %57 : vector<8xf32> to vector<8x1xf32>
    %59 = tpu.reciprocal %58 {approx = true} : vector<8x1xf32> -> vector<8x1xf32>
    %60 = vector.broadcast %59 : vector<8x1xf32> to vector<8x8xf32>
    %61 = arith.mulf %56, %60 : vector<8x8xf32>
    %62 = arith.truncf %61 : vector<8x8xf32> to vector<8x8xbf16>
    %cst_26 = arith.constant dense<0.000000e+00> : vector<8x8xf32>
    %63 = tpu.matmul %62, %48, %cst_26 {dimension_numbers = #tpu.dot_dimension_numbers<[1], [0], [0], [1], [0, 0, 1, 1], [], []>} : vector<8x8xbf16>, vector<8x8xbf16>, vector<8x8xf32> -> vector<8x8xf32>
    %64 = tpu.concatenate %45, %63 in 0 : vector<8x8xf32>, vector<8x8xf32> -> vector<16x8xf32>
    %65 = arith.truncf %64 : vector<16x8xf32> to vector<16x8xbf16>
    %66 = vector.extract_strided_slice %9 {offsets = [0, 0], sizes = [8, 32], strides = [1, 1]} : vector<32x32xbf16> to vector<8x32xbf16>
    %cst_27 = arith.constant dense<0.000000e+00> : vector<16x32xf32>
    %67 = tpu.matmul %65, %66, %cst_27 {dimension_numbers = #tpu.dot_dimension_numbers<[1], [0], [0], [1], [0, 0, 1, 1], [], []>} : vector<16x8xbf16>, vector<8x32xbf16>, vector<16x32xf32> -> vector<16x32xf32>
    %68 = arith.addf %27, %67 : vector<16x32xf32>
    %69 = vector.extract_strided_slice %24 {offsets = [0, 8], sizes = [8, 8], strides = [1, 1]} : vector<16x32xbf16> to vector<8x8xbf16>
    %70 = vector.extract_strided_slice %25 {offsets = [0, 8], sizes = [8, 8], strides = [1, 1]} : vector<16x64xbf16> to vector<8x8xbf16>
    %71 = vector.extract_strided_slice %25 {offsets = [0, 40], sizes = [8, 8], strides = [1, 1]} : vector<16x64xbf16> to vector<8x8xbf16>
    %cst_28 = arith.constant dense<0.000000e+00> : vector<8x8xf32>
    %72 = tpu.matmul %69, %70, %cst_28 {dimension_numbers = #tpu.dot_dimension_numbers<[1], [1], [0], [0], [0, 0, 1, 0], [], []>} : vector<8x8xbf16>, vector<8x8xbf16>, vector<8x8xf32> -> vector<8x8xf32>
    %cst_29 = arith.constant 0.353553385 : f32
    %73 = vector.broadcast %cst_29 : f32 to vector<8x8xf32>
    %74 = arith.mulf %72, %73 : vector<8x8xf32>
    %cst_30 = arith.constant dense<0xFF800000> : vector<8xf32>
    %75 = vector.multi_reduction <maximumf>, %74, %cst_30 [1] : vector<8x8xf32> to vector<8xf32>
    %76 = vector.shape_cast %75 : vector<8xf32> to vector<8x1xf32>
    %77 = vector.broadcast %76 : vector<8x1xf32> to vector<8x8xf32>
    %78 = arith.subf %74, %77 : vector<8x8xf32>
    %79 = math.exp %78 : vector<8x8xf32>
    %cst_31 = arith.constant dense<0.000000e+00> : vector<8xf32>
    %80 = vector.multi_reduction <add>, %79, %cst_31 [1] : vector<8x8xf32> to vector<8xf32>
    %81 = vector.shape_cast %80 : vector<8xf32> to vector<8x1xf32>
    %82 = tpu.reciprocal %81 {approx = true} : vector<8x1xf32> -> vector<8x1xf32>
    %83 = vector.broadcast %82 : vector<8x1xf32> to vector<8x8xf32>
    %84 = arith.mulf %79, %83 : vector<8x8xf32>
    %85 = arith.truncf %84 : vector<8x8xf32> to vector<8x8xbf16>
    %cst_32 = arith.constant dense<0.000000e+00> : vector<8x8xf32>
    %86 = tpu.matmul %85, %71, %cst_32 {dimension_numbers = #tpu.dot_dimension_numbers<[1], [0], [0], [1], [0, 0, 1, 1], [], []>} : vector<8x8xbf16>, vector<8x8xbf16>, vector<8x8xf32> -> vector<8x8xf32>
    %87 = vector.extract_strided_slice %24 {offsets = [8, 8], sizes = [8, 8], strides = [1, 1]} : vector<16x32xbf16> to vector<8x8xbf16>
    %88 = vector.extract_strided_slice %25 {offsets = [8, 8], sizes = [8, 8], strides = [1, 1]} : vector<16x64xbf16> to vector<8x8xbf16>
    %89 = vector.extract_strided_slice %25 {offsets = [8, 40], sizes = [8, 8], strides = [1, 1]} : vector<16x64xbf16> to vector<8x8xbf16>
    %cst_33 = arith.constant dense<0.000000e+00> : vector<8x8xf32>
    %90 = tpu.matmul %87, %88, %cst_33 {dimension_numbers = #tpu.dot_dimension_numbers<[1], [1], [0], [0], [0, 0, 1, 0], [], []>} : vector<8x8xbf16>, vector<8x8xbf16>, vector<8x8xf32> -> vector<8x8xf32>
    %cst_34 = arith.constant 0.353553385 : f32
    %91 = vector.broadcast %cst_34 : f32 to vector<8x8xf32>
    %92 = arith.mulf %90, %91 : vector<8x8xf32>
    %cst_35 = arith.constant dense<0xFF800000> : vector<8xf32>
    %93 = vector.multi_reduction <maximumf>, %92, %cst_35 [1] : vector<8x8xf32> to vector<8xf32>
    %94 = vector.shape_cast %93 : vector<8xf32> to vector<8x1xf32>
    %95 = vector.broadcast %94 : vector<8x1xf32> to vector<8x8xf32>
    %96 = arith.subf %92, %95 : vector<8x8xf32>
    %97 = math.exp %96 : vector<8x8xf32>
    %cst_36 = arith.constant dense<0.000000e+00> : vector<8xf32>
    %98 = vector.multi_reduction <add>, %97, %cst_36 [1] : vector<8x8xf32> to vector<8xf32>
    %99 = vector.shape_cast %98 : vector<8xf32> to vector<8x1xf32>
    %100 = tpu.reciprocal %99 {approx = true} : vector<8x1xf32> -> vector<8x1xf32>
    %101 = vector.broadcast %100 : vector<8x1xf32> to vector<8x8xf32>
    %102 = arith.mulf %97, %101 : vector<8x8xf32>
    %103 = arith.truncf %102 : vector<8x8xf32> to vector<8x8xbf16>
    %cst_37 = arith.constant dense<0.000000e+00> : vector<8x8xf32>
    %104 = tpu.matmul %103, %89, %cst_37 {dimension_numbers = #tpu.dot_dimension_numbers<[1], [0], [0], [1], [0, 0, 1, 1], [], []>} : vector<8x8xbf16>, vector<8x8xbf16>, vector<8x8xf32> -> vector<8x8xf32>
    %105 = tpu.concatenate %86, %104 in 0 : vector<8x8xf32>, vector<8x8xf32> -> vector<16x8xf32>
    %106 = arith.truncf %105 : vector<16x8xf32> to vector<16x8xbf16>
    %107 = vector.extract_strided_slice %9 {offsets = [8, 0], sizes = [8, 32], strides = [1, 1]} : vector<32x32xbf16> to vector<8x32xbf16>
    %cst_38 = arith.constant dense<0.000000e+00> : vector<16x32xf32>
    %108 = tpu.matmul %106, %107, %cst_38 {dimension_numbers = #tpu.dot_dimension_numbers<[1], [0], [0], [1], [0, 0, 1, 1], [], []>} : vector<16x8xbf16>, vector<8x32xbf16>, vector<16x32xf32> -> vector<16x32xf32>
    %109 = arith.addf %68, %108 : vector<16x32xf32>
    %110 = vector.extract_strided_slice %24 {offsets = [0, 16], sizes = [8, 8], strides = [1, 1]} : vector<16x32xbf16> to vector<8x8xbf16>
    %111 = vector.extract_strided_slice %25 {offsets = [0, 16], sizes = [8, 8], strides = [1, 1]} : vector<16x64xbf16> to vector<8x8xbf16>
    %112 = vector.extract_strided_slice %25 {offsets = [0, 48], sizes = [8, 8], strides = [1, 1]} : vector<16x64xbf16> to vector<8x8xbf16>
    %cst_39 = arith.constant dense<0.000000e+00> : vector<8x8xf32>
    %113 = tpu.matmul %110, %111, %cst_39 {dimension_numbers = #tpu.dot_dimension_numbers<[1], [1], [0], [0], [0, 0, 1, 0], [], []>} : vector<8x8xbf16>, vector<8x8xbf16>, vector<8x8xf32> -> vector<8x8xf32>
    %cst_40 = arith.constant 0.353553385 : f32
    %114 = vector.broadcast %cst_40 : f32 to vector<8x8xf32>
    %115 = arith.mulf %113, %114 : vector<8x8xf32>
    %cst_41 = arith.constant dense<0xFF800000> : vector<8xf32>
    %116 = vector.multi_reduction <maximumf>, %115, %cst_41 [1] : vector<8x8xf32> to vector<8xf32>
    %117 = vector.shape_cast %116 : vector<8xf32> to vector<8x1xf32>
    %118 = vector.broadcast %117 : vector<8x1xf32> to vector<8x8xf32>
    %119 = arith.subf %115, %118 : vector<8x8xf32>
    %120 = math.exp %119 : vector<8x8xf32>
    %cst_42 = arith.constant dense<0.000000e+00> : vector<8xf32>
    %121 = vector.multi_reduction <add>, %120, %cst_42 [1] : vector<8x8xf32> to vector<8xf32>
    %122 = vector.shape_cast %121 : vector<8xf32> to vector<8x1xf32>
    %123 = tpu.reciprocal %122 {approx = true} : vector<8x1xf32> -> vector<8x1xf32>
    %124 = vector.broadcast %123 : vector<8x1xf32> to vector<8x8xf32>
    %125 = arith.mulf %120, %124 : vector<8x8xf32>
    %126 = arith.truncf %125 : vector<8x8xf32> to vector<8x8xbf16>
    %cst_43 = arith.constant dense<0.000000e+00> : vector<8x8xf32>
    %127 = tpu.matmul %126, %112, %cst_43 {dimension_numbers = #tpu.dot_dimension_numbers<[1], [0], [0], [1], [0, 0, 1, 1], [], []>} : vector<8x8xbf16>, vector<8x8xbf16>, vector<8x8xf32> -> vector<8x8xf32>
    %128 = vector.extract_strided_slice %24 {offsets = [8, 16], sizes = [8, 8], strides = [1, 1]} : vector<16x32xbf16> to vector<8x8xbf16>
    %129 = vector.extract_strided_slice %25 {offsets = [8, 16], sizes = [8, 8], strides = [1, 1]} : vector<16x64xbf16> to vector<8x8xbf16>
    %130 = vector.extract_strided_slice %25 {offsets = [8, 48], sizes = [8, 8], strides = [1, 1]} : vector<16x64xbf16> to vector<8x8xbf16>
    %cst_44 = arith.constant dense<0.000000e+00> : vector<8x8xf32>
    %131 = tpu.matmul %128, %129, %cst_44 {dimension_numbers = #tpu.dot_dimension_numbers<[1], [1], [0], [0], [0, 0, 1, 0], [], []>} : vector<8x8xbf16>, vector<8x8xbf16>, vector<8x8xf32> -> vector<8x8xf32>
    %cst_45 = arith.constant 0.353553385 : f32
    %132 = vector.broadcast %cst_45 : f32 to vector<8x8xf32>
    %133 = arith.mulf %131, %132 : vector<8x8xf32>
    %cst_46 = arith.constant dense<0xFF800000> : vector<8xf32>
    %134 = vector.multi_reduction <maximumf>, %133, %cst_46 [1] : vector<8x8xf32> to vector<8xf32>
    %135 = vector.shape_cast %134 : vector<8xf32> to vector<8x1xf32>
    %136 = vector.broadcast %135 : vector<8x1xf32> to vector<8x8xf32>
    %137 = arith.subf %133, %136 : vector<8x8xf32>
    %138 = math.exp %137 : vector<8x8xf32>
    %cst_47 = arith.constant dense<0.000000e+00> : vector<8xf32>
    %139 = vector.multi_reduction <add>, %138, %cst_47 [1] : vector<8x8xf32> to vector<8xf32>
    %140 = vector.shape_cast %139 : vector<8xf32> to vector<8x1xf32>
    %141 = tpu.reciprocal %140 {approx = true} : vector<8x1xf32> -> vector<8x1xf32>
    %142 = vector.broadcast %141 : vector<8x1xf32> to vector<8x8xf32>
    %143 = arith.mulf %138, %142 : vector<8x8xf32>
    %144 = arith.truncf %143 : vector<8x8xf32> to vector<8x8xbf16>
    %cst_48 = arith.constant dense<0.000000e+00> : vector<8x8xf32>
    %145 = tpu.matmul %144, %130, %cst_48 {dimension_numbers = #tpu.dot_dimension_numbers<[1], [0], [0], [1], [0, 0, 1, 1], [], []>} : vector<8x8xbf16>, vector<8x8xbf16>, vector<8x8xf32> -> vector<8x8xf32>
    %146 = tpu.concatenate %127, %145 in 0 : vector<8x8xf32>, vector<8x8xf32> -> vector<16x8xf32>
    %147 = arith.truncf %146 : vector<16x8xf32> to vector<16x8xbf16>
    %148 = vector.extract_strided_slice %9 {offsets = [16, 0], sizes = [8, 32], strides = [1, 1]} : vector<32x32xbf16> to vector<8x32xbf16>
    %cst_49 = arith.constant dense<0.000000e+00> : vector<16x32xf32>
    %149 = tpu.matmul %147, %148, %cst_49 {dimension_numbers = #tpu.dot_dimension_numbers<[1], [0], [0], [1], [0, 0, 1, 1], [], []>} : vector<16x8xbf16>, vector<8x32xbf16>, vector<16x32xf32> -> vector<16x32xf32>
    %150 = arith.addf %109, %149 : vector<16x32xf32>
    %151 = vector.extract_strided_slice %24 {offsets = [0, 24], sizes = [8, 8], strides = [1, 1]} : vector<16x32xbf16> to vector<8x8xbf16>
    %152 = vector.extract_strided_slice %25 {offsets = [0, 24], sizes = [8, 8], strides = [1, 1]} : vector<16x64xbf16> to vector<8x8xbf16>
    %153 = vector.extract_strided_slice %25 {offsets = [0, 56], sizes = [8, 8], strides = [1, 1]} : vector<16x64xbf16> to vector<8x8xbf16>
    %cst_50 = arith.constant dense<0.000000e+00> : vector<8x8xf32>
    %154 = tpu.matmul %151, %152, %cst_50 {dimension_numbers = #tpu.dot_dimension_numbers<[1], [1], [0], [0], [0, 0, 1, 0], [], []>} : vector<8x8xbf16>, vector<8x8xbf16>, vector<8x8xf32> -> vector<8x8xf32>
    %cst_51 = arith.constant 0.353553385 : f32
    %155 = vector.broadcast %cst_51 : f32 to vector<8x8xf32>
    %156 = arith.mulf %154, %155 : vector<8x8xf32>
    %cst_52 = arith.constant dense<0xFF800000> : vector<8xf32>
    %157 = vector.multi_reduction <maximumf>, %156, %cst_52 [1] : vector<8x8xf32> to vector<8xf32>
    %158 = vector.shape_cast %157 : vector<8xf32> to vector<8x1xf32>
    %159 = vector.broadcast %158 : vector<8x1xf32> to vector<8x8xf32>
    %160 = arith.subf %156, %159 : vector<8x8xf32>
    %161 = math.exp %160 : vector<8x8xf32>
    %cst_53 = arith.constant dense<0.000000e+00> : vector<8xf32>
    %162 = vector.multi_reduction <add>, %161, %cst_53 [1] : vector<8x8xf32> to vector<8xf32>
    %163 = vector.shape_cast %162 : vector<8xf32> to vector<8x1xf32>
    %164 = tpu.reciprocal %163 {approx = true} : vector<8x1xf32> -> vector<8x1xf32>
    %165 = vector.broadcast %164 : vector<8x1xf32> to vector<8x8xf32>
    %166 = arith.mulf %161, %165 : vector<8x8xf32>
    %167 = arith.truncf %166 : vector<8x8xf32> to vector<8x8xbf16>
    %cst_54 = arith.constant dense<0.000000e+00> : vector<8x8xf32>
    %168 = tpu.matmul %167, %153, %cst_54 {dimension_numbers = #tpu.dot_dimension_numbers<[1], [0], [0], [1], [0, 0, 1, 1], [], []>} : vector<8x8xbf16>, vector<8x8xbf16>, vector<8x8xf32> -> vector<8x8xf32>
    %169 = vector.extract_strided_slice %24 {offsets = [8, 24], sizes = [8, 8], strides = [1, 1]} : vector<16x32xbf16> to vector<8x8xbf16>
    %170 = vector.extract_strided_slice %25 {offsets = [8, 24], sizes = [8, 8], strides = [1, 1]} : vector<16x64xbf16> to vector<8x8xbf16>
    %171 = vector.extract_strided_slice %25 {offsets = [8, 56], sizes = [8, 8], strides = [1, 1]} : vector<16x64xbf16> to vector<8x8xbf16>
    %cst_55 = arith.constant dense<0.000000e+00> : vector<8x8xf32>
    %172 = tpu.matmul %169, %170, %cst_55 {dimension_numbers = #tpu.dot_dimension_numbers<[1], [1], [0], [0], [0, 0, 1, 0], [], []>} : vector<8x8xbf16>, vector<8x8xbf16>, vector<8x8xf32> -> vector<8x8xf32>
    %cst_56 = arith.constant 0.353553385 : f32
    %173 = vector.broadcast %cst_56 : f32 to vector<8x8xf32>
    %174 = arith.mulf %172, %173 : vector<8x8xf32>
    %cst_57 = arith.constant dense<0xFF800000> : vector<8xf32>
    %175 = vector.multi_reduction <maximumf>, %174, %cst_57 [1] : vector<8x8xf32> to vector<8xf32>
    %176 = vector.shape_cast %175 : vector<8xf32> to vector<8x1xf32>
    %177 = vector.broadcast %176 : vector<8x1xf32> to vector<8x8xf32>
    %178 = arith.subf %174, %177 : vector<8x8xf32>
    %179 = math.exp %178 : vector<8x8xf32>
    %cst_58 = arith.constant dense<0.000000e+00> : vector<8xf32>
    %180 = vector.multi_reduction <add>, %179, %cst_58 [1] : vector<8x8xf32> to vector<8xf32>
    %181 = vector.shape_cast %180 : vector<8xf32> to vector<8x1xf32>
    %182 = tpu.reciprocal %181 {approx = true} : vector<8x1xf32> -> vector<8x1xf32>
    %183 = vector.broadcast %182 : vector<8x1xf32> to vector<8x8xf32>
    %184 = arith.mulf %179, %183 : vector<8x8xf32>
    %185 = arith.truncf %184 : vector<8x8xf32> to vector<8x8xbf16>
    %cst_59 = arith.constant dense<0.000000e+00> : vector<8x8xf32>
    %186 = tpu.matmul %185, %171, %cst_59 {dimension_numbers = #tpu.dot_dimension_numbers<[1], [0], [0], [1], [0, 0, 1, 1], [], []>} : vector<8x8xbf16>, vector<8x8xbf16>, vector<8x8xf32> -> vector<8x8xf32>
    %187 = tpu.concatenate %168, %186 in 0 : vector<8x8xf32>, vector<8x8xf32> -> vector<16x8xf32>
    %188 = arith.truncf %187 : vector<16x8xf32> to vector<16x8xbf16>
    %189 = vector.extract_strided_slice %9 {offsets = [24, 0], sizes = [8, 32], strides = [1, 1]} : vector<32x32xbf16> to vector<8x32xbf16>
    %cst_60 = arith.constant dense<0.000000e+00> : vector<16x32xf32>
    %190 = tpu.matmul %188, %189, %cst_60 {dimension_numbers = #tpu.dot_dimension_numbers<[1], [0], [0], [1], [0, 0, 1, 1], [], []>} : vector<16x8xbf16>, vector<8x32xbf16>, vector<16x32xf32> -> vector<16x32xf32>
    %191 = arith.addf %150, %190 : vector<16x32xf32>
    %c2 = arith.constant 2 : index
    %c0_61 = arith.constant 0 : index
    %c0_62 = arith.constant 0 : index
    %192 = vector.load %arg2[%c2, %c0_61, %c0_62] : memref<10x32x96xbf16, #tpu.memory_space<vmem>>, vector<1x32x96xbf16>
    %193 = vector.shape_cast %192 : vector<1x32x96xbf16> to vector<32x96xbf16>
    %c2_63 = arith.constant 2 : index
    %c0_64 = arith.constant 0 : index
    %c0_65 = arith.constant 0 : index
    %194 = vector.load %arg3[%c2_63, %c0_64, %c0_65] : memref<10x1x96xf32, #tpu.memory_space<vmem>>, vector<1x1x96xf32>
    %195 = vector.shape_cast %194 : vector<1x1x96xf32> to vector<1x96xf32>
    %c2_66 = arith.constant 2 : index
    %c0_67 = arith.constant 0 : index
    %c0_68 = arith.constant 0 : index
    %196 = vector.load %arg4[%c2_66, %c0_67, %c0_68] : memref<10x32x32xbf16, #tpu.memory_space<vmem>>, vector<1x32x32xbf16>
    %197 = vector.shape_cast %196 : vector<1x32x32xbf16> to vector<32x32xbf16>
    %c2_69 = arith.constant 2 : index
    %c0_70 = arith.constant 0 : index
    %c0_71 = arith.constant 0 : index
    %198 = vector.load %arg5[%c2_69, %c0_70, %c0_71] : memref<10x1x32xf32, #tpu.memory_space<vmem>>, vector<1x1x32xf32>
    %199 = vector.shape_cast %198 : vector<1x1x32xf32> to vector<1x32xf32>
    %200 = arith.truncf %1 : vector<16x32xf32> to vector<16x32xbf16>
    %201 = arith.truncf %3 : vector<16x32xf32> to vector<16x32xbf16>
    %202 = tpu.concatenate %201, %200 in 0 : vector<16x32xbf16>, vector<16x32xbf16> -> vector<32x32xbf16>
    %cst_72 = arith.constant dense<0.000000e+00> : vector<32x96xf32>
    %203 = tpu.matmul %202, %193, %cst_72 {dimension_numbers = #tpu.dot_dimension_numbers<[1], [0], [0], [1], [0, 0, 1, 1], [], []>} : vector<32x32xbf16>, vector<32x96xbf16>, vector<32x96xf32> -> vector<32x96xf32>
    %204 = vector.extract_strided_slice %203 {offsets = [0, 0], sizes = [16, 32], strides = [1, 1]} : vector<32x96xf32> to vector<16x32xf32>
    %205 = vector.extract_strided_slice %195 {offsets = [0, 0], sizes = [1, 32], strides = [1, 1]} : vector<1x96xf32> to vector<1x32xf32>
    %206 = vector.broadcast %205 : vector<1x32xf32> to vector<16x32xf32>
    %207 = arith.addf %204, %206 : vector<16x32xf32>
    %208 = vector.extract_strided_slice %203 {offsets = [16, 32], sizes = [16, 64], strides = [1, 1]} : vector<32x96xf32> to vector<16x64xf32>
    %209 = vector.extract_strided_slice %195 {offsets = [0, 32], sizes = [1, 64], strides = [1, 1]} : vector<1x96xf32> to vector<1x64xf32>
    %210 = vector.broadcast %209 : vector<1x64xf32> to vector<16x64xf32>
    %211 = arith.addf %208, %210 : vector<16x64xf32>
    %212 = arith.truncf %207 : vector<16x32xf32> to vector<16x32xbf16>
    %213 = arith.truncf %211 : vector<16x64xf32> to vector<16x64xbf16>
    %214 = vector.shape_cast %199 : vector<1x32xf32> to vector<1x32xf32>
    %215 = vector.broadcast %214 : vector<1x32xf32> to vector<16x32xf32>
    %216 = vector.extract_strided_slice %212 {offsets = [0, 0], sizes = [8, 8], strides = [1, 1]} : vector<16x32xbf16> to vector<8x8xbf16>
    %217 = vector.extract_strided_slice %213 {offsets = [0, 0], sizes = [8, 8], strides = [1, 1]} : vector<16x64xbf16> to vector<8x8xbf16>
    %218 = vector.extract_strided_slice %213 {offsets = [0, 32], sizes = [8, 8], strides = [1, 1]} : vector<16x64xbf16> to vector<8x8xbf16>
    %cst_73 = arith.constant dense<0.000000e+00> : vector<8x8xf32>
    %219 = tpu.matmul %216, %217, %cst_73 {dimension_numbers = #tpu.dot_dimension_numbers<[1], [1], [0], [0], [0, 0, 1, 0], [], []>} : vector<8x8xbf16>, vector<8x8xbf16>, vector<8x8xf32> -> vector<8x8xf32>
    %cst_74 = arith.constant 0.353553385 : f32
    %220 = vector.broadcast %cst_74 : f32 to vector<8x8xf32>
    %221 = arith.mulf %219, %220 : vector<8x8xf32>
    %cst_75 = arith.constant dense<0xFF800000> : vector<8xf32>
    %222 = vector.multi_reduction <maximumf>, %221, %cst_75 [1] : vector<8x8xf32> to vector<8xf32>
    %223 = vector.shape_cast %222 : vector<8xf32> to vector<8x1xf32>
    %224 = vector.broadcast %223 : vector<8x1xf32> to vector<8x8xf32>
    %225 = arith.subf %221, %224 : vector<8x8xf32>
    %226 = math.exp %225 : vector<8x8xf32>
    %cst_76 = arith.constant dense<0.000000e+00> : vector<8xf32>
    %227 = vector.multi_reduction <add>, %226, %cst_76 [1] : vector<8x8xf32> to vector<8xf32>
    %228 = vector.shape_cast %227 : vector<8xf32> to vector<8x1xf32>
    %229 = tpu.reciprocal %228 {approx = true} : vector<8x1xf32> -> vector<8x1xf32>
    %230 = vector.broadcast %229 : vector<8x1xf32> to vector<8x8xf32>
    %231 = arith.mulf %226, %230 : vector<8x8xf32>
    %232 = arith.truncf %231 : vector<8x8xf32> to vector<8x8xbf16>
    %cst_77 = arith.constant dense<0.000000e+00> : vector<8x8xf32>
    %233 = tpu.matmul %232, %218, %cst_77 {dimension_numbers = #tpu.dot_dimension_numbers<[1], [0], [0], [1], [0, 0, 1, 1], [], []>} : vector<8x8xbf16>, vector<8x8xbf16>, vector<8x8xf32> -> vector<8x8xf32>
    %234 = vector.extract_strided_slice %212 {offsets = [8, 0], sizes = [8, 8], strides = [1, 1]} : vector<16x32xbf16> to vector<8x8xbf16>
    %235 = vector.extract_strided_slice %213 {offsets = [8, 0], sizes = [8, 8], strides = [1, 1]} : vector<16x64xbf16> to vector<8x8xbf16>
    %236 = vector.extract_strided_slice %213 {offsets = [8, 32], sizes = [8, 8], strides = [1, 1]} : vector<16x64xbf16> to vector<8x8xbf16>
    %cst_78 = arith.constant dense<0.000000e+00> : vector<8x8xf32>
    %237 = tpu.matmul %234, %235, %cst_78 {dimension_numbers = #tpu.dot_dimension_numbers<[1], [1], [0], [0], [0, 0, 1, 0], [], []>} : vector<8x8xbf16>, vector<8x8xbf16>, vector<8x8xf32> -> vector<8x8xf32>
    %cst_79 = arith.constant 0.353553385 : f32
    %238 = vector.broadcast %cst_79 : f32 to vector<8x8xf32>
    %239 = arith.mulf %237, %238 : vector<8x8xf32>
    %cst_80 = arith.constant dense<0xFF800000> : vector<8xf32>
    %240 = vector.multi_reduction <maximumf>, %239, %cst_80 [1] : vector<8x8xf32> to vector<8xf32>
    %241 = vector.shape_cast %240 : vector<8xf32> to vector<8x1xf32>
    %242 = vector.broadcast %241 : vector<8x1xf32> to vector<8x8xf32>
    %243 = arith.subf %239, %242 : vector<8x8xf32>
    %244 = math.exp %243 : vector<8x8xf32>
    %cst_81 = arith.constant dense<0.000000e+00> : vector<8xf32>
    %245 = vector.multi_reduction <add>, %244, %cst_81 [1] : vector<8x8xf32> to vector<8xf32>
    %246 = vector.shape_cast %245 : vector<8xf32> to vector<8x1xf32>
    %247 = tpu.reciprocal %246 {approx = true} : vector<8x1xf32> -> vector<8x1xf32>
    %248 = vector.broadcast %247 : vector<8x1xf32> to vector<8x8xf32>
    %249 = arith.mulf %244, %248 : vector<8x8xf32>
    %250 = arith.truncf %249 : vector<8x8xf32> to vector<8x8xbf16>
    %cst_82 = arith.constant dense<0.000000e+00> : vector<8x8xf32>
    %251 = tpu.matmul %250, %236, %cst_82 {dimension_numbers = #tpu.dot_dimension_numbers<[1], [0], [0], [1], [0, 0, 1, 1], [], []>} : vector<8x8xbf16>, vector<8x8xbf16>, vector<8x8xf32> -> vector<8x8xf32>
    %252 = tpu.concatenate %233, %251 in 0 : vector<8x8xf32>, vector<8x8xf32> -> vector<16x8xf32>
    %253 = arith.truncf %252 : vector<16x8xf32> to vector<16x8xbf16>
    %254 = vector.extract_strided_slice %197 {offsets = [0, 0], sizes = [8, 32], strides = [1, 1]} : vector<32x32xbf16> to vector<8x32xbf16>
    %cst_83 = arith.constant dense<0.000000e+00> : vector<16x32xf32>
    %255 = tpu.matmul %253, %254, %cst_83 {dimension_numbers = #tpu.dot_dimension_numbers<[1], [0], [0], [1], [0, 0, 1, 1], [], []>} : vector<16x8xbf16>, vector<8x32xbf16>, vector<16x32xf32> -> vector<16x32xf32>
    %256 = arith.addf %215, %255 : vector<16x32xf32>
    %257 = vector.extract_strided_slice %212 {offsets = [0, 8], sizes = [8, 8], strides = [1, 1]} : vector<16x32xbf16> to vector<8x8xbf16>
    %258 = vector.extract_strided_slice %213 {offsets = [0, 8], sizes = [8, 8], strides = [1, 1]} : vector<16x64xbf16> to vector<8x8xbf16>
    %259 = vector.extract_strided_slice %213 {offsets = [0, 40], sizes = [8, 8], strides = [1, 1]} : vector<16x64xbf16> to vector<8x8xbf16>
    %cst_84 = arith.constant dense<0.000000e+00> : vector<8x8xf32>
    %260 = tpu.matmul %257, %258, %cst_84 {dimension_numbers = #tpu.dot_dimension_numbers<[1], [1], [0], [0], [0, 0, 1, 0], [], []>} : vector<8x8xbf16>, vector<8x8xbf16>, vector<8x8xf32> -> vector<8x8xf32>
    %cst_85 = arith.constant 0.353553385 : f32
    %261 = vector.broadcast %cst_85 : f32 to vector<8x8xf32>
    %262 = arith.mulf %260, %261 : vector<8x8xf32>
    %cst_86 = arith.constant dense<0xFF800000> : vector<8xf32>
    %263 = vector.multi_reduction <maximumf>, %262, %cst_86 [1] : vector<8x8xf32> to vector<8xf32>
    %264 = vector.shape_cast %263 : vector<8xf32> to vector<8x1xf32>
    %265 = vector.broadcast %264 : vector<8x1xf32> to vector<8x8xf32>
    %266 = arith.subf %262, %265 : vector<8x8xf32>
    %267 = math.exp %266 : vector<8x8xf32>
    %cst_87 = arith.constant dense<0.000000e+00> : vector<8xf32>
    %268 = vector.multi_reduction <add>, %267, %cst_87 [1] : vector<8x8xf32> to vector<8xf32>
    %269 = vector.shape_cast %268 : vector<8xf32> to vector<8x1xf32>
    %270 = tpu.reciprocal %269 {approx = true} : vector<8x1xf32> -> vector<8x1xf32>
    %271 = vector.broadcast %270 : vector<8x1xf32> to vector<8x8xf32>
    %272 = arith.mulf %267, %271 : vector<8x8xf32>
    %273 = arith.truncf %272 : vector<8x8xf32> to vector<8x8xbf16>
    %cst_88 = arith.constant dense<0.000000e+00> : vector<8x8xf32>
    %274 = tpu.matmul %273, %259, %cst_88 {dimension_numbers = #tpu.dot_dimension_numbers<[1], [0], [0], [1], [0, 0, 1, 1], [], []>} : vector<8x8xbf16>, vector<8x8xbf16>, vector<8x8xf32> -> vector<8x8xf32>
    %275 = vector.extract_strided_slice %212 {offsets = [8, 8], sizes = [8, 8], strides = [1, 1]} : vector<16x32xbf16> to vector<8x8xbf16>
    %276 = vector.extract_strided_slice %213 {offsets = [8, 8], sizes = [8, 8], strides = [1, 1]} : vector<16x64xbf16> to vector<8x8xbf16>
    %277 = vector.extract_strided_slice %213 {offsets = [8, 40], sizes = [8, 8], strides = [1, 1]} : vector<16x64xbf16> to vector<8x8xbf16>
    %cst_89 = arith.constant dense<0.000000e+00> : vector<8x8xf32>
    %278 = tpu.matmul %275, %276, %cst_89 {dimension_numbers = #tpu.dot_dimension_numbers<[1], [1], [0], [0], [0, 0, 1, 0], [], []>} : vector<8x8xbf16>, vector<8x8xbf16>, vector<8x8xf32> -> vector<8x8xf32>
    %cst_90 = arith.constant 0.353553385 : f32
    %279 = vector.broadcast %cst_90 : f32 to vector<8x8xf32>
    %280 = arith.mulf %278, %279 : vector<8x8xf32>
    %cst_91 = arith.constant dense<0xFF800000> : vector<8xf32>
    %281 = vector.multi_reduction <maximumf>, %280, %cst_91 [1] : vector<8x8xf32> to vector<8xf32>
    %282 = vector.shape_cast %281 : vector<8xf32> to vector<8x1xf32>
    %283 = vector.broadcast %282 : vector<8x1xf32> to vector<8x8xf32>
    %284 = arith.subf %280, %283 : vector<8x8xf32>
    %285 = math.exp %284 : vector<8x8xf32>
    %cst_92 = arith.constant dense<0.000000e+00> : vector<8xf32>
    %286 = vector.multi_reduction <add>, %285, %cst_92 [1] : vector<8x8xf32> to vector<8xf32>
    %287 = vector.shape_cast %286 : vector<8xf32> to vector<8x1xf32>
    %288 = tpu.reciprocal %287 {approx = true} : vector<8x1xf32> -> vector<8x1xf32>
    %289 = vector.broadcast %288 : vector<8x1xf32> to vector<8x8xf32>
    %290 = arith.mulf %285, %289 : vector<8x8xf32>
    %291 = arith.truncf %290 : vector<8x8xf32> to vector<8x8xbf16>
    %cst_93 = arith.constant dense<0.000000e+00> : vector<8x8xf32>
    %292 = tpu.matmul %291, %277, %cst_93 {dimension_numbers = #tpu.dot_dimension_numbers<[1], [0], [0], [1], [0, 0, 1, 1], [], []>} : vector<8x8xbf16>, vector<8x8xbf16>, vector<8x8xf32> -> vector<8x8xf32>
    %293 = tpu.concatenate %274, %292 in 0 : vector<8x8xf32>, vector<8x8xf32> -> vector<16x8xf32>
    %294 = arith.truncf %293 : vector<16x8xf32> to vector<16x8xbf16>
    %295 = vector.extract_strided_slice %197 {offsets = [8, 0], sizes = [8, 32], strides = [1, 1]} : vector<32x32xbf16> to vector<8x32xbf16>
    %cst_94 = arith.constant dense<0.000000e+00> : vector<16x32xf32>
    %296 = tpu.matmul %294, %295, %cst_94 {dimension_numbers = #tpu.dot_dimension_numbers<[1], [0], [0], [1], [0, 0, 1, 1], [], []>} : vector<16x8xbf16>, vector<8x32xbf16>, vector<16x32xf32> -> vector<16x32xf32>
    %297 = arith.addf %256, %296 : vector<16x32xf32>
    %298 = vector.extract_strided_slice %212 {offsets = [0, 16], sizes = [8, 8], strides = [1, 1]} : vector<16x32xbf16> to vector<8x8xbf16>
    %299 = vector.extract_strided_slice %213 {offsets = [0, 16], sizes = [8, 8], strides = [1, 1]} : vector<16x64xbf16> to vector<8x8xbf16>
    %300 = vector.extract_strided_slice %213 {offsets = [0, 48], sizes = [8, 8], strides = [1, 1]} : vector<16x64xbf16> to vector<8x8xbf16>
    %cst_95 = arith.constant dense<0.000000e+00> : vector<8x8xf32>
    %301 = tpu.matmul %298, %299, %cst_95 {dimension_numbers = #tpu.dot_dimension_numbers<[1], [1], [0], [0], [0, 0, 1, 0], [], []>} : vector<8x8xbf16>, vector<8x8xbf16>, vector<8x8xf32> -> vector<8x8xf32>
    %cst_96 = arith.constant 0.353553385 : f32
    %302 = vector.broadcast %cst_96 : f32 to vector<8x8xf32>
    %303 = arith.mulf %301, %302 : vector<8x8xf32>
    %cst_97 = arith.constant dense<0xFF800000> : vector<8xf32>
    %304 = vector.multi_reduction <maximumf>, %303, %cst_97 [1] : vector<8x8xf32> to vector<8xf32>
    %305 = vector.shape_cast %304 : vector<8xf32> to vector<8x1xf32>
    %306 = vector.broadcast %305 : vector<8x1xf32> to vector<8x8xf32>
    %307 = arith.subf %303, %306 : vector<8x8xf32>
    %308 = math.exp %307 : vector<8x8xf32>
    %cst_98 = arith.constant dense<0.000000e+00> : vector<8xf32>
    %309 = vector.multi_reduction <add>, %308, %cst_98 [1] : vector<8x8xf32> to vector<8xf32>
    %310 = vector.shape_cast %309 : vector<8xf32> to vector<8x1xf32>
    %311 = tpu.reciprocal %310 {approx = true} : vector<8x1xf32> -> vector<8x1xf32>
    %312 = vector.broadcast %311 : vector<8x1xf32> to vector<8x8xf32>
    %313 = arith.mulf %308, %312 : vector<8x8xf32>
    %314 = arith.truncf %313 : vector<8x8xf32> to vector<8x8xbf16>
    %cst_99 = arith.constant dense<0.000000e+00> : vector<8x8xf32>
    %315 = tpu.matmul %314, %300, %cst_99 {dimension_numbers = #tpu.dot_dimension_numbers<[1], [0], [0], [1], [0, 0, 1, 1], [], []>} : vector<8x8xbf16>, vector<8x8xbf16>, vector<8x8xf32> -> vector<8x8xf32>
    %316 = vector.extract_strided_slice %212 {offsets = [8, 16], sizes = [8, 8], strides = [1, 1]} : vector<16x32xbf16> to vector<8x8xbf16>
    %317 = vector.extract_strided_slice %213 {offsets = [8, 16], sizes = [8, 8], strides = [1, 1]} : vector<16x64xbf16> to vector<8x8xbf16>
    %318 = vector.extract_strided_slice %213 {offsets = [8, 48], sizes = [8, 8], strides = [1, 1]} : vector<16x64xbf16> to vector<8x8xbf16>
    %cst_100 = arith.constant dense<0.000000e+00> : vector<8x8xf32>
    %319 = tpu.matmul %316, %317, %cst_100 {dimension_numbers = #tpu.dot_dimension_numbers<[1], [1], [0], [0], [0, 0, 1, 0], [], []>} : vector<8x8xbf16>, vector<8x8xbf16>, vector<8x8xf32> -> vector<8x8xf32>
    %cst_101 = arith.constant 0.353553385 : f32
    %320 = vector.broadcast %cst_101 : f32 to vector<8x8xf32>
    %321 = arith.mulf %319, %320 : vector<8x8xf32>
    %cst_102 = arith.constant dense<0xFF800000> : vector<8xf32>
    %322 = vector.multi_reduction <maximumf>, %321, %cst_102 [1] : vector<8x8xf32> to vector<8xf32>
    %323 = vector.shape_cast %322 : vector<8xf32> to vector<8x1xf32>
    %324 = vector.broadcast %323 : vector<8x1xf32> to vector<8x8xf32>
    %325 = arith.subf %321, %324 : vector<8x8xf32>
    %326 = math.exp %325 : vector<8x8xf32>
    %cst_103 = arith.constant dense<0.000000e+00> : vector<8xf32>
    %327 = vector.multi_reduction <add>, %326, %cst_103 [1] : vector<8x8xf32> to vector<8xf32>
    %328 = vector.shape_cast %327 : vector<8xf32> to vector<8x1xf32>
    %329 = tpu.reciprocal %328 {approx = true} : vector<8x1xf32> -> vector<8x1xf32>
    %330 = vector.broadcast %329 : vector<8x1xf32> to vector<8x8xf32>
    %331 = arith.mulf %326, %330 : vector<8x8xf32>
    %332 = arith.truncf %331 : vector<8x8xf32> to vector<8x8xbf16>
    %cst_104 = arith.constant dense<0.000000e+00> : vector<8x8xf32>
    %333 = tpu.matmul %332, %318, %cst_104 {dimension_numbers = #tpu.dot_dimension_numbers<[1], [0], [0], [1], [0, 0, 1, 1], [], []>} : vector<8x8xbf16>, vector<8x8xbf16>, vector<8x8xf32> -> vector<8x8xf32>
    %334 = tpu.concatenate %315, %333 in 0 : vector<8x8xf32>, vector<8x8xf32> -> vector<16x8xf32>
    %335 = arith.truncf %334 : vector<16x8xf32> to vector<16x8xbf16>
    %336 = vector.extract_strided_slice %197 {offsets = [16, 0], sizes = [8, 32], strides = [1, 1]} : vector<32x32xbf16> to vector<8x32xbf16>
    %cst_105 = arith.constant dense<0.000000e+00> : vector<16x32xf32>
    %337 = tpu.matmul %335, %336, %cst_105 {dimension_numbers = #tpu.dot_dimension_numbers<[1], [0], [0], [1], [0, 0, 1, 1], [], []>} : vector<16x8xbf16>, vector<8x32xbf16>, vector<16x32xf32> -> vector<16x32xf32>
    %338 = arith.addf %297, %337 : vector<16x32xf32>
    %339 = vector.extract_strided_slice %212 {offsets = [0, 24], sizes = [8, 8], strides = [1, 1]} : vector<16x32xbf16> to vector<8x8xbf16>
    %340 = vector.extract_strided_slice %213 {offsets = [0, 24], sizes = [8, 8], strides = [1, 1]} : vector<16x64xbf16> to vector<8x8xbf16>
    %341 = vector.extract_strided_slice %213 {offsets = [0, 56], sizes = [8, 8], strides = [1, 1]} : vector<16x64xbf16> to vector<8x8xbf16>
    %cst_106 = arith.constant dense<0.000000e+00> : vector<8x8xf32>
    %342 = tpu.matmul %339, %340, %cst_106 {dimension_numbers = #tpu.dot_dimension_numbers<[1], [1], [0], [0], [0, 0, 1, 0], [], []>} : vector<8x8xbf16>, vector<8x8xbf16>, vector<8x8xf32> -> vector<8x8xf32>
    %cst_107 = arith.constant 0.353553385 : f32
    %343 = vector.broadcast %cst_107 : f32 to vector<8x8xf32>
    %344 = arith.mulf %342, %343 : vector<8x8xf32>
    %cst_108 = arith.constant dense<0xFF800000> : vector<8xf32>
    %345 = vector.multi_reduction <maximumf>, %344, %cst_108 [1] : vector<8x8xf32> to vector<8xf32>
    %346 = vector.shape_cast %345 : vector<8xf32> to vector<8x1xf32>
    %347 = vector.broadcast %346 : vector<8x1xf32> to vector<8x8xf32>
    %348 = arith.subf %344, %347 : vector<8x8xf32>
    %349 = math.exp %348 : vector<8x8xf32>
    %cst_109 = arith.constant dense<0.000000e+00> : vector<8xf32>
    %350 = vector.multi_reduction <add>, %349, %cst_109 [1] : vector<8x8xf32> to vector<8xf32>
    %351 = vector.shape_cast %350 : vector<8xf32> to vector<8x1xf32>
    %352 = tpu.reciprocal %351 {approx = true} : vector<8x1xf32> -> vector<8x1xf32>
    %353 = vector.broadcast %352 : vector<8x1xf32> to vector<8x8xf32>
    %354 = arith.mulf %349, %353 : vector<8x8xf32>
    %355 = arith.truncf %354 : vector<8x8xf32> to vector<8x8xbf16>
    %cst_110 = arith.constant dense<0.000000e+00> : vector<8x8xf32>
    %356 = tpu.matmul %355, %341, %cst_110 {dimension_numbers = #tpu.dot_dimension_numbers<[1], [0], [0], [1], [0, 0, 1, 1], [], []>} : vector<8x8xbf16>, vector<8x8xbf16>, vector<8x8xf32> -> vector<8x8xf32>
    %357 = vector.extract_strided_slice %212 {offsets = [8, 24], sizes = [8, 8], strides = [1, 1]} : vector<16x32xbf16> to vector<8x8xbf16>
    %358 = vector.extract_strided_slice %213 {offsets = [8, 24], sizes = [8, 8], strides = [1, 1]} : vector<16x64xbf16> to vector<8x8xbf16>
    %359 = vector.extract_strided_slice %213 {offsets = [8, 56], sizes = [8, 8], strides = [1, 1]} : vector<16x64xbf16> to vector<8x8xbf16>
    %cst_111 = arith.constant dense<0.000000e+00> : vector<8x8xf32>
    %360 = tpu.matmul %357, %358, %cst_111 {dimension_numbers = #tpu.dot_dimension_numbers<[1], [1], [0], [0], [0, 0, 1, 0], [], []>} : vector<8x8xbf16>, vector<8x8xbf16>, vector<8x8xf32> -> vector<8x8xf32>
    %cst_112 = arith.constant 0.353553385 : f32
    %361 = vector.broadcast %cst_112 : f32 to vector<8x8xf32>
    %362 = arith.mulf %360, %361 : vector<8x8xf32>
    %cst_113 = arith.constant dense<0xFF800000> : vector<8xf32>
    %363 = vector.multi_reduction <maximumf>, %362, %cst_113 [1] : vector<8x8xf32> to vector<8xf32>
    %364 = vector.shape_cast %363 : vector<8xf32> to vector<8x1xf32>
    %365 = vector.broadcast %364 : vector<8x1xf32> to vector<8x8xf32>
    %366 = arith.subf %362, %365 : vector<8x8xf32>
    %367 = math.exp %366 : vector<8x8xf32>
    %cst_114 = arith.constant dense<0.000000e+00> : vector<8xf32>
    %368 = vector.multi_reduction <add>, %367, %cst_114 [1] : vector<8x8xf32> to vector<8xf32>
    %369 = vector.shape_cast %368 : vector<8xf32> to vector<8x1xf32>
    %370 = tpu.reciprocal %369 {approx = true} : vector<8x1xf32> -> vector<8x1xf32>
    %371 = vector.broadcast %370 : vector<8x1xf32> to vector<8x8xf32>
    %372 = arith.mulf %367, %371 : vector<8x8xf32>
    %373 = arith.truncf %372 : vector<8x8xf32> to vector<8x8xbf16>
    %cst_115 = arith.constant dense<0.000000e+00> : vector<8x8xf32>
    %374 = tpu.matmul %373, %359, %cst_115 {dimension_numbers = #tpu.dot_dimension_numbers<[1], [0], [0], [1], [0, 0, 1, 1], [], []>} : vector<8x8xbf16>, vector<8x8xbf16>, vector<8x8xf32> -> vector<8x8xf32>
    %375 = tpu.concatenate %356, %374 in 0 : vector<8x8xf32>, vector<8x8xf32> -> vector<16x8xf32>
    %376 = arith.truncf %375 : vector<16x8xf32> to vector<16x8xbf16>
    %377 = vector.extract_strided_slice %197 {offsets = [24, 0], sizes = [8, 32], strides = [1, 1]} : vector<32x32xbf16> to vector<8x32xbf16>
    %cst_116 = arith.constant dense<0.000000e+00> : vector<16x32xf32>
    %378 = tpu.matmul %376, %377, %cst_116 {dimension_numbers = #tpu.dot_dimension_numbers<[1], [0], [0], [1], [0, 0, 1, 1], [], []>} : vector<16x8xbf16>, vector<8x32xbf16>, vector<16x32xf32> -> vector<16x32xf32>
    %379 = arith.addf %338, %378 : vector<16x32xf32>
    %c4 = arith.constant 4 : index
    %c0_117 = arith.constant 0 : index
    %c0_118 = arith.constant 0 : index
    %380 = vector.load %arg2[%c4, %c0_117, %c0_118] : memref<10x32x96xbf16, #tpu.memory_space<vmem>>, vector<1x32x96xbf16>
    %381 = vector.shape_cast %380 : vector<1x32x96xbf16> to vector<32x96xbf16>
    %c4_119 = arith.constant 4 : index
    %c0_120 = arith.constant 0 : index
    %c0_121 = arith.constant 0 : index
    %382 = vector.load %arg3[%c4_119, %c0_120, %c0_121] : memref<10x1x96xf32, #tpu.memory_space<vmem>>, vector<1x1x96xf32>
    %383 = vector.shape_cast %382 : vector<1x1x96xf32> to vector<1x96xf32>
    %c4_122 = arith.constant 4 : index
    %c0_123 = arith.constant 0 : index
    %c0_124 = arith.constant 0 : index
    %384 = vector.load %arg4[%c4_122, %c0_123, %c0_124] : memref<10x32x32xbf16, #tpu.memory_space<vmem>>, vector<1x32x32xbf16>
    %385 = vector.shape_cast %384 : vector<1x32x32xbf16> to vector<32x32xbf16>
    %c4_125 = arith.constant 4 : index
    %c0_126 = arith.constant 0 : index
    %c0_127 = arith.constant 0 : index
    %386 = vector.load %arg5[%c4_125, %c0_126, %c0_127] : memref<10x1x32xf32, #tpu.memory_space<vmem>>, vector<1x1x32xf32>
    %387 = vector.shape_cast %386 : vector<1x1x32xf32> to vector<1x32xf32>
    %388 = arith.truncf %191 : vector<16x32xf32> to vector<16x32xbf16>
    %389 = vector.extract_strided_slice %381 {offsets = [0, 32], sizes = [32, 64], strides = [1, 1]} : vector<32x96xbf16> to vector<32x64xbf16>
    %cst_128 = arith.constant dense<0.000000e+00> : vector<16x64xf32>
    %390 = tpu.matmul %388, %389, %cst_128 {dimension_numbers = #tpu.dot_dimension_numbers<[1], [0], [0], [1], [0, 0, 1, 1], [], []>} : vector<16x32xbf16>, vector<32x64xbf16>, vector<16x64xf32> -> vector<16x64xf32>
    %391 = vector.extract_strided_slice %383 {offsets = [0, 32], sizes = [1, 64], strides = [1, 1]} : vector<1x96xf32> to vector<1x64xf32>
    %392 = vector.broadcast %391 : vector<1x64xf32> to vector<16x64xf32>
    %393 = arith.addf %390, %392 : vector<16x64xf32>
    %394 = vector.extract_strided_slice %383 {offsets = [0, 0], sizes = [1, 32], strides = [1, 1]} : vector<1x96xf32> to vector<1x32xf32>
    %395 = vector.shape_cast %394 : vector<1x32xf32> to vector<1x32xf32>
    %396 = vector.broadcast %395 : vector<1x32xf32> to vector<2x32xf32>
    %397 = arith.truncf %396 : vector<2x32xf32> to vector<2x32xbf16>
    %398 = arith.truncf %393 : vector<16x64xf32> to vector<16x64xbf16>
    %399 = vector.shape_cast %387 : vector<1x32xf32> to vector<1x32xf32>
    %400 = vector.broadcast %399 : vector<1x32xf32> to vector<2x32xf32>
    %401 = vector.extract_strided_slice %397 {offsets = [0, 0], sizes = [1, 8], strides = [1, 1]} : vector<2x32xbf16> to vector<1x8xbf16>
    %402 = vector.extract_strided_slice %398 {offsets = [0, 0], sizes = [8, 8], strides = [1, 1]} : vector<16x64xbf16> to vector<8x8xbf16>
    %403 = vector.extract_strided_slice %398 {offsets = [0, 32], sizes = [8, 8], strides = [1, 1]} : vector<16x64xbf16> to vector<8x8xbf16>
    %cst_129 = arith.constant dense<0.000000e+00> : vector<1x8xf32>
    %404 = tpu.matmul %401, %402, %cst_129 {dimension_numbers = #tpu.dot_dimension_numbers<[1], [1], [0], [0], [0, 0, 1, 0], [], []>} : vector<1x8xbf16>, vector<8x8xbf16>, vector<1x8xf32> -> vector<1x8xf32>
    %cst_130 = arith.constant 0.353553385 : f32
    %405 = vector.broadcast %cst_130 : f32 to vector<1x8xf32>
    %406 = arith.mulf %404, %405 : vector<1x8xf32>
    %cst_131 = arith.constant dense<0xFF800000> : vector<1xf32>
    %407 = vector.multi_reduction <maximumf>, %406, %cst_131 [1] : vector<1x8xf32> to vector<1xf32>
    %408 = vector.shape_cast %407 : vector<1xf32> to vector<1x1xf32>
    %409 = vector.broadcast %408 : vector<1x1xf32> to vector<1x8xf32>
    %410 = arith.subf %406, %409 : vector<1x8xf32>
    %411 = math.exp %410 : vector<1x8xf32>
    %cst_132 = arith.constant dense<0.000000e+00> : vector<1xf32>
    %412 = vector.multi_reduction <add>, %411, %cst_132 [1] : vector<1x8xf32> to vector<1xf32>
    %413 = vector.shape_cast %412 : vector<1xf32> to vector<1x1xf32>
    %414 = tpu.reciprocal %413 {approx = true} : vector<1x1xf32> -> vector<1x1xf32>
    %415 = vector.broadcast %414 : vector<1x1xf32> to vector<1x8xf32>
    %416 = arith.mulf %411, %415 : vector<1x8xf32>
    %417 = arith.truncf %416 : vector<1x8xf32> to vector<1x8xbf16>
    %cst_133 = arith.constant dense<0.000000e+00> : vector<1x8xf32>
    %418 = tpu.matmul %417, %403, %cst_133 {dimension_numbers = #tpu.dot_dimension_numbers<[1], [0], [0], [1], [0, 0, 1, 1], [], []>} : vector<1x8xbf16>, vector<8x8xbf16>, vector<1x8xf32> -> vector<1x8xf32>
    %419 = vector.extract_strided_slice %397 {offsets = [1, 0], sizes = [1, 8], strides = [1, 1]} : vector<2x32xbf16> to vector<1x8xbf16>
    %420 = vector.extract_strided_slice %398 {offsets = [8, 0], sizes = [8, 8], strides = [1, 1]} : vector<16x64xbf16> to vector<8x8xbf16>
    %421 = vector.extract_strided_slice %398 {offsets = [8, 32], sizes = [8, 8], strides = [1, 1]} : vector<16x64xbf16> to vector<8x8xbf16>
    %cst_134 = arith.constant dense<0.000000e+00> : vector<1x8xf32>
    %422 = tpu.matmul %419, %420, %cst_134 {dimension_numbers = #tpu.dot_dimension_numbers<[1], [1], [0], [0], [0, 0, 1, 0], [], []>} : vector<1x8xbf16>, vector<8x8xbf16>, vector<1x8xf32> -> vector<1x8xf32>
    %cst_135 = arith.constant 0.353553385 : f32
    %423 = vector.broadcast %cst_135 : f32 to vector<1x8xf32>
    %424 = arith.mulf %422, %423 : vector<1x8xf32>
    %cst_136 = arith.constant dense<0xFF800000> : vector<1xf32>
    %425 = vector.multi_reduction <maximumf>, %424, %cst_136 [1] : vector<1x8xf32> to vector<1xf32>
    %426 = vector.shape_cast %425 : vector<1xf32> to vector<1x1xf32>
    %427 = vector.broadcast %426 : vector<1x1xf32> to vector<1x8xf32>
    %428 = arith.subf %424, %427 : vector<1x8xf32>
    %429 = math.exp %428 : vector<1x8xf32>
    %cst_137 = arith.constant dense<0.000000e+00> : vector<1xf32>
    %430 = vector.multi_reduction <add>, %429, %cst_137 [1] : vector<1x8xf32> to vector<1xf32>
    %431 = vector.shape_cast %430 : vector<1xf32> to vector<1x1xf32>
    %432 = tpu.reciprocal %431 {approx = true} : vector<1x1xf32> -> vector<1x1xf32>
    %433 = vector.broadcast %432 : vector<1x1xf32> to vector<1x8xf32>
    %434 = arith.mulf %429, %433 : vector<1x8xf32>
    %435 = arith.truncf %434 : vector<1x8xf32> to vector<1x8xbf16>
    %cst_138 = arith.constant dense<0.000000e+00> : vector<1x8xf32>
    %436 = tpu.matmul %435, %421, %cst_138 {dimension_numbers = #tpu.dot_dimension_numbers<[1], [0], [0], [1], [0, 0, 1, 1], [], []>} : vector<1x8xbf16>, vector<8x8xbf16>, vector<1x8xf32> -> vector<1x8xf32>
    %437 = tpu.concatenate %418, %436 in 0 : vector<1x8xf32>, vector<1x8xf32> -> vector<2x8xf32>
    %438 = arith.truncf %437 : vector<2x8xf32> to vector<2x8xbf16>
    %439 = vector.extract_strided_slice %385 {offsets = [0, 0], sizes = [8, 32], strides = [1, 1]} : vector<32x32xbf16> to vector<8x32xbf16>
    %cst_139 = arith.constant dense<0.000000e+00> : vector<2x32xf32>
    %440 = tpu.matmul %438, %439, %cst_139 {dimension_numbers = #tpu.dot_dimension_numbers<[1], [0], [0], [1], [0, 0, 1, 1], [], []>} : vector<2x8xbf16>, vector<8x32xbf16>, vector<2x32xf32> -> vector<2x32xf32>
    %441 = arith.addf %400, %440 : vector<2x32xf32>
    %442 = vector.extract_strided_slice %397 {offsets = [0, 8], sizes = [1, 8], strides = [1, 1]} : vector<2x32xbf16> to vector<1x8xbf16>
    %443 = vector.extract_strided_slice %398 {offsets = [0, 8], sizes = [8, 8], strides = [1, 1]} : vector<16x64xbf16> to vector<8x8xbf16>
    %444 = vector.extract_strided_slice %398 {offsets = [0, 40], sizes = [8, 8], strides = [1, 1]} : vector<16x64xbf16> to vector<8x8xbf16>
    %cst_140 = arith.constant dense<0.000000e+00> : vector<1x8xf32>
    %445 = tpu.matmul %442, %443, %cst_140 {dimension_numbers = #tpu.dot_dimension_numbers<[1], [1], [0], [0], [0, 0, 1, 0], [], []>} : vector<1x8xbf16>, vector<8x8xbf16>, vector<1x8xf32> -> vector<1x8xf32>
    %cst_141 = arith.constant 0.353553385 : f32
    %446 = vector.broadcast %cst_141 : f32 to vector<1x8xf32>
    %447 = arith.mulf %445, %446 : vector<1x8xf32>
    %cst_142 = arith.constant dense<0xFF800000> : vector<1xf32>
    %448 = vector.multi_reduction <maximumf>, %447, %cst_142 [1] : vector<1x8xf32> to vector<1xf32>
    %449 = vector.shape_cast %448 : vector<1xf32> to vector<1x1xf32>
    %450 = vector.broadcast %449 : vector<1x1xf32> to vector<1x8xf32>
    %451 = arith.subf %447, %450 : vector<1x8xf32>
    %452 = math.exp %451 : vector<1x8xf32>
    %cst_143 = arith.constant dense<0.000000e+00> : vector<1xf32>
    %453 = vector.multi_reduction <add>, %452, %cst_143 [1] : vector<1x8xf32> to vector<1xf32>
    %454 = vector.shape_cast %453 : vector<1xf32> to vector<1x1xf32>
    %455 = tpu.reciprocal %454 {approx = true} : vector<1x1xf32> -> vector<1x1xf32>
    %456 = vector.broadcast %455 : vector<1x1xf32> to vector<1x8xf32>
    %457 = arith.mulf %452, %456 : vector<1x8xf32>
    %458 = arith.truncf %457 : vector<1x8xf32> to vector<1x8xbf16>
    %cst_144 = arith.constant dense<0.000000e+00> : vector<1x8xf32>
    %459 = tpu.matmul %458, %444, %cst_144 {dimension_numbers = #tpu.dot_dimension_numbers<[1], [0], [0], [1], [0, 0, 1, 1], [], []>} : vector<1x8xbf16>, vector<8x8xbf16>, vector<1x8xf32> -> vector<1x8xf32>
    %460 = vector.extract_strided_slice %397 {offsets = [1, 8], sizes = [1, 8], strides = [1, 1]} : vector<2x32xbf16> to vector<1x8xbf16>
    %461 = vector.extract_strided_slice %398 {offsets = [8, 8], sizes = [8, 8], strides = [1, 1]} : vector<16x64xbf16> to vector<8x8xbf16>
    %462 = vector.extract_strided_slice %398 {offsets = [8, 40], sizes = [8, 8], strides = [1, 1]} : vector<16x64xbf16> to vector<8x8xbf16>
    %cst_145 = arith.constant dense<0.000000e+00> : vector<1x8xf32>
    %463 = tpu.matmul %460, %461, %cst_145 {dimension_numbers = #tpu.dot_dimension_numbers<[1], [1], [0], [0], [0, 0, 1, 0], [], []>} : vector<1x8xbf16>, vector<8x8xbf16>, vector<1x8xf32> -> vector<1x8xf32>
    %cst_146 = arith.constant 0.353553385 : f32
    %464 = vector.broadcast %cst_146 : f32 to vector<1x8xf32>
    %465 = arith.mulf %463, %464 : vector<1x8xf32>
    %cst_147 = arith.constant dense<0xFF800000> : vector<1xf32>
    %466 = vector.multi_reduction <maximumf>, %465, %cst_147 [1] : vector<1x8xf32> to vector<1xf32>
    %467 = vector.shape_cast %466 : vector<1xf32> to vector<1x1xf32>
    %468 = vector.broadcast %467 : vector<1x1xf32> to vector<1x8xf32>
    %469 = arith.subf %465, %468 : vector<1x8xf32>
    %470 = math.exp %469 : vector<1x8xf32>
    %cst_148 = arith.constant dense<0.000000e+00> : vector<1xf32>
    %471 = vector.multi_reduction <add>, %470, %cst_148 [1] : vector<1x8xf32> to vector<1xf32>
    %472 = vector.shape_cast %471 : vector<1xf32> to vector<1x1xf32>
    %473 = tpu.reciprocal %472 {approx = true} : vector<1x1xf32> -> vector<1x1xf32>
    %474 = vector.broadcast %473 : vector<1x1xf32> to vector<1x8xf32>
    %475 = arith.mulf %470, %474 : vector<1x8xf32>
    %476 = arith.truncf %475 : vector<1x8xf32> to vector<1x8xbf16>
    %cst_149 = arith.constant dense<0.000000e+00> : vector<1x8xf32>
    %477 = tpu.matmul %476, %462, %cst_149 {dimension_numbers = #tpu.dot_dimension_numbers<[1], [0], [0], [1], [0, 0, 1, 1], [], []>} : vector<1x8xbf16>, vector<8x8xbf16>, vector<1x8xf32> -> vector<1x8xf32>
    %478 = tpu.concatenate %459, %477 in 0 : vector<1x8xf32>, vector<1x8xf32> -> vector<2x8xf32>
    %479 = arith.truncf %478 : vector<2x8xf32> to vector<2x8xbf16>
    %480 = vector.extract_strided_slice %385 {offsets = [8, 0], sizes = [8, 32], strides = [1, 1]} : vector<32x32xbf16> to vector<8x32xbf16>
    %cst_150 = arith.constant dense<0.000000e+00> : vector<2x32xf32>
    %481 = tpu.matmul %479, %480, %cst_150 {dimension_numbers = #tpu.dot_dimension_numbers<[1], [0], [0], [1], [0, 0, 1, 1], [], []>} : vector<2x8xbf16>, vector<8x32xbf16>, vector<2x32xf32> -> vector<2x32xf32>
    %482 = arith.addf %441, %481 : vector<2x32xf32>
    %483 = vector.extract_strided_slice %397 {offsets = [0, 16], sizes = [1, 8], strides = [1, 1]} : vector<2x32xbf16> to vector<1x8xbf16>
    %484 = vector.extract_strided_slice %398 {offsets = [0, 16], sizes = [8, 8], strides = [1, 1]} : vector<16x64xbf16> to vector<8x8xbf16>
    %485 = vector.extract_strided_slice %398 {offsets = [0, 48], sizes = [8, 8], strides = [1, 1]} : vector<16x64xbf16> to vector<8x8xbf16>
    %cst_151 = arith.constant dense<0.000000e+00> : vector<1x8xf32>
    %486 = tpu.matmul %483, %484, %cst_151 {dimension_numbers = #tpu.dot_dimension_numbers<[1], [1], [0], [0], [0, 0, 1, 0], [], []>} : vector<1x8xbf16>, vector<8x8xbf16>, vector<1x8xf32> -> vector<1x8xf32>
    %cst_152 = arith.constant 0.353553385 : f32
    %487 = vector.broadcast %cst_152 : f32 to vector<1x8xf32>
    %488 = arith.mulf %486, %487 : vector<1x8xf32>
    %cst_153 = arith.constant dense<0xFF800000> : vector<1xf32>
    %489 = vector.multi_reduction <maximumf>, %488, %cst_153 [1] : vector<1x8xf32> to vector<1xf32>
    %490 = vector.shape_cast %489 : vector<1xf32> to vector<1x1xf32>
    %491 = vector.broadcast %490 : vector<1x1xf32> to vector<1x8xf32>
    %492 = arith.subf %488, %491 : vector<1x8xf32>
    %493 = math.exp %492 : vector<1x8xf32>
    %cst_154 = arith.constant dense<0.000000e+00> : vector<1xf32>
    %494 = vector.multi_reduction <add>, %493, %cst_154 [1] : vector<1x8xf32> to vector<1xf32>
    %495 = vector.shape_cast %494 : vector<1xf32> to vector<1x1xf32>
    %496 = tpu.reciprocal %495 {approx = true} : vector<1x1xf32> -> vector<1x1xf32>
    %497 = vector.broadcast %496 : vector<1x1xf32> to vector<1x8xf32>
    %498 = arith.mulf %493, %497 : vector<1x8xf32>
    %499 = arith.truncf %498 : vector<1x8xf32> to vector<1x8xbf16>
    %cst_155 = arith.constant dense<0.000000e+00> : vector<1x8xf32>
    %500 = tpu.matmul %499, %485, %cst_155 {dimension_numbers = #tpu.dot_dimension_numbers<[1], [0], [0], [1], [0, 0, 1, 1], [], []>} : vector<1x8xbf16>, vector<8x8xbf16>, vector<1x8xf32> -> vector<1x8xf32>
    %501 = vector.extract_strided_slice %397 {offsets = [1, 16], sizes = [1, 8], strides = [1, 1]} : vector<2x32xbf16> to vector<1x8xbf16>
    %502 = vector.extract_strided_slice %398 {offsets = [8, 16], sizes = [8, 8], strides = [1, 1]} : vector<16x64xbf16> to vector<8x8xbf16>
    %503 = vector.extract_strided_slice %398 {offsets = [8, 48], sizes = [8, 8], strides = [1, 1]} : vector<16x64xbf16> to vector<8x8xbf16>
    %cst_156 = arith.constant dense<0.000000e+00> : vector<1x8xf32>
    %504 = tpu.matmul %501, %502, %cst_156 {dimension_numbers = #tpu.dot_dimension_numbers<[1], [1], [0], [0], [0, 0, 1, 0], [], []>} : vector<1x8xbf16>, vector<8x8xbf16>, vector<1x8xf32> -> vector<1x8xf32>
    %cst_157 = arith.constant 0.353553385 : f32
    %505 = vector.broadcast %cst_157 : f32 to vector<1x8xf32>
    %506 = arith.mulf %504, %505 : vector<1x8xf32>
    %cst_158 = arith.constant dense<0xFF800000> : vector<1xf32>
    %507 = vector.multi_reduction <maximumf>, %506, %cst_158 [1] : vector<1x8xf32> to vector<1xf32>
    %508 = vector.shape_cast %507 : vector<1xf32> to vector<1x1xf32>
    %509 = vector.broadcast %508 : vector<1x1xf32> to vector<1x8xf32>
    %510 = arith.subf %506, %509 : vector<1x8xf32>
    %511 = math.exp %510 : vector<1x8xf32>
    %cst_159 = arith.constant dense<0.000000e+00> : vector<1xf32>
    %512 = vector.multi_reduction <add>, %511, %cst_159 [1] : vector<1x8xf32> to vector<1xf32>
    %513 = vector.shape_cast %512 : vector<1xf32> to vector<1x1xf32>
    %514 = tpu.reciprocal %513 {approx = true} : vector<1x1xf32> -> vector<1x1xf32>
    %515 = vector.broadcast %514 : vector<1x1xf32> to vector<1x8xf32>
    %516 = arith.mulf %511, %515 : vector<1x8xf32>
    %517 = arith.truncf %516 : vector<1x8xf32> to vector<1x8xbf16>
    %cst_160 = arith.constant dense<0.000000e+00> : vector<1x8xf32>
    %518 = tpu.matmul %517, %503, %cst_160 {dimension_numbers = #tpu.dot_dimension_numbers<[1], [0], [0], [1], [0, 0, 1, 1], [], []>} : vector<1x8xbf16>, vector<8x8xbf16>, vector<1x8xf32> -> vector<1x8xf32>
    %519 = tpu.concatenate %500, %518 in 0 : vector<1x8xf32>, vector<1x8xf32> -> vector<2x8xf32>
    %520 = arith.truncf %519 : vector<2x8xf32> to vector<2x8xbf16>
    %521 = vector.extract_strided_slice %385 {offsets = [16, 0], sizes = [8, 32], strides = [1, 1]} : vector<32x32xbf16> to vector<8x32xbf16>
    %cst_161 = arith.constant dense<0.000000e+00> : vector<2x32xf32>
    %522 = tpu.matmul %520, %521, %cst_161 {dimension_numbers = #tpu.dot_dimension_numbers<[1], [0], [0], [1], [0, 0, 1, 1], [], []>} : vector<2x8xbf16>, vector<8x32xbf16>, vector<2x32xf32> -> vector<2x32xf32>
    %523 = arith.addf %482, %522 : vector<2x32xf32>
    %524 = vector.extract_strided_slice %397 {offsets = [0, 24], sizes = [1, 8], strides = [1, 1]} : vector<2x32xbf16> to vector<1x8xbf16>
    %525 = vector.extract_strided_slice %398 {offsets = [0, 24], sizes = [8, 8], strides = [1, 1]} : vector<16x64xbf16> to vector<8x8xbf16>
    %526 = vector.extract_strided_slice %398 {offsets = [0, 56], sizes = [8, 8], strides = [1, 1]} : vector<16x64xbf16> to vector<8x8xbf16>
    %cst_162 = arith.constant dense<0.000000e+00> : vector<1x8xf32>
    %527 = tpu.matmul %524, %525, %cst_162 {dimension_numbers = #tpu.dot_dimension_numbers<[1], [1], [0], [0], [0, 0, 1, 0], [], []>} : vector<1x8xbf16>, vector<8x8xbf16>, vector<1x8xf32> -> vector<1x8xf32>
    %cst_163 = arith.constant 0.353553385 : f32
    %528 = vector.broadcast %cst_163 : f32 to vector<1x8xf32>
    %529 = arith.mulf %527, %528 : vector<1x8xf32>
    %cst_164 = arith.constant dense<0xFF800000> : vector<1xf32>
    %530 = vector.multi_reduction <maximumf>, %529, %cst_164 [1] : vector<1x8xf32> to vector<1xf32>
    %531 = vector.shape_cast %530 : vector<1xf32> to vector<1x1xf32>
    %532 = vector.broadcast %531 : vector<1x1xf32> to vector<1x8xf32>
    %533 = arith.subf %529, %532 : vector<1x8xf32>
    %534 = math.exp %533 : vector<1x8xf32>
    %cst_165 = arith.constant dense<0.000000e+00> : vector<1xf32>
    %535 = vector.multi_reduction <add>, %534, %cst_165 [1] : vector<1x8xf32> to vector<1xf32>
    %536 = vector.shape_cast %535 : vector<1xf32> to vector<1x1xf32>
    %537 = tpu.reciprocal %536 {approx = true} : vector<1x1xf32> -> vector<1x1xf32>
    %538 = vector.broadcast %537 : vector<1x1xf32> to vector<1x8xf32>
    %539 = arith.mulf %534, %538 : vector<1x8xf32>
    %540 = arith.truncf %539 : vector<1x8xf32> to vector<1x8xbf16>
    %cst_166 = arith.constant dense<0.000000e+00> : vector<1x8xf32>
    %541 = tpu.matmul %540, %526, %cst_166 {dimension_numbers = #tpu.dot_dimension_numbers<[1], [0], [0], [1], [0, 0, 1, 1], [], []>} : vector<1x8xbf16>, vector<8x8xbf16>, vector<1x8xf32> -> vector<1x8xf32>
    %542 = vector.extract_strided_slice %397 {offsets = [1, 24], sizes = [1, 8], strides = [1, 1]} : vector<2x32xbf16> to vector<1x8xbf16>
    %543 = vector.extract_strided_slice %398 {offsets = [8, 24], sizes = [8, 8], strides = [1, 1]} : vector<16x64xbf16> to vector<8x8xbf16>
    %544 = vector.extract_strided_slice %398 {offsets = [8, 56], sizes = [8, 8], strides = [1, 1]} : vector<16x64xbf16> to vector<8x8xbf16>
    %cst_167 = arith.constant dense<0.000000e+00> : vector<1x8xf32>
    %545 = tpu.matmul %542, %543, %cst_167 {dimension_numbers = #tpu.dot_dimension_numbers<[1], [1], [0], [0], [0, 0, 1, 0], [], []>} : vector<1x8xbf16>, vector<8x8xbf16>, vector<1x8xf32> -> vector<1x8xf32>
    %cst_168 = arith.constant 0.353553385 : f32
    %546 = vector.broadcast %cst_168 : f32 to vector<1x8xf32>
    %547 = arith.mulf %545, %546 : vector<1x8xf32>
    %cst_169 = arith.constant dense<0xFF800000> : vector<1xf32>
    %548 = vector.multi_reduction <maximumf>, %547, %cst_169 [1] : vector<1x8xf32> to vector<1xf32>
    %549 = vector.shape_cast %548 : vector<1xf32> to vector<1x1xf32>
    %550 = vector.broadcast %549 : vector<1x1xf32> to vector<1x8xf32>
    %551 = arith.subf %547, %550 : vector<1x8xf32>
    %552 = math.exp %551 : vector<1x8xf32>
    %cst_170 = arith.constant dense<0.000000e+00> : vector<1xf32>
    %553 = vector.multi_reduction <add>, %552, %cst_170 [1] : vector<1x8xf32> to vector<1xf32>
    %554 = vector.shape_cast %553 : vector<1xf32> to vector<1x1xf32>
    %555 = tpu.reciprocal %554 {approx = true} : vector<1x1xf32> -> vector<1x1xf32>
    %556 = vector.broadcast %555 : vector<1x1xf32> to vector<1x8xf32>
    %557 = arith.mulf %552, %556 : vector<1x8xf32>
    %558 = arith.truncf %557 : vector<1x8xf32> to vector<1x8xbf16>
    %cst_171 = arith.constant dense<0.000000e+00> : vector<1x8xf32>
    %559 = tpu.matmul %558, %544, %cst_171 {dimension_numbers = #tpu.dot_dimension_numbers<[1], [0], [0], [1], [0, 0, 1, 1], [], []>} : vector<1x8xbf16>, vector<8x8xbf16>, vector<1x8xf32> -> vector<1x8xf32>
    %560 = tpu.concatenate %541, %559 in 0 : vector<1x8xf32>, vector<1x8xf32> -> vector<2x8xf32>
    %561 = arith.truncf %560 : vector<2x8xf32> to vector<2x8xbf16>
    %562 = vector.extract_strided_slice %385 {offsets = [24, 0], sizes = [8, 32], strides = [1, 1]} : vector<32x32xbf16> to vector<8x32xbf16>
    %cst_172 = arith.constant dense<0.000000e+00> : vector<2x32xf32>
    %563 = tpu.matmul %561, %562, %cst_172 {dimension_numbers = #tpu.dot_dimension_numbers<[1], [0], [0], [1], [0, 0, 1, 1], [], []>} : vector<2x8xbf16>, vector<8x32xbf16>, vector<2x32xf32> -> vector<2x32xf32>
    %564 = arith.addf %523, %563 : vector<2x32xf32>
    %c6 = arith.constant 6 : index
    %c0_173 = arith.constant 0 : index
    %c0_174 = arith.constant 0 : index
    %565 = vector.load %arg2[%c6, %c0_173, %c0_174] : memref<10x32x96xbf16, #tpu.memory_space<vmem>>, vector<1x32x96xbf16>
    %566 = vector.shape_cast %565 : vector<1x32x96xbf16> to vector<32x96xbf16>
    %c6_175 = arith.constant 6 : index
    %c0_176 = arith.constant 0 : index
    %c0_177 = arith.constant 0 : index
    %567 = vector.load %arg3[%c6_175, %c0_176, %c0_177] : memref<10x1x96xf32, #tpu.memory_space<vmem>>, vector<1x1x96xf32>
    %568 = vector.shape_cast %567 : vector<1x1x96xf32> to vector<1x96xf32>
    %c6_178 = arith.constant 6 : index
    %c0_179 = arith.constant 0 : index
    %c0_180 = arith.constant 0 : index
    %569 = vector.load %arg4[%c6_178, %c0_179, %c0_180] : memref<10x32x32xbf16, #tpu.memory_space<vmem>>, vector<1x32x32xbf16>
    %570 = vector.shape_cast %569 : vector<1x32x32xbf16> to vector<32x32xbf16>
    %c6_181 = arith.constant 6 : index
    %c0_182 = arith.constant 0 : index
    %c0_183 = arith.constant 0 : index
    %571 = vector.load %arg5[%c6_181, %c0_182, %c0_183] : memref<10x1x32xf32, #tpu.memory_space<vmem>>, vector<1x1x32xf32>
    %572 = vector.shape_cast %571 : vector<1x1x32xf32> to vector<1x32xf32>
    %573 = arith.truncf %379 : vector<16x32xf32> to vector<16x32xbf16>
    %574 = vector.extract_strided_slice %566 {offsets = [0, 32], sizes = [32, 64], strides = [1, 1]} : vector<32x96xbf16> to vector<32x64xbf16>
    %cst_184 = arith.constant dense<0.000000e+00> : vector<16x64xf32>
    %575 = tpu.matmul %573, %574, %cst_184 {dimension_numbers = #tpu.dot_dimension_numbers<[1], [0], [0], [1], [0, 0, 1, 1], [], []>} : vector<16x32xbf16>, vector<32x64xbf16>, vector<16x64xf32> -> vector<16x64xf32>
    %576 = vector.extract_strided_slice %568 {offsets = [0, 32], sizes = [1, 64], strides = [1, 1]} : vector<1x96xf32> to vector<1x64xf32>
    %577 = vector.broadcast %576 : vector<1x64xf32> to vector<16x64xf32>
    %578 = arith.addf %575, %577 : vector<16x64xf32>
    %579 = vector.extract_strided_slice %568 {offsets = [0, 0], sizes = [1, 32], strides = [1, 1]} : vector<1x96xf32> to vector<1x32xf32>
    %580 = vector.shape_cast %579 : vector<1x32xf32> to vector<1x32xf32>
    %581 = vector.broadcast %580 : vector<1x32xf32> to vector<2x32xf32>
    %582 = arith.truncf %581 : vector<2x32xf32> to vector<2x32xbf16>
    %583 = arith.truncf %578 : vector<16x64xf32> to vector<16x64xbf16>
    %584 = vector.shape_cast %572 : vector<1x32xf32> to vector<1x32xf32>
    %585 = vector.broadcast %584 : vector<1x32xf32> to vector<2x32xf32>
    %586 = vector.extract_strided_slice %582 {offsets = [0, 0], sizes = [1, 8], strides = [1, 1]} : vector<2x32xbf16> to vector<1x8xbf16>
    %587 = vector.extract_strided_slice %583 {offsets = [0, 0], sizes = [8, 8], strides = [1, 1]} : vector<16x64xbf16> to vector<8x8xbf16>
    %588 = vector.extract_strided_slice %583 {offsets = [0, 32], sizes = [8, 8], strides = [1, 1]} : vector<16x64xbf16> to vector<8x8xbf16>
    %cst_185 = arith.constant dense<0.000000e+00> : vector<1x8xf32>
    %589 = tpu.matmul %586, %587, %cst_185 {dimension_numbers = #tpu.dot_dimension_numbers<[1], [1], [0], [0], [0, 0, 1, 0], [], []>} : vector<1x8xbf16>, vector<8x8xbf16>, vector<1x8xf32> -> vector<1x8xf32>
    %cst_186 = arith.constant 0.353553385 : f32
    %590 = vector.broadcast %cst_186 : f32 to vector<1x8xf32>
    %591 = arith.mulf %589, %590 : vector<1x8xf32>
    %cst_187 = arith.constant dense<0xFF800000> : vector<1xf32>
    %592 = vector.multi_reduction <maximumf>, %591, %cst_187 [1] : vector<1x8xf32> to vector<1xf32>
    %593 = vector.shape_cast %592 : vector<1xf32> to vector<1x1xf32>
    %594 = vector.broadcast %593 : vector<1x1xf32> to vector<1x8xf32>
    %595 = arith.subf %591, %594 : vector<1x8xf32>
    %596 = math.exp %595 : vector<1x8xf32>
    %cst_188 = arith.constant dense<0.000000e+00> : vector<1xf32>
    %597 = vector.multi_reduction <add>, %596, %cst_188 [1] : vector<1x8xf32> to vector<1xf32>
    %598 = vector.shape_cast %597 : vector<1xf32> to vector<1x1xf32>
    %599 = tpu.reciprocal %598 {approx = true} : vector<1x1xf32> -> vector<1x1xf32>
    %600 = vector.broadcast %599 : vector<1x1xf32> to vector<1x8xf32>
    %601 = arith.mulf %596, %600 : vector<1x8xf32>
    %602 = arith.truncf %601 : vector<1x8xf32> to vector<1x8xbf16>
    %cst_189 = arith.constant dense<0.000000e+00> : vector<1x8xf32>
    %603 = tpu.matmul %602, %588, %cst_189 {dimension_numbers = #tpu.dot_dimension_numbers<[1], [0], [0], [1], [0, 0, 1, 1], [], []>} : vector<1x8xbf16>, vector<8x8xbf16>, vector<1x8xf32> -> vector<1x8xf32>
    %604 = vector.extract_strided_slice %582 {offsets = [1, 0], sizes = [1, 8], strides = [1, 1]} : vector<2x32xbf16> to vector<1x8xbf16>
    %605 = vector.extract_strided_slice %583 {offsets = [8, 0], sizes = [8, 8], strides = [1, 1]} : vector<16x64xbf16> to vector<8x8xbf16>
    %606 = vector.extract_strided_slice %583 {offsets = [8, 32], sizes = [8, 8], strides = [1, 1]} : vector<16x64xbf16> to vector<8x8xbf16>
    %cst_190 = arith.constant dense<0.000000e+00> : vector<1x8xf32>
    %607 = tpu.matmul %604, %605, %cst_190 {dimension_numbers = #tpu.dot_dimension_numbers<[1], [1], [0], [0], [0, 0, 1, 0], [], []>} : vector<1x8xbf16>, vector<8x8xbf16>, vector<1x8xf32> -> vector<1x8xf32>
    %cst_191 = arith.constant 0.353553385 : f32
    %608 = vector.broadcast %cst_191 : f32 to vector<1x8xf32>
    %609 = arith.mulf %607, %608 : vector<1x8xf32>
    %cst_192 = arith.constant dense<0xFF800000> : vector<1xf32>
    %610 = vector.multi_reduction <maximumf>, %609, %cst_192 [1] : vector<1x8xf32> to vector<1xf32>
    %611 = vector.shape_cast %610 : vector<1xf32> to vector<1x1xf32>
    %612 = vector.broadcast %611 : vector<1x1xf32> to vector<1x8xf32>
    %613 = arith.subf %609, %612 : vector<1x8xf32>
    %614 = math.exp %613 : vector<1x8xf32>
    %cst_193 = arith.constant dense<0.000000e+00> : vector<1xf32>
    %615 = vector.multi_reduction <add>, %614, %cst_193 [1] : vector<1x8xf32> to vector<1xf32>
    %616 = vector.shape_cast %615 : vector<1xf32> to vector<1x1xf32>
    %617 = tpu.reciprocal %616 {approx = true} : vector<1x1xf32> -> vector<1x1xf32>
    %618 = vector.broadcast %617 : vector<1x1xf32> to vector<1x8xf32>
    %619 = arith.mulf %614, %618 : vector<1x8xf32>
    %620 = arith.truncf %619 : vector<1x8xf32> to vector<1x8xbf16>
    %cst_194 = arith.constant dense<0.000000e+00> : vector<1x8xf32>
    %621 = tpu.matmul %620, %606, %cst_194 {dimension_numbers = #tpu.dot_dimension_numbers<[1], [0], [0], [1], [0, 0, 1, 1], [], []>} : vector<1x8xbf16>, vector<8x8xbf16>, vector<1x8xf32> -> vector<1x8xf32>
    %622 = tpu.concatenate %603, %621 in 0 : vector<1x8xf32>, vector<1x8xf32> -> vector<2x8xf32>
    %623 = arith.truncf %622 : vector<2x8xf32> to vector<2x8xbf16>
    %624 = vector.extract_strided_slice %570 {offsets = [0, 0], sizes = [8, 32], strides = [1, 1]} : vector<32x32xbf16> to vector<8x32xbf16>
    %cst_195 = arith.constant dense<0.000000e+00> : vector<2x32xf32>
    %625 = tpu.matmul %623, %624, %cst_195 {dimension_numbers = #tpu.dot_dimension_numbers<[1], [0], [0], [1], [0, 0, 1, 1], [], []>} : vector<2x8xbf16>, vector<8x32xbf16>, vector<2x32xf32> -> vector<2x32xf32>
    %626 = arith.addf %585, %625 : vector<2x32xf32>
    %627 = vector.extract_strided_slice %582 {offsets = [0, 8], sizes = [1, 8], strides = [1, 1]} : vector<2x32xbf16> to vector<1x8xbf16>
    %628 = vector.extract_strided_slice %583 {offsets = [0, 8], sizes = [8, 8], strides = [1, 1]} : vector<16x64xbf16> to vector<8x8xbf16>
    %629 = vector.extract_strided_slice %583 {offsets = [0, 40], sizes = [8, 8], strides = [1, 1]} : vector<16x64xbf16> to vector<8x8xbf16>
    %cst_196 = arith.constant dense<0.000000e+00> : vector<1x8xf32>
    %630 = tpu.matmul %627, %628, %cst_196 {dimension_numbers = #tpu.dot_dimension_numbers<[1], [1], [0], [0], [0, 0, 1, 0], [], []>} : vector<1x8xbf16>, vector<8x8xbf16>, vector<1x8xf32> -> vector<1x8xf32>
    %cst_197 = arith.constant 0.353553385 : f32
    %631 = vector.broadcast %cst_197 : f32 to vector<1x8xf32>
    %632 = arith.mulf %630, %631 : vector<1x8xf32>
    %cst_198 = arith.constant dense<0xFF800000> : vector<1xf32>
    %633 = vector.multi_reduction <maximumf>, %632, %cst_198 [1] : vector<1x8xf32> to vector<1xf32>
    %634 = vector.shape_cast %633 : vector<1xf32> to vector<1x1xf32>
    %635 = vector.broadcast %634 : vector<1x1xf32> to vector<1x8xf32>
    %636 = arith.subf %632, %635 : vector<1x8xf32>
    %637 = math.exp %636 : vector<1x8xf32>
    %cst_199 = arith.constant dense<0.000000e+00> : vector<1xf32>
    %638 = vector.multi_reduction <add>, %637, %cst_199 [1] : vector<1x8xf32> to vector<1xf32>
    %639 = vector.shape_cast %638 : vector<1xf32> to vector<1x1xf32>
    %640 = tpu.reciprocal %639 {approx = true} : vector<1x1xf32> -> vector<1x1xf32>
    %641 = vector.broadcast %640 : vector<1x1xf32> to vector<1x8xf32>
    %642 = arith.mulf %637, %641 : vector<1x8xf32>
    %643 = arith.truncf %642 : vector<1x8xf32> to vector<1x8xbf16>
    %cst_200 = arith.constant dense<0.000000e+00> : vector<1x8xf32>
    %644 = tpu.matmul %643, %629, %cst_200 {dimension_numbers = #tpu.dot_dimension_numbers<[1], [0], [0], [1], [0, 0, 1, 1], [], []>} : vector<1x8xbf16>, vector<8x8xbf16>, vector<1x8xf32> -> vector<1x8xf32>
    %645 = vector.extract_strided_slice %582 {offsets = [1, 8], sizes = [1, 8], strides = [1, 1]} : vector<2x32xbf16> to vector<1x8xbf16>
    %646 = vector.extract_strided_slice %583 {offsets = [8, 8], sizes = [8, 8], strides = [1, 1]} : vector<16x64xbf16> to vector<8x8xbf16>
    %647 = vector.extract_strided_slice %583 {offsets = [8, 40], sizes = [8, 8], strides = [1, 1]} : vector<16x64xbf16> to vector<8x8xbf16>
    %cst_201 = arith.constant dense<0.000000e+00> : vector<1x8xf32>
    %648 = tpu.matmul %645, %646, %cst_201 {dimension_numbers = #tpu.dot_dimension_numbers<[1], [1], [0], [0], [0, 0, 1, 0], [], []>} : vector<1x8xbf16>, vector<8x8xbf16>, vector<1x8xf32> -> vector<1x8xf32>
    %cst_202 = arith.constant 0.353553385 : f32
    %649 = vector.broadcast %cst_202 : f32 to vector<1x8xf32>
    %650 = arith.mulf %648, %649 : vector<1x8xf32>
    %cst_203 = arith.constant dense<0xFF800000> : vector<1xf32>
    %651 = vector.multi_reduction <maximumf>, %650, %cst_203 [1] : vector<1x8xf32> to vector<1xf32>
    %652 = vector.shape_cast %651 : vector<1xf32> to vector<1x1xf32>
    %653 = vector.broadcast %652 : vector<1x1xf32> to vector<1x8xf32>
    %654 = arith.subf %650, %653 : vector<1x8xf32>
    %655 = math.exp %654 : vector<1x8xf32>
    %cst_204 = arith.constant dense<0.000000e+00> : vector<1xf32>
    %656 = vector.multi_reduction <add>, %655, %cst_204 [1] : vector<1x8xf32> to vector<1xf32>
    %657 = vector.shape_cast %656 : vector<1xf32> to vector<1x1xf32>
    %658 = tpu.reciprocal %657 {approx = true} : vector<1x1xf32> -> vector<1x1xf32>
    %659 = vector.broadcast %658 : vector<1x1xf32> to vector<1x8xf32>
    %660 = arith.mulf %655, %659 : vector<1x8xf32>
    %661 = arith.truncf %660 : vector<1x8xf32> to vector<1x8xbf16>
    %cst_205 = arith.constant dense<0.000000e+00> : vector<1x8xf32>
    %662 = tpu.matmul %661, %647, %cst_205 {dimension_numbers = #tpu.dot_dimension_numbers<[1], [0], [0], [1], [0, 0, 1, 1], [], []>} : vector<1x8xbf16>, vector<8x8xbf16>, vector<1x8xf32> -> vector<1x8xf32>
    %663 = tpu.concatenate %644, %662 in 0 : vector<1x8xf32>, vector<1x8xf32> -> vector<2x8xf32>
    %664 = arith.truncf %663 : vector<2x8xf32> to vector<2x8xbf16>
    %665 = vector.extract_strided_slice %570 {offsets = [8, 0], sizes = [8, 32], strides = [1, 1]} : vector<32x32xbf16> to vector<8x32xbf16>
    %cst_206 = arith.constant dense<0.000000e+00> : vector<2x32xf32>
    %666 = tpu.matmul %664, %665, %cst_206 {dimension_numbers = #tpu.dot_dimension_numbers<[1], [0], [0], [1], [0, 0, 1, 1], [], []>} : vector<2x8xbf16>, vector<8x32xbf16>, vector<2x32xf32> -> vector<2x32xf32>
    %667 = arith.addf %626, %666 : vector<2x32xf32>
    %668 = vector.extract_strided_slice %582 {offsets = [0, 16], sizes = [1, 8], strides = [1, 1]} : vector<2x32xbf16> to vector<1x8xbf16>
    %669 = vector.extract_strided_slice %583 {offsets = [0, 16], sizes = [8, 8], strides = [1, 1]} : vector<16x64xbf16> to vector<8x8xbf16>
    %670 = vector.extract_strided_slice %583 {offsets = [0, 48], sizes = [8, 8], strides = [1, 1]} : vector<16x64xbf16> to vector<8x8xbf16>
    %cst_207 = arith.constant dense<0.000000e+00> : vector<1x8xf32>
    %671 = tpu.matmul %668, %669, %cst_207 {dimension_numbers = #tpu.dot_dimension_numbers<[1], [1], [0], [0], [0, 0, 1, 0], [], []>} : vector<1x8xbf16>, vector<8x8xbf16>, vector<1x8xf32> -> vector<1x8xf32>
    %cst_208 = arith.constant 0.353553385 : f32
    %672 = vector.broadcast %cst_208 : f32 to vector<1x8xf32>
    %673 = arith.mulf %671, %672 : vector<1x8xf32>
    %cst_209 = arith.constant dense<0xFF800000> : vector<1xf32>
    %674 = vector.multi_reduction <maximumf>, %673, %cst_209 [1] : vector<1x8xf32> to vector<1xf32>
    %675 = vector.shape_cast %674 : vector<1xf32> to vector<1x1xf32>
    %676 = vector.broadcast %675 : vector<1x1xf32> to vector<1x8xf32>
    %677 = arith.subf %673, %676 : vector<1x8xf32>
    %678 = math.exp %677 : vector<1x8xf32>
    %cst_210 = arith.constant dense<0.000000e+00> : vector<1xf32>
    %679 = vector.multi_reduction <add>, %678, %cst_210 [1] : vector<1x8xf32> to vector<1xf32>
    %680 = vector.shape_cast %679 : vector<1xf32> to vector<1x1xf32>
    %681 = tpu.reciprocal %680 {approx = true} : vector<1x1xf32> -> vector<1x1xf32>
    %682 = vector.broadcast %681 : vector<1x1xf32> to vector<1x8xf32>
    %683 = arith.mulf %678, %682 : vector<1x8xf32>
    %684 = arith.truncf %683 : vector<1x8xf32> to vector<1x8xbf16>
    %cst_211 = arith.constant dense<0.000000e+00> : vector<1x8xf32>
    %685 = tpu.matmul %684, %670, %cst_211 {dimension_numbers = #tpu.dot_dimension_numbers<[1], [0], [0], [1], [0, 0, 1, 1], [], []>} : vector<1x8xbf16>, vector<8x8xbf16>, vector<1x8xf32> -> vector<1x8xf32>
    %686 = vector.extract_strided_slice %582 {offsets = [1, 16], sizes = [1, 8], strides = [1, 1]} : vector<2x32xbf16> to vector<1x8xbf16>
    %687 = vector.extract_strided_slice %583 {offsets = [8, 16], sizes = [8, 8], strides = [1, 1]} : vector<16x64xbf16> to vector<8x8xbf16>
    %688 = vector.extract_strided_slice %583 {offsets = [8, 48], sizes = [8, 8], strides = [1, 1]} : vector<16x64xbf16> to vector<8x8xbf16>
    %cst_212 = arith.constant dense<0.000000e+00> : vector<1x8xf32>
    %689 = tpu.matmul %686, %687, %cst_212 {dimension_numbers = #tpu.dot_dimension_numbers<[1], [1], [0], [0], [0, 0, 1, 0], [], []>} : vector<1x8xbf16>, vector<8x8xbf16>, vector<1x8xf32> -> vector<1x8xf32>
    %cst_213 = arith.constant 0.353553385 : f32
    %690 = vector.broadcast %cst_213 : f32 to vector<1x8xf32>
    %691 = arith.mulf %689, %690 : vector<1x8xf32>
    %cst_214 = arith.constant dense<0xFF800000> : vector<1xf32>
    %692 = vector.multi_reduction <maximumf>, %691, %cst_214 [1] : vector<1x8xf32> to vector<1xf32>
    %693 = vector.shape_cast %692 : vector<1xf32> to vector<1x1xf32>
    %694 = vector.broadcast %693 : vector<1x1xf32> to vector<1x8xf32>
    %695 = arith.subf %691, %694 : vector<1x8xf32>
    %696 = math.exp %695 : vector<1x8xf32>
    %cst_215 = arith.constant dense<0.000000e+00> : vector<1xf32>
    %697 = vector.multi_reduction <add>, %696, %cst_215 [1] : vector<1x8xf32> to vector<1xf32>
    %698 = vector.shape_cast %697 : vector<1xf32> to vector<1x1xf32>
    %699 = tpu.reciprocal %698 {approx = true} : vector<1x1xf32> -> vector<1x1xf32>
    %700 = vector.broadcast %699 : vector<1x1xf32> to vector<1x8xf32>
    %701 = arith.mulf %696, %700 : vector<1x8xf32>
    %702 = arith.truncf %701 : vector<1x8xf32> to vector<1x8xbf16>
    %cst_216 = arith.constant dense<0.000000e+00> : vector<1x8xf32>
    %703 = tpu.matmul %702, %688, %cst_216 {dimension_numbers = #tpu.dot_dimension_numbers<[1], [0], [0], [1], [0, 0, 1, 1], [], []>} : vector<1x8xbf16>, vector<8x8xbf16>, vector<1x8xf32> -> vector<1x8xf32>
    %704 = tpu.concatenate %685, %703 in 0 : vector<1x8xf32>, vector<1x8xf32> -> vector<2x8xf32>
    %705 = arith.truncf %704 : vector<2x8xf32> to vector<2x8xbf16>
    %706 = vector.extract_strided_slice %570 {offsets = [16, 0], sizes = [8, 32], strides = [1, 1]} : vector<32x32xbf16> to vector<8x32xbf16>
    %cst_217 = arith.constant dense<0.000000e+00> : vector<2x32xf32>
    %707 = tpu.matmul %705, %706, %cst_217 {dimension_numbers = #tpu.dot_dimension_numbers<[1], [0], [0], [1], [0, 0, 1, 1], [], []>} : vector<2x8xbf16>, vector<8x32xbf16>, vector<2x32xf32> -> vector<2x32xf32>
    %708 = arith.addf %667, %707 : vector<2x32xf32>
    %709 = vector.extract_strided_slice %582 {offsets = [0, 24], sizes = [1, 8], strides = [1, 1]} : vector<2x32xbf16> to vector<1x8xbf16>
    %710 = vector.extract_strided_slice %583 {offsets = [0, 24], sizes = [8, 8], strides = [1, 1]} : vector<16x64xbf16> to vector<8x8xbf16>
    %711 = vector.extract_strided_slice %583 {offsets = [0, 56], sizes = [8, 8], strides = [1, 1]} : vector<16x64xbf16> to vector<8x8xbf16>
    %cst_218 = arith.constant dense<0.000000e+00> : vector<1x8xf32>
    %712 = tpu.matmul %709, %710, %cst_218 {dimension_numbers = #tpu.dot_dimension_numbers<[1], [1], [0], [0], [0, 0, 1, 0], [], []>} : vector<1x8xbf16>, vector<8x8xbf16>, vector<1x8xf32> -> vector<1x8xf32>
    %cst_219 = arith.constant 0.353553385 : f32
    %713 = vector.broadcast %cst_219 : f32 to vector<1x8xf32>
    %714 = arith.mulf %712, %713 : vector<1x8xf32>
    %cst_220 = arith.constant dense<0xFF800000> : vector<1xf32>
    %715 = vector.multi_reduction <maximumf>, %714, %cst_220 [1] : vector<1x8xf32> to vector<1xf32>
    %716 = vector.shape_cast %715 : vector<1xf32> to vector<1x1xf32>
    %717 = vector.broadcast %716 : vector<1x1xf32> to vector<1x8xf32>
    %718 = arith.subf %714, %717 : vector<1x8xf32>
    %719 = math.exp %718 : vector<1x8xf32>
    %cst_221 = arith.constant dense<0.000000e+00> : vector<1xf32>
    %720 = vector.multi_reduction <add>, %719, %cst_221 [1] : vector<1x8xf32> to vector<1xf32>
    %721 = vector.shape_cast %720 : vector<1xf32> to vector<1x1xf32>
    %722 = tpu.reciprocal %721 {approx = true} : vector<1x1xf32> -> vector<1x1xf32>
    %723 = vector.broadcast %722 : vector<1x1xf32> to vector<1x8xf32>
    %724 = arith.mulf %719, %723 : vector<1x8xf32>
    %725 = arith.truncf %724 : vector<1x8xf32> to vector<1x8xbf16>
    %cst_222 = arith.constant dense<0.000000e+00> : vector<1x8xf32>
    %726 = tpu.matmul %725, %711, %cst_222 {dimension_numbers = #tpu.dot_dimension_numbers<[1], [0], [0], [1], [0, 0, 1, 1], [], []>} : vector<1x8xbf16>, vector<8x8xbf16>, vector<1x8xf32> -> vector<1x8xf32>
    %727 = vector.extract_strided_slice %582 {offsets = [1, 24], sizes = [1, 8], strides = [1, 1]} : vector<2x32xbf16> to vector<1x8xbf16>
    %728 = vector.extract_strided_slice %583 {offsets = [8, 24], sizes = [8, 8], strides = [1, 1]} : vector<16x64xbf16> to vector<8x8xbf16>
    %729 = vector.extract_strided_slice %583 {offsets = [8, 56], sizes = [8, 8], strides = [1, 1]} : vector<16x64xbf16> to vector<8x8xbf16>
    %cst_223 = arith.constant dense<0.000000e+00> : vector<1x8xf32>
    %730 = tpu.matmul %727, %728, %cst_223 {dimension_numbers = #tpu.dot_dimension_numbers<[1], [1], [0], [0], [0, 0, 1, 0], [], []>} : vector<1x8xbf16>, vector<8x8xbf16>, vector<1x8xf32> -> vector<1x8xf32>
    %cst_224 = arith.constant 0.353553385 : f32
    %731 = vector.broadcast %cst_224 : f32 to vector<1x8xf32>
    %732 = arith.mulf %730, %731 : vector<1x8xf32>
    %cst_225 = arith.constant dense<0xFF800000> : vector<1xf32>
    %733 = vector.multi_reduction <maximumf>, %732, %cst_225 [1] : vector<1x8xf32> to vector<1xf32>
    %734 = vector.shape_cast %733 : vector<1xf32> to vector<1x1xf32>
    %735 = vector.broadcast %734 : vector<1x1xf32> to vector<1x8xf32>
    %736 = arith.subf %732, %735 : vector<1x8xf32>
    %737 = math.exp %736 : vector<1x8xf32>
    %cst_226 = arith.constant dense<0.000000e+00> : vector<1xf32>
    %738 = vector.multi_reduction <add>, %737, %cst_226 [1] : vector<1x8xf32> to vector<1xf32>
    %739 = vector.shape_cast %738 : vector<1xf32> to vector<1x1xf32>
    %740 = tpu.reciprocal %739 {approx = true} : vector<1x1xf32> -> vector<1x1xf32>
    %741 = vector.broadcast %740 : vector<1x1xf32> to vector<1x8xf32>
    %742 = arith.mulf %737, %741 : vector<1x8xf32>
    %743 = arith.truncf %742 : vector<1x8xf32> to vector<1x8xbf16>
    %cst_227 = arith.constant dense<0.000000e+00> : vector<1x8xf32>
    %744 = tpu.matmul %743, %729, %cst_227 {dimension_numbers = #tpu.dot_dimension_numbers<[1], [0], [0], [1], [0, 0, 1, 1], [], []>} : vector<1x8xbf16>, vector<8x8xbf16>, vector<1x8xf32> -> vector<1x8xf32>
    %745 = tpu.concatenate %726, %744 in 0 : vector<1x8xf32>, vector<1x8xf32> -> vector<2x8xf32>
    %746 = arith.truncf %745 : vector<2x8xf32> to vector<2x8xbf16>
    %747 = vector.extract_strided_slice %570 {offsets = [24, 0], sizes = [8, 32], strides = [1, 1]} : vector<32x32xbf16> to vector<8x32xbf16>
    %cst_228 = arith.constant dense<0.000000e+00> : vector<2x32xf32>
    %748 = tpu.matmul %746, %747, %cst_228 {dimension_numbers = #tpu.dot_dimension_numbers<[1], [0], [0], [1], [0, 0, 1, 1], [], []>} : vector<2x8xbf16>, vector<8x32xbf16>, vector<2x32xf32> -> vector<2x32xf32>
    %749 = arith.addf %708, %748 : vector<2x32xf32>
    %c1 = arith.constant 1 : index
    %c0_229 = arith.constant 0 : index
    %c0_230 = arith.constant 0 : index
    %750 = vector.load %arg2[%c1, %c0_229, %c0_230] : memref<10x32x96xbf16, #tpu.memory_space<vmem>>, vector<1x32x96xbf16>
    %751 = vector.shape_cast %750 : vector<1x32x96xbf16> to vector<32x96xbf16>
    %c1_231 = arith.constant 1 : index
    %c0_232 = arith.constant 0 : index
    %c0_233 = arith.constant 0 : index
    %752 = vector.load %arg3[%c1_231, %c0_232, %c0_233] : memref<10x1x96xf32, #tpu.memory_space<vmem>>, vector<1x1x96xf32>
    %753 = vector.shape_cast %752 : vector<1x1x96xf32> to vector<1x96xf32>
    %c1_234 = arith.constant 1 : index
    %c0_235 = arith.constant 0 : index
    %c0_236 = arith.constant 0 : index
    %754 = vector.load %arg4[%c1_234, %c0_235, %c0_236] : memref<10x32x32xbf16, #tpu.memory_space<vmem>>, vector<1x32x32xbf16>
    %755 = vector.shape_cast %754 : vector<1x32x32xbf16> to vector<32x32xbf16>
    %c1_237 = arith.constant 1 : index
    %c0_238 = arith.constant 0 : index
    %c0_239 = arith.constant 0 : index
    %756 = vector.load %arg5[%c1_237, %c0_238, %c0_239] : memref<10x1x32xf32, #tpu.memory_space<vmem>>, vector<1x1x32xf32>
    %757 = vector.shape_cast %756 : vector<1x1x32xf32> to vector<1x32xf32>
    %758 = arith.truncf %749 : vector<2x32xf32> to vector<2x32xbf16>
    %759 = arith.truncf %564 : vector<2x32xf32> to vector<2x32xbf16>
    %760 = tpu.concatenate %759, %758 in 0 : vector<2x32xbf16>, vector<2x32xbf16> -> vector<4x32xbf16>
    %cst_240 = arith.constant dense<0.000000e+00> : vector<4x96xf32>
    %761 = tpu.matmul %760, %751, %cst_240 {dimension_numbers = #tpu.dot_dimension_numbers<[1], [0], [0], [1], [0, 0, 1, 1], [], []>} : vector<4x32xbf16>, vector<32x96xbf16>, vector<4x96xf32> -> vector<4x96xf32>
    %762 = vector.extract_strided_slice %761 {offsets = [0, 0], sizes = [2, 32], strides = [1, 1]} : vector<4x96xf32> to vector<2x32xf32>
    %763 = vector.extract_strided_slice %753 {offsets = [0, 0], sizes = [1, 32], strides = [1, 1]} : vector<1x96xf32> to vector<1x32xf32>
    %764 = vector.broadcast %763 : vector<1x32xf32> to vector<2x32xf32>
    %765 = arith.addf %762, %764 : vector<2x32xf32>
    %766 = vector.extract_strided_slice %761 {offsets = [2, 32], sizes = [2, 64], strides = [1, 1]} : vector<4x96xf32> to vector<2x64xf32>
    %767 = vector.extract_strided_slice %753 {offsets = [0, 32], sizes = [1, 64], strides = [1, 1]} : vector<1x96xf32> to vector<1x64xf32>
    %768 = vector.broadcast %767 : vector<1x64xf32> to vector<2x64xf32>
    %769 = arith.addf %766, %768 : vector<2x64xf32>
    %770 = arith.truncf %765 : vector<2x32xf32> to vector<2x32xbf16>
    %771 = arith.truncf %769 : vector<2x64xf32> to vector<2x64xbf16>
    %772 = vector.shape_cast %757 : vector<1x32xf32> to vector<1x32xf32>
    %773 = vector.broadcast %772 : vector<1x32xf32> to vector<2x32xf32>
    %774 = vector.extract_strided_slice %770 {offsets = [0, 0], sizes = [1, 8], strides = [1, 1]} : vector<2x32xbf16> to vector<1x8xbf16>
    %775 = vector.extract_strided_slice %771 {offsets = [0, 0], sizes = [1, 8], strides = [1, 1]} : vector<2x64xbf16> to vector<1x8xbf16>
    %776 = vector.extract_strided_slice %771 {offsets = [0, 32], sizes = [1, 8], strides = [1, 1]} : vector<2x64xbf16> to vector<1x8xbf16>
    %777 = arith.extf %774 : vector<1x8xbf16> to vector<1x8xf32>
    %778 = arith.extf %775 : vector<1x8xbf16> to vector<1x8xf32>
    %cst_241 = arith.constant dense<0.000000e+00> : vector<1xf32>
    %779 = arith.mulf %777, %778 : vector<1x8xf32>
    %780 = vector.multi_reduction <add>, %779, %cst_241 [1] : vector<1x8xf32> to vector<1xf32>
    %781 = vector.shape_cast %780 : vector<1xf32> to vector<1x1xf32>
    %cst_242 = arith.constant 0.353553385 : f32
    %782 = vector.broadcast %cst_242 : f32 to vector<1x1xf32>
    %783 = arith.mulf %781, %782 : vector<1x1xf32>
    %cst_243 = arith.constant dense<0xFF800000> : vector<1xf32>
    %784 = vector.multi_reduction <maximumf>, %783, %cst_243 [1] : vector<1x1xf32> to vector<1xf32>
    %785 = vector.shape_cast %784 : vector<1xf32> to vector<1x1xf32>
    %786 = arith.subf %783, %785 : vector<1x1xf32>
    %787 = math.exp %786 : vector<1x1xf32>
    %cst_244 = arith.constant dense<0.000000e+00> : vector<1xf32>
    %788 = vector.multi_reduction <add>, %787, %cst_244 [1] : vector<1x1xf32> to vector<1xf32>
    %789 = vector.shape_cast %788 : vector<1xf32> to vector<1x1xf32>
    %790 = tpu.reciprocal %789 {approx = true} : vector<1x1xf32> -> vector<1x1xf32>
    %791 = arith.mulf %787, %790 : vector<1x1xf32>
    %792 = arith.truncf %791 : vector<1x1xf32> to vector<1x1xbf16>
    %cst_245 = arith.constant dense<0.000000e+00> : vector<1x8xf32>
    %793 = tpu.matmul %792, %776, %cst_245 {dimension_numbers = #tpu.dot_dimension_numbers<[1], [0], [0], [1], [0, 0, 1, 1], [], []>} : vector<1x1xbf16>, vector<1x8xbf16>, vector<1x8xf32> -> vector<1x8xf32>
    %794 = vector.extract_strided_slice %770 {offsets = [1, 0], sizes = [1, 8], strides = [1, 1]} : vector<2x32xbf16> to vector<1x8xbf16>
    %795 = vector.extract_strided_slice %771 {offsets = [1, 0], sizes = [1, 8], strides = [1, 1]} : vector<2x64xbf16> to vector<1x8xbf16>
    %796 = vector.extract_strided_slice %771 {offsets = [1, 32], sizes = [1, 8], strides = [1, 1]} : vector<2x64xbf16> to vector<1x8xbf16>
    %797 = arith.extf %794 : vector<1x8xbf16> to vector<1x8xf32>
    %798 = arith.extf %795 : vector<1x8xbf16> to vector<1x8xf32>
    %cst_246 = arith.constant dense<0.000000e+00> : vector<1xf32>
    %799 = arith.mulf %797, %798 : vector<1x8xf32>
    %800 = vector.multi_reduction <add>, %799, %cst_246 [1] : vector<1x8xf32> to vector<1xf32>
    %801 = vector.shape_cast %800 : vector<1xf32> to vector<1x1xf32>
    %cst_247 = arith.constant 0.353553385 : f32
    %802 = vector.broadcast %cst_247 : f32 to vector<1x1xf32>
    %803 = arith.mulf %801, %802 : vector<1x1xf32>
    %cst_248 = arith.constant dense<0xFF800000> : vector<1xf32>
    %804 = vector.multi_reduction <maximumf>, %803, %cst_248 [1] : vector<1x1xf32> to vector<1xf32>
    %805 = vector.shape_cast %804 : vector<1xf32> to vector<1x1xf32>
    %806 = arith.subf %803, %805 : vector<1x1xf32>
    %807 = math.exp %806 : vector<1x1xf32>
    %cst_249 = arith.constant dense<0.000000e+00> : vector<1xf32>
    %808 = vector.multi_reduction <add>, %807, %cst_249 [1] : vector<1x1xf32> to vector<1xf32>
    %809 = vector.shape_cast %808 : vector<1xf32> to vector<1x1xf32>
    %810 = tpu.reciprocal %809 {approx = true} : vector<1x1xf32> -> vector<1x1xf32>
    %811 = arith.mulf %807, %810 : vector<1x1xf32>
    %812 = arith.truncf %811 : vector<1x1xf32> to vector<1x1xbf16>
    %cst_250 = arith.constant dense<0.000000e+00> : vector<1x8xf32>
    %813 = tpu.matmul %812, %796, %cst_250 {dimension_numbers = #tpu.dot_dimension_numbers<[1], [0], [0], [1], [0, 0, 1, 1], [], []>} : vector<1x1xbf16>, vector<1x8xbf16>, vector<1x8xf32> -> vector<1x8xf32>
    %814 = tpu.concatenate %793, %813 in 0 : vector<1x8xf32>, vector<1x8xf32> -> vector<2x8xf32>
    %815 = arith.truncf %814 : vector<2x8xf32> to vector<2x8xbf16>
    %816 = vector.extract_strided_slice %755 {offsets = [0, 0], sizes = [8, 32], strides = [1, 1]} : vector<32x32xbf16> to vector<8x32xbf16>
    %cst_251 = arith.constant dense<0.000000e+00> : vector<2x32xf32>
    %817 = tpu.matmul %815, %816, %cst_251 {dimension_numbers = #tpu.dot_dimension_numbers<[1], [0], [0], [1], [0, 0, 1, 1], [], []>} : vector<2x8xbf16>, vector<8x32xbf16>, vector<2x32xf32> -> vector<2x32xf32>
    %818 = arith.addf %773, %817 : vector<2x32xf32>
    %819 = vector.extract_strided_slice %770 {offsets = [0, 8], sizes = [1, 8], strides = [1, 1]} : vector<2x32xbf16> to vector<1x8xbf16>
    %820 = vector.extract_strided_slice %771 {offsets = [0, 8], sizes = [1, 8], strides = [1, 1]} : vector<2x64xbf16> to vector<1x8xbf16>
    %821 = vector.extract_strided_slice %771 {offsets = [0, 40], sizes = [1, 8], strides = [1, 1]} : vector<2x64xbf16> to vector<1x8xbf16>
    %822 = arith.extf %819 : vector<1x8xbf16> to vector<1x8xf32>
    %823 = arith.extf %820 : vector<1x8xbf16> to vector<1x8xf32>
    %cst_252 = arith.constant dense<0.000000e+00> : vector<1xf32>
    %824 = arith.mulf %822, %823 : vector<1x8xf32>
    %825 = vector.multi_reduction <add>, %824, %cst_252 [1] : vector<1x8xf32> to vector<1xf32>
    %826 = vector.shape_cast %825 : vector<1xf32> to vector<1x1xf32>
    %cst_253 = arith.constant 0.353553385 : f32
    %827 = vector.broadcast %cst_253 : f32 to vector<1x1xf32>
    %828 = arith.mulf %826, %827 : vector<1x1xf32>
    %cst_254 = arith.constant dense<0xFF800000> : vector<1xf32>
    %829 = vector.multi_reduction <maximumf>, %828, %cst_254 [1] : vector<1x1xf32> to vector<1xf32>
    %830 = vector.shape_cast %829 : vector<1xf32> to vector<1x1xf32>
    %831 = arith.subf %828, %830 : vector<1x1xf32>
    %832 = math.exp %831 : vector<1x1xf32>
    %cst_255 = arith.constant dense<0.000000e+00> : vector<1xf32>
    %833 = vector.multi_reduction <add>, %832, %cst_255 [1] : vector<1x1xf32> to vector<1xf32>
    %834 = vector.shape_cast %833 : vector<1xf32> to vector<1x1xf32>
    %835 = tpu.reciprocal %834 {approx = true} : vector<1x1xf32> -> vector<1x1xf32>
    %836 = arith.mulf %832, %835 : vector<1x1xf32>
    %837 = arith.truncf %836 : vector<1x1xf32> to vector<1x1xbf16>
    %cst_256 = arith.constant dense<0.000000e+00> : vector<1x8xf32>
    %838 = tpu.matmul %837, %821, %cst_256 {dimension_numbers = #tpu.dot_dimension_numbers<[1], [0], [0], [1], [0, 0, 1, 1], [], []>} : vector<1x1xbf16>, vector<1x8xbf16>, vector<1x8xf32> -> vector<1x8xf32>
    %839 = vector.extract_strided_slice %770 {offsets = [1, 8], sizes = [1, 8], strides = [1, 1]} : vector<2x32xbf16> to vector<1x8xbf16>
    %840 = vector.extract_strided_slice %771 {offsets = [1, 8], sizes = [1, 8], strides = [1, 1]} : vector<2x64xbf16> to vector<1x8xbf16>
    %841 = vector.extract_strided_slice %771 {offsets = [1, 40], sizes = [1, 8], strides = [1, 1]} : vector<2x64xbf16> to vector<1x8xbf16>
    %842 = arith.extf %839 : vector<1x8xbf16> to vector<1x8xf32>
    %843 = arith.extf %840 : vector<1x8xbf16> to vector<1x8xf32>
    %cst_257 = arith.constant dense<0.000000e+00> : vector<1xf32>
    %844 = arith.mulf %842, %843 : vector<1x8xf32>
    %845 = vector.multi_reduction <add>, %844, %cst_257 [1] : vector<1x8xf32> to vector<1xf32>
    %846 = vector.shape_cast %845 : vector<1xf32> to vector<1x1xf32>
    %cst_258 = arith.constant 0.353553385 : f32
    %847 = vector.broadcast %cst_258 : f32 to vector<1x1xf32>
    %848 = arith.mulf %846, %847 : vector<1x1xf32>
    %cst_259 = arith.constant dense<0xFF800000> : vector<1xf32>
    %849 = vector.multi_reduction <maximumf>, %848, %cst_259 [1] : vector<1x1xf32> to vector<1xf32>
    %850 = vector.shape_cast %849 : vector<1xf32> to vector<1x1xf32>
    %851 = arith.subf %848, %850 : vector<1x1xf32>
    %852 = math.exp %851 : vector<1x1xf32>
    %cst_260 = arith.constant dense<0.000000e+00> : vector<1xf32>
    %853 = vector.multi_reduction <add>, %852, %cst_260 [1] : vector<1x1xf32> to vector<1xf32>
    %854 = vector.shape_cast %853 : vector<1xf32> to vector<1x1xf32>
    %855 = tpu.reciprocal %854 {approx = true} : vector<1x1xf32> -> vector<1x1xf32>
    %856 = arith.mulf %852, %855 : vector<1x1xf32>
    %857 = arith.truncf %856 : vector<1x1xf32> to vector<1x1xbf16>
    %cst_261 = arith.constant dense<0.000000e+00> : vector<1x8xf32>
    %858 = tpu.matmul %857, %841, %cst_261 {dimension_numbers = #tpu.dot_dimension_numbers<[1], [0], [0], [1], [0, 0, 1, 1], [], []>} : vector<1x1xbf16>, vector<1x8xbf16>, vector<1x8xf32> -> vector<1x8xf32>
    %859 = tpu.concatenate %838, %858 in 0 : vector<1x8xf32>, vector<1x8xf32> -> vector<2x8xf32>
    %860 = arith.truncf %859 : vector<2x8xf32> to vector<2x8xbf16>
    %861 = vector.extract_strided_slice %755 {offsets = [8, 0], sizes = [8, 32], strides = [1, 1]} : vector<32x32xbf16> to vector<8x32xbf16>
    %cst_262 = arith.constant dense<0.000000e+00> : vector<2x32xf32>
    %862 = tpu.matmul %860, %861, %cst_262 {dimension_numbers = #tpu.dot_dimension_numbers<[1], [0], [0], [1], [0, 0, 1, 1], [], []>} : vector<2x8xbf16>, vector<8x32xbf16>, vector<2x32xf32> -> vector<2x32xf32>
    %863 = arith.addf %818, %862 : vector<2x32xf32>
    %864 = vector.extract_strided_slice %770 {offsets = [0, 16], sizes = [1, 8], strides = [1, 1]} : vector<2x32xbf16> to vector<1x8xbf16>
    %865 = vector.extract_strided_slice %771 {offsets = [0, 16], sizes = [1, 8], strides = [1, 1]} : vector<2x64xbf16> to vector<1x8xbf16>
    %866 = vector.extract_strided_slice %771 {offsets = [0, 48], sizes = [1, 8], strides = [1, 1]} : vector<2x64xbf16> to vector<1x8xbf16>
    %867 = arith.extf %864 : vector<1x8xbf16> to vector<1x8xf32>
    %868 = arith.extf %865 : vector<1x8xbf16> to vector<1x8xf32>
    %cst_263 = arith.constant dense<0.000000e+00> : vector<1xf32>
    %869 = arith.mulf %867, %868 : vector<1x8xf32>
    %870 = vector.multi_reduction <add>, %869, %cst_263 [1] : vector<1x8xf32> to vector<1xf32>
    %871 = vector.shape_cast %870 : vector<1xf32> to vector<1x1xf32>
    %cst_264 = arith.constant 0.353553385 : f32
    %872 = vector.broadcast %cst_264 : f32 to vector<1x1xf32>
    %873 = arith.mulf %871, %872 : vector<1x1xf32>
    %cst_265 = arith.constant dense<0xFF800000> : vector<1xf32>
    %874 = vector.multi_reduction <maximumf>, %873, %cst_265 [1] : vector<1x1xf32> to vector<1xf32>
    %875 = vector.shape_cast %874 : vector<1xf32> to vector<1x1xf32>
    %876 = arith.subf %873, %875 : vector<1x1xf32>
    %877 = math.exp %876 : vector<1x1xf32>
    %cst_266 = arith.constant dense<0.000000e+00> : vector<1xf32>
    %878 = vector.multi_reduction <add>, %877, %cst_266 [1] : vector<1x1xf32> to vector<1xf32>
    %879 = vector.shape_cast %878 : vector<1xf32> to vector<1x1xf32>
    %880 = tpu.reciprocal %879 {approx = true} : vector<1x1xf32> -> vector<1x1xf32>
    %881 = arith.mulf %877, %880 : vector<1x1xf32>
    %882 = arith.truncf %881 : vector<1x1xf32> to vector<1x1xbf16>
    %cst_267 = arith.constant dense<0.000000e+00> : vector<1x8xf32>
    %883 = tpu.matmul %882, %866, %cst_267 {dimension_numbers = #tpu.dot_dimension_numbers<[1], [0], [0], [1], [0, 0, 1, 1], [], []>} : vector<1x1xbf16>, vector<1x8xbf16>, vector<1x8xf32> -> vector<1x8xf32>
    %884 = vector.extract_strided_slice %770 {offsets = [1, 16], sizes = [1, 8], strides = [1, 1]} : vector<2x32xbf16> to vector<1x8xbf16>
    %885 = vector.extract_strided_slice %771 {offsets = [1, 16], sizes = [1, 8], strides = [1, 1]} : vector<2x64xbf16> to vector<1x8xbf16>
    %886 = vector.extract_strided_slice %771 {offsets = [1, 48], sizes = [1, 8], strides = [1, 1]} : vector<2x64xbf16> to vector<1x8xbf16>
    %887 = arith.extf %884 : vector<1x8xbf16> to vector<1x8xf32>
    %888 = arith.extf %885 : vector<1x8xbf16> to vector<1x8xf32>
    %cst_268 = arith.constant dense<0.000000e+00> : vector<1xf32>
    %889 = arith.mulf %887, %888 : vector<1x8xf32>
    %890 = vector.multi_reduction <add>, %889, %cst_268 [1] : vector<1x8xf32> to vector<1xf32>
    %891 = vector.shape_cast %890 : vector<1xf32> to vector<1x1xf32>
    %cst_269 = arith.constant 0.353553385 : f32
    %892 = vector.broadcast %cst_269 : f32 to vector<1x1xf32>
    %893 = arith.mulf %891, %892 : vector<1x1xf32>
    %cst_270 = arith.constant dense<0xFF800000> : vector<1xf32>
    %894 = vector.multi_reduction <maximumf>, %893, %cst_270 [1] : vector<1x1xf32> to vector<1xf32>
    %895 = vector.shape_cast %894 : vector<1xf32> to vector<1x1xf32>
    %896 = arith.subf %893, %895 : vector<1x1xf32>
    %897 = math.exp %896 : vector<1x1xf32>
    %cst_271 = arith.constant dense<0.000000e+00> : vector<1xf32>
    %898 = vector.multi_reduction <add>, %897, %cst_271 [1] : vector<1x1xf32> to vector<1xf32>
    %899 = vector.shape_cast %898 : vector<1xf32> to vector<1x1xf32>
    %900 = tpu.reciprocal %899 {approx = true} : vector<1x1xf32> -> vector<1x1xf32>
    %901 = arith.mulf %897, %900 : vector<1x1xf32>
    %902 = arith.truncf %901 : vector<1x1xf32> to vector<1x1xbf16>
    %cst_272 = arith.constant dense<0.000000e+00> : vector<1x8xf32>
    %903 = tpu.matmul %902, %886, %cst_272 {dimension_numbers = #tpu.dot_dimension_numbers<[1], [0], [0], [1], [0, 0, 1, 1], [], []>} : vector<1x1xbf16>, vector<1x8xbf16>, vector<1x8xf32> -> vector<1x8xf32>
    %904 = tpu.concatenate %883, %903 in 0 : vector<1x8xf32>, vector<1x8xf32> -> vector<2x8xf32>
    %905 = arith.truncf %904 : vector<2x8xf32> to vector<2x8xbf16>
    %906 = vector.extract_strided_slice %755 {offsets = [16, 0], sizes = [8, 32], strides = [1, 1]} : vector<32x32xbf16> to vector<8x32xbf16>
    %cst_273 = arith.constant dense<0.000000e+00> : vector<2x32xf32>
    %907 = tpu.matmul %905, %906, %cst_273 {dimension_numbers = #tpu.dot_dimension_numbers<[1], [0], [0], [1], [0, 0, 1, 1], [], []>} : vector<2x8xbf16>, vector<8x32xbf16>, vector<2x32xf32> -> vector<2x32xf32>
    %908 = arith.addf %863, %907 : vector<2x32xf32>
    %909 = vector.extract_strided_slice %770 {offsets = [0, 24], sizes = [1, 8], strides = [1, 1]} : vector<2x32xbf16> to vector<1x8xbf16>
    %910 = vector.extract_strided_slice %771 {offsets = [0, 24], sizes = [1, 8], strides = [1, 1]} : vector<2x64xbf16> to vector<1x8xbf16>
    %911 = vector.extract_strided_slice %771 {offsets = [0, 56], sizes = [1, 8], strides = [1, 1]} : vector<2x64xbf16> to vector<1x8xbf16>
    %912 = arith.extf %909 : vector<1x8xbf16> to vector<1x8xf32>
    %913 = arith.extf %910 : vector<1x8xbf16> to vector<1x8xf32>
    %cst_274 = arith.constant dense<0.000000e+00> : vector<1xf32>
    %914 = arith.mulf %912, %913 : vector<1x8xf32>
    %915 = vector.multi_reduction <add>, %914, %cst_274 [1] : vector<1x8xf32> to vector<1xf32>
    %916 = vector.shape_cast %915 : vector<1xf32> to vector<1x1xf32>
    %cst_275 = arith.constant 0.353553385 : f32
    %917 = vector.broadcast %cst_275 : f32 to vector<1x1xf32>
    %918 = arith.mulf %916, %917 : vector<1x1xf32>
    %cst_276 = arith.constant dense<0xFF800000> : vector<1xf32>
    %919 = vector.multi_reduction <maximumf>, %918, %cst_276 [1] : vector<1x1xf32> to vector<1xf32>
    %920 = vector.shape_cast %919 : vector<1xf32> to vector<1x1xf32>
    %921 = arith.subf %918, %920 : vector<1x1xf32>
    %922 = math.exp %921 : vector<1x1xf32>
    %cst_277 = arith.constant dense<0.000000e+00> : vector<1xf32>
    %923 = vector.multi_reduction <add>, %922, %cst_277 [1] : vector<1x1xf32> to vector<1xf32>
    %924 = vector.shape_cast %923 : vector<1xf32> to vector<1x1xf32>
    %925 = tpu.reciprocal %924 {approx = true} : vector<1x1xf32> -> vector<1x1xf32>
    %926 = arith.mulf %922, %925 : vector<1x1xf32>
    %927 = arith.truncf %926 : vector<1x1xf32> to vector<1x1xbf16>
    %cst_278 = arith.constant dense<0.000000e+00> : vector<1x8xf32>
    %928 = tpu.matmul %927, %911, %cst_278 {dimension_numbers = #tpu.dot_dimension_numbers<[1], [0], [0], [1], [0, 0, 1, 1], [], []>} : vector<1x1xbf16>, vector<1x8xbf16>, vector<1x8xf32> -> vector<1x8xf32>
    %929 = vector.extract_strided_slice %770 {offsets = [1, 24], sizes = [1, 8], strides = [1, 1]} : vector<2x32xbf16> to vector<1x8xbf16>
    %930 = vector.extract_strided_slice %771 {offsets = [1, 24], sizes = [1, 8], strides = [1, 1]} : vector<2x64xbf16> to vector<1x8xbf16>
    %931 = vector.extract_strided_slice %771 {offsets = [1, 56], sizes = [1, 8], strides = [1, 1]} : vector<2x64xbf16> to vector<1x8xbf16>
    %932 = arith.extf %929 : vector<1x8xbf16> to vector<1x8xf32>
    %933 = arith.extf %930 : vector<1x8xbf16> to vector<1x8xf32>
    %cst_279 = arith.constant dense<0.000000e+00> : vector<1xf32>
    %934 = arith.mulf %932, %933 : vector<1x8xf32>
    %935 = vector.multi_reduction <add>, %934, %cst_279 [1] : vector<1x8xf32> to vector<1xf32>
    %936 = vector.shape_cast %935 : vector<1xf32> to vector<1x1xf32>
    %cst_280 = arith.constant 0.353553385 : f32
    %937 = vector.broadcast %cst_280 : f32 to vector<1x1xf32>
    %938 = arith.mulf %936, %937 : vector<1x1xf32>
    %cst_281 = arith.constant dense<0xFF800000> : vector<1xf32>
    %939 = vector.multi_reduction <maximumf>, %938, %cst_281 [1] : vector<1x1xf32> to vector<1xf32>
    %940 = vector.shape_cast %939 : vector<1xf32> to vector<1x1xf32>
    %941 = arith.subf %938, %940 : vector<1x1xf32>
    %942 = math.exp %941 : vector<1x1xf32>
    %cst_282 = arith.constant dense<0.000000e+00> : vector<1xf32>
    %943 = vector.multi_reduction <add>, %942, %cst_282 [1] : vector<1x1xf32> to vector<1xf32>
    %944 = vector.shape_cast %943 : vector<1xf32> to vector<1x1xf32>
    %945 = tpu.reciprocal %944 {approx = true} : vector<1x1xf32> -> vector<1x1xf32>
    %946 = arith.mulf %942, %945 : vector<1x1xf32>
    %947 = arith.truncf %946 : vector<1x1xf32> to vector<1x1xbf16>
    %cst_283 = arith.constant dense<0.000000e+00> : vector<1x8xf32>
    %948 = tpu.matmul %947, %931, %cst_283 {dimension_numbers = #tpu.dot_dimension_numbers<[1], [0], [0], [1], [0, 0, 1, 1], [], []>} : vector<1x1xbf16>, vector<1x8xbf16>, vector<1x8xf32> -> vector<1x8xf32>
    %949 = tpu.concatenate %928, %948 in 0 : vector<1x8xf32>, vector<1x8xf32> -> vector<2x8xf32>
    %950 = arith.truncf %949 : vector<2x8xf32> to vector<2x8xbf16>
    %951 = vector.extract_strided_slice %755 {offsets = [24, 0], sizes = [8, 32], strides = [1, 1]} : vector<32x32xbf16> to vector<8x32xbf16>
    %cst_284 = arith.constant dense<0.000000e+00> : vector<2x32xf32>
    %952 = tpu.matmul %950, %951, %cst_284 {dimension_numbers = #tpu.dot_dimension_numbers<[1], [0], [0], [1], [0, 0, 1, 1], [], []>} : vector<2x8xbf16>, vector<8x32xbf16>, vector<2x32xf32> -> vector<2x32xf32>
    %953 = arith.addf %908, %952 : vector<2x32xf32>
    %c3 = arith.constant 3 : index
    %c0_285 = arith.constant 0 : index
    %c0_286 = arith.constant 0 : index
    %954 = vector.load %arg2[%c3, %c0_285, %c0_286] : memref<10x32x96xbf16, #tpu.memory_space<vmem>>, vector<1x32x96xbf16>
    %955 = vector.shape_cast %954 : vector<1x32x96xbf16> to vector<32x96xbf16>
    %c3_287 = arith.constant 3 : index
    %c0_288 = arith.constant 0 : index
    %c0_289 = arith.constant 0 : index
    %956 = vector.load %arg3[%c3_287, %c0_288, %c0_289] : memref<10x1x96xf32, #tpu.memory_space<vmem>>, vector<1x1x96xf32>
    %957 = vector.shape_cast %956 : vector<1x1x96xf32> to vector<1x96xf32>
    %c3_290 = arith.constant 3 : index
    %c0_291 = arith.constant 0 : index
    %c0_292 = arith.constant 0 : index
    %958 = vector.load %arg4[%c3_290, %c0_291, %c0_292] : memref<10x32x32xbf16, #tpu.memory_space<vmem>>, vector<1x32x32xbf16>
    %959 = vector.shape_cast %958 : vector<1x32x32xbf16> to vector<32x32xbf16>
    %c3_293 = arith.constant 3 : index
    %c0_294 = arith.constant 0 : index
    %c0_295 = arith.constant 0 : index
    %960 = vector.load %arg5[%c3_293, %c0_294, %c0_295] : memref<10x1x32xf32, #tpu.memory_space<vmem>>, vector<1x1x32xf32>
    %961 = vector.shape_cast %960 : vector<1x1x32xf32> to vector<1x32xf32>
    %962 = arith.truncf %564 : vector<2x32xf32> to vector<2x32xbf16>
    %963 = arith.truncf %749 : vector<2x32xf32> to vector<2x32xbf16>
    %964 = tpu.concatenate %963, %962 in 0 : vector<2x32xbf16>, vector<2x32xbf16> -> vector<4x32xbf16>
    %cst_296 = arith.constant dense<0.000000e+00> : vector<4x96xf32>
    %965 = tpu.matmul %964, %955, %cst_296 {dimension_numbers = #tpu.dot_dimension_numbers<[1], [0], [0], [1], [0, 0, 1, 1], [], []>} : vector<4x32xbf16>, vector<32x96xbf16>, vector<4x96xf32> -> vector<4x96xf32>
    %966 = vector.extract_strided_slice %965 {offsets = [0, 0], sizes = [2, 32], strides = [1, 1]} : vector<4x96xf32> to vector<2x32xf32>
    %967 = vector.extract_strided_slice %957 {offsets = [0, 0], sizes = [1, 32], strides = [1, 1]} : vector<1x96xf32> to vector<1x32xf32>
    %968 = vector.broadcast %967 : vector<1x32xf32> to vector<2x32xf32>
    %969 = arith.addf %966, %968 : vector<2x32xf32>
    %970 = vector.extract_strided_slice %965 {offsets = [2, 32], sizes = [2, 64], strides = [1, 1]} : vector<4x96xf32> to vector<2x64xf32>
    %971 = vector.extract_strided_slice %957 {offsets = [0, 32], sizes = [1, 64], strides = [1, 1]} : vector<1x96xf32> to vector<1x64xf32>
    %972 = vector.broadcast %971 : vector<1x64xf32> to vector<2x64xf32>
    %973 = arith.addf %970, %972 : vector<2x64xf32>
    %974 = arith.truncf %969 : vector<2x32xf32> to vector<2x32xbf16>
    %975 = arith.truncf %973 : vector<2x64xf32> to vector<2x64xbf16>
    %976 = vector.shape_cast %961 : vector<1x32xf32> to vector<1x32xf32>
    %977 = vector.broadcast %976 : vector<1x32xf32> to vector<2x32xf32>
    %978 = vector.extract_strided_slice %974 {offsets = [0, 0], sizes = [1, 8], strides = [1, 1]} : vector<2x32xbf16> to vector<1x8xbf16>
    %979 = vector.extract_strided_slice %975 {offsets = [0, 0], sizes = [1, 8], strides = [1, 1]} : vector<2x64xbf16> to vector<1x8xbf16>
    %980 = vector.extract_strided_slice %975 {offsets = [0, 32], sizes = [1, 8], strides = [1, 1]} : vector<2x64xbf16> to vector<1x8xbf16>
    %981 = arith.extf %978 : vector<1x8xbf16> to vector<1x8xf32>
    %982 = arith.extf %979 : vector<1x8xbf16> to vector<1x8xf32>
    %cst_297 = arith.constant dense<0.000000e+00> : vector<1xf32>
    %983 = arith.mulf %981, %982 : vector<1x8xf32>
    %984 = vector.multi_reduction <add>, %983, %cst_297 [1] : vector<1x8xf32> to vector<1xf32>
    %985 = vector.shape_cast %984 : vector<1xf32> to vector<1x1xf32>
    %cst_298 = arith.constant 0.353553385 : f32
    %986 = vector.broadcast %cst_298 : f32 to vector<1x1xf32>
    %987 = arith.mulf %985, %986 : vector<1x1xf32>
    %cst_299 = arith.constant dense<0xFF800000> : vector<1xf32>
    %988 = vector.multi_reduction <maximumf>, %987, %cst_299 [1] : vector<1x1xf32> to vector<1xf32>
    %989 = vector.shape_cast %988 : vector<1xf32> to vector<1x1xf32>
    %990 = arith.subf %987, %989 : vector<1x1xf32>
    %991 = math.exp %990 : vector<1x1xf32>
    %cst_300 = arith.constant dense<0.000000e+00> : vector<1xf32>
    %992 = vector.multi_reduction <add>, %991, %cst_300 [1] : vector<1x1xf32> to vector<1xf32>
    %993 = vector.shape_cast %992 : vector<1xf32> to vector<1x1xf32>
    %994 = tpu.reciprocal %993 {approx = true} : vector<1x1xf32> -> vector<1x1xf32>
    %995 = arith.mulf %991, %994 : vector<1x1xf32>
    %996 = arith.truncf %995 : vector<1x1xf32> to vector<1x1xbf16>
    %cst_301 = arith.constant dense<0.000000e+00> : vector<1x8xf32>
    %997 = tpu.matmul %996, %980, %cst_301 {dimension_numbers = #tpu.dot_dimension_numbers<[1], [0], [0], [1], [0, 0, 1, 1], [], []>} : vector<1x1xbf16>, vector<1x8xbf16>, vector<1x8xf32> -> vector<1x8xf32>
    %998 = vector.extract_strided_slice %974 {offsets = [1, 0], sizes = [1, 8], strides = [1, 1]} : vector<2x32xbf16> to vector<1x8xbf16>
    %999 = vector.extract_strided_slice %975 {offsets = [1, 0], sizes = [1, 8], strides = [1, 1]} : vector<2x64xbf16> to vector<1x8xbf16>
    %1000 = vector.extract_strided_slice %975 {offsets = [1, 32], sizes = [1, 8], strides = [1, 1]} : vector<2x64xbf16> to vector<1x8xbf16>
    %1001 = arith.extf %998 : vector<1x8xbf16> to vector<1x8xf32>
    %1002 = arith.extf %999 : vector<1x8xbf16> to vector<1x8xf32>
    %cst_302 = arith.constant dense<0.000000e+00> : vector<1xf32>
    %1003 = arith.mulf %1001, %1002 : vector<1x8xf32>
    %1004 = vector.multi_reduction <add>, %1003, %cst_302 [1] : vector<1x8xf32> to vector<1xf32>
    %1005 = vector.shape_cast %1004 : vector<1xf32> to vector<1x1xf32>
    %cst_303 = arith.constant 0.353553385 : f32
    %1006 = vector.broadcast %cst_303 : f32 to vector<1x1xf32>
    %1007 = arith.mulf %1005, %1006 : vector<1x1xf32>
    %cst_304 = arith.constant dense<0xFF800000> : vector<1xf32>
    %1008 = vector.multi_reduction <maximumf>, %1007, %cst_304 [1] : vector<1x1xf32> to vector<1xf32>
    %1009 = vector.shape_cast %1008 : vector<1xf32> to vector<1x1xf32>
    %1010 = arith.subf %1007, %1009 : vector<1x1xf32>
    %1011 = math.exp %1010 : vector<1x1xf32>
    %cst_305 = arith.constant dense<0.000000e+00> : vector<1xf32>
    %1012 = vector.multi_reduction <add>, %1011, %cst_305 [1] : vector<1x1xf32> to vector<1xf32>
    %1013 = vector.shape_cast %1012 : vector<1xf32> to vector<1x1xf32>
    %1014 = tpu.reciprocal %1013 {approx = true} : vector<1x1xf32> -> vector<1x1xf32>
    %1015 = arith.mulf %1011, %1014 : vector<1x1xf32>
    %1016 = arith.truncf %1015 : vector<1x1xf32> to vector<1x1xbf16>
    %cst_306 = arith.constant dense<0.000000e+00> : vector<1x8xf32>
    %1017 = tpu.matmul %1016, %1000, %cst_306 {dimension_numbers = #tpu.dot_dimension_numbers<[1], [0], [0], [1], [0, 0, 1, 1], [], []>} : vector<1x1xbf16>, vector<1x8xbf16>, vector<1x8xf32> -> vector<1x8xf32>
    %1018 = tpu.concatenate %997, %1017 in 0 : vector<1x8xf32>, vector<1x8xf32> -> vector<2x8xf32>
    %1019 = arith.truncf %1018 : vector<2x8xf32> to vector<2x8xbf16>
    %1020 = vector.extract_strided_slice %959 {offsets = [0, 0], sizes = [8, 32], strides = [1, 1]} : vector<32x32xbf16> to vector<8x32xbf16>
    %cst_307 = arith.constant dense<0.000000e+00> : vector<2x32xf32>
    %1021 = tpu.matmul %1019, %1020, %cst_307 {dimension_numbers = #tpu.dot_dimension_numbers<[1], [0], [0], [1], [0, 0, 1, 1], [], []>} : vector<2x8xbf16>, vector<8x32xbf16>, vector<2x32xf32> -> vector<2x32xf32>
    %1022 = arith.addf %977, %1021 : vector<2x32xf32>
    %1023 = vector.extract_strided_slice %974 {offsets = [0, 8], sizes = [1, 8], strides = [1, 1]} : vector<2x32xbf16> to vector<1x8xbf16>
    %1024 = vector.extract_strided_slice %975 {offsets = [0, 8], sizes = [1, 8], strides = [1, 1]} : vector<2x64xbf16> to vector<1x8xbf16>
    %1025 = vector.extract_strided_slice %975 {offsets = [0, 40], sizes = [1, 8], strides = [1, 1]} : vector<2x64xbf16> to vector<1x8xbf16>
    %1026 = arith.extf %1023 : vector<1x8xbf16> to vector<1x8xf32>
    %1027 = arith.extf %1024 : vector<1x8xbf16> to vector<1x8xf32>
    %cst_308 = arith.constant dense<0.000000e+00> : vector<1xf32>
    %1028 = arith.mulf %1026, %1027 : vector<1x8xf32>
    %1029 = vector.multi_reduction <add>, %1028, %cst_308 [1] : vector<1x8xf32> to vector<1xf32>
    %1030 = vector.shape_cast %1029 : vector<1xf32> to vector<1x1xf32>
    %cst_309 = arith.constant 0.353553385 : f32
    %1031 = vector.broadcast %cst_309 : f32 to vector<1x1xf32>
    %1032 = arith.mulf %1030, %1031 : vector<1x1xf32>
    %cst_310 = arith.constant dense<0xFF800000> : vector<1xf32>
    %1033 = vector.multi_reduction <maximumf>, %1032, %cst_310 [1] : vector<1x1xf32> to vector<1xf32>
    %1034 = vector.shape_cast %1033 : vector<1xf32> to vector<1x1xf32>
    %1035 = arith.subf %1032, %1034 : vector<1x1xf32>
    %1036 = math.exp %1035 : vector<1x1xf32>
    %cst_311 = arith.constant dense<0.000000e+00> : vector<1xf32>
    %1037 = vector.multi_reduction <add>, %1036, %cst_311 [1] : vector<1x1xf32> to vector<1xf32>
    %1038 = vector.shape_cast %1037 : vector<1xf32> to vector<1x1xf32>
    %1039 = tpu.reciprocal %1038 {approx = true} : vector<1x1xf32> -> vector<1x1xf32>
    %1040 = arith.mulf %1036, %1039 : vector<1x1xf32>
    %1041 = arith.truncf %1040 : vector<1x1xf32> to vector<1x1xbf16>
    %cst_312 = arith.constant dense<0.000000e+00> : vector<1x8xf32>
    %1042 = tpu.matmul %1041, %1025, %cst_312 {dimension_numbers = #tpu.dot_dimension_numbers<[1], [0], [0], [1], [0, 0, 1, 1], [], []>} : vector<1x1xbf16>, vector<1x8xbf16>, vector<1x8xf32> -> vector<1x8xf32>
    %1043 = vector.extract_strided_slice %974 {offsets = [1, 8], sizes = [1, 8], strides = [1, 1]} : vector<2x32xbf16> to vector<1x8xbf16>
    %1044 = vector.extract_strided_slice %975 {offsets = [1, 8], sizes = [1, 8], strides = [1, 1]} : vector<2x64xbf16> to vector<1x8xbf16>
    %1045 = vector.extract_strided_slice %975 {offsets = [1, 40], sizes = [1, 8], strides = [1, 1]} : vector<2x64xbf16> to vector<1x8xbf16>
    %1046 = arith.extf %1043 : vector<1x8xbf16> to vector<1x8xf32>
    %1047 = arith.extf %1044 : vector<1x8xbf16> to vector<1x8xf32>
    %cst_313 = arith.constant dense<0.000000e+00> : vector<1xf32>
    %1048 = arith.mulf %1046, %1047 : vector<1x8xf32>
    %1049 = vector.multi_reduction <add>, %1048, %cst_313 [1] : vector<1x8xf32> to vector<1xf32>
    %1050 = vector.shape_cast %1049 : vector<1xf32> to vector<1x1xf32>
    %cst_314 = arith.constant 0.353553385 : f32
    %1051 = vector.broadcast %cst_314 : f32 to vector<1x1xf32>
    %1052 = arith.mulf %1050, %1051 : vector<1x1xf32>
    %cst_315 = arith.constant dense<0xFF800000> : vector<1xf32>
    %1053 = vector.multi_reduction <maximumf>, %1052, %cst_315 [1] : vector<1x1xf32> to vector<1xf32>
    %1054 = vector.shape_cast %1053 : vector<1xf32> to vector<1x1xf32>
    %1055 = arith.subf %1052, %1054 : vector<1x1xf32>
    %1056 = math.exp %1055 : vector<1x1xf32>
    %cst_316 = arith.constant dense<0.000000e+00> : vector<1xf32>
    %1057 = vector.multi_reduction <add>, %1056, %cst_316 [1] : vector<1x1xf32> to vector<1xf32>
    %1058 = vector.shape_cast %1057 : vector<1xf32> to vector<1x1xf32>
    %1059 = tpu.reciprocal %1058 {approx = true} : vector<1x1xf32> -> vector<1x1xf32>
    %1060 = arith.mulf %1056, %1059 : vector<1x1xf32>
    %1061 = arith.truncf %1060 : vector<1x1xf32> to vector<1x1xbf16>
    %cst_317 = arith.constant dense<0.000000e+00> : vector<1x8xf32>
    %1062 = tpu.matmul %1061, %1045, %cst_317 {dimension_numbers = #tpu.dot_dimension_numbers<[1], [0], [0], [1], [0, 0, 1, 1], [], []>} : vector<1x1xbf16>, vector<1x8xbf16>, vector<1x8xf32> -> vector<1x8xf32>
    %1063 = tpu.concatenate %1042, %1062 in 0 : vector<1x8xf32>, vector<1x8xf32> -> vector<2x8xf32>
    %1064 = arith.truncf %1063 : vector<2x8xf32> to vector<2x8xbf16>
    %1065 = vector.extract_strided_slice %959 {offsets = [8, 0], sizes = [8, 32], strides = [1, 1]} : vector<32x32xbf16> to vector<8x32xbf16>
    %cst_318 = arith.constant dense<0.000000e+00> : vector<2x32xf32>
    %1066 = tpu.matmul %1064, %1065, %cst_318 {dimension_numbers = #tpu.dot_dimension_numbers<[1], [0], [0], [1], [0, 0, 1, 1], [], []>} : vector<2x8xbf16>, vector<8x32xbf16>, vector<2x32xf32> -> vector<2x32xf32>
    %1067 = arith.addf %1022, %1066 : vector<2x32xf32>
    %1068 = vector.extract_strided_slice %974 {offsets = [0, 16], sizes = [1, 8], strides = [1, 1]} : vector<2x32xbf16> to vector<1x8xbf16>
    %1069 = vector.extract_strided_slice %975 {offsets = [0, 16], sizes = [1, 8], strides = [1, 1]} : vector<2x64xbf16> to vector<1x8xbf16>
    %1070 = vector.extract_strided_slice %975 {offsets = [0, 48], sizes = [1, 8], strides = [1, 1]} : vector<2x64xbf16> to vector<1x8xbf16>
    %1071 = arith.extf %1068 : vector<1x8xbf16> to vector<1x8xf32>
    %1072 = arith.extf %1069 : vector<1x8xbf16> to vector<1x8xf32>
    %cst_319 = arith.constant dense<0.000000e+00> : vector<1xf32>
    %1073 = arith.mulf %1071, %1072 : vector<1x8xf32>
    %1074 = vector.multi_reduction <add>, %1073, %cst_319 [1] : vector<1x8xf32> to vector<1xf32>
    %1075 = vector.shape_cast %1074 : vector<1xf32> to vector<1x1xf32>
    %cst_320 = arith.constant 0.353553385 : f32
    %1076 = vector.broadcast %cst_320 : f32 to vector<1x1xf32>
    %1077 = arith.mulf %1075, %1076 : vector<1x1xf32>
    %cst_321 = arith.constant dense<0xFF800000> : vector<1xf32>
    %1078 = vector.multi_reduction <maximumf>, %1077, %cst_321 [1] : vector<1x1xf32> to vector<1xf32>
    %1079 = vector.shape_cast %1078 : vector<1xf32> to vector<1x1xf32>
    %1080 = arith.subf %1077, %1079 : vector<1x1xf32>
    %1081 = math.exp %1080 : vector<1x1xf32>
    %cst_322 = arith.constant dense<0.000000e+00> : vector<1xf32>
    %1082 = vector.multi_reduction <add>, %1081, %cst_322 [1] : vector<1x1xf32> to vector<1xf32>
    %1083 = vector.shape_cast %1082 : vector<1xf32> to vector<1x1xf32>
    %1084 = tpu.reciprocal %1083 {approx = true} : vector<1x1xf32> -> vector<1x1xf32>
    %1085 = arith.mulf %1081, %1084 : vector<1x1xf32>
    %1086 = arith.truncf %1085 : vector<1x1xf32> to vector<1x1xbf16>
    %cst_323 = arith.constant dense<0.000000e+00> : vector<1x8xf32>
    %1087 = tpu.matmul %1086, %1070, %cst_323 {dimension_numbers = #tpu.dot_dimension_numbers<[1], [0], [0], [1], [0, 0, 1, 1], [], []>} : vector<1x1xbf16>, vector<1x8xbf16>, vector<1x8xf32> -> vector<1x8xf32>
    %1088 = vector.extract_strided_slice %974 {offsets = [1, 16], sizes = [1, 8], strides = [1, 1]} : vector<2x32xbf16> to vector<1x8xbf16>
    %1089 = vector.extract_strided_slice %975 {offsets = [1, 16], sizes = [1, 8], strides = [1, 1]} : vector<2x64xbf16> to vector<1x8xbf16>
    %1090 = vector.extract_strided_slice %975 {offsets = [1, 48], sizes = [1, 8], strides = [1, 1]} : vector<2x64xbf16> to vector<1x8xbf16>
    %1091 = arith.extf %1088 : vector<1x8xbf16> to vector<1x8xf32>
    %1092 = arith.extf %1089 : vector<1x8xbf16> to vector<1x8xf32>
    %cst_324 = arith.constant dense<0.000000e+00> : vector<1xf32>
    %1093 = arith.mulf %1091, %1092 : vector<1x8xf32>
    %1094 = vector.multi_reduction <add>, %1093, %cst_324 [1] : vector<1x8xf32> to vector<1xf32>
    %1095 = vector.shape_cast %1094 : vector<1xf32> to vector<1x1xf32>
    %cst_325 = arith.constant 0.353553385 : f32
    %1096 = vector.broadcast %cst_325 : f32 to vector<1x1xf32>
    %1097 = arith.mulf %1095, %1096 : vector<1x1xf32>
    %cst_326 = arith.constant dense<0xFF800000> : vector<1xf32>
    %1098 = vector.multi_reduction <maximumf>, %1097, %cst_326 [1] : vector<1x1xf32> to vector<1xf32>
    %1099 = vector.shape_cast %1098 : vector<1xf32> to vector<1x1xf32>
    %1100 = arith.subf %1097, %1099 : vector<1x1xf32>
    %1101 = math.exp %1100 : vector<1x1xf32>
    %cst_327 = arith.constant dense<0.000000e+00> : vector<1xf32>
    %1102 = vector.multi_reduction <add>, %1101, %cst_327 [1] : vector<1x1xf32> to vector<1xf32>
    %1103 = vector.shape_cast %1102 : vector<1xf32> to vector<1x1xf32>
    %1104 = tpu.reciprocal %1103 {approx = true} : vector<1x1xf32> -> vector<1x1xf32>
    %1105 = arith.mulf %1101, %1104 : vector<1x1xf32>
    %1106 = arith.truncf %1105 : vector<1x1xf32> to vector<1x1xbf16>
    %cst_328 = arith.constant dense<0.000000e+00> : vector<1x8xf32>
    %1107 = tpu.matmul %1106, %1090, %cst_328 {dimension_numbers = #tpu.dot_dimension_numbers<[1], [0], [0], [1], [0, 0, 1, 1], [], []>} : vector<1x1xbf16>, vector<1x8xbf16>, vector<1x8xf32> -> vector<1x8xf32>
    %1108 = tpu.concatenate %1087, %1107 in 0 : vector<1x8xf32>, vector<1x8xf32> -> vector<2x8xf32>
    %1109 = arith.truncf %1108 : vector<2x8xf32> to vector<2x8xbf16>
    %1110 = vector.extract_strided_slice %959 {offsets = [16, 0], sizes = [8, 32], strides = [1, 1]} : vector<32x32xbf16> to vector<8x32xbf16>
    %cst_329 = arith.constant dense<0.000000e+00> : vector<2x32xf32>
    %1111 = tpu.matmul %1109, %1110, %cst_329 {dimension_numbers = #tpu.dot_dimension_numbers<[1], [0], [0], [1], [0, 0, 1, 1], [], []>} : vector<2x8xbf16>, vector<8x32xbf16>, vector<2x32xf32> -> vector<2x32xf32>
    %1112 = arith.addf %1067, %1111 : vector<2x32xf32>
    %1113 = vector.extract_strided_slice %974 {offsets = [0, 24], sizes = [1, 8], strides = [1, 1]} : vector<2x32xbf16> to vector<1x8xbf16>
    %1114 = vector.extract_strided_slice %975 {offsets = [0, 24], sizes = [1, 8], strides = [1, 1]} : vector<2x64xbf16> to vector<1x8xbf16>
    %1115 = vector.extract_strided_slice %975 {offsets = [0, 56], sizes = [1, 8], strides = [1, 1]} : vector<2x64xbf16> to vector<1x8xbf16>
    %1116 = arith.extf %1113 : vector<1x8xbf16> to vector<1x8xf32>
    %1117 = arith.extf %1114 : vector<1x8xbf16> to vector<1x8xf32>
    %cst_330 = arith.constant dense<0.000000e+00> : vector<1xf32>
    %1118 = arith.mulf %1116, %1117 : vector<1x8xf32>
    %1119 = vector.multi_reduction <add>, %1118, %cst_330 [1] : vector<1x8xf32> to vector<1xf32>
    %1120 = vector.shape_cast %1119 : vector<1xf32> to vector<1x1xf32>
    %cst_331 = arith.constant 0.353553385 : f32
    %1121 = vector.broadcast %cst_331 : f32 to vector<1x1xf32>
    %1122 = arith.mulf %1120, %1121 : vector<1x1xf32>
    %cst_332 = arith.constant dense<0xFF800000> : vector<1xf32>
    %1123 = vector.multi_reduction <maximumf>, %1122, %cst_332 [1] : vector<1x1xf32> to vector<1xf32>
    %1124 = vector.shape_cast %1123 : vector<1xf32> to vector<1x1xf32>
    %1125 = arith.subf %1122, %1124 : vector<1x1xf32>
    %1126 = math.exp %1125 : vector<1x1xf32>
    %cst_333 = arith.constant dense<0.000000e+00> : vector<1xf32>
    %1127 = vector.multi_reduction <add>, %1126, %cst_333 [1] : vector<1x1xf32> to vector<1xf32>
    %1128 = vector.shape_cast %1127 : vector<1xf32> to vector<1x1xf32>
    %1129 = tpu.reciprocal %1128 {approx = true} : vector<1x1xf32> -> vector<1x1xf32>
    %1130 = arith.mulf %1126, %1129 : vector<1x1xf32>
    %1131 = arith.truncf %1130 : vector<1x1xf32> to vector<1x1xbf16>
    %cst_334 = arith.constant dense<0.000000e+00> : vector<1x8xf32>
    %1132 = tpu.matmul %1131, %1115, %cst_334 {dimension_numbers = #tpu.dot_dimension_numbers<[1], [0], [0], [1], [0, 0, 1, 1], [], []>} : vector<1x1xbf16>, vector<1x8xbf16>, vector<1x8xf32> -> vector<1x8xf32>
    %1133 = vector.extract_strided_slice %974 {offsets = [1, 24], sizes = [1, 8], strides = [1, 1]} : vector<2x32xbf16> to vector<1x8xbf16>
    %1134 = vector.extract_strided_slice %975 {offsets = [1, 24], sizes = [1, 8], strides = [1, 1]} : vector<2x64xbf16> to vector<1x8xbf16>
    %1135 = vector.extract_strided_slice %975 {offsets = [1, 56], sizes = [1, 8], strides = [1, 1]} : vector<2x64xbf16> to vector<1x8xbf16>
    %1136 = arith.extf %1133 : vector<1x8xbf16> to vector<1x8xf32>
    %1137 = arith.extf %1134 : vector<1x8xbf16> to vector<1x8xf32>
    %cst_335 = arith.constant dense<0.000000e+00> : vector<1xf32>
    %1138 = arith.mulf %1136, %1137 : vector<1x8xf32>
    %1139 = vector.multi_reduction <add>, %1138, %cst_335 [1] : vector<1x8xf32> to vector<1xf32>
    %1140 = vector.shape_cast %1139 : vector<1xf32> to vector<1x1xf32>
    %cst_336 = arith.constant 0.353553385 : f32
    %1141 = vector.broadcast %cst_336 : f32 to vector<1x1xf32>
    %1142 = arith.mulf %1140, %1141 : vector<1x1xf32>
    %cst_337 = arith.constant dense<0xFF800000> : vector<1xf32>
    %1143 = vector.multi_reduction <maximumf>, %1142, %cst_337 [1] : vector<1x1xf32> to vector<1xf32>
    %1144 = vector.shape_cast %1143 : vector<1xf32> to vector<1x1xf32>
    %1145 = arith.subf %1142, %1144 : vector<1x1xf32>
    %1146 = math.exp %1145 : vector<1x1xf32>
    %cst_338 = arith.constant dense<0.000000e+00> : vector<1xf32>
    %1147 = vector.multi_reduction <add>, %1146, %cst_338 [1] : vector<1x1xf32> to vector<1xf32>
    %1148 = vector.shape_cast %1147 : vector<1xf32> to vector<1x1xf32>
    %1149 = tpu.reciprocal %1148 {approx = true} : vector<1x1xf32> -> vector<1x1xf32>
    %1150 = arith.mulf %1146, %1149 : vector<1x1xf32>
    %1151 = arith.truncf %1150 : vector<1x1xf32> to vector<1x1xbf16>
    %cst_339 = arith.constant dense<0.000000e+00> : vector<1x8xf32>
    %1152 = tpu.matmul %1151, %1135, %cst_339 {dimension_numbers = #tpu.dot_dimension_numbers<[1], [0], [0], [1], [0, 0, 1, 1], [], []>} : vector<1x1xbf16>, vector<1x8xbf16>, vector<1x8xf32> -> vector<1x8xf32>
    %1153 = tpu.concatenate %1132, %1152 in 0 : vector<1x8xf32>, vector<1x8xf32> -> vector<2x8xf32>
    %1154 = arith.truncf %1153 : vector<2x8xf32> to vector<2x8xbf16>
    %1155 = vector.extract_strided_slice %959 {offsets = [24, 0], sizes = [8, 32], strides = [1, 1]} : vector<32x32xbf16> to vector<8x32xbf16>
    %cst_340 = arith.constant dense<0.000000e+00> : vector<2x32xf32>
    %1156 = tpu.matmul %1154, %1155, %cst_340 {dimension_numbers = #tpu.dot_dimension_numbers<[1], [0], [0], [1], [0, 0, 1, 1], [], []>} : vector<2x8xbf16>, vector<8x32xbf16>, vector<2x32xf32> -> vector<2x32xf32>
    %1157 = arith.addf %1112, %1156 : vector<2x32xf32>
    %c5 = arith.constant 5 : index
    %c0_341 = arith.constant 0 : index
    %c0_342 = arith.constant 0 : index
    %1158 = vector.load %arg2[%c5, %c0_341, %c0_342] : memref<10x32x96xbf16, #tpu.memory_space<vmem>>, vector<1x32x96xbf16>
    %1159 = vector.shape_cast %1158 : vector<1x32x96xbf16> to vector<32x96xbf16>
    %c5_343 = arith.constant 5 : index
    %c0_344 = arith.constant 0 : index
    %c0_345 = arith.constant 0 : index
    %1160 = vector.load %arg3[%c5_343, %c0_344, %c0_345] : memref<10x1x96xf32, #tpu.memory_space<vmem>>, vector<1x1x96xf32>
    %1161 = vector.shape_cast %1160 : vector<1x1x96xf32> to vector<1x96xf32>
    %c5_346 = arith.constant 5 : index
    %c0_347 = arith.constant 0 : index
    %c0_348 = arith.constant 0 : index
    %1162 = vector.load %arg4[%c5_346, %c0_347, %c0_348] : memref<10x32x32xbf16, #tpu.memory_space<vmem>>, vector<1x32x32xbf16>
    %1163 = vector.shape_cast %1162 : vector<1x32x32xbf16> to vector<32x32xbf16>
    %c5_349 = arith.constant 5 : index
    %c0_350 = arith.constant 0 : index
    %c0_351 = arith.constant 0 : index
    %1164 = vector.load %arg5[%c5_349, %c0_350, %c0_351] : memref<10x1x32xf32, #tpu.memory_space<vmem>>, vector<1x1x32xf32>
    %1165 = vector.shape_cast %1164 : vector<1x1x32xf32> to vector<1x32xf32>
    %1166 = arith.truncf %953 : vector<2x32xf32> to vector<2x32xbf16>
    %cst_352 = arith.constant dense<0.000000e+00> : vector<2x96xf32>
    %1167 = tpu.matmul %1166, %1159, %cst_352 {dimension_numbers = #tpu.dot_dimension_numbers<[1], [0], [0], [1], [0, 0, 1, 1], [], []>} : vector<2x32xbf16>, vector<32x96xbf16>, vector<2x96xf32> -> vector<2x96xf32>
    %1168 = vector.broadcast %1161 : vector<1x96xf32> to vector<2x96xf32>
    %1169 = arith.addf %1167, %1168 : vector<2x96xf32>
    %1170 = vector.extract_strided_slice %1169 {offsets = [0, 0], sizes = [2, 32], strides = [1, 1]} : vector<2x96xf32> to vector<2x32xf32>
    %1171 = vector.extract_strided_slice %1169 {offsets = [0, 32], sizes = [2, 64], strides = [1, 1]} : vector<2x96xf32> to vector<2x64xf32>
    %1172 = arith.truncf %1170 : vector<2x32xf32> to vector<2x32xbf16>
    %1173 = arith.truncf %1171 : vector<2x64xf32> to vector<2x64xbf16>
    %1174 = vector.shape_cast %1165 : vector<1x32xf32> to vector<1x32xf32>
    %1175 = vector.broadcast %1174 : vector<1x32xf32> to vector<2x32xf32>
    %1176 = vector.extract_strided_slice %1172 {offsets = [0, 0], sizes = [1, 8], strides = [1, 1]} : vector<2x32xbf16> to vector<1x8xbf16>
    %1177 = vector.extract_strided_slice %1173 {offsets = [0, 0], sizes = [1, 8], strides = [1, 1]} : vector<2x64xbf16> to vector<1x8xbf16>
    %1178 = vector.extract_strided_slice %1173 {offsets = [0, 32], sizes = [1, 8], strides = [1, 1]} : vector<2x64xbf16> to vector<1x8xbf16>
    %1179 = arith.extf %1176 : vector<1x8xbf16> to vector<1x8xf32>
    %1180 = arith.extf %1177 : vector<1x8xbf16> to vector<1x8xf32>
    %cst_353 = arith.constant dense<0.000000e+00> : vector<1xf32>
    %1181 = arith.mulf %1179, %1180 : vector<1x8xf32>
    %1182 = vector.multi_reduction <add>, %1181, %cst_353 [1] : vector<1x8xf32> to vector<1xf32>
    %1183 = vector.shape_cast %1182 : vector<1xf32> to vector<1x1xf32>
    %cst_354 = arith.constant 0.353553385 : f32
    %1184 = vector.broadcast %cst_354 : f32 to vector<1x1xf32>
    %1185 = arith.mulf %1183, %1184 : vector<1x1xf32>
    %cst_355 = arith.constant dense<0xFF800000> : vector<1xf32>
    %1186 = vector.multi_reduction <maximumf>, %1185, %cst_355 [1] : vector<1x1xf32> to vector<1xf32>
    %1187 = vector.shape_cast %1186 : vector<1xf32> to vector<1x1xf32>
    %1188 = arith.subf %1185, %1187 : vector<1x1xf32>
    %1189 = math.exp %1188 : vector<1x1xf32>
    %cst_356 = arith.constant dense<0.000000e+00> : vector<1xf32>
    %1190 = vector.multi_reduction <add>, %1189, %cst_356 [1] : vector<1x1xf32> to vector<1xf32>
    %1191 = vector.shape_cast %1190 : vector<1xf32> to vector<1x1xf32>
    %1192 = tpu.reciprocal %1191 {approx = true} : vector<1x1xf32> -> vector<1x1xf32>
    %1193 = arith.mulf %1189, %1192 : vector<1x1xf32>
    %1194 = arith.truncf %1193 : vector<1x1xf32> to vector<1x1xbf16>
    %cst_357 = arith.constant dense<0.000000e+00> : vector<1x8xf32>
    %1195 = tpu.matmul %1194, %1178, %cst_357 {dimension_numbers = #tpu.dot_dimension_numbers<[1], [0], [0], [1], [0, 0, 1, 1], [], []>} : vector<1x1xbf16>, vector<1x8xbf16>, vector<1x8xf32> -> vector<1x8xf32>
    %1196 = vector.extract_strided_slice %1172 {offsets = [1, 0], sizes = [1, 8], strides = [1, 1]} : vector<2x32xbf16> to vector<1x8xbf16>
    %1197 = vector.extract_strided_slice %1173 {offsets = [1, 0], sizes = [1, 8], strides = [1, 1]} : vector<2x64xbf16> to vector<1x8xbf16>
    %1198 = vector.extract_strided_slice %1173 {offsets = [1, 32], sizes = [1, 8], strides = [1, 1]} : vector<2x64xbf16> to vector<1x8xbf16>
    %1199 = arith.extf %1196 : vector<1x8xbf16> to vector<1x8xf32>
    %1200 = arith.extf %1197 : vector<1x8xbf16> to vector<1x8xf32>
    %cst_358 = arith.constant dense<0.000000e+00> : vector<1xf32>
    %1201 = arith.mulf %1199, %1200 : vector<1x8xf32>
    %1202 = vector.multi_reduction <add>, %1201, %cst_358 [1] : vector<1x8xf32> to vector<1xf32>
    %1203 = vector.shape_cast %1202 : vector<1xf32> to vector<1x1xf32>
    %cst_359 = arith.constant 0.353553385 : f32
    %1204 = vector.broadcast %cst_359 : f32 to vector<1x1xf32>
    %1205 = arith.mulf %1203, %1204 : vector<1x1xf32>
    %cst_360 = arith.constant dense<0xFF800000> : vector<1xf32>
    %1206 = vector.multi_reduction <maximumf>, %1205, %cst_360 [1] : vector<1x1xf32> to vector<1xf32>
    %1207 = vector.shape_cast %1206 : vector<1xf32> to vector<1x1xf32>
    %1208 = arith.subf %1205, %1207 : vector<1x1xf32>
    %1209 = math.exp %1208 : vector<1x1xf32>
    %cst_361 = arith.constant dense<0.000000e+00> : vector<1xf32>
    %1210 = vector.multi_reduction <add>, %1209, %cst_361 [1] : vector<1x1xf32> to vector<1xf32>
    %1211 = vector.shape_cast %1210 : vector<1xf32> to vector<1x1xf32>
    %1212 = tpu.reciprocal %1211 {approx = true} : vector<1x1xf32> -> vector<1x1xf32>
    %1213 = arith.mulf %1209, %1212 : vector<1x1xf32>
    %1214 = arith.truncf %1213 : vector<1x1xf32> to vector<1x1xbf16>
    %cst_362 = arith.constant dense<0.000000e+00> : vector<1x8xf32>
    %1215 = tpu.matmul %1214, %1198, %cst_362 {dimension_numbers = #tpu.dot_dimension_numbers<[1], [0], [0], [1], [0, 0, 1, 1], [], []>} : vector<1x1xbf16>, vector<1x8xbf16>, vector<1x8xf32> -> vector<1x8xf32>
    %1216 = tpu.concatenate %1195, %1215 in 0 : vector<1x8xf32>, vector<1x8xf32> -> vector<2x8xf32>
    %1217 = arith.truncf %1216 : vector<2x8xf32> to vector<2x8xbf16>
    %1218 = vector.extract_strided_slice %1163 {offsets = [0, 0], sizes = [8, 32], strides = [1, 1]} : vector<32x32xbf16> to vector<8x32xbf16>
    %cst_363 = arith.constant dense<0.000000e+00> : vector<2x32xf32>
    %1219 = tpu.matmul %1217, %1218, %cst_363 {dimension_numbers = #tpu.dot_dimension_numbers<[1], [0], [0], [1], [0, 0, 1, 1], [], []>} : vector<2x8xbf16>, vector<8x32xbf16>, vector<2x32xf32> -> vector<2x32xf32>
    %1220 = arith.addf %1175, %1219 : vector<2x32xf32>
    %1221 = vector.extract_strided_slice %1172 {offsets = [0, 8], sizes = [1, 8], strides = [1, 1]} : vector<2x32xbf16> to vector<1x8xbf16>
    %1222 = vector.extract_strided_slice %1173 {offsets = [0, 8], sizes = [1, 8], strides = [1, 1]} : vector<2x64xbf16> to vector<1x8xbf16>
    %1223 = vector.extract_strided_slice %1173 {offsets = [0, 40], sizes = [1, 8], strides = [1, 1]} : vector<2x64xbf16> to vector<1x8xbf16>
    %1224 = arith.extf %1221 : vector<1x8xbf16> to vector<1x8xf32>
    %1225 = arith.extf %1222 : vector<1x8xbf16> to vector<1x8xf32>
    %cst_364 = arith.constant dense<0.000000e+00> : vector<1xf32>
    %1226 = arith.mulf %1224, %1225 : vector<1x8xf32>
    %1227 = vector.multi_reduction <add>, %1226, %cst_364 [1] : vector<1x8xf32> to vector<1xf32>
    %1228 = vector.shape_cast %1227 : vector<1xf32> to vector<1x1xf32>
    %cst_365 = arith.constant 0.353553385 : f32
    %1229 = vector.broadcast %cst_365 : f32 to vector<1x1xf32>
    %1230 = arith.mulf %1228, %1229 : vector<1x1xf32>
    %cst_366 = arith.constant dense<0xFF800000> : vector<1xf32>
    %1231 = vector.multi_reduction <maximumf>, %1230, %cst_366 [1] : vector<1x1xf32> to vector<1xf32>
    %1232 = vector.shape_cast %1231 : vector<1xf32> to vector<1x1xf32>
    %1233 = arith.subf %1230, %1232 : vector<1x1xf32>
    %1234 = math.exp %1233 : vector<1x1xf32>
    %cst_367 = arith.constant dense<0.000000e+00> : vector<1xf32>
    %1235 = vector.multi_reduction <add>, %1234, %cst_367 [1] : vector<1x1xf32> to vector<1xf32>
    %1236 = vector.shape_cast %1235 : vector<1xf32> to vector<1x1xf32>
    %1237 = tpu.reciprocal %1236 {approx = true} : vector<1x1xf32> -> vector<1x1xf32>
    %1238 = arith.mulf %1234, %1237 : vector<1x1xf32>
    %1239 = arith.truncf %1238 : vector<1x1xf32> to vector<1x1xbf16>
    %cst_368 = arith.constant dense<0.000000e+00> : vector<1x8xf32>
    %1240 = tpu.matmul %1239, %1223, %cst_368 {dimension_numbers = #tpu.dot_dimension_numbers<[1], [0], [0], [1], [0, 0, 1, 1], [], []>} : vector<1x1xbf16>, vector<1x8xbf16>, vector<1x8xf32> -> vector<1x8xf32>
    %1241 = vector.extract_strided_slice %1172 {offsets = [1, 8], sizes = [1, 8], strides = [1, 1]} : vector<2x32xbf16> to vector<1x8xbf16>
    %1242 = vector.extract_strided_slice %1173 {offsets = [1, 8], sizes = [1, 8], strides = [1, 1]} : vector<2x64xbf16> to vector<1x8xbf16>
    %1243 = vector.extract_strided_slice %1173 {offsets = [1, 40], sizes = [1, 8], strides = [1, 1]} : vector<2x64xbf16> to vector<1x8xbf16>
    %1244 = arith.extf %1241 : vector<1x8xbf16> to vector<1x8xf32>
    %1245 = arith.extf %1242 : vector<1x8xbf16> to vector<1x8xf32>
    %cst_369 = arith.constant dense<0.000000e+00> : vector<1xf32>
    %1246 = arith.mulf %1244, %1245 : vector<1x8xf32>
    %1247 = vector.multi_reduction <add>, %1246, %cst_369 [1] : vector<1x8xf32> to vector<1xf32>
    %1248 = vector.shape_cast %1247 : vector<1xf32> to vector<1x1xf32>
    %cst_370 = arith.constant 0.353553385 : f32
    %1249 = vector.broadcast %cst_370 : f32 to vector<1x1xf32>
    %1250 = arith.mulf %1248, %1249 : vector<1x1xf32>
    %cst_371 = arith.constant dense<0xFF800000> : vector<1xf32>
    %1251 = vector.multi_reduction <maximumf>, %1250, %cst_371 [1] : vector<1x1xf32> to vector<1xf32>
    %1252 = vector.shape_cast %1251 : vector<1xf32> to vector<1x1xf32>
    %1253 = arith.subf %1250, %1252 : vector<1x1xf32>
    %1254 = math.exp %1253 : vector<1x1xf32>
    %cst_372 = arith.constant dense<0.000000e+00> : vector<1xf32>
    %1255 = vector.multi_reduction <add>, %1254, %cst_372 [1] : vector<1x1xf32> to vector<1xf32>
    %1256 = vector.shape_cast %1255 : vector<1xf32> to vector<1x1xf32>
    %1257 = tpu.reciprocal %1256 {approx = true} : vector<1x1xf32> -> vector<1x1xf32>
    %1258 = arith.mulf %1254, %1257 : vector<1x1xf32>
    %1259 = arith.truncf %1258 : vector<1x1xf32> to vector<1x1xbf16>
    %cst_373 = arith.constant dense<0.000000e+00> : vector<1x8xf32>
    %1260 = tpu.matmul %1259, %1243, %cst_373 {dimension_numbers = #tpu.dot_dimension_numbers<[1], [0], [0], [1], [0, 0, 1, 1], [], []>} : vector<1x1xbf16>, vector<1x8xbf16>, vector<1x8xf32> -> vector<1x8xf32>
    %1261 = tpu.concatenate %1240, %1260 in 0 : vector<1x8xf32>, vector<1x8xf32> -> vector<2x8xf32>
    %1262 = arith.truncf %1261 : vector<2x8xf32> to vector<2x8xbf16>
    %1263 = vector.extract_strided_slice %1163 {offsets = [8, 0], sizes = [8, 32], strides = [1, 1]} : vector<32x32xbf16> to vector<8x32xbf16>
    %cst_374 = arith.constant dense<0.000000e+00> : vector<2x32xf32>
    %1264 = tpu.matmul %1262, %1263, %cst_374 {dimension_numbers = #tpu.dot_dimension_numbers<[1], [0], [0], [1], [0, 0, 1, 1], [], []>} : vector<2x8xbf16>, vector<8x32xbf16>, vector<2x32xf32> -> vector<2x32xf32>
    %1265 = arith.addf %1220, %1264 : vector<2x32xf32>
    %1266 = vector.extract_strided_slice %1172 {offsets = [0, 16], sizes = [1, 8], strides = [1, 1]} : vector<2x32xbf16> to vector<1x8xbf16>
    %1267 = vector.extract_strided_slice %1173 {offsets = [0, 16], sizes = [1, 8], strides = [1, 1]} : vector<2x64xbf16> to vector<1x8xbf16>
    %1268 = vector.extract_strided_slice %1173 {offsets = [0, 48], sizes = [1, 8], strides = [1, 1]} : vector<2x64xbf16> to vector<1x8xbf16>
    %1269 = arith.extf %1266 : vector<1x8xbf16> to vector<1x8xf32>
    %1270 = arith.extf %1267 : vector<1x8xbf16> to vector<1x8xf32>
    %cst_375 = arith.constant dense<0.000000e+00> : vector<1xf32>
    %1271 = arith.mulf %1269, %1270 : vector<1x8xf32>
    %1272 = vector.multi_reduction <add>, %1271, %cst_375 [1] : vector<1x8xf32> to vector<1xf32>
    %1273 = vector.shape_cast %1272 : vector<1xf32> to vector<1x1xf32>
    %cst_376 = arith.constant 0.353553385 : f32
    %1274 = vector.broadcast %cst_376 : f32 to vector<1x1xf32>
    %1275 = arith.mulf %1273, %1274 : vector<1x1xf32>
    %cst_377 = arith.constant dense<0xFF800000> : vector<1xf32>
    %1276 = vector.multi_reduction <maximumf>, %1275, %cst_377 [1] : vector<1x1xf32> to vector<1xf32>
    %1277 = vector.shape_cast %1276 : vector<1xf32> to vector<1x1xf32>
    %1278 = arith.subf %1275, %1277 : vector<1x1xf32>
    %1279 = math.exp %1278 : vector<1x1xf32>
    %cst_378 = arith.constant dense<0.000000e+00> : vector<1xf32>
    %1280 = vector.multi_reduction <add>, %1279, %cst_378 [1] : vector<1x1xf32> to vector<1xf32>
    %1281 = vector.shape_cast %1280 : vector<1xf32> to vector<1x1xf32>
    %1282 = tpu.reciprocal %1281 {approx = true} : vector<1x1xf32> -> vector<1x1xf32>
    %1283 = arith.mulf %1279, %1282 : vector<1x1xf32>
    %1284 = arith.truncf %1283 : vector<1x1xf32> to vector<1x1xbf16>
    %cst_379 = arith.constant dense<0.000000e+00> : vector<1x8xf32>
    %1285 = tpu.matmul %1284, %1268, %cst_379 {dimension_numbers = #tpu.dot_dimension_numbers<[1], [0], [0], [1], [0, 0, 1, 1], [], []>} : vector<1x1xbf16>, vector<1x8xbf16>, vector<1x8xf32> -> vector<1x8xf32>
    %1286 = vector.extract_strided_slice %1172 {offsets = [1, 16], sizes = [1, 8], strides = [1, 1]} : vector<2x32xbf16> to vector<1x8xbf16>
    %1287 = vector.extract_strided_slice %1173 {offsets = [1, 16], sizes = [1, 8], strides = [1, 1]} : vector<2x64xbf16> to vector<1x8xbf16>
    %1288 = vector.extract_strided_slice %1173 {offsets = [1, 48], sizes = [1, 8], strides = [1, 1]} : vector<2x64xbf16> to vector<1x8xbf16>
    %1289 = arith.extf %1286 : vector<1x8xbf16> to vector<1x8xf32>
    %1290 = arith.extf %1287 : vector<1x8xbf16> to vector<1x8xf32>
    %cst_380 = arith.constant dense<0.000000e+00> : vector<1xf32>
    %1291 = arith.mulf %1289, %1290 : vector<1x8xf32>
    %1292 = vector.multi_reduction <add>, %1291, %cst_380 [1] : vector<1x8xf32> to vector<1xf32>
    %1293 = vector.shape_cast %1292 : vector<1xf32> to vector<1x1xf32>
    %cst_381 = arith.constant 0.353553385 : f32
    %1294 = vector.broadcast %cst_381 : f32 to vector<1x1xf32>
    %1295 = arith.mulf %1293, %1294 : vector<1x1xf32>
    %cst_382 = arith.constant dense<0xFF800000> : vector<1xf32>
    %1296 = vector.multi_reduction <maximumf>, %1295, %cst_382 [1] : vector<1x1xf32> to vector<1xf32>
    %1297 = vector.shape_cast %1296 : vector<1xf32> to vector<1x1xf32>
    %1298 = arith.subf %1295, %1297 : vector<1x1xf32>
    %1299 = math.exp %1298 : vector<1x1xf32>
    %cst_383 = arith.constant dense<0.000000e+00> : vector<1xf32>
    %1300 = vector.multi_reduction <add>, %1299, %cst_383 [1] : vector<1x1xf32> to vector<1xf32>
    %1301 = vector.shape_cast %1300 : vector<1xf32> to vector<1x1xf32>
    %1302 = tpu.reciprocal %1301 {approx = true} : vector<1x1xf32> -> vector<1x1xf32>
    %1303 = arith.mulf %1299, %1302 : vector<1x1xf32>
    %1304 = arith.truncf %1303 : vector<1x1xf32> to vector<1x1xbf16>
    %cst_384 = arith.constant dense<0.000000e+00> : vector<1x8xf32>
    %1305 = tpu.matmul %1304, %1288, %cst_384 {dimension_numbers = #tpu.dot_dimension_numbers<[1], [0], [0], [1], [0, 0, 1, 1], [], []>} : vector<1x1xbf16>, vector<1x8xbf16>, vector<1x8xf32> -> vector<1x8xf32>
    %1306 = tpu.concatenate %1285, %1305 in 0 : vector<1x8xf32>, vector<1x8xf32> -> vector<2x8xf32>
    %1307 = arith.truncf %1306 : vector<2x8xf32> to vector<2x8xbf16>
    %1308 = vector.extract_strided_slice %1163 {offsets = [16, 0], sizes = [8, 32], strides = [1, 1]} : vector<32x32xbf16> to vector<8x32xbf16>
    %cst_385 = arith.constant dense<0.000000e+00> : vector<2x32xf32>
    %1309 = tpu.matmul %1307, %1308, %cst_385 {dimension_numbers = #tpu.dot_dimension_numbers<[1], [0], [0], [1], [0, 0, 1, 1], [], []>} : vector<2x8xbf16>, vector<8x32xbf16>, vector<2x32xf32> -> vector<2x32xf32>
    %1310 = arith.addf %1265, %1309 : vector<2x32xf32>
    %1311 = vector.extract_strided_slice %1172 {offsets = [0, 24], sizes = [1, 8], strides = [1, 1]} : vector<2x32xbf16> to vector<1x8xbf16>
    %1312 = vector.extract_strided_slice %1173 {offsets = [0, 24], sizes = [1, 8], strides = [1, 1]} : vector<2x64xbf16> to vector<1x8xbf16>
    %1313 = vector.extract_strided_slice %1173 {offsets = [0, 56], sizes = [1, 8], strides = [1, 1]} : vector<2x64xbf16> to vector<1x8xbf16>
    %1314 = arith.extf %1311 : vector<1x8xbf16> to vector<1x8xf32>
    %1315 = arith.extf %1312 : vector<1x8xbf16> to vector<1x8xf32>
    %cst_386 = arith.constant dense<0.000000e+00> : vector<1xf32>
    %1316 = arith.mulf %1314, %1315 : vector<1x8xf32>
    %1317 = vector.multi_reduction <add>, %1316, %cst_386 [1] : vector<1x8xf32> to vector<1xf32>
    %1318 = vector.shape_cast %1317 : vector<1xf32> to vector<1x1xf32>
    %cst_387 = arith.constant 0.353553385 : f32
    %1319 = vector.broadcast %cst_387 : f32 to vector<1x1xf32>
    %1320 = arith.mulf %1318, %1319 : vector<1x1xf32>
    %cst_388 = arith.constant dense<0xFF800000> : vector<1xf32>
    %1321 = vector.multi_reduction <maximumf>, %1320, %cst_388 [1] : vector<1x1xf32> to vector<1xf32>
    %1322 = vector.shape_cast %1321 : vector<1xf32> to vector<1x1xf32>
    %1323 = arith.subf %1320, %1322 : vector<1x1xf32>
    %1324 = math.exp %1323 : vector<1x1xf32>
    %cst_389 = arith.constant dense<0.000000e+00> : vector<1xf32>
    %1325 = vector.multi_reduction <add>, %1324, %cst_389 [1] : vector<1x1xf32> to vector<1xf32>
    %1326 = vector.shape_cast %1325 : vector<1xf32> to vector<1x1xf32>
    %1327 = tpu.reciprocal %1326 {approx = true} : vector<1x1xf32> -> vector<1x1xf32>
    %1328 = arith.mulf %1324, %1327 : vector<1x1xf32>
    %1329 = arith.truncf %1328 : vector<1x1xf32> to vector<1x1xbf16>
    %cst_390 = arith.constant dense<0.000000e+00> : vector<1x8xf32>
    %1330 = tpu.matmul %1329, %1313, %cst_390 {dimension_numbers = #tpu.dot_dimension_numbers<[1], [0], [0], [1], [0, 0, 1, 1], [], []>} : vector<1x1xbf16>, vector<1x8xbf16>, vector<1x8xf32> -> vector<1x8xf32>
    %1331 = vector.extract_strided_slice %1172 {offsets = [1, 24], sizes = [1, 8], strides = [1, 1]} : vector<2x32xbf16> to vector<1x8xbf16>
    %1332 = vector.extract_strided_slice %1173 {offsets = [1, 24], sizes = [1, 8], strides = [1, 1]} : vector<2x64xbf16> to vector<1x8xbf16>
    %1333 = vector.extract_strided_slice %1173 {offsets = [1, 56], sizes = [1, 8], strides = [1, 1]} : vector<2x64xbf16> to vector<1x8xbf16>
    %1334 = arith.extf %1331 : vector<1x8xbf16> to vector<1x8xf32>
    %1335 = arith.extf %1332 : vector<1x8xbf16> to vector<1x8xf32>
    %cst_391 = arith.constant dense<0.000000e+00> : vector<1xf32>
    %1336 = arith.mulf %1334, %1335 : vector<1x8xf32>
    %1337 = vector.multi_reduction <add>, %1336, %cst_391 [1] : vector<1x8xf32> to vector<1xf32>
    %1338 = vector.shape_cast %1337 : vector<1xf32> to vector<1x1xf32>
    %cst_392 = arith.constant 0.353553385 : f32
    %1339 = vector.broadcast %cst_392 : f32 to vector<1x1xf32>
    %1340 = arith.mulf %1338, %1339 : vector<1x1xf32>
    %cst_393 = arith.constant dense<0xFF800000> : vector<1xf32>
    %1341 = vector.multi_reduction <maximumf>, %1340, %cst_393 [1] : vector<1x1xf32> to vector<1xf32>
    %1342 = vector.shape_cast %1341 : vector<1xf32> to vector<1x1xf32>
    %1343 = arith.subf %1340, %1342 : vector<1x1xf32>
    %1344 = math.exp %1343 : vector<1x1xf32>
    %cst_394 = arith.constant dense<0.000000e+00> : vector<1xf32>
    %1345 = vector.multi_reduction <add>, %1344, %cst_394 [1] : vector<1x1xf32> to vector<1xf32>
    %1346 = vector.shape_cast %1345 : vector<1xf32> to vector<1x1xf32>
    %1347 = tpu.reciprocal %1346 {approx = true} : vector<1x1xf32> -> vector<1x1xf32>
    %1348 = arith.mulf %1344, %1347 : vector<1x1xf32>
    %1349 = arith.truncf %1348 : vector<1x1xf32> to vector<1x1xbf16>
    %cst_395 = arith.constant dense<0.000000e+00> : vector<1x8xf32>
    %1350 = tpu.matmul %1349, %1333, %cst_395 {dimension_numbers = #tpu.dot_dimension_numbers<[1], [0], [0], [1], [0, 0, 1, 1], [], []>} : vector<1x1xbf16>, vector<1x8xbf16>, vector<1x8xf32> -> vector<1x8xf32>
    %1351 = tpu.concatenate %1330, %1350 in 0 : vector<1x8xf32>, vector<1x8xf32> -> vector<2x8xf32>
    %1352 = arith.truncf %1351 : vector<2x8xf32> to vector<2x8xbf16>
    %1353 = vector.extract_strided_slice %1163 {offsets = [24, 0], sizes = [8, 32], strides = [1, 1]} : vector<32x32xbf16> to vector<8x32xbf16>
    %cst_396 = arith.constant dense<0.000000e+00> : vector<2x32xf32>
    %1354 = tpu.matmul %1352, %1353, %cst_396 {dimension_numbers = #tpu.dot_dimension_numbers<[1], [0], [0], [1], [0, 0, 1, 1], [], []>} : vector<2x8xbf16>, vector<8x32xbf16>, vector<2x32xf32> -> vector<2x32xf32>
    %1355 = arith.addf %1310, %1354 : vector<2x32xf32>
    %c7 = arith.constant 7 : index
    %c0_397 = arith.constant 0 : index
    %c0_398 = arith.constant 0 : index
    %1356 = vector.load %arg2[%c7, %c0_397, %c0_398] : memref<10x32x96xbf16, #tpu.memory_space<vmem>>, vector<1x32x96xbf16>
    %1357 = vector.shape_cast %1356 : vector<1x32x96xbf16> to vector<32x96xbf16>
    %c7_399 = arith.constant 7 : index
    %c0_400 = arith.constant 0 : index
    %c0_401 = arith.constant 0 : index
    %1358 = vector.load %arg3[%c7_399, %c0_400, %c0_401] : memref<10x1x96xf32, #tpu.memory_space<vmem>>, vector<1x1x96xf32>
    %1359 = vector.shape_cast %1358 : vector<1x1x96xf32> to vector<1x96xf32>
    %c7_402 = arith.constant 7 : index
    %c0_403 = arith.constant 0 : index
    %c0_404 = arith.constant 0 : index
    %1360 = vector.load %arg4[%c7_402, %c0_403, %c0_404] : memref<10x32x32xbf16, #tpu.memory_space<vmem>>, vector<1x32x32xbf16>
    %1361 = vector.shape_cast %1360 : vector<1x32x32xbf16> to vector<32x32xbf16>
    %c7_405 = arith.constant 7 : index
    %c0_406 = arith.constant 0 : index
    %c0_407 = arith.constant 0 : index
    %1362 = vector.load %arg5[%c7_405, %c0_406, %c0_407] : memref<10x1x32xf32, #tpu.memory_space<vmem>>, vector<1x1x32xf32>
    %1363 = vector.shape_cast %1362 : vector<1x1x32xf32> to vector<1x32xf32>
    %1364 = arith.truncf %1157 : vector<2x32xf32> to vector<2x32xbf16>
    %cst_408 = arith.constant dense<0.000000e+00> : vector<2x96xf32>
    %1365 = tpu.matmul %1364, %1357, %cst_408 {dimension_numbers = #tpu.dot_dimension_numbers<[1], [0], [0], [1], [0, 0, 1, 1], [], []>} : vector<2x32xbf16>, vector<32x96xbf16>, vector<2x96xf32> -> vector<2x96xf32>
    %1366 = vector.broadcast %1359 : vector<1x96xf32> to vector<2x96xf32>
    %1367 = arith.addf %1365, %1366 : vector<2x96xf32>
    %1368 = vector.extract_strided_slice %1367 {offsets = [0, 0], sizes = [2, 32], strides = [1, 1]} : vector<2x96xf32> to vector<2x32xf32>
    %1369 = vector.extract_strided_slice %1367 {offsets = [0, 32], sizes = [2, 64], strides = [1, 1]} : vector<2x96xf32> to vector<2x64xf32>
    %1370 = arith.truncf %1368 : vector<2x32xf32> to vector<2x32xbf16>
    %1371 = arith.truncf %1369 : vector<2x64xf32> to vector<2x64xbf16>
    %1372 = vector.shape_cast %1363 : vector<1x32xf32> to vector<1x32xf32>
    %1373 = vector.broadcast %1372 : vector<1x32xf32> to vector<2x32xf32>
    %1374 = vector.extract_strided_slice %1370 {offsets = [0, 0], sizes = [1, 8], strides = [1, 1]} : vector<2x32xbf16> to vector<1x8xbf16>
    %1375 = vector.extract_strided_slice %1371 {offsets = [0, 0], sizes = [1, 8], strides = [1, 1]} : vector<2x64xbf16> to vector<1x8xbf16>
    %1376 = vector.extract_strided_slice %1371 {offsets = [0, 32], sizes = [1, 8], strides = [1, 1]} : vector<2x64xbf16> to vector<1x8xbf16>
    %1377 = arith.extf %1374 : vector<1x8xbf16> to vector<1x8xf32>
    %1378 = arith.extf %1375 : vector<1x8xbf16> to vector<1x8xf32>
    %cst_409 = arith.constant dense<0.000000e+00> : vector<1xf32>
    %1379 = arith.mulf %1377, %1378 : vector<1x8xf32>
    %1380 = vector.multi_reduction <add>, %1379, %cst_409 [1] : vector<1x8xf32> to vector<1xf32>
    %1381 = vector.shape_cast %1380 : vector<1xf32> to vector<1x1xf32>
    %cst_410 = arith.constant 0.353553385 : f32
    %1382 = vector.broadcast %cst_410 : f32 to vector<1x1xf32>
    %1383 = arith.mulf %1381, %1382 : vector<1x1xf32>
    %cst_411 = arith.constant dense<0xFF800000> : vector<1xf32>
    %1384 = vector.multi_reduction <maximumf>, %1383, %cst_411 [1] : vector<1x1xf32> to vector<1xf32>
    %1385 = vector.shape_cast %1384 : vector<1xf32> to vector<1x1xf32>
    %1386 = arith.subf %1383, %1385 : vector<1x1xf32>
    %1387 = math.exp %1386 : vector<1x1xf32>
    %cst_412 = arith.constant dense<0.000000e+00> : vector<1xf32>
    %1388 = vector.multi_reduction <add>, %1387, %cst_412 [1] : vector<1x1xf32> to vector<1xf32>
    %1389 = vector.shape_cast %1388 : vector<1xf32> to vector<1x1xf32>
    %1390 = tpu.reciprocal %1389 {approx = true} : vector<1x1xf32> -> vector<1x1xf32>
    %1391 = arith.mulf %1387, %1390 : vector<1x1xf32>
    %1392 = arith.truncf %1391 : vector<1x1xf32> to vector<1x1xbf16>
    %cst_413 = arith.constant dense<0.000000e+00> : vector<1x8xf32>
    %1393 = tpu.matmul %1392, %1376, %cst_413 {dimension_numbers = #tpu.dot_dimension_numbers<[1], [0], [0], [1], [0, 0, 1, 1], [], []>} : vector<1x1xbf16>, vector<1x8xbf16>, vector<1x8xf32> -> vector<1x8xf32>
    %1394 = vector.extract_strided_slice %1370 {offsets = [1, 0], sizes = [1, 8], strides = [1, 1]} : vector<2x32xbf16> to vector<1x8xbf16>
    %1395 = vector.extract_strided_slice %1371 {offsets = [1, 0], sizes = [1, 8], strides = [1, 1]} : vector<2x64xbf16> to vector<1x8xbf16>
    %1396 = vector.extract_strided_slice %1371 {offsets = [1, 32], sizes = [1, 8], strides = [1, 1]} : vector<2x64xbf16> to vector<1x8xbf16>
    %1397 = arith.extf %1394 : vector<1x8xbf16> to vector<1x8xf32>
    %1398 = arith.extf %1395 : vector<1x8xbf16> to vector<1x8xf32>
    %cst_414 = arith.constant dense<0.000000e+00> : vector<1xf32>
    %1399 = arith.mulf %1397, %1398 : vector<1x8xf32>
    %1400 = vector.multi_reduction <add>, %1399, %cst_414 [1] : vector<1x8xf32> to vector<1xf32>
    %1401 = vector.shape_cast %1400 : vector<1xf32> to vector<1x1xf32>
    %cst_415 = arith.constant 0.353553385 : f32
    %1402 = vector.broadcast %cst_415 : f32 to vector<1x1xf32>
    %1403 = arith.mulf %1401, %1402 : vector<1x1xf32>
    %cst_416 = arith.constant dense<0xFF800000> : vector<1xf32>
    %1404 = vector.multi_reduction <maximumf>, %1403, %cst_416 [1] : vector<1x1xf32> to vector<1xf32>
    %1405 = vector.shape_cast %1404 : vector<1xf32> to vector<1x1xf32>
    %1406 = arith.subf %1403, %1405 : vector<1x1xf32>
    %1407 = math.exp %1406 : vector<1x1xf32>
    %cst_417 = arith.constant dense<0.000000e+00> : vector<1xf32>
    %1408 = vector.multi_reduction <add>, %1407, %cst_417 [1] : vector<1x1xf32> to vector<1xf32>
    %1409 = vector.shape_cast %1408 : vector<1xf32> to vector<1x1xf32>
    %1410 = tpu.reciprocal %1409 {approx = true} : vector<1x1xf32> -> vector<1x1xf32>
    %1411 = arith.mulf %1407, %1410 : vector<1x1xf32>
    %1412 = arith.truncf %1411 : vector<1x1xf32> to vector<1x1xbf16>
    %cst_418 = arith.constant dense<0.000000e+00> : vector<1x8xf32>
    %1413 = tpu.matmul %1412, %1396, %cst_418 {dimension_numbers = #tpu.dot_dimension_numbers<[1], [0], [0], [1], [0, 0, 1, 1], [], []>} : vector<1x1xbf16>, vector<1x8xbf16>, vector<1x8xf32> -> vector<1x8xf32>
    %1414 = tpu.concatenate %1393, %1413 in 0 : vector<1x8xf32>, vector<1x8xf32> -> vector<2x8xf32>
    %1415 = arith.truncf %1414 : vector<2x8xf32> to vector<2x8xbf16>
    %1416 = vector.extract_strided_slice %1361 {offsets = [0, 0], sizes = [8, 32], strides = [1, 1]} : vector<32x32xbf16> to vector<8x32xbf16>
    %cst_419 = arith.constant dense<0.000000e+00> : vector<2x32xf32>
    %1417 = tpu.matmul %1415, %1416, %cst_419 {dimension_numbers = #tpu.dot_dimension_numbers<[1], [0], [0], [1], [0, 0, 1, 1], [], []>} : vector<2x8xbf16>, vector<8x32xbf16>, vector<2x32xf32> -> vector<2x32xf32>
    %1418 = arith.addf %1373, %1417 : vector<2x32xf32>
    %1419 = vector.extract_strided_slice %1370 {offsets = [0, 8], sizes = [1, 8], strides = [1, 1]} : vector<2x32xbf16> to vector<1x8xbf16>
    %1420 = vector.extract_strided_slice %1371 {offsets = [0, 8], sizes = [1, 8], strides = [1, 1]} : vector<2x64xbf16> to vector<1x8xbf16>
    %1421 = vector.extract_strided_slice %1371 {offsets = [0, 40], sizes = [1, 8], strides = [1, 1]} : vector<2x64xbf16> to vector<1x8xbf16>
    %1422 = arith.extf %1419 : vector<1x8xbf16> to vector<1x8xf32>
    %1423 = arith.extf %1420 : vector<1x8xbf16> to vector<1x8xf32>
    %cst_420 = arith.constant dense<0.000000e+00> : vector<1xf32>
    %1424 = arith.mulf %1422, %1423 : vector<1x8xf32>
    %1425 = vector.multi_reduction <add>, %1424, %cst_420 [1] : vector<1x8xf32> to vector<1xf32>
    %1426 = vector.shape_cast %1425 : vector<1xf32> to vector<1x1xf32>
    %cst_421 = arith.constant 0.353553385 : f32
    %1427 = vector.broadcast %cst_421 : f32 to vector<1x1xf32>
    %1428 = arith.mulf %1426, %1427 : vector<1x1xf32>
    %cst_422 = arith.constant dense<0xFF800000> : vector<1xf32>
    %1429 = vector.multi_reduction <maximumf>, %1428, %cst_422 [1] : vector<1x1xf32> to vector<1xf32>
    %1430 = vector.shape_cast %1429 : vector<1xf32> to vector<1x1xf32>
    %1431 = arith.subf %1428, %1430 : vector<1x1xf32>
    %1432 = math.exp %1431 : vector<1x1xf32>
    %cst_423 = arith.constant dense<0.000000e+00> : vector<1xf32>
    %1433 = vector.multi_reduction <add>, %1432, %cst_423 [1] : vector<1x1xf32> to vector<1xf32>
    %1434 = vector.shape_cast %1433 : vector<1xf32> to vector<1x1xf32>
    %1435 = tpu.reciprocal %1434 {approx = true} : vector<1x1xf32> -> vector<1x1xf32>
    %1436 = arith.mulf %1432, %1435 : vector<1x1xf32>
    %1437 = arith.truncf %1436 : vector<1x1xf32> to vector<1x1xbf16>
    %cst_424 = arith.constant dense<0.000000e+00> : vector<1x8xf32>
    %1438 = tpu.matmul %1437, %1421, %cst_424 {dimension_numbers = #tpu.dot_dimension_numbers<[1], [0], [0], [1], [0, 0, 1, 1], [], []>} : vector<1x1xbf16>, vector<1x8xbf16>, vector<1x8xf32> -> vector<1x8xf32>
    %1439 = vector.extract_strided_slice %1370 {offsets = [1, 8], sizes = [1, 8], strides = [1, 1]} : vector<2x32xbf16> to vector<1x8xbf16>
    %1440 = vector.extract_strided_slice %1371 {offsets = [1, 8], sizes = [1, 8], strides = [1, 1]} : vector<2x64xbf16> to vector<1x8xbf16>
    %1441 = vector.extract_strided_slice %1371 {offsets = [1, 40], sizes = [1, 8], strides = [1, 1]} : vector<2x64xbf16> to vector<1x8xbf16>
    %1442 = arith.extf %1439 : vector<1x8xbf16> to vector<1x8xf32>
    %1443 = arith.extf %1440 : vector<1x8xbf16> to vector<1x8xf32>
    %cst_425 = arith.constant dense<0.000000e+00> : vector<1xf32>
    %1444 = arith.mulf %1442, %1443 : vector<1x8xf32>
    %1445 = vector.multi_reduction <add>, %1444, %cst_425 [1] : vector<1x8xf32> to vector<1xf32>
    %1446 = vector.shape_cast %1445 : vector<1xf32> to vector<1x1xf32>
    %cst_426 = arith.constant 0.353553385 : f32
    %1447 = vector.broadcast %cst_426 : f32 to vector<1x1xf32>
    %1448 = arith.mulf %1446, %1447 : vector<1x1xf32>
    %cst_427 = arith.constant dense<0xFF800000> : vector<1xf32>
    %1449 = vector.multi_reduction <maximumf>, %1448, %cst_427 [1] : vector<1x1xf32> to vector<1xf32>
    %1450 = vector.shape_cast %1449 : vector<1xf32> to vector<1x1xf32>
    %1451 = arith.subf %1448, %1450 : vector<1x1xf32>
    %1452 = math.exp %1451 : vector<1x1xf32>
    %cst_428 = arith.constant dense<0.000000e+00> : vector<1xf32>
    %1453 = vector.multi_reduction <add>, %1452, %cst_428 [1] : vector<1x1xf32> to vector<1xf32>
    %1454 = vector.shape_cast %1453 : vector<1xf32> to vector<1x1xf32>
    %1455 = tpu.reciprocal %1454 {approx = true} : vector<1x1xf32> -> vector<1x1xf32>
    %1456 = arith.mulf %1452, %1455 : vector<1x1xf32>
    %1457 = arith.truncf %1456 : vector<1x1xf32> to vector<1x1xbf16>
    %cst_429 = arith.constant dense<0.000000e+00> : vector<1x8xf32>
    %1458 = tpu.matmul %1457, %1441, %cst_429 {dimension_numbers = #tpu.dot_dimension_numbers<[1], [0], [0], [1], [0, 0, 1, 1], [], []>} : vector<1x1xbf16>, vector<1x8xbf16>, vector<1x8xf32> -> vector<1x8xf32>
    %1459 = tpu.concatenate %1438, %1458 in 0 : vector<1x8xf32>, vector<1x8xf32> -> vector<2x8xf32>
    %1460 = arith.truncf %1459 : vector<2x8xf32> to vector<2x8xbf16>
    %1461 = vector.extract_strided_slice %1361 {offsets = [8, 0], sizes = [8, 32], strides = [1, 1]} : vector<32x32xbf16> to vector<8x32xbf16>
    %cst_430 = arith.constant dense<0.000000e+00> : vector<2x32xf32>
    %1462 = tpu.matmul %1460, %1461, %cst_430 {dimension_numbers = #tpu.dot_dimension_numbers<[1], [0], [0], [1], [0, 0, 1, 1], [], []>} : vector<2x8xbf16>, vector<8x32xbf16>, vector<2x32xf32> -> vector<2x32xf32>
    %1463 = arith.addf %1418, %1462 : vector<2x32xf32>
    %1464 = vector.extract_strided_slice %1370 {offsets = [0, 16], sizes = [1, 8], strides = [1, 1]} : vector<2x32xbf16> to vector<1x8xbf16>
    %1465 = vector.extract_strided_slice %1371 {offsets = [0, 16], sizes = [1, 8], strides = [1, 1]} : vector<2x64xbf16> to vector<1x8xbf16>
    %1466 = vector.extract_strided_slice %1371 {offsets = [0, 48], sizes = [1, 8], strides = [1, 1]} : vector<2x64xbf16> to vector<1x8xbf16>
    %1467 = arith.extf %1464 : vector<1x8xbf16> to vector<1x8xf32>
    %1468 = arith.extf %1465 : vector<1x8xbf16> to vector<1x8xf32>
    %cst_431 = arith.constant dense<0.000000e+00> : vector<1xf32>
    %1469 = arith.mulf %1467, %1468 : vector<1x8xf32>
    %1470 = vector.multi_reduction <add>, %1469, %cst_431 [1] : vector<1x8xf32> to vector<1xf32>
    %1471 = vector.shape_cast %1470 : vector<1xf32> to vector<1x1xf32>
    %cst_432 = arith.constant 0.353553385 : f32
    %1472 = vector.broadcast %cst_432 : f32 to vector<1x1xf32>
    %1473 = arith.mulf %1471, %1472 : vector<1x1xf32>
    %cst_433 = arith.constant dense<0xFF800000> : vector<1xf32>
    %1474 = vector.multi_reduction <maximumf>, %1473, %cst_433 [1] : vector<1x1xf32> to vector<1xf32>
    %1475 = vector.shape_cast %1474 : vector<1xf32> to vector<1x1xf32>
    %1476 = arith.subf %1473, %1475 : vector<1x1xf32>
    %1477 = math.exp %1476 : vector<1x1xf32>
    %cst_434 = arith.constant dense<0.000000e+00> : vector<1xf32>
    %1478 = vector.multi_reduction <add>, %1477, %cst_434 [1] : vector<1x1xf32> to vector<1xf32>
    %1479 = vector.shape_cast %1478 : vector<1xf32> to vector<1x1xf32>
    %1480 = tpu.reciprocal %1479 {approx = true} : vector<1x1xf32> -> vector<1x1xf32>
    %1481 = arith.mulf %1477, %1480 : vector<1x1xf32>
    %1482 = arith.truncf %1481 : vector<1x1xf32> to vector<1x1xbf16>
    %cst_435 = arith.constant dense<0.000000e+00> : vector<1x8xf32>
    %1483 = tpu.matmul %1482, %1466, %cst_435 {dimension_numbers = #tpu.dot_dimension_numbers<[1], [0], [0], [1], [0, 0, 1, 1], [], []>} : vector<1x1xbf16>, vector<1x8xbf16>, vector<1x8xf32> -> vector<1x8xf32>
    %1484 = vector.extract_strided_slice %1370 {offsets = [1, 16], sizes = [1, 8], strides = [1, 1]} : vector<2x32xbf16> to vector<1x8xbf16>
    %1485 = vector.extract_strided_slice %1371 {offsets = [1, 16], sizes = [1, 8], strides = [1, 1]} : vector<2x64xbf16> to vector<1x8xbf16>
    %1486 = vector.extract_strided_slice %1371 {offsets = [1, 48], sizes = [1, 8], strides = [1, 1]} : vector<2x64xbf16> to vector<1x8xbf16>
    %1487 = arith.extf %1484 : vector<1x8xbf16> to vector<1x8xf32>
    %1488 = arith.extf %1485 : vector<1x8xbf16> to vector<1x8xf32>
    %cst_436 = arith.constant dense<0.000000e+00> : vector<1xf32>
    %1489 = arith.mulf %1487, %1488 : vector<1x8xf32>
    %1490 = vector.multi_reduction <add>, %1489, %cst_436 [1] : vector<1x8xf32> to vector<1xf32>
    %1491 = vector.shape_cast %1490 : vector<1xf32> to vector<1x1xf32>
    %cst_437 = arith.constant 0.353553385 : f32
    %1492 = vector.broadcast %cst_437 : f32 to vector<1x1xf32>
    %1493 = arith.mulf %1491, %1492 : vector<1x1xf32>
    %cst_438 = arith.constant dense<0xFF800000> : vector<1xf32>
    %1494 = vector.multi_reduction <maximumf>, %1493, %cst_438 [1] : vector<1x1xf32> to vector<1xf32>
    %1495 = vector.shape_cast %1494 : vector<1xf32> to vector<1x1xf32>
    %1496 = arith.subf %1493, %1495 : vector<1x1xf32>
    %1497 = math.exp %1496 : vector<1x1xf32>
    %cst_439 = arith.constant dense<0.000000e+00> : vector<1xf32>
    %1498 = vector.multi_reduction <add>, %1497, %cst_439 [1] : vector<1x1xf32> to vector<1xf32>
    %1499 = vector.shape_cast %1498 : vector<1xf32> to vector<1x1xf32>
    %1500 = tpu.reciprocal %1499 {approx = true} : vector<1x1xf32> -> vector<1x1xf32>
    %1501 = arith.mulf %1497, %1500 : vector<1x1xf32>
    %1502 = arith.truncf %1501 : vector<1x1xf32> to vector<1x1xbf16>
    %cst_440 = arith.constant dense<0.000000e+00> : vector<1x8xf32>
    %1503 = tpu.matmul %1502, %1486, %cst_440 {dimension_numbers = #tpu.dot_dimension_numbers<[1], [0], [0], [1], [0, 0, 1, 1], [], []>} : vector<1x1xbf16>, vector<1x8xbf16>, vector<1x8xf32> -> vector<1x8xf32>
    %1504 = tpu.concatenate %1483, %1503 in 0 : vector<1x8xf32>, vector<1x8xf32> -> vector<2x8xf32>
    %1505 = arith.truncf %1504 : vector<2x8xf32> to vector<2x8xbf16>
    %1506 = vector.extract_strided_slice %1361 {offsets = [16, 0], sizes = [8, 32], strides = [1, 1]} : vector<32x32xbf16> to vector<8x32xbf16>
    %cst_441 = arith.constant dense<0.000000e+00> : vector<2x32xf32>
    %1507 = tpu.matmul %1505, %1506, %cst_441 {dimension_numbers = #tpu.dot_dimension_numbers<[1], [0], [0], [1], [0, 0, 1, 1], [], []>} : vector<2x8xbf16>, vector<8x32xbf16>, vector<2x32xf32> -> vector<2x32xf32>
    %1508 = arith.addf %1463, %1507 : vector<2x32xf32>
    %1509 = vector.extract_strided_slice %1370 {offsets = [0, 24], sizes = [1, 8], strides = [1, 1]} : vector<2x32xbf16> to vector<1x8xbf16>
    %1510 = vector.extract_strided_slice %1371 {offsets = [0, 24], sizes = [1, 8], strides = [1, 1]} : vector<2x64xbf16> to vector<1x8xbf16>
    %1511 = vector.extract_strided_slice %1371 {offsets = [0, 56], sizes = [1, 8], strides = [1, 1]} : vector<2x64xbf16> to vector<1x8xbf16>
    %1512 = arith.extf %1509 : vector<1x8xbf16> to vector<1x8xf32>
    %1513 = arith.extf %1510 : vector<1x8xbf16> to vector<1x8xf32>
    %cst_442 = arith.constant dense<0.000000e+00> : vector<1xf32>
    %1514 = arith.mulf %1512, %1513 : vector<1x8xf32>
    %1515 = vector.multi_reduction <add>, %1514, %cst_442 [1] : vector<1x8xf32> to vector<1xf32>
    %1516 = vector.shape_cast %1515 : vector<1xf32> to vector<1x1xf32>
    %cst_443 = arith.constant 0.353553385 : f32
    %1517 = vector.broadcast %cst_443 : f32 to vector<1x1xf32>
    %1518 = arith.mulf %1516, %1517 : vector<1x1xf32>
    %cst_444 = arith.constant dense<0xFF800000> : vector<1xf32>
    %1519 = vector.multi_reduction <maximumf>, %1518, %cst_444 [1] : vector<1x1xf32> to vector<1xf32>
    %1520 = vector.shape_cast %1519 : vector<1xf32> to vector<1x1xf32>
    %1521 = arith.subf %1518, %1520 : vector<1x1xf32>
    %1522 = math.exp %1521 : vector<1x1xf32>
    %cst_445 = arith.constant dense<0.000000e+00> : vector<1xf32>
    %1523 = vector.multi_reduction <add>, %1522, %cst_445 [1] : vector<1x1xf32> to vector<1xf32>
    %1524 = vector.shape_cast %1523 : vector<1xf32> to vector<1x1xf32>
    %1525 = tpu.reciprocal %1524 {approx = true} : vector<1x1xf32> -> vector<1x1xf32>
    %1526 = arith.mulf %1522, %1525 : vector<1x1xf32>
    %1527 = arith.truncf %1526 : vector<1x1xf32> to vector<1x1xbf16>
    %cst_446 = arith.constant dense<0.000000e+00> : vector<1x8xf32>
    %1528 = tpu.matmul %1527, %1511, %cst_446 {dimension_numbers = #tpu.dot_dimension_numbers<[1], [0], [0], [1], [0, 0, 1, 1], [], []>} : vector<1x1xbf16>, vector<1x8xbf16>, vector<1x8xf32> -> vector<1x8xf32>
    %1529 = vector.extract_strided_slice %1370 {offsets = [1, 24], sizes = [1, 8], strides = [1, 1]} : vector<2x32xbf16> to vector<1x8xbf16>
    %1530 = vector.extract_strided_slice %1371 {offsets = [1, 24], sizes = [1, 8], strides = [1, 1]} : vector<2x64xbf16> to vector<1x8xbf16>
    %1531 = vector.extract_strided_slice %1371 {offsets = [1, 56], sizes = [1, 8], strides = [1, 1]} : vector<2x64xbf16> to vector<1x8xbf16>
    %1532 = arith.extf %1529 : vector<1x8xbf16> to vector<1x8xf32>
    %1533 = arith.extf %1530 : vector<1x8xbf16> to vector<1x8xf32>
    %cst_447 = arith.constant dense<0.000000e+00> : vector<1xf32>
    %1534 = arith.mulf %1532, %1533 : vector<1x8xf32>
    %1535 = vector.multi_reduction <add>, %1534, %cst_447 [1] : vector<1x8xf32> to vector<1xf32>
    %1536 = vector.shape_cast %1535 : vector<1xf32> to vector<1x1xf32>
    %cst_448 = arith.constant 0.353553385 : f32
    %1537 = vector.broadcast %cst_448 : f32 to vector<1x1xf32>
    %1538 = arith.mulf %1536, %1537 : vector<1x1xf32>
    %cst_449 = arith.constant dense<0xFF800000> : vector<1xf32>
    %1539 = vector.multi_reduction <maximumf>, %1538, %cst_449 [1] : vector<1x1xf32> to vector<1xf32>
    %1540 = vector.shape_cast %1539 : vector<1xf32> to vector<1x1xf32>
    %1541 = arith.subf %1538, %1540 : vector<1x1xf32>
    %1542 = math.exp %1541 : vector<1x1xf32>
    %cst_450 = arith.constant dense<0.000000e+00> : vector<1xf32>
    %1543 = vector.multi_reduction <add>, %1542, %cst_450 [1] : vector<1x1xf32> to vector<1xf32>
    %1544 = vector.shape_cast %1543 : vector<1xf32> to vector<1x1xf32>
    %1545 = tpu.reciprocal %1544 {approx = true} : vector<1x1xf32> -> vector<1x1xf32>
    %1546 = arith.mulf %1542, %1545 : vector<1x1xf32>
    %1547 = arith.truncf %1546 : vector<1x1xf32> to vector<1x1xbf16>
    %cst_451 = arith.constant dense<0.000000e+00> : vector<1x8xf32>
    %1548 = tpu.matmul %1547, %1531, %cst_451 {dimension_numbers = #tpu.dot_dimension_numbers<[1], [0], [0], [1], [0, 0, 1, 1], [], []>} : vector<1x1xbf16>, vector<1x8xbf16>, vector<1x8xf32> -> vector<1x8xf32>
    %1549 = tpu.concatenate %1528, %1548 in 0 : vector<1x8xf32>, vector<1x8xf32> -> vector<2x8xf32>
    %1550 = arith.truncf %1549 : vector<2x8xf32> to vector<2x8xbf16>
    %1551 = vector.extract_strided_slice %1361 {offsets = [24, 0], sizes = [8, 32], strides = [1, 1]} : vector<32x32xbf16> to vector<8x32xbf16>
    %cst_452 = arith.constant dense<0.000000e+00> : vector<2x32xf32>
    %1552 = tpu.matmul %1550, %1551, %cst_452 {dimension_numbers = #tpu.dot_dimension_numbers<[1], [0], [0], [1], [0, 0, 1, 1], [], []>} : vector<2x8xbf16>, vector<8x32xbf16>, vector<2x32xf32> -> vector<2x32xf32>
    %1553 = arith.addf %1508, %1552 : vector<2x32xf32>
    %1554 = arith.mulf %1355, %1553 : vector<2x32xf32>
    %c8 = arith.constant 8 : index
    %c0_453 = arith.constant 0 : index
    %c0_454 = arith.constant 0 : index
    %1555 = vector.load %arg2[%c8, %c0_453, %c0_454] : memref<10x32x96xbf16, #tpu.memory_space<vmem>>, vector<1x32x96xbf16>
    %1556 = vector.shape_cast %1555 : vector<1x32x96xbf16> to vector<32x96xbf16>
    %c8_455 = arith.constant 8 : index
    %c0_456 = arith.constant 0 : index
    %c0_457 = arith.constant 0 : index
    %1557 = vector.load %arg3[%c8_455, %c0_456, %c0_457] : memref<10x1x96xf32, #tpu.memory_space<vmem>>, vector<1x1x96xf32>
    %1558 = vector.shape_cast %1557 : vector<1x1x96xf32> to vector<1x96xf32>
    %c8_458 = arith.constant 8 : index
    %c0_459 = arith.constant 0 : index
    %c0_460 = arith.constant 0 : index
    %1559 = vector.load %arg4[%c8_458, %c0_459, %c0_460] : memref<10x32x32xbf16, #tpu.memory_space<vmem>>, vector<1x32x32xbf16>
    %1560 = vector.shape_cast %1559 : vector<1x32x32xbf16> to vector<32x32xbf16>
    %c8_461 = arith.constant 8 : index
    %c0_462 = arith.constant 0 : index
    %c0_463 = arith.constant 0 : index
    %1561 = vector.load %arg5[%c8_461, %c0_462, %c0_463] : memref<10x1x32xf32, #tpu.memory_space<vmem>>, vector<1x1x32xf32>
    %1562 = vector.shape_cast %1561 : vector<1x1x32xf32> to vector<1x32xf32>
    %1563 = arith.truncf %1554 : vector<2x32xf32> to vector<2x32xbf16>
    %1564 = vector.extract_strided_slice %1556 {offsets = [0, 32], sizes = [32, 64], strides = [1, 1]} : vector<32x96xbf16> to vector<32x64xbf16>
    %cst_464 = arith.constant dense<0.000000e+00> : vector<2x64xf32>
    %1565 = tpu.matmul %1563, %1564, %cst_464 {dimension_numbers = #tpu.dot_dimension_numbers<[1], [0], [0], [1], [0, 0, 1, 1], [], []>} : vector<2x32xbf16>, vector<32x64xbf16>, vector<2x64xf32> -> vector<2x64xf32>
    %1566 = vector.extract_strided_slice %1558 {offsets = [0, 32], sizes = [1, 64], strides = [1, 1]} : vector<1x96xf32> to vector<1x64xf32>
    %1567 = vector.broadcast %1566 : vector<1x64xf32> to vector<2x64xf32>
    %1568 = arith.addf %1565, %1567 : vector<2x64xf32>
    %1569 = vector.extract_strided_slice %1558 {offsets = [0, 0], sizes = [1, 32], strides = [1, 1]} : vector<1x96xf32> to vector<1x32xf32>
    %1570 = vector.shape_cast %1569 : vector<1x32xf32> to vector<1x32xf32>
    %1571 = vector.broadcast %1570 : vector<1x32xf32> to vector<2x32xf32>
    %1572 = arith.truncf %1571 : vector<2x32xf32> to vector<2x32xbf16>
    %1573 = arith.truncf %1568 : vector<2x64xf32> to vector<2x64xbf16>
    %1574 = vector.shape_cast %1562 : vector<1x32xf32> to vector<1x32xf32>
    %1575 = vector.broadcast %1574 : vector<1x32xf32> to vector<2x32xf32>
    %1576 = vector.extract_strided_slice %1572 {offsets = [0, 0], sizes = [1, 8], strides = [1, 1]} : vector<2x32xbf16> to vector<1x8xbf16>
    %1577 = vector.extract_strided_slice %1573 {offsets = [0, 0], sizes = [1, 8], strides = [1, 1]} : vector<2x64xbf16> to vector<1x8xbf16>
    %1578 = vector.extract_strided_slice %1573 {offsets = [0, 32], sizes = [1, 8], strides = [1, 1]} : vector<2x64xbf16> to vector<1x8xbf16>
    %1579 = arith.extf %1576 : vector<1x8xbf16> to vector<1x8xf32>
    %1580 = arith.extf %1577 : vector<1x8xbf16> to vector<1x8xf32>
    %cst_465 = arith.constant dense<0.000000e+00> : vector<1xf32>
    %1581 = arith.mulf %1579, %1580 : vector<1x8xf32>
    %1582 = vector.multi_reduction <add>, %1581, %cst_465 [1] : vector<1x8xf32> to vector<1xf32>
    %1583 = vector.shape_cast %1582 : vector<1xf32> to vector<1x1xf32>
    %cst_466 = arith.constant 0.353553385 : f32
    %1584 = vector.broadcast %cst_466 : f32 to vector<1x1xf32>
    %1585 = arith.mulf %1583, %1584 : vector<1x1xf32>
    %cst_467 = arith.constant dense<0xFF800000> : vector<1xf32>
    %1586 = vector.multi_reduction <maximumf>, %1585, %cst_467 [1] : vector<1x1xf32> to vector<1xf32>
    %1587 = vector.shape_cast %1586 : vector<1xf32> to vector<1x1xf32>
    %1588 = arith.subf %1585, %1587 : vector<1x1xf32>
    %1589 = math.exp %1588 : vector<1x1xf32>
    %cst_468 = arith.constant dense<0.000000e+00> : vector<1xf32>
    %1590 = vector.multi_reduction <add>, %1589, %cst_468 [1] : vector<1x1xf32> to vector<1xf32>
    %1591 = vector.shape_cast %1590 : vector<1xf32> to vector<1x1xf32>
    %1592 = tpu.reciprocal %1591 {approx = true} : vector<1x1xf32> -> vector<1x1xf32>
    %1593 = arith.mulf %1589, %1592 : vector<1x1xf32>
    %1594 = arith.truncf %1593 : vector<1x1xf32> to vector<1x1xbf16>
    %cst_469 = arith.constant dense<0.000000e+00> : vector<1x8xf32>
    %1595 = tpu.matmul %1594, %1578, %cst_469 {dimension_numbers = #tpu.dot_dimension_numbers<[1], [0], [0], [1], [0, 0, 1, 1], [], []>} : vector<1x1xbf16>, vector<1x8xbf16>, vector<1x8xf32> -> vector<1x8xf32>
    %1596 = vector.extract_strided_slice %1572 {offsets = [1, 0], sizes = [1, 8], strides = [1, 1]} : vector<2x32xbf16> to vector<1x8xbf16>
    %1597 = vector.extract_strided_slice %1573 {offsets = [1, 0], sizes = [1, 8], strides = [1, 1]} : vector<2x64xbf16> to vector<1x8xbf16>
    %1598 = vector.extract_strided_slice %1573 {offsets = [1, 32], sizes = [1, 8], strides = [1, 1]} : vector<2x64xbf16> to vector<1x8xbf16>
    %1599 = arith.extf %1596 : vector<1x8xbf16> to vector<1x8xf32>
    %1600 = arith.extf %1597 : vector<1x8xbf16> to vector<1x8xf32>
    %cst_470 = arith.constant dense<0.000000e+00> : vector<1xf32>
    %1601 = arith.mulf %1599, %1600 : vector<1x8xf32>
    %1602 = vector.multi_reduction <add>, %1601, %cst_470 [1] : vector<1x8xf32> to vector<1xf32>
    %1603 = vector.shape_cast %1602 : vector<1xf32> to vector<1x1xf32>
    %cst_471 = arith.constant 0.353553385 : f32
    %1604 = vector.broadcast %cst_471 : f32 to vector<1x1xf32>
    %1605 = arith.mulf %1603, %1604 : vector<1x1xf32>
    %cst_472 = arith.constant dense<0xFF800000> : vector<1xf32>
    %1606 = vector.multi_reduction <maximumf>, %1605, %cst_472 [1] : vector<1x1xf32> to vector<1xf32>
    %1607 = vector.shape_cast %1606 : vector<1xf32> to vector<1x1xf32>
    %1608 = arith.subf %1605, %1607 : vector<1x1xf32>
    %1609 = math.exp %1608 : vector<1x1xf32>
    %cst_473 = arith.constant dense<0.000000e+00> : vector<1xf32>
    %1610 = vector.multi_reduction <add>, %1609, %cst_473 [1] : vector<1x1xf32> to vector<1xf32>
    %1611 = vector.shape_cast %1610 : vector<1xf32> to vector<1x1xf32>
    %1612 = tpu.reciprocal %1611 {approx = true} : vector<1x1xf32> -> vector<1x1xf32>
    %1613 = arith.mulf %1609, %1612 : vector<1x1xf32>
    %1614 = arith.truncf %1613 : vector<1x1xf32> to vector<1x1xbf16>
    %cst_474 = arith.constant dense<0.000000e+00> : vector<1x8xf32>
    %1615 = tpu.matmul %1614, %1598, %cst_474 {dimension_numbers = #tpu.dot_dimension_numbers<[1], [0], [0], [1], [0, 0, 1, 1], [], []>} : vector<1x1xbf16>, vector<1x8xbf16>, vector<1x8xf32> -> vector<1x8xf32>
    %1616 = tpu.concatenate %1595, %1615 in 0 : vector<1x8xf32>, vector<1x8xf32> -> vector<2x8xf32>
    %1617 = arith.truncf %1616 : vector<2x8xf32> to vector<2x8xbf16>
    %1618 = vector.extract_strided_slice %1560 {offsets = [0, 0], sizes = [8, 32], strides = [1, 1]} : vector<32x32xbf16> to vector<8x32xbf16>
    %cst_475 = arith.constant dense<0.000000e+00> : vector<2x32xf32>
    %1619 = tpu.matmul %1617, %1618, %cst_475 {dimension_numbers = #tpu.dot_dimension_numbers<[1], [0], [0], [1], [0, 0, 1, 1], [], []>} : vector<2x8xbf16>, vector<8x32xbf16>, vector<2x32xf32> -> vector<2x32xf32>
    %1620 = arith.addf %1575, %1619 : vector<2x32xf32>
    %1621 = vector.extract_strided_slice %1572 {offsets = [0, 8], sizes = [1, 8], strides = [1, 1]} : vector<2x32xbf16> to vector<1x8xbf16>
    %1622 = vector.extract_strided_slice %1573 {offsets = [0, 8], sizes = [1, 8], strides = [1, 1]} : vector<2x64xbf16> to vector<1x8xbf16>
    %1623 = vector.extract_strided_slice %1573 {offsets = [0, 40], sizes = [1, 8], strides = [1, 1]} : vector<2x64xbf16> to vector<1x8xbf16>
    %1624 = arith.extf %1621 : vector<1x8xbf16> to vector<1x8xf32>
    %1625 = arith.extf %1622 : vector<1x8xbf16> to vector<1x8xf32>
    %cst_476 = arith.constant dense<0.000000e+00> : vector<1xf32>
    %1626 = arith.mulf %1624, %1625 : vector<1x8xf32>
    %1627 = vector.multi_reduction <add>, %1626, %cst_476 [1] : vector<1x8xf32> to vector<1xf32>
    %1628 = vector.shape_cast %1627 : vector<1xf32> to vector<1x1xf32>
    %cst_477 = arith.constant 0.353553385 : f32
    %1629 = vector.broadcast %cst_477 : f32 to vector<1x1xf32>
    %1630 = arith.mulf %1628, %1629 : vector<1x1xf32>
    %cst_478 = arith.constant dense<0xFF800000> : vector<1xf32>
    %1631 = vector.multi_reduction <maximumf>, %1630, %cst_478 [1] : vector<1x1xf32> to vector<1xf32>
    %1632 = vector.shape_cast %1631 : vector<1xf32> to vector<1x1xf32>
    %1633 = arith.subf %1630, %1632 : vector<1x1xf32>
    %1634 = math.exp %1633 : vector<1x1xf32>
    %cst_479 = arith.constant dense<0.000000e+00> : vector<1xf32>
    %1635 = vector.multi_reduction <add>, %1634, %cst_479 [1] : vector<1x1xf32> to vector<1xf32>
    %1636 = vector.shape_cast %1635 : vector<1xf32> to vector<1x1xf32>
    %1637 = tpu.reciprocal %1636 {approx = true} : vector<1x1xf32> -> vector<1x1xf32>
    %1638 = arith.mulf %1634, %1637 : vector<1x1xf32>
    %1639 = arith.truncf %1638 : vector<1x1xf32> to vector<1x1xbf16>
    %cst_480 = arith.constant dense<0.000000e+00> : vector<1x8xf32>
    %1640 = tpu.matmul %1639, %1623, %cst_480 {dimension_numbers = #tpu.dot_dimension_numbers<[1], [0], [0], [1], [0, 0, 1, 1], [], []>} : vector<1x1xbf16>, vector<1x8xbf16>, vector<1x8xf32> -> vector<1x8xf32>
    %1641 = vector.extract_strided_slice %1572 {offsets = [1, 8], sizes = [1, 8], strides = [1, 1]} : vector<2x32xbf16> to vector<1x8xbf16>
    %1642 = vector.extract_strided_slice %1573 {offsets = [1, 8], sizes = [1, 8], strides = [1, 1]} : vector<2x64xbf16> to vector<1x8xbf16>
    %1643 = vector.extract_strided_slice %1573 {offsets = [1, 40], sizes = [1, 8], strides = [1, 1]} : vector<2x64xbf16> to vector<1x8xbf16>
    %1644 = arith.extf %1641 : vector<1x8xbf16> to vector<1x8xf32>
    %1645 = arith.extf %1642 : vector<1x8xbf16> to vector<1x8xf32>
    %cst_481 = arith.constant dense<0.000000e+00> : vector<1xf32>
    %1646 = arith.mulf %1644, %1645 : vector<1x8xf32>
    %1647 = vector.multi_reduction <add>, %1646, %cst_481 [1] : vector<1x8xf32> to vector<1xf32>
    %1648 = vector.shape_cast %1647 : vector<1xf32> to vector<1x1xf32>
    %cst_482 = arith.constant 0.353553385 : f32
    %1649 = vector.broadcast %cst_482 : f32 to vector<1x1xf32>
    %1650 = arith.mulf %1648, %1649 : vector<1x1xf32>
    %cst_483 = arith.constant dense<0xFF800000> : vector<1xf32>
    %1651 = vector.multi_reduction <maximumf>, %1650, %cst_483 [1] : vector<1x1xf32> to vector<1xf32>
    %1652 = vector.shape_cast %1651 : vector<1xf32> to vector<1x1xf32>
    %1653 = arith.subf %1650, %1652 : vector<1x1xf32>
    %1654 = math.exp %1653 : vector<1x1xf32>
    %cst_484 = arith.constant dense<0.000000e+00> : vector<1xf32>
    %1655 = vector.multi_reduction <add>, %1654, %cst_484 [1] : vector<1x1xf32> to vector<1xf32>
    %1656 = vector.shape_cast %1655 : vector<1xf32> to vector<1x1xf32>
    %1657 = tpu.reciprocal %1656 {approx = true} : vector<1x1xf32> -> vector<1x1xf32>
    %1658 = arith.mulf %1654, %1657 : vector<1x1xf32>
    %1659 = arith.truncf %1658 : vector<1x1xf32> to vector<1x1xbf16>
    %cst_485 = arith.constant dense<0.000000e+00> : vector<1x8xf32>
    %1660 = tpu.matmul %1659, %1643, %cst_485 {dimension_numbers = #tpu.dot_dimension_numbers<[1], [0], [0], [1], [0, 0, 1, 1], [], []>} : vector<1x1xbf16>, vector<1x8xbf16>, vector<1x8xf32> -> vector<1x8xf32>
    %1661 = tpu.concatenate %1640, %1660 in 0 : vector<1x8xf32>, vector<1x8xf32> -> vector<2x8xf32>
    %1662 = arith.truncf %1661 : vector<2x8xf32> to vector<2x8xbf16>
    %1663 = vector.extract_strided_slice %1560 {offsets = [8, 0], sizes = [8, 32], strides = [1, 1]} : vector<32x32xbf16> to vector<8x32xbf16>
    %cst_486 = arith.constant dense<0.000000e+00> : vector<2x32xf32>
    %1664 = tpu.matmul %1662, %1663, %cst_486 {dimension_numbers = #tpu.dot_dimension_numbers<[1], [0], [0], [1], [0, 0, 1, 1], [], []>} : vector<2x8xbf16>, vector<8x32xbf16>, vector<2x32xf32> -> vector<2x32xf32>
    %1665 = arith.addf %1620, %1664 : vector<2x32xf32>
    %1666 = vector.extract_strided_slice %1572 {offsets = [0, 16], sizes = [1, 8], strides = [1, 1]} : vector<2x32xbf16> to vector<1x8xbf16>
    %1667 = vector.extract_strided_slice %1573 {offsets = [0, 16], sizes = [1, 8], strides = [1, 1]} : vector<2x64xbf16> to vector<1x8xbf16>
    %1668 = vector.extract_strided_slice %1573 {offsets = [0, 48], sizes = [1, 8], strides = [1, 1]} : vector<2x64xbf16> to vector<1x8xbf16>
    %1669 = arith.extf %1666 : vector<1x8xbf16> to vector<1x8xf32>
    %1670 = arith.extf %1667 : vector<1x8xbf16> to vector<1x8xf32>
    %cst_487 = arith.constant dense<0.000000e+00> : vector<1xf32>
    %1671 = arith.mulf %1669, %1670 : vector<1x8xf32>
    %1672 = vector.multi_reduction <add>, %1671, %cst_487 [1] : vector<1x8xf32> to vector<1xf32>
    %1673 = vector.shape_cast %1672 : vector<1xf32> to vector<1x1xf32>
    %cst_488 = arith.constant 0.353553385 : f32
    %1674 = vector.broadcast %cst_488 : f32 to vector<1x1xf32>
    %1675 = arith.mulf %1673, %1674 : vector<1x1xf32>
    %cst_489 = arith.constant dense<0xFF800000> : vector<1xf32>
    %1676 = vector.multi_reduction <maximumf>, %1675, %cst_489 [1] : vector<1x1xf32> to vector<1xf32>
    %1677 = vector.shape_cast %1676 : vector<1xf32> to vector<1x1xf32>
    %1678 = arith.subf %1675, %1677 : vector<1x1xf32>
    %1679 = math.exp %1678 : vector<1x1xf32>
    %cst_490 = arith.constant dense<0.000000e+00> : vector<1xf32>
    %1680 = vector.multi_reduction <add>, %1679, %cst_490 [1] : vector<1x1xf32> to vector<1xf32>
    %1681 = vector.shape_cast %1680 : vector<1xf32> to vector<1x1xf32>
    %1682 = tpu.reciprocal %1681 {approx = true} : vector<1x1xf32> -> vector<1x1xf32>
    %1683 = arith.mulf %1679, %1682 : vector<1x1xf32>
    %1684 = arith.truncf %1683 : vector<1x1xf32> to vector<1x1xbf16>
    %cst_491 = arith.constant dense<0.000000e+00> : vector<1x8xf32>
    %1685 = tpu.matmul %1684, %1668, %cst_491 {dimension_numbers = #tpu.dot_dimension_numbers<[1], [0], [0], [1], [0, 0, 1, 1], [], []>} : vector<1x1xbf16>, vector<1x8xbf16>, vector<1x8xf32> -> vector<1x8xf32>
    %1686 = vector.extract_strided_slice %1572 {offsets = [1, 16], sizes = [1, 8], strides = [1, 1]} : vector<2x32xbf16> to vector<1x8xbf16>
    %1687 = vector.extract_strided_slice %1573 {offsets = [1, 16], sizes = [1, 8], strides = [1, 1]} : vector<2x64xbf16> to vector<1x8xbf16>
    %1688 = vector.extract_strided_slice %1573 {offsets = [1, 48], sizes = [1, 8], strides = [1, 1]} : vector<2x64xbf16> to vector<1x8xbf16>
    %1689 = arith.extf %1686 : vector<1x8xbf16> to vector<1x8xf32>
    %1690 = arith.extf %1687 : vector<1x8xbf16> to vector<1x8xf32>
    %cst_492 = arith.constant dense<0.000000e+00> : vector<1xf32>
    %1691 = arith.mulf %1689, %1690 : vector<1x8xf32>
    %1692 = vector.multi_reduction <add>, %1691, %cst_492 [1] : vector<1x8xf32> to vector<1xf32>
    %1693 = vector.shape_cast %1692 : vector<1xf32> to vector<1x1xf32>
    %cst_493 = arith.constant 0.353553385 : f32
    %1694 = vector.broadcast %cst_493 : f32 to vector<1x1xf32>
    %1695 = arith.mulf %1693, %1694 : vector<1x1xf32>
    %cst_494 = arith.constant dense<0xFF800000> : vector<1xf32>
    %1696 = vector.multi_reduction <maximumf>, %1695, %cst_494 [1] : vector<1x1xf32> to vector<1xf32>
    %1697 = vector.shape_cast %1696 : vector<1xf32> to vector<1x1xf32>
    %1698 = arith.subf %1695, %1697 : vector<1x1xf32>
    %1699 = math.exp %1698 : vector<1x1xf32>
    %cst_495 = arith.constant dense<0.000000e+00> : vector<1xf32>
    %1700 = vector.multi_reduction <add>, %1699, %cst_495 [1] : vector<1x1xf32> to vector<1xf32>
    %1701 = vector.shape_cast %1700 : vector<1xf32> to vector<1x1xf32>
    %1702 = tpu.reciprocal %1701 {approx = true} : vector<1x1xf32> -> vector<1x1xf32>
    %1703 = arith.mulf %1699, %1702 : vector<1x1xf32>
    %1704 = arith.truncf %1703 : vector<1x1xf32> to vector<1x1xbf16>
    %cst_496 = arith.constant dense<0.000000e+00> : vector<1x8xf32>
    %1705 = tpu.matmul %1704, %1688, %cst_496 {dimension_numbers = #tpu.dot_dimension_numbers<[1], [0], [0], [1], [0, 0, 1, 1], [], []>} : vector<1x1xbf16>, vector<1x8xbf16>, vector<1x8xf32> -> vector<1x8xf32>
    %1706 = tpu.concatenate %1685, %1705 in 0 : vector<1x8xf32>, vector<1x8xf32> -> vector<2x8xf32>
    %1707 = arith.truncf %1706 : vector<2x8xf32> to vector<2x8xbf16>
    %1708 = vector.extract_strided_slice %1560 {offsets = [16, 0], sizes = [8, 32], strides = [1, 1]} : vector<32x32xbf16> to vector<8x32xbf16>
    %cst_497 = arith.constant dense<0.000000e+00> : vector<2x32xf32>
    %1709 = tpu.matmul %1707, %1708, %cst_497 {dimension_numbers = #tpu.dot_dimension_numbers<[1], [0], [0], [1], [0, 0, 1, 1], [], []>} : vector<2x8xbf16>, vector<8x32xbf16>, vector<2x32xf32> -> vector<2x32xf32>
    %1710 = arith.addf %1665, %1709 : vector<2x32xf32>
    %1711 = vector.extract_strided_slice %1572 {offsets = [0, 24], sizes = [1, 8], strides = [1, 1]} : vector<2x32xbf16> to vector<1x8xbf16>
    %1712 = vector.extract_strided_slice %1573 {offsets = [0, 24], sizes = [1, 8], strides = [1, 1]} : vector<2x64xbf16> to vector<1x8xbf16>
    %1713 = vector.extract_strided_slice %1573 {offsets = [0, 56], sizes = [1, 8], strides = [1, 1]} : vector<2x64xbf16> to vector<1x8xbf16>
    %1714 = arith.extf %1711 : vector<1x8xbf16> to vector<1x8xf32>
    %1715 = arith.extf %1712 : vector<1x8xbf16> to vector<1x8xf32>
    %cst_498 = arith.constant dense<0.000000e+00> : vector<1xf32>
    %1716 = arith.mulf %1714, %1715 : vector<1x8xf32>
    %1717 = vector.multi_reduction <add>, %1716, %cst_498 [1] : vector<1x8xf32> to vector<1xf32>
    %1718 = vector.shape_cast %1717 : vector<1xf32> to vector<1x1xf32>
    %cst_499 = arith.constant 0.353553385 : f32
    %1719 = vector.broadcast %cst_499 : f32 to vector<1x1xf32>
    %1720 = arith.mulf %1718, %1719 : vector<1x1xf32>
    %cst_500 = arith.constant dense<0xFF800000> : vector<1xf32>
    %1721 = vector.multi_reduction <maximumf>, %1720, %cst_500 [1] : vector<1x1xf32> to vector<1xf32>
    %1722 = vector.shape_cast %1721 : vector<1xf32> to vector<1x1xf32>
    %1723 = arith.subf %1720, %1722 : vector<1x1xf32>
    %1724 = math.exp %1723 : vector<1x1xf32>
    %cst_501 = arith.constant dense<0.000000e+00> : vector<1xf32>
    %1725 = vector.multi_reduction <add>, %1724, %cst_501 [1] : vector<1x1xf32> to vector<1xf32>
    %1726 = vector.shape_cast %1725 : vector<1xf32> to vector<1x1xf32>
    %1727 = tpu.reciprocal %1726 {approx = true} : vector<1x1xf32> -> vector<1x1xf32>
    %1728 = arith.mulf %1724, %1727 : vector<1x1xf32>
    %1729 = arith.truncf %1728 : vector<1x1xf32> to vector<1x1xbf16>
    %cst_502 = arith.constant dense<0.000000e+00> : vector<1x8xf32>
    %1730 = tpu.matmul %1729, %1713, %cst_502 {dimension_numbers = #tpu.dot_dimension_numbers<[1], [0], [0], [1], [0, 0, 1, 1], [], []>} : vector<1x1xbf16>, vector<1x8xbf16>, vector<1x8xf32> -> vector<1x8xf32>
    %1731 = vector.extract_strided_slice %1572 {offsets = [1, 24], sizes = [1, 8], strides = [1, 1]} : vector<2x32xbf16> to vector<1x8xbf16>
    %1732 = vector.extract_strided_slice %1573 {offsets = [1, 24], sizes = [1, 8], strides = [1, 1]} : vector<2x64xbf16> to vector<1x8xbf16>
    %1733 = vector.extract_strided_slice %1573 {offsets = [1, 56], sizes = [1, 8], strides = [1, 1]} : vector<2x64xbf16> to vector<1x8xbf16>
    %1734 = arith.extf %1731 : vector<1x8xbf16> to vector<1x8xf32>
    %1735 = arith.extf %1732 : vector<1x8xbf16> to vector<1x8xf32>
    %cst_503 = arith.constant dense<0.000000e+00> : vector<1xf32>
    %1736 = arith.mulf %1734, %1735 : vector<1x8xf32>
    %1737 = vector.multi_reduction <add>, %1736, %cst_503 [1] : vector<1x8xf32> to vector<1xf32>
    %1738 = vector.shape_cast %1737 : vector<1xf32> to vector<1x1xf32>
    %cst_504 = arith.constant 0.353553385 : f32
    %1739 = vector.broadcast %cst_504 : f32 to vector<1x1xf32>
    %1740 = arith.mulf %1738, %1739 : vector<1x1xf32>
    %cst_505 = arith.constant dense<0xFF800000> : vector<1xf32>
    %1741 = vector.multi_reduction <maximumf>, %1740, %cst_505 [1] : vector<1x1xf32> to vector<1xf32>
    %1742 = vector.shape_cast %1741 : vector<1xf32> to vector<1x1xf32>
    %1743 = arith.subf %1740, %1742 : vector<1x1xf32>
    %1744 = math.exp %1743 : vector<1x1xf32>
    %cst_506 = arith.constant dense<0.000000e+00> : vector<1xf32>
    %1745 = vector.multi_reduction <add>, %1744, %cst_506 [1] : vector<1x1xf32> to vector<1xf32>
    %1746 = vector.shape_cast %1745 : vector<1xf32> to vector<1x1xf32>
    %1747 = tpu.reciprocal %1746 {approx = true} : vector<1x1xf32> -> vector<1x1xf32>
    %1748 = arith.mulf %1744, %1747 : vector<1x1xf32>
    %1749 = arith.truncf %1748 : vector<1x1xf32> to vector<1x1xbf16>
    %cst_507 = arith.constant dense<0.000000e+00> : vector<1x8xf32>
    %1750 = tpu.matmul %1749, %1733, %cst_507 {dimension_numbers = #tpu.dot_dimension_numbers<[1], [0], [0], [1], [0, 0, 1, 1], [], []>} : vector<1x1xbf16>, vector<1x8xbf16>, vector<1x8xf32> -> vector<1x8xf32>
    %1751 = tpu.concatenate %1730, %1750 in 0 : vector<1x8xf32>, vector<1x8xf32> -> vector<2x8xf32>
    %1752 = arith.truncf %1751 : vector<2x8xf32> to vector<2x8xbf16>
    %1753 = vector.extract_strided_slice %1560 {offsets = [24, 0], sizes = [8, 32], strides = [1, 1]} : vector<32x32xbf16> to vector<8x32xbf16>
    %cst_508 = arith.constant dense<0.000000e+00> : vector<2x32xf32>
    %1754 = tpu.matmul %1752, %1753, %cst_508 {dimension_numbers = #tpu.dot_dimension_numbers<[1], [0], [0], [1], [0, 0, 1, 1], [], []>} : vector<2x8xbf16>, vector<8x32xbf16>, vector<2x32xf32> -> vector<2x32xf32>
    %1755 = arith.addf %1710, %1754 : vector<2x32xf32>
    %1756 = arith.addf %1554, %1755 : vector<2x32xf32>
    %c9 = arith.constant 9 : index
    %c0_509 = arith.constant 0 : index
    %c0_510 = arith.constant 0 : index
    %1757 = vector.load %arg2[%c9, %c0_509, %c0_510] : memref<10x32x96xbf16, #tpu.memory_space<vmem>>, vector<1x32x96xbf16>
    %1758 = vector.shape_cast %1757 : vector<1x32x96xbf16> to vector<32x96xbf16>
    %c9_511 = arith.constant 9 : index
    %c0_512 = arith.constant 0 : index
    %c0_513 = arith.constant 0 : index
    %1759 = vector.load %arg3[%c9_511, %c0_512, %c0_513] : memref<10x1x96xf32, #tpu.memory_space<vmem>>, vector<1x1x96xf32>
    %1760 = vector.shape_cast %1759 : vector<1x1x96xf32> to vector<1x96xf32>
    %c9_514 = arith.constant 9 : index
    %c0_515 = arith.constant 0 : index
    %c0_516 = arith.constant 0 : index
    %1761 = vector.load %arg4[%c9_514, %c0_515, %c0_516] : memref<10x32x32xbf16, #tpu.memory_space<vmem>>, vector<1x32x32xbf16>
    %1762 = vector.shape_cast %1761 : vector<1x32x32xbf16> to vector<32x32xbf16>
    %c9_517 = arith.constant 9 : index
    %c0_518 = arith.constant 0 : index
    %c0_519 = arith.constant 0 : index
    %1763 = vector.load %arg5[%c9_517, %c0_518, %c0_519] : memref<10x1x32xf32, #tpu.memory_space<vmem>>, vector<1x1x32xf32>
    %1764 = vector.shape_cast %1763 : vector<1x1x32xf32> to vector<1x32xf32>
    %1765 = arith.truncf %1756 : vector<2x32xf32> to vector<2x32xbf16>
    %cst_520 = arith.constant dense<0.000000e+00> : vector<2x96xf32>
    %1766 = tpu.matmul %1765, %1758, %cst_520 {dimension_numbers = #tpu.dot_dimension_numbers<[1], [0], [0], [1], [0, 0, 1, 1], [], []>} : vector<2x32xbf16>, vector<32x96xbf16>, vector<2x96xf32> -> vector<2x96xf32>
    %1767 = vector.broadcast %1760 : vector<1x96xf32> to vector<2x96xf32>
    %1768 = arith.addf %1766, %1767 : vector<2x96xf32>
    %1769 = vector.extract_strided_slice %1768 {offsets = [0, 0], sizes = [2, 32], strides = [1, 1]} : vector<2x96xf32> to vector<2x32xf32>
    %1770 = vector.extract_strided_slice %1768 {offsets = [0, 32], sizes = [2, 64], strides = [1, 1]} : vector<2x96xf32> to vector<2x64xf32>
    %1771 = arith.truncf %1769 : vector<2x32xf32> to vector<2x32xbf16>
    %1772 = arith.truncf %1770 : vector<2x64xf32> to vector<2x64xbf16>
    %1773 = vector.shape_cast %1764 : vector<1x32xf32> to vector<1x32xf32>
    %1774 = vector.broadcast %1773 : vector<1x32xf32> to vector<2x32xf32>
    %1775 = vector.extract_strided_slice %1771 {offsets = [0, 0], sizes = [1, 8], strides = [1, 1]} : vector<2x32xbf16> to vector<1x8xbf16>
    %1776 = vector.extract_strided_slice %1772 {offsets = [0, 0], sizes = [1, 8], strides = [1, 1]} : vector<2x64xbf16> to vector<1x8xbf16>
    %1777 = vector.extract_strided_slice %1772 {offsets = [0, 32], sizes = [1, 8], strides = [1, 1]} : vector<2x64xbf16> to vector<1x8xbf16>
    %1778 = arith.extf %1775 : vector<1x8xbf16> to vector<1x8xf32>
    %1779 = arith.extf %1776 : vector<1x8xbf16> to vector<1x8xf32>
    %cst_521 = arith.constant dense<0.000000e+00> : vector<1xf32>
    %1780 = arith.mulf %1778, %1779 : vector<1x8xf32>
    %1781 = vector.multi_reduction <add>, %1780, %cst_521 [1] : vector<1x8xf32> to vector<1xf32>
    %1782 = vector.shape_cast %1781 : vector<1xf32> to vector<1x1xf32>
    %cst_522 = arith.constant 0.353553385 : f32
    %1783 = vector.broadcast %cst_522 : f32 to vector<1x1xf32>
    %1784 = arith.mulf %1782, %1783 : vector<1x1xf32>
    %cst_523 = arith.constant dense<0xFF800000> : vector<1xf32>
    %1785 = vector.multi_reduction <maximumf>, %1784, %cst_523 [1] : vector<1x1xf32> to vector<1xf32>
    %1786 = vector.shape_cast %1785 : vector<1xf32> to vector<1x1xf32>
    %1787 = arith.subf %1784, %1786 : vector<1x1xf32>
    %1788 = math.exp %1787 : vector<1x1xf32>
    %cst_524 = arith.constant dense<0.000000e+00> : vector<1xf32>
    %1789 = vector.multi_reduction <add>, %1788, %cst_524 [1] : vector<1x1xf32> to vector<1xf32>
    %1790 = vector.shape_cast %1789 : vector<1xf32> to vector<1x1xf32>
    %1791 = tpu.reciprocal %1790 {approx = true} : vector<1x1xf32> -> vector<1x1xf32>
    %1792 = arith.mulf %1788, %1791 : vector<1x1xf32>
    %1793 = arith.truncf %1792 : vector<1x1xf32> to vector<1x1xbf16>
    %cst_525 = arith.constant dense<0.000000e+00> : vector<1x8xf32>
    %1794 = tpu.matmul %1793, %1777, %cst_525 {dimension_numbers = #tpu.dot_dimension_numbers<[1], [0], [0], [1], [0, 0, 1, 1], [], []>} : vector<1x1xbf16>, vector<1x8xbf16>, vector<1x8xf32> -> vector<1x8xf32>
    %1795 = vector.extract_strided_slice %1771 {offsets = [1, 0], sizes = [1, 8], strides = [1, 1]} : vector<2x32xbf16> to vector<1x8xbf16>
    %1796 = vector.extract_strided_slice %1772 {offsets = [1, 0], sizes = [1, 8], strides = [1, 1]} : vector<2x64xbf16> to vector<1x8xbf16>
    %1797 = vector.extract_strided_slice %1772 {offsets = [1, 32], sizes = [1, 8], strides = [1, 1]} : vector<2x64xbf16> to vector<1x8xbf16>
    %1798 = arith.extf %1795 : vector<1x8xbf16> to vector<1x8xf32>
    %1799 = arith.extf %1796 : vector<1x8xbf16> to vector<1x8xf32>
    %cst_526 = arith.constant dense<0.000000e+00> : vector<1xf32>
    %1800 = arith.mulf %1798, %1799 : vector<1x8xf32>
    %1801 = vector.multi_reduction <add>, %1800, %cst_526 [1] : vector<1x8xf32> to vector<1xf32>
    %1802 = vector.shape_cast %1801 : vector<1xf32> to vector<1x1xf32>
    %cst_527 = arith.constant 0.353553385 : f32
    %1803 = vector.broadcast %cst_527 : f32 to vector<1x1xf32>
    %1804 = arith.mulf %1802, %1803 : vector<1x1xf32>
    %cst_528 = arith.constant dense<0xFF800000> : vector<1xf32>
    %1805 = vector.multi_reduction <maximumf>, %1804, %cst_528 [1] : vector<1x1xf32> to vector<1xf32>
    %1806 = vector.shape_cast %1805 : vector<1xf32> to vector<1x1xf32>
    %1807 = arith.subf %1804, %1806 : vector<1x1xf32>
    %1808 = math.exp %1807 : vector<1x1xf32>
    %cst_529 = arith.constant dense<0.000000e+00> : vector<1xf32>
    %1809 = vector.multi_reduction <add>, %1808, %cst_529 [1] : vector<1x1xf32> to vector<1xf32>
    %1810 = vector.shape_cast %1809 : vector<1xf32> to vector<1x1xf32>
    %1811 = tpu.reciprocal %1810 {approx = true} : vector<1x1xf32> -> vector<1x1xf32>
    %1812 = arith.mulf %1808, %1811 : vector<1x1xf32>
    %1813 = arith.truncf %1812 : vector<1x1xf32> to vector<1x1xbf16>
    %cst_530 = arith.constant dense<0.000000e+00> : vector<1x8xf32>
    %1814 = tpu.matmul %1813, %1797, %cst_530 {dimension_numbers = #tpu.dot_dimension_numbers<[1], [0], [0], [1], [0, 0, 1, 1], [], []>} : vector<1x1xbf16>, vector<1x8xbf16>, vector<1x8xf32> -> vector<1x8xf32>
    %1815 = tpu.concatenate %1794, %1814 in 0 : vector<1x8xf32>, vector<1x8xf32> -> vector<2x8xf32>
    %1816 = arith.truncf %1815 : vector<2x8xf32> to vector<2x8xbf16>
    %1817 = vector.extract_strided_slice %1762 {offsets = [0, 0], sizes = [8, 32], strides = [1, 1]} : vector<32x32xbf16> to vector<8x32xbf16>
    %cst_531 = arith.constant dense<0.000000e+00> : vector<2x32xf32>
    %1818 = tpu.matmul %1816, %1817, %cst_531 {dimension_numbers = #tpu.dot_dimension_numbers<[1], [0], [0], [1], [0, 0, 1, 1], [], []>} : vector<2x8xbf16>, vector<8x32xbf16>, vector<2x32xf32> -> vector<2x32xf32>
    %1819 = arith.addf %1774, %1818 : vector<2x32xf32>
    %1820 = vector.extract_strided_slice %1771 {offsets = [0, 8], sizes = [1, 8], strides = [1, 1]} : vector<2x32xbf16> to vector<1x8xbf16>
    %1821 = vector.extract_strided_slice %1772 {offsets = [0, 8], sizes = [1, 8], strides = [1, 1]} : vector<2x64xbf16> to vector<1x8xbf16>
    %1822 = vector.extract_strided_slice %1772 {offsets = [0, 40], sizes = [1, 8], strides = [1, 1]} : vector<2x64xbf16> to vector<1x8xbf16>
    %1823 = arith.extf %1820 : vector<1x8xbf16> to vector<1x8xf32>
    %1824 = arith.extf %1821 : vector<1x8xbf16> to vector<1x8xf32>
    %cst_532 = arith.constant dense<0.000000e+00> : vector<1xf32>
    %1825 = arith.mulf %1823, %1824 : vector<1x8xf32>
    %1826 = vector.multi_reduction <add>, %1825, %cst_532 [1] : vector<1x8xf32> to vector<1xf32>
    %1827 = vector.shape_cast %1826 : vector<1xf32> to vector<1x1xf32>
    %cst_533 = arith.constant 0.353553385 : f32
    %1828 = vector.broadcast %cst_533 : f32 to vector<1x1xf32>
    %1829 = arith.mulf %1827, %1828 : vector<1x1xf32>
    %cst_534 = arith.constant dense<0xFF800000> : vector<1xf32>
    %1830 = vector.multi_reduction <maximumf>, %1829, %cst_534 [1] : vector<1x1xf32> to vector<1xf32>
    %1831 = vector.shape_cast %1830 : vector<1xf32> to vector<1x1xf32>
    %1832 = arith.subf %1829, %1831 : vector<1x1xf32>
    %1833 = math.exp %1832 : vector<1x1xf32>
    %cst_535 = arith.constant dense<0.000000e+00> : vector<1xf32>
    %1834 = vector.multi_reduction <add>, %1833, %cst_535 [1] : vector<1x1xf32> to vector<1xf32>
    %1835 = vector.shape_cast %1834 : vector<1xf32> to vector<1x1xf32>
    %1836 = tpu.reciprocal %1835 {approx = true} : vector<1x1xf32> -> vector<1x1xf32>
    %1837 = arith.mulf %1833, %1836 : vector<1x1xf32>
    %1838 = arith.truncf %1837 : vector<1x1xf32> to vector<1x1xbf16>
    %cst_536 = arith.constant dense<0.000000e+00> : vector<1x8xf32>
    %1839 = tpu.matmul %1838, %1822, %cst_536 {dimension_numbers = #tpu.dot_dimension_numbers<[1], [0], [0], [1], [0, 0, 1, 1], [], []>} : vector<1x1xbf16>, vector<1x8xbf16>, vector<1x8xf32> -> vector<1x8xf32>
    %1840 = vector.extract_strided_slice %1771 {offsets = [1, 8], sizes = [1, 8], strides = [1, 1]} : vector<2x32xbf16> to vector<1x8xbf16>
    %1841 = vector.extract_strided_slice %1772 {offsets = [1, 8], sizes = [1, 8], strides = [1, 1]} : vector<2x64xbf16> to vector<1x8xbf16>
    %1842 = vector.extract_strided_slice %1772 {offsets = [1, 40], sizes = [1, 8], strides = [1, 1]} : vector<2x64xbf16> to vector<1x8xbf16>
    %1843 = arith.extf %1840 : vector<1x8xbf16> to vector<1x8xf32>
    %1844 = arith.extf %1841 : vector<1x8xbf16> to vector<1x8xf32>
    %cst_537 = arith.constant dense<0.000000e+00> : vector<1xf32>
    %1845 = arith.mulf %1843, %1844 : vector<1x8xf32>
    %1846 = vector.multi_reduction <add>, %1845, %cst_537 [1] : vector<1x8xf32> to vector<1xf32>
    %1847 = vector.shape_cast %1846 : vector<1xf32> to vector<1x1xf32>
    %cst_538 = arith.constant 0.353553385 : f32
    %1848 = vector.broadcast %cst_538 : f32 to vector<1x1xf32>
    %1849 = arith.mulf %1847, %1848 : vector<1x1xf32>
    %cst_539 = arith.constant dense<0xFF800000> : vector<1xf32>
    %1850 = vector.multi_reduction <maximumf>, %1849, %cst_539 [1] : vector<1x1xf32> to vector<1xf32>
    %1851 = vector.shape_cast %1850 : vector<1xf32> to vector<1x1xf32>
    %1852 = arith.subf %1849, %1851 : vector<1x1xf32>
    %1853 = math.exp %1852 : vector<1x1xf32>
    %cst_540 = arith.constant dense<0.000000e+00> : vector<1xf32>
    %1854 = vector.multi_reduction <add>, %1853, %cst_540 [1] : vector<1x1xf32> to vector<1xf32>
    %1855 = vector.shape_cast %1854 : vector<1xf32> to vector<1x1xf32>
    %1856 = tpu.reciprocal %1855 {approx = true} : vector<1x1xf32> -> vector<1x1xf32>
    %1857 = arith.mulf %1853, %1856 : vector<1x1xf32>
    %1858 = arith.truncf %1857 : vector<1x1xf32> to vector<1x1xbf16>
    %cst_541 = arith.constant dense<0.000000e+00> : vector<1x8xf32>
    %1859 = tpu.matmul %1858, %1842, %cst_541 {dimension_numbers = #tpu.dot_dimension_numbers<[1], [0], [0], [1], [0, 0, 1, 1], [], []>} : vector<1x1xbf16>, vector<1x8xbf16>, vector<1x8xf32> -> vector<1x8xf32>
    %1860 = tpu.concatenate %1839, %1859 in 0 : vector<1x8xf32>, vector<1x8xf32> -> vector<2x8xf32>
    %1861 = arith.truncf %1860 : vector<2x8xf32> to vector<2x8xbf16>
    %1862 = vector.extract_strided_slice %1762 {offsets = [8, 0], sizes = [8, 32], strides = [1, 1]} : vector<32x32xbf16> to vector<8x32xbf16>
    %cst_542 = arith.constant dense<0.000000e+00> : vector<2x32xf32>
    %1863 = tpu.matmul %1861, %1862, %cst_542 {dimension_numbers = #tpu.dot_dimension_numbers<[1], [0], [0], [1], [0, 0, 1, 1], [], []>} : vector<2x8xbf16>, vector<8x32xbf16>, vector<2x32xf32> -> vector<2x32xf32>
    %1864 = arith.addf %1819, %1863 : vector<2x32xf32>
    %1865 = vector.extract_strided_slice %1771 {offsets = [0, 16], sizes = [1, 8], strides = [1, 1]} : vector<2x32xbf16> to vector<1x8xbf16>
    %1866 = vector.extract_strided_slice %1772 {offsets = [0, 16], sizes = [1, 8], strides = [1, 1]} : vector<2x64xbf16> to vector<1x8xbf16>
    %1867 = vector.extract_strided_slice %1772 {offsets = [0, 48], sizes = [1, 8], strides = [1, 1]} : vector<2x64xbf16> to vector<1x8xbf16>
    %1868 = arith.extf %1865 : vector<1x8xbf16> to vector<1x8xf32>
    %1869 = arith.extf %1866 : vector<1x8xbf16> to vector<1x8xf32>
    %cst_543 = arith.constant dense<0.000000e+00> : vector<1xf32>
    %1870 = arith.mulf %1868, %1869 : vector<1x8xf32>
    %1871 = vector.multi_reduction <add>, %1870, %cst_543 [1] : vector<1x8xf32> to vector<1xf32>
    %1872 = vector.shape_cast %1871 : vector<1xf32> to vector<1x1xf32>
    %cst_544 = arith.constant 0.353553385 : f32
    %1873 = vector.broadcast %cst_544 : f32 to vector<1x1xf32>
    %1874 = arith.mulf %1872, %1873 : vector<1x1xf32>
    %cst_545 = arith.constant dense<0xFF800000> : vector<1xf32>
    %1875 = vector.multi_reduction <maximumf>, %1874, %cst_545 [1] : vector<1x1xf32> to vector<1xf32>
    %1876 = vector.shape_cast %1875 : vector<1xf32> to vector<1x1xf32>
    %1877 = arith.subf %1874, %1876 : vector<1x1xf32>
    %1878 = math.exp %1877 : vector<1x1xf32>
    %cst_546 = arith.constant dense<0.000000e+00> : vector<1xf32>
    %1879 = vector.multi_reduction <add>, %1878, %cst_546 [1] : vector<1x1xf32> to vector<1xf32>
    %1880 = vector.shape_cast %1879 : vector<1xf32> to vector<1x1xf32>
    %1881 = tpu.reciprocal %1880 {approx = true} : vector<1x1xf32> -> vector<1x1xf32>
    %1882 = arith.mulf %1878, %1881 : vector<1x1xf32>
    %1883 = arith.truncf %1882 : vector<1x1xf32> to vector<1x1xbf16>
    %cst_547 = arith.constant dense<0.000000e+00> : vector<1x8xf32>
    %1884 = tpu.matmul %1883, %1867, %cst_547 {dimension_numbers = #tpu.dot_dimension_numbers<[1], [0], [0], [1], [0, 0, 1, 1], [], []>} : vector<1x1xbf16>, vector<1x8xbf16>, vector<1x8xf32> -> vector<1x8xf32>
    %1885 = vector.extract_strided_slice %1771 {offsets = [1, 16], sizes = [1, 8], strides = [1, 1]} : vector<2x32xbf16> to vector<1x8xbf16>
    %1886 = vector.extract_strided_slice %1772 {offsets = [1, 16], sizes = [1, 8], strides = [1, 1]} : vector<2x64xbf16> to vector<1x8xbf16>
    %1887 = vector.extract_strided_slice %1772 {offsets = [1, 48], sizes = [1, 8], strides = [1, 1]} : vector<2x64xbf16> to vector<1x8xbf16>
    %1888 = arith.extf %1885 : vector<1x8xbf16> to vector<1x8xf32>
    %1889 = arith.extf %1886 : vector<1x8xbf16> to vector<1x8xf32>
    %cst_548 = arith.constant dense<0.000000e+00> : vector<1xf32>
    %1890 = arith.mulf %1888, %1889 : vector<1x8xf32>
    %1891 = vector.multi_reduction <add>, %1890, %cst_548 [1] : vector<1x8xf32> to vector<1xf32>
    %1892 = vector.shape_cast %1891 : vector<1xf32> to vector<1x1xf32>
    %cst_549 = arith.constant 0.353553385 : f32
    %1893 = vector.broadcast %cst_549 : f32 to vector<1x1xf32>
    %1894 = arith.mulf %1892, %1893 : vector<1x1xf32>
    %cst_550 = arith.constant dense<0xFF800000> : vector<1xf32>
    %1895 = vector.multi_reduction <maximumf>, %1894, %cst_550 [1] : vector<1x1xf32> to vector<1xf32>
    %1896 = vector.shape_cast %1895 : vector<1xf32> to vector<1x1xf32>
    %1897 = arith.subf %1894, %1896 : vector<1x1xf32>
    %1898 = math.exp %1897 : vector<1x1xf32>
    %cst_551 = arith.constant dense<0.000000e+00> : vector<1xf32>
    %1899 = vector.multi_reduction <add>, %1898, %cst_551 [1] : vector<1x1xf32> to vector<1xf32>
    %1900 = vector.shape_cast %1899 : vector<1xf32> to vector<1x1xf32>
    %1901 = tpu.reciprocal %1900 {approx = true} : vector<1x1xf32> -> vector<1x1xf32>
    %1902 = arith.mulf %1898, %1901 : vector<1x1xf32>
    %1903 = arith.truncf %1902 : vector<1x1xf32> to vector<1x1xbf16>
    %cst_552 = arith.constant dense<0.000000e+00> : vector<1x8xf32>
    %1904 = tpu.matmul %1903, %1887, %cst_552 {dimension_numbers = #tpu.dot_dimension_numbers<[1], [0], [0], [1], [0, 0, 1, 1], [], []>} : vector<1x1xbf16>, vector<1x8xbf16>, vector<1x8xf32> -> vector<1x8xf32>
    %1905 = tpu.concatenate %1884, %1904 in 0 : vector<1x8xf32>, vector<1x8xf32> -> vector<2x8xf32>
    %1906 = arith.truncf %1905 : vector<2x8xf32> to vector<2x8xbf16>
    %1907 = vector.extract_strided_slice %1762 {offsets = [16, 0], sizes = [8, 32], strides = [1, 1]} : vector<32x32xbf16> to vector<8x32xbf16>
    %cst_553 = arith.constant dense<0.000000e+00> : vector<2x32xf32>
    %1908 = tpu.matmul %1906, %1907, %cst_553 {dimension_numbers = #tpu.dot_dimension_numbers<[1], [0], [0], [1], [0, 0, 1, 1], [], []>} : vector<2x8xbf16>, vector<8x32xbf16>, vector<2x32xf32> -> vector<2x32xf32>
    %1909 = arith.addf %1864, %1908 : vector<2x32xf32>
    %1910 = vector.extract_strided_slice %1771 {offsets = [0, 24], sizes = [1, 8], strides = [1, 1]} : vector<2x32xbf16> to vector<1x8xbf16>
    %1911 = vector.extract_strided_slice %1772 {offsets = [0, 24], sizes = [1, 8], strides = [1, 1]} : vector<2x64xbf16> to vector<1x8xbf16>
    %1912 = vector.extract_strided_slice %1772 {offsets = [0, 56], sizes = [1, 8], strides = [1, 1]} : vector<2x64xbf16> to vector<1x8xbf16>
    %1913 = arith.extf %1910 : vector<1x8xbf16> to vector<1x8xf32>
    %1914 = arith.extf %1911 : vector<1x8xbf16> to vector<1x8xf32>
    %cst_554 = arith.constant dense<0.000000e+00> : vector<1xf32>
    %1915 = arith.mulf %1913, %1914 : vector<1x8xf32>
    %1916 = vector.multi_reduction <add>, %1915, %cst_554 [1] : vector<1x8xf32> to vector<1xf32>
    %1917 = vector.shape_cast %1916 : vector<1xf32> to vector<1x1xf32>
    %cst_555 = arith.constant 0.353553385 : f32
    %1918 = vector.broadcast %cst_555 : f32 to vector<1x1xf32>
    %1919 = arith.mulf %1917, %1918 : vector<1x1xf32>
    %cst_556 = arith.constant dense<0xFF800000> : vector<1xf32>
    %1920 = vector.multi_reduction <maximumf>, %1919, %cst_556 [1] : vector<1x1xf32> to vector<1xf32>
    %1921 = vector.shape_cast %1920 : vector<1xf32> to vector<1x1xf32>
    %1922 = arith.subf %1919, %1921 : vector<1x1xf32>
    %1923 = math.exp %1922 : vector<1x1xf32>
    %cst_557 = arith.constant dense<0.000000e+00> : vector<1xf32>
    %1924 = vector.multi_reduction <add>, %1923, %cst_557 [1] : vector<1x1xf32> to vector<1xf32>
    %1925 = vector.shape_cast %1924 : vector<1xf32> to vector<1x1xf32>
    %1926 = tpu.reciprocal %1925 {approx = true} : vector<1x1xf32> -> vector<1x1xf32>
    %1927 = arith.mulf %1923, %1926 : vector<1x1xf32>
    %1928 = arith.truncf %1927 : vector<1x1xf32> to vector<1x1xbf16>
    %cst_558 = arith.constant dense<0.000000e+00> : vector<1x8xf32>
    %1929 = tpu.matmul %1928, %1912, %cst_558 {dimension_numbers = #tpu.dot_dimension_numbers<[1], [0], [0], [1], [0, 0, 1, 1], [], []>} : vector<1x1xbf16>, vector<1x8xbf16>, vector<1x8xf32> -> vector<1x8xf32>
    %1930 = vector.extract_strided_slice %1771 {offsets = [1, 24], sizes = [1, 8], strides = [1, 1]} : vector<2x32xbf16> to vector<1x8xbf16>
    %1931 = vector.extract_strided_slice %1772 {offsets = [1, 24], sizes = [1, 8], strides = [1, 1]} : vector<2x64xbf16> to vector<1x8xbf16>
    %1932 = vector.extract_strided_slice %1772 {offsets = [1, 56], sizes = [1, 8], strides = [1, 1]} : vector<2x64xbf16> to vector<1x8xbf16>
    %1933 = arith.extf %1930 : vector<1x8xbf16> to vector<1x8xf32>
    %1934 = arith.extf %1931 : vector<1x8xbf16> to vector<1x8xf32>
    %cst_559 = arith.constant dense<0.000000e+00> : vector<1xf32>
    %1935 = arith.mulf %1933, %1934 : vector<1x8xf32>
    %1936 = vector.multi_reduction <add>, %1935, %cst_559 [1] : vector<1x8xf32> to vector<1xf32>
    %1937 = vector.shape_cast %1936 : vector<1xf32> to vector<1x1xf32>
    %cst_560 = arith.constant 0.353553385 : f32
    %1938 = vector.broadcast %cst_560 : f32 to vector<1x1xf32>
    %1939 = arith.mulf %1937, %1938 : vector<1x1xf32>
    %cst_561 = arith.constant dense<0xFF800000> : vector<1xf32>
    %1940 = vector.multi_reduction <maximumf>, %1939, %cst_561 [1] : vector<1x1xf32> to vector<1xf32>
    %1941 = vector.shape_cast %1940 : vector<1xf32> to vector<1x1xf32>
    %1942 = arith.subf %1939, %1941 : vector<1x1xf32>
    %1943 = math.exp %1942 : vector<1x1xf32>
    %cst_562 = arith.constant dense<0.000000e+00> : vector<1xf32>
    %1944 = vector.multi_reduction <add>, %1943, %cst_562 [1] : vector<1x1xf32> to vector<1xf32>
    %1945 = vector.shape_cast %1944 : vector<1xf32> to vector<1x1xf32>
    %1946 = tpu.reciprocal %1945 {approx = true} : vector<1x1xf32> -> vector<1x1xf32>
    %1947 = arith.mulf %1943, %1946 : vector<1x1xf32>
    %1948 = arith.truncf %1947 : vector<1x1xf32> to vector<1x1xbf16>
    %cst_563 = arith.constant dense<0.000000e+00> : vector<1x8xf32>
    %1949 = tpu.matmul %1948, %1932, %cst_563 {dimension_numbers = #tpu.dot_dimension_numbers<[1], [0], [0], [1], [0, 0, 1, 1], [], []>} : vector<1x1xbf16>, vector<1x8xbf16>, vector<1x8xf32> -> vector<1x8xf32>
    %1950 = tpu.concatenate %1929, %1949 in 0 : vector<1x8xf32>, vector<1x8xf32> -> vector<2x8xf32>
    %1951 = arith.truncf %1950 : vector<2x8xf32> to vector<2x8xbf16>
    %1952 = vector.extract_strided_slice %1762 {offsets = [24, 0], sizes = [8, 32], strides = [1, 1]} : vector<32x32xbf16> to vector<8x32xbf16>
    %cst_564 = arith.constant dense<0.000000e+00> : vector<2x32xf32>
    %1953 = tpu.matmul %1951, %1952, %cst_564 {dimension_numbers = #tpu.dot_dimension_numbers<[1], [0], [0], [1], [0, 0, 1, 1], [], []>} : vector<2x8xbf16>, vector<8x32xbf16>, vector<2x32xf32> -> vector<2x32xf32>
    %1954 = arith.addf %1909, %1953 : vector<2x32xf32>
    %1955 = arith.addf %1756, %1954 : vector<2x32xf32>
    %1956 = arith.truncf %1955 : vector<2x32xf32> to vector<2x32xbf16>
    %c0_565 = arith.constant 0 : index
    %c0_566 = arith.constant 0 : index
    %1957 = vector.load %arg6[%c0_565, %c0_566] : memref<32x32xbf16, #tpu.memory_space<vmem>>, vector<32x32xbf16>
    %cst_567 = arith.constant dense<0.000000e+00> : vector<2x32xf32>
    %1958 = tpu.matmul %1956, %1957, %cst_567 {dimension_numbers = #tpu.dot_dimension_numbers<[1], [0], [0], [1], [0, 0, 1, 1], [], []>} : vector<2x32xbf16>, vector<32x32xbf16>, vector<2x32xf32> -> vector<2x32xf32>
    %c0_568 = arith.constant 0 : index
    %c0_569 = arith.constant 0 : index
    %1959 = vector.load %arg7[%c0_568, %c0_569] : memref<1x32xf32, #tpu.memory_space<vmem>>, vector<1x32xf32>
    %1960 = vector.broadcast %1959 : vector<1x32xf32> to vector<2x32xf32>
    %1961 = arith.addf %1958, %1960 : vector<2x32xf32>
    %cst_570 = arith.constant 0.000000e+00 : f32
    %1962 = vector.broadcast %cst_570 : f32 to vector<2x32xf32>
    %1963 = arith.maximumf %1961, %1962 : vector<2x32xf32>
    %1964 = arith.truncf %1963 : vector<2x32xf32> to vector<2x32xbf16>
    %c0_571 = arith.constant 0 : index
    %c0_572 = arith.constant 0 : index
    %1965 = vector.load %arg8[%c0_571, %c0_572] : memref<32x16xbf16, #tpu.memory_space<vmem>>, vector<32x16xbf16>
    %cst_573 = arith.constant dense<0.000000e+00> : vector<2x16xf32>
    %1966 = tpu.matmul %1964, %1965, %cst_573 {dimension_numbers = #tpu.dot_dimension_numbers<[1], [0], [0], [1], [0, 0, 1, 1], [], []>} : vector<2x32xbf16>, vector<32x16xbf16>, vector<2x16xf32> -> vector<2x16xf32>
    %c0_574 = arith.constant 0 : index
    %c0_575 = arith.constant 0 : index
    %1967 = vector.load %arg9[%c0_574, %c0_575] : memref<1x16xf32, #tpu.memory_space<vmem>>, vector<1x16xf32>
    %1968 = vector.broadcast %1967 : vector<1x16xf32> to vector<2x16xf32>
    %1969 = arith.addf %1966, %1968 : vector<2x16xf32>
    %cst_576 = arith.constant 0.000000e+00 : f32
    %1970 = vector.broadcast %cst_576 : f32 to vector<2x16xf32>
    %1971 = arith.maximumf %1969, %1970 : vector<2x16xf32>
    %1972 = arith.truncf %1971 : vector<2x16xf32> to vector<2x16xbf16>
    %c0_577 = arith.constant 0 : index
    %c0_578 = arith.constant 0 : index
    %1973 = vector.load %arg10[%c0_577, %c0_578] : memref<16x128xbf16, #tpu.memory_space<vmem>>, vector<16x128xbf16>
    %cst_579 = arith.constant dense<0.000000e+00> : vector<2x128xf32>
    %1974 = tpu.matmul %1972, %1973, %cst_579 {dimension_numbers = #tpu.dot_dimension_numbers<[1], [0], [0], [1], [0, 0, 1, 1], [], []>} : vector<2x16xbf16>, vector<16x128xbf16>, vector<2x128xf32> -> vector<2x128xf32>
    %c0_580 = arith.constant 0 : index
    %c0_581 = arith.constant 0 : index
    %1975 = vector.load %arg11[%c0_580, %c0_581] : memref<1x128xf32, #tpu.memory_space<vmem>>, vector<1x128xf32>
    %1976 = vector.broadcast %1975 : vector<1x128xf32> to vector<2x128xf32>
    %1977 = arith.addf %1974, %1976 : vector<2x128xf32>
    %c0_582 = arith.constant 0 : index
    %c0_583 = arith.constant 0 : index
    %1978 = vector.load %arg12[%c0_582, %c0_583] : memref<2x128xf32, #tpu.memory_space<vmem>>, vector<2x128xf32>
    tpu.vector_store %arg12[%c0_582, %c0_583], %1977 {strides = array<i32>} : memref<2x128xf32, #tpu.memory_space<vmem>>, vector<2x128xf32>,
    return
  }
}

</mosaic_0001>

<bundles_post_ra>
// kernel: tpu_custom_call.1
= control target key start
LH: loop header
LB: loop body
LE: loop exit
PB: predicated region body
PF: predicated region fallthrough
CT: control target
= control target key end

     0   :  { %17 = vsyncpa [#allocation3], 0  ;;  %s13704_s0 = inlined_call_operand.vmem [shape: f32[2,8,32], index: 0, kind: input, shape index: {}]   ;;  %s13705_s1 = inlined_call_operand.hbm [shape: f32[2,8,32], index: 1, kind: input, shape index: {}]   ;;  %s13706_s2 = inlined_call_operand.hbm [shape: bf16[10,32,96], index: 2, kind: input, shape index: {}]   ;;  %s13707_s3 = inlined_call_operand.hbm [shape: f32[10,1,96], index: 3, kind: input, shape index: {}]   ;;  %s13708_s4 = inlined_call_operand.hbm [shape: bf16[10,32,32], index: 4, kind: input, shape index: {}]   ;;  %s13709_s5 = inlined_call_operand.vmem [shape: f32[10,1,32], index: 5, kind: input, shape index: {}]   ;;  %s13710_s6 = inlined_call_operand.vmem [shape: bf16[32,32], index: 6, kind: input, shape index: {}]   ;;  %s13711_s7 = inlined_call_operand.hbm [shape: f32[1,32], index: 7, kind: input, shape index: {}]   ;;  %s13712_s8 = inlined_call_operand.vmem [shape: bf16[32,16], index: 8, kind: input, shape index: {}]   ;;  %s13713_s9 = inlined_call_operand.hbm [shape: f32[1,16], index: 9, kind: input, shape index: {}]   ;;  %s13714_s10 = inlined_call_operand.vmem [shape: bf16[16,128], index: 10, kind: input, shape index: {}]   ;;  %s13715_s11 = inlined_call_operand.vmem [shape: f32[1,128], index: 11, kind: input, shape index: {}]   ;;  %s13716_s12 = inlined_call_operand.hbm [shape: f32[2,128], index: 12, kind: output, shape index: {}]  }
   0x1   :  { %18 = vsyncpa [#allocation6], 0 }
   0x2   :  { %19 = vsyncpa [#allocation9], 0 }
   0x3   :  { %20 = vsyncpa [#allocation12], 0 }
   0x4   :  { %21 = vsyncpa [#allocation4], 0  ;;  %s12062_s21 = smov [#allocation5]   ;;  %s11898_s25 = scalar_lea.hbm %s13706_s2, 2560 }
   0x5   :  { %s41_s22 = sshll.u32 %s12062_s21, 4  ;;  %p11899_p0 = scmp.ne.s32.totalorder %s13706_s2, %s11898_s25  ;;  %s42_s22 = int_to_ptr.vmem [resolvable:$true] %s41_s22 }
   0x6   :  { %p11902_p1 = scmp.lt.u32.totalorder %s11898_s25, %s13706_s2 }
   0x8   :  { %p11904_p2 = pnand %p11902_p1, %p11899_p0 }
   0xa   :  { %11907 = shalt.err (!%p11904_p2)
}
   0xb   :  { %s11908_s30 = scalar_lea.vmem %s42_s22, 2560  ;;  %p11913_p4 = scmp.lt.s32.totalorder %s42_s22, %s42_s22 }
   0xc   :  { %p11909_p3 = scmp.ne.s32.totalorder %s42_s22, %s11908_s30  ;;  %p11914_p5 = scmp.lt.s32.totalorder %s11908_s30, %s11908_s30 }
   0xe   :  { %p11915_p6 = por %p11914_p5, %p11913_p4 }
  0x10   :  { %p11916_p7 = pnand %p11915_p6, %p11909_p3 }
  0x12   :  { %11919 = shalt.err (!%p11916_p7)
}
  0x13   :  { %s12063_s13 = smov 64   ;;  %s12064_s14 = smov 4  }
  0x14   :  { %47 = dma.hbm_to_vmem [thread:$0]  %s13706_s2, 2560, %s42_s22, [#allocation6], %s12063_s13, %s12063_s13, %s12064_s14  }
  0x15   :  { %s12065_s17 = smov [#allocation8]   ;;  %s12066_s19 = smov [#allocation2]  }
  0x16   :  { %s65_s18 = sshll.u32 %s12065_s17, 4  ;;  %s29_s20 = sshll.u32 %s12066_s19, 4  ;;  %s66_s18 = int_to_ptr.vmem [resolvable:$true] %s65_s18  ;;  %s30_s20 = int_to_ptr.vmem [resolvable:$true] %s29_s20 }
  0x17   :  { %s11920_s24 = scalar_lea.hbm %s13708_s4, 2560 }
  0x18   :  { %p11921_p8 = scmp.ne.s32.totalorder %s13708_s4, %s11920_s24  ;;  %p11924_p9 = scmp.lt.u32.totalorder %s11920_s24, %s13708_s4 }
  0x1a   :  { %p11926_p10 = pnand %p11924_p9, %p11921_p8 }
  0x1c   :  { %11929 = shalt.err (!%p11926_p10)
}
  0x1d   :  { %s11930_s2 = scalar_lea.vmem %s66_s18, 2560  ;;  %p11935_p12 = scmp.lt.s32.totalorder %s66_s18, %s66_s18 }
  0x1e   :  { %p11931_p11 = scmp.ne.s32.totalorder %s66_s18, %s11930_s2  ;;  %p11936_p13 = scmp.lt.s32.totalorder %s11930_s2, %s11930_s2 }
  0x20   :  { %p11937_p0 = por %p11936_p13, %p11935_p12 }
  0x22   :  { %p11938_p1 = pnand %p11937_p0, %p11931_p11 }
  0x24   :  { %11941 = shalt.err (!%p11938_p1)
}
  0x25   :  { %71 = dma.hbm_to_vmem [thread:$0]  %s13708_s4, 2560, %s66_s18, [#allocation9], %s12063_s13, %s12063_s13, %s12064_s14  }
  0x26   :  { %s11942_s16 = scalar_lea.hbm %s13705_s1, 256 }
  0x27   :  { %p11943_p2 = scmp.ne.s32.totalorder %s13705_s1, %s11942_s16  ;;  %p11946_p3 = scmp.lt.u32.totalorder %s11942_s16, %s13705_s1 }
  0x29   :  { %p11948_p4 = pnand %p11946_p3, %p11943_p2 }
  0x2b   :  { %11951 = shalt.err (!%p11948_p4)
}
  0x2c   :  { %s11952_s24 = scalar_lea.vmem %s30_s20, 256  ;;  %p11957_p6 = scmp.lt.s32.totalorder %s30_s20, %s30_s20 }
  0x2d   :  { %p11953_p5 = scmp.ne.s32.totalorder %s30_s20, %s11952_s24  ;;  %p11958_p7 = scmp.lt.s32.totalorder %s11952_s24, %s11952_s24 }
  0x2f   :  { %p11959_p8 = por %p11958_p7, %p11957_p6 }
  0x31   :  { %p11960_p9 = pnand %p11959_p8, %p11953_p5 }
  0x33   :  { %11963 = shalt.err (!%p11960_p9)
}
  0x34   :  { %s12067_s4 = smov 128   ;;  %s12068_s14 = smov 8  }
  0x35   :  { %35 = dma.hbm_to_vmem [thread:$0]  %s13705_s1, 256, %s30_s20, [#allocation3], %s12067_s4, %s12067_s4, %s12068_s14  }
  0x36   :  { %s12069_s26 = smov [#allocation7]   ;;  %s11964_s22 = scalar_lea.hbm %s13707_s3, 160 }
  0x37   :  { %s53_s27 = sshll.u32 %s12069_s26, 4  ;;  %p11965_p10 = scmp.ne.s32.totalorder %s13707_s3, %s11964_s22  ;;  %s54_s27 = int_to_ptr.vmem [resolvable:$true] %s53_s27 }
  0x38   :  { %p11968_p11 = scmp.lt.u32.totalorder %s11964_s22, %s13707_s3 }
  0x3a   :  { %p11970_p12 = pnand %p11968_p11, %p11965_p10 }
  0x3c   :  { %11973 = shalt.err (!%p11970_p12)
}
  0x3d   :  { %s11974_s17 = scalar_lea.vmem %s54_s27, 160  ;;  %p11979_p0 = scmp.lt.s32.totalorder %s54_s27, %s54_s27 }
  0x3e   :  { %p11975_p13 = scmp.ne.s32.totalorder %s54_s27, %s11974_s17  ;;  %p11980_p1 = scmp.lt.s32.totalorder %s11974_s17, %s11974_s17 }
  0x40   :  { %p11981_p2 = por %p11980_p1, %p11979_p0 }
  0x42   :  { %p11982_p3 = pnand %p11981_p2, %p11975_p13 }
  0x44   :  { %11985 = shalt.err (!%p11982_p3)
}
  0x45   :  { %s12070_s1 = smov 16   ;;  %s12071_s20 = smov 1  }
  0x46   :  { %59 = dma.hbm_to_vmem [thread:$0]  %s13707_s3, 160, %s54_s27, [#allocation6], %s12070_s1, %s12070_s1, %s12071_s20  }
  0x47   :  { %s12072_s23 = smov [#allocation10]   ;;  %s12073_s4 = smov [#allocation11]  }
  0x48   :  { %s82_s24 = sshll.u32 %s12072_s23, 4  ;;  %s94_s14 = sshll.u32 %s12073_s4, 4  ;;  %s83_s24 = int_to_ptr.vmem [resolvable:$true] %s82_s24  ;;  %s95_s14 = int_to_ptr.vmem [resolvable:$true] %s94_s14 }
  0x49   :  { %s11986_s26 = scalar_lea.hbm %s13711_s7, 16 }
  0x4a   :  { %p11987_p4 = scmp.ne.s32.totalorder %s13711_s7, %s11986_s26  ;;  %p11990_p5 = scmp.lt.u32.totalorder %s11986_s26, %s13711_s7 }
  0x4c   :  { %p11992_p6 = pnand %p11990_p5, %p11987_p4 }
  0x4e   :  { %11995 = shalt.err (!%p11992_p6)
}
  0x4f   :  { %s11996_s3 = scalar_lea.vmem %s83_s24, 16  ;;  %s12000_s27 = scalar_lea.vmem %s83_s24, 32 }
  0x50   :  { %p11997_p7 = scmp.ne.s32.totalorder %s83_s24, %s11996_s3  ;;  %p12001_p8 = scmp.lt.s32.totalorder %s83_s24, %s83_s24 }
  0x51   :  { %p12002_p9 = scmp.lt.s32.totalorder %s12000_s27, %s11996_s3 }
  0x53   :  { %p12003_p10 = por %p12002_p9, %p12001_p8 }
  0x55   :  { %p12004_p11 = pnand %p12003_p10, %p11997_p7 }
  0x57   :  { %12007 = shalt.err (!%p12004_p11)
}
  0x58   :  { %85 = dma.hbm_to_vmem [thread:$0]  %s13711_s7, 16, %s83_s24, [#allocation9]  }
  0x59   :  { %s12008_s1 = scalar_lea.hbm %s13713_s9, 16 }
  0x5a   :  { %p12009_p12 = scmp.ne.s32.totalorder %s13713_s9, %s12008_s1  ;;  %p12012_p13 = scmp.lt.u32.totalorder %s12008_s1, %s13713_s9 }
  0x5c   :  { %p12014_p0 = pnand %p12012_p13, %p12009_p12 }
  0x5e   :  { %12017 = shalt.err (!%p12014_p0)
}
  0x5f   :  { %s12018_s4 = scalar_lea.vmem %s95_s14, 16  ;;  %s12022_s18 = scalar_lea.vmem %s95_s14, 32 }
  0x60   :  { %p12019_p1 = scmp.ne.s32.totalorder %s95_s14, %s12018_s4  ;;  %p12023_p2 = scmp.lt.s32.totalorder %s95_s14, %s95_s14 }
  0x61   :  { %p12024_p3 = scmp.lt.s32.totalorder %s12022_s18, %s12018_s4 }
  0x63   :  { %p12025_p4 = por %p12024_p3, %p12023_p2 }
  0x65   :  { %p12026_p5 = pnand %p12025_p4, %p12019_p1 }
  0x67   :  { %12029 = shalt.err (!%p12026_p5)
}
  0x68   :  { %97 = dma.hbm_to_vmem [thread:$0]  %s13713_s9, 16, %s95_s14, [#allocation12]  }
  0x69   :  { %12052 = dma.done.wait [#allocation3], 256  }
  0x6a   :  { %12053 = vsyncadd [#allocation3], 4294967040 }
  0x6b   :  { %12054 = dma.done.wait [#allocation6], 2720  }
  0x6c   :  { %12055 = vsyncadd [#allocation6], 4294964576 }
  0x6d   :  { %12056 = dma.done.wait [#allocation9], 2576  }
  0x6e   :  { %12057 = vsyncadd [#allocation9], 4294964720 }
  0x6f   :  { %12058 = dma.done.wait [#allocation12], 16  }
  0x70   :  { %12059 = vsyncadd [#allocation12], 4294967280  ;;  %v11553_v0 = vld [vmem:[#allocation5] sm:$0xff]   ;;  %v11554_v1 = vld [vmem:[#allocation5 + $0x8] sm:$0xff]   ;;  %vm149_vm0 = vcmask 261120   ;;  %v12074_v8 = vmov 0.0  }
  0x71   :  { %10407 = vmatprep.subr.bf16.mxu0 %v11553_v0  ;;  %v121_v2 = vld [vmem:[%s13704_s0] sm:$0xff]  ;;  %v122_v3 = vld [vmem:[%s13704_s0 + $0x8] sm:$0xff]  ;;  %10415 = vmatprep.subr.bf16.mxu1 %v12074_v8  ;;  %v9843_v9 = vld [vmem:[#allocation7] ss:$0 sm:$0xff]  ;;  %vm12075_vm1 = vmmov 0   ;;  %s12076_s0 = smov 96  }
  0x72   :  { %10408 = vmatpush3.bf16.msra.mxu0 %v11553_v0  ;;  %v12235_v4 = vpack.c.bf16 %v122_v3, %v121_v2  ;;  %v123_v5 = vld [vmem:[#allocation2] sm:$0xff]  ;;  %v124_v6 = vld [vmem:[#allocation2 + $0x8] sm:$0xff]  ;;  %10417 = vmatprep.mubr.msk.bf16.mxu1 %vm12075_vm1, %v12074_v8  ;;  %vm226_vm2 = vcmask 64512   ;;  %vm291_vm3 = vcmask 1043456   ;;  %s12077_s9 = smov 88   ;;  %s12078_s14 = smov 120  }
  0x73   :  { %10409 = vmatprep.subr.bf16.mxu0 %v11554_v1  ;;  %v12239_v7 = vpack.c.bf16 %v124_v6, %v123_v5  ;;  %v130_v2 = vld [vmem:[#allocation8] sm:$0xf]  ;;  %s12079_s22 = smov 56   ;;  %s12080_s29 = smov 80   ;;  %vm2633_vm4 = vcmask 57344   ;;  %vm2803_vm5 = vcmask 1040384  }
  0x74   :  { %10411 = vmatprep.mubr.msk.bf16.mxu0 %vm149_vm0, %v12235_v4  ;;  %v452_v3 = vsel %vm291_vm3, %v130_v2, 0  ;;  %s12081_s3 = smov 112   ;;  %s12082_s27 = smov 48   ;;  %vm4986_vm6 = vcmask 58369   ;;  %vm4937_vm7 = vcmask 7168   ;;  %vm9776_vm8 = vcmask 130048  }
  0x75   :  { %s12083_s30 = smov 72   ;;  %s12084_s15 = smov 104  }
  0x76   :  { %10410 = vmatpush3.bf16.msra.mxu0 %v11554_v1  ;;  %s12085_s16 = smov 40   ;;  %s12087_s21 = smov [#allocation13]  }
  0x77   :  { %10421 = vmatprep.subr.bf16.mxu0 %v12074_v8  ;;  %s9827_s23 = sshll.u32 %s12087_s21, 4  ;;  %s9828_s23 = int_to_ptr.vmem [resolvable:$true] %s9827_s23 }
  0x78   :  { %p12035_p7 = scmp.lt.s32.totalorder %s9828_s23, %s9828_s23 }
  0x79   :  { %10412 = vmatmul.mubr.msk.bf16.vlgmr.msra.gmra.mrb[0].mxu0 %vm149_vm0, %v12239_v7 }
  0x7a   :  { %10423 = vmatprep.mubr.msk.bf16.mxu0 %vm12075_vm1, %v12074_v8 }
 0x14c   :  { %v10413_v10 = vpop.f32.mrb[0].mxu0 }
 0x14d   :  { %v190_v11 = vpop.f32.mrb[1].mxu0  ;;  %v213_v14 = vadd.f32 %v10413_v10, %v9843_v9 }
 0x14e   :  { %v211_v12 = vadd.f32 %v9843_v9, %v190_v11  ;;  %v10414_v13 = vpop.f32.mrb[2].mxu0 }
 0x14f   :  { %v214_v15 = vadd.f32 %v10414_v13, %v9843_v9  ;;  %v193_v16 = vpop.f32.mrb[3].mxu0 }
 0x150   :  { %v212_v17 = vadd.f32 %v9843_v9, %v193_v16 }
 0x151   :  { %v12249_v18 = vpack.c.bf16 %v214_v15, %v213_v14 }
 0x152   :  { %v12251_v19 = vpack.c.bf16 %v212_v17, %v211_v12 }
 0x153   :  { %224 = vrot.lane.b32.xlu0 %v12249_v18, %s12076_s0  ;;  %v12256_v20 = vrot.slane %v12249_v18, 4 }
 0x154   :  { %v12269_v25 = vrot.slane %v12251_v19, 4 }
 0x157   :  { %338 = vrot.lane.b32.xlu0 %v12256_v20, %s12076_s0 }
 0x1c5   :  { %v225_v21 = vpop.permute.xlu0 %224 }
 0x1c6   :  { %v231_v22 = vsel %vm226_vm2, %v225_v21, 0 }
 0x1c7   :  { %10416 = vmatpush3.bf16.xpose.msra.mxu1 %v231_v22 }
 0x1c8   :  { %10427 = vmatprep.subr.bf16.mxu1 %v12074_v8 }
 0x1c9   :  { %v339_v23 = vpop.permute.xlu0 %338 }
 0x1ca   :  { %v344_v24 = vsel %vm226_vm2, %v339_v23, 0 }
 0x1ce   :  { %10418 = vmatmul.mubr.msk.bf16.vlgmr.msra.gmra.mrb[0].mxu1 %vm226_vm2, %v12251_v19 }
 0x1cf   :  { %10428 = vmatpush3.bf16.xpose.msra.mxu1 %v344_v24  ;;  %10429 = vmatprep.mubr.msk.bf16.mxu1 %vm12075_vm1, %v12074_v8 }
 0x1d0   :  { %10439 = vmatprep.subr.bf16.mxu1 %v12074_v8 }
 0x1d6   :  { %10430 = vmatmul.mubr.msk.bf16.vlgmr.msra.gmra.mrb[4].mxu1 %vm226_vm2, %v12269_v25 }
 0x1d7   :  { %10441 = vmatprep.mubr.msk.bf16.mxu1 %vm12075_vm1, %v12074_v8  ;;  %10440 = vmatpush3.bf16.msra.mxu1 %v452_v3 }
 0x1d8   :  { %10451 = vmatprep.subr.bf16.mxu1 %v12074_v8 }
 0x2a1   :  { %v267_v26 = vpop.f32.mrb[0].mxu1 }
 0x2a2   :  { %v10419_v27 = vpop.f32.mrb[1].mxu1  ;;  %v273_v28 = vmul.f32 0.35355338, %v267_v26 }
 0x2a3   :  { %v270_v29 = vpop.f32.mrb[2].mxu1 }
 0x2a4   :  { %v10420_v30 = vpop.f32.mrb[3].mxu1  ;;  %v274_v31 = vsel %vm226_vm2, %v273_v28, -inf }
 0x2a5   :  { %275 = vmax.xlane.f32.xlu1 %v274_v31 }
 0x2a9   :  { %v380_v32 = vpop.f32.mrb[4].mxu1 }
 0x2aa   :  { %v10431_v33 = vpop.f32.mrb[5].mxu1  ;;  %v386_v34 = vmul.f32 0.35355338, %v380_v32 }
 0x2ab   :  { %v383_v35 = vpop.f32.mrb[6].mxu1 }
 0x2ac   :  { %v10432_v36 = vpop.f32.mrb[7].mxu1  ;;  %v387_v37 = vsel %vm226_vm2, %v386_v34, -inf }
 0x2ad   :  { %388 = vmax.xlane.f32.xlu1 %v387_v37 }
 0x2be   :  { %286 = vrot.lane.b32.xlu1 %v12249_v18, %s12063_s13 }
 0x2c2   :  { %399 = vrot.lane.b32.xlu1 %v12256_v20, %s12063_s13 }
 0x332   :  { %v276_v38 = vpop.xlane.xlu1 %275 }
 0x333   :  { %v277_v39 = vsub.f32 %v273_v28, %v276_v38 }
 0x335   :  { %v278_v40 = vmul.f32 1.442695, %v277_v39 }
 0x337   :  { %11578 = vpow2.f32 %v278_v40 }
 0x33a   :  { %v389_v41 = vpop.xlane.xlu1 %388 }
 0x33b   :  { %v390_v42 = vsub.f32 %v386_v34, %v389_v41 }
 0x33d   :  { %v391_v43 = vmul.f32 1.442695, %v390_v42 }
 0x33e   :  { %v287_v44 = vpop.permute.xlu1 %286 }
 0x33f   :  { %11580 = vpow2.f32 %v391_v43  ;;  %v293_v45 = vsel %vm291_vm3, %v287_v44, 0 }
 0x340   :  { %10422 = vmatpush3.bf16.msra.mxu0 %v293_v45 }
 0x341   :  { %v11579_v46 = vpop.eup %11578  ;;  %10433 = vmatprep.subr.bf16.mxu0 %v12074_v8 }
 0x342   :  { %v280_v47 = vsel %vm226_vm2, %v11579_v46, 0.0  ;;  %v400_v51 = vpop.permute.xlu1 %399 }
 0x343   :  { %281 = vadd.xlane.f32.xlu0 %v280_v47  ;;  %v405_v56 = vsel %vm291_vm3, %v400_v51, 0 }
 0x349   :  { %v11581_v48 = vpop.eup %11580 }
 0x34a   :  { %v393_v49 = vsel %vm226_vm2, %v11581_v48, 0.0 }
 0x34b   :  { %394 = vadd.xlane.f32.xlu1 %v393_v49 }
 0x359   :  { %610 = vrot.lane.b32.xlu0 %v12256_v20, %s12077_s9 }
 0x35c   :  { %499 = vrot.lane.b32.xlu1 %v12249_v18, %s12077_s9 }
 0x360   :  { %497 = vrot.lane.b32.xlu1 %v12251_v19, %s12078_s14 }
 0x364   :  { %608 = vrot.lane.b32.xlu1 %v12269_v25, %s12078_s14 }
 0x3d0   :  { %v282_v50 = vpop.xlane.xlu0 %281 }
 0x3d1   :  { %11582 = vrcp.f32 %v282_v50 }
 0x3d4   :  { %v611_v62 = vpop.permute.xlu0 %610 }
 0x3d5   :  { %v616_v0 = vsel %vm226_vm2, %v611_v62, 0 }
 0x3d8   :  { %v395_v52 = vpop.xlane.xlu1 %394 }
 0x3d9   :  { %11584 = vrcp.f32 %v395_v52 }
 0x3db   :  { %v11583_v53 = vpop.eup %11582 }
 0x3dc   :  { %v284_v54 = vmul.f32 %v11583_v53, %v11579_v46  ;;  %v500_v59 = vpop.permute.xlu1 %499 }
 0x3dd   :  { %v505_v61 = vsel %vm226_vm2, %v500_v59, 0 }
 0x3de   :  { %v285_v55 = vpack.c.bf16 %v284_v54, %v284_v54 }
 0x3e0   :  { %10424 = vmatmul.mubr.msk.bf16.vlgmr.msra.gmra.mrb[4].mxu0 %vm226_vm2, %v285_v55  ;;  %v498_v63 = vpop.permute.xlu1 %497 }
 0x3e1   :  { %10434 = vmatpush3.bf16.msra.mxu0 %v405_v56  ;;  %10435 = vmatprep.mubr.msk.bf16.mxu0 %vm12075_vm1, %v12074_v8 }
 0x3e2   :  { %10445 = vmatprep.subr.bf16.mxu0 %v12074_v8 }
 0x3e3   :  { %v11585_v57 = vpop.eup %11584 }
 0x3e4   :  { %v397_v58 = vmul.f32 %v11585_v57, %v11581_v48  ;;  %v609_v1 = vpop.permute.xlu1 %608  ;;  %v131_v57 = vld [vmem:[#allocation8 + $0x4] sm:$0xf] }
 0x3e6   :  { %v398_v60 = vpack.c.bf16 %v397_v58, %v397_v58  ;;  %v724_v58 = vsel %vm291_vm3, %v131_v57, 0 }
 0x3e8   :  { %10436 = vmatmul.mubr.msk.bf16.vlgmr.msra.gmra.mrb[8].mxu0 %vm226_vm2, %v398_v60 }
 0x3e9   :  { %10447 = vmatprep.mubr.msk.bf16.mxu0 %vm12075_vm1, %v12074_v8 }
 0x3ea   :  { %10446 = vmatpush3.bf16.xpose.msra.mxu0 %v505_v61 }
 0x3eb   :  { %10457 = vmatprep.subr.bf16.mxu0 %v12074_v8 }
 0x3f1   :  { %10448 = vmatmul.mubr.msk.bf16.vlgmr.msra.gmra.mrb[12].mxu0 %vm226_vm2, %v498_v63 }
 0x3f2   :  { %10458 = vmatpush3.bf16.xpose.msra.mxu0 %v616_v0  ;;  %10459 = vmatprep.mubr.msk.bf16.mxu0 %vm12075_vm1, %v12074_v8 }
 0x3f3   :  { %10475 = vmatprep.subr.bf16.mxu0 %v12074_v8 }
 0x3f9   :  { %10460 = vmatmul.mubr.msk.bf16.vlgmr.msra.gmra.mrb[16].mxu0 %vm226_vm2, %v609_v1 }
 0x3fa   :  { %10477 = vmatprep.mubr.msk.bf16.mxu0 %vm12075_vm1, %v12074_v8 }
 0x4b3   :  { %v329_v5 = vpop.f32.mrb[4].mxu0 }
 0x4b4   :  { %v10425_v6 = vpop.f32.mrb[5].mxu0 }
 0x4b5   :  { %v332_v9 = vpop.f32.mrb[6].mxu0 }
 0x4b6   :  { %v10426_v10 = vpop.f32.mrb[7].mxu0 }
 0x4bb   :  { %v441_v11 = vpop.f32.mrb[8].mxu0 }
 0x4bc   :  { %v447_v12 = vpack.c.bf16 %v441_v11, %v329_v5  ;;  %v10437_v13 = vpop.f32.mrb[9].mxu0 }
 0x4bd   :  { %v444_v14 = vpop.f32.mrb[10].mxu0 }
 0x4be   :  { %v10438_v15 = vpop.f32.mrb[11].mxu0  ;;  %10442 = vmatmul.mubr.msk.bf16.vlgmr.msra.gmra.mrb[8].mxu1 %vm226_vm2, %v447_v12 }
 0x4bf   :  { %10453 = vmatprep.mubr.msk.bf16.mxu1 %vm12075_vm1, %v12074_v8 }
 0x4c4   :  { %v541_v16 = vpop.f32.mrb[12].mxu0 }
 0x4c5   :  { %v10449_v17 = vpop.f32.mrb[13].mxu0  ;;  %v547_v21 = vmul.f32 0.35355338, %v541_v16 }
 0x4c6   :  { %v544_v22 = vpop.f32.mrb[14].mxu0 }
 0x4c7   :  { %v10450_v23 = vpop.f32.mrb[15].mxu0  ;;  %v548_v24 = vsel %vm226_vm2, %v547_v21, -inf }
 0x4c8   :  { %549 = vmax.xlane.f32.xlu1 %v548_v24 }
 0x4cc   :  { %v652_v26 = vpop.f32.mrb[16].mxu0 }
 0x4cd   :  { %v10461_v27 = vpop.f32.mrb[17].mxu0  ;;  %v658_v28 = vmul.f32 0.35355338, %v652_v26 }
 0x4ce   :  { %v655_v29 = vpop.f32.mrb[18].mxu0 }
 0x4cf   :  { %v10462_v30 = vpop.f32.mrb[19].mxu0  ;;  %v659_v31 = vsel %vm226_vm2, %v658_v28, -inf }
 0x4d0   :  { %660 = vmax.xlane.f32.xlu0 %v659_v31 }
 0x4e6   :  { %671 = vrot.lane.b32.xlu0 %v12256_v20, %s12079_s22 }
 0x4ea   :  { %882 = vrot.lane.b32.xlu0 %v12256_v20, %s12080_s29 }
 0x555   :  { %v550_v32 = vpop.xlane.xlu1 %549 }
 0x556   :  { %v551_v33 = vsub.f32 %v547_v21, %v550_v32 }
 0x558   :  { %v552_v34 = vmul.f32 1.442695, %v551_v33 }
 0x55a   :  { %11586 = vpow2.f32 %v552_v34 }
 0x55d   :  { %v661_v35 = vpop.xlane.xlu0 %660 }
 0x55e   :  { %v662_v36 = vsub.f32 %v658_v28, %v661_v35 }
 0x560   :  { %v663_v37 = vmul.f32 1.442695, %v662_v36 }
 0x561   :  { %v672_v48 = vpop.permute.xlu0 %671 }
 0x562   :  { %11588 = vpow2.f32 %v663_v37  ;;  %v677_v51 = vsel %vm291_vm3, %v672_v48, 0 }
 0x564   :  { %v11587_v38 = vpop.eup %11586 }
 0x565   :  { %v554_v39 = vsel %vm226_vm2, %v11587_v38, 0.0  ;;  %v883_v63 = vpop.permute.xlu0 %882 }
 0x566   :  { %555 = vadd.xlane.f32.xlu1 %v554_v39  ;;  %v888_v11 = vsel %vm226_vm2, %v883_v63, 0 }
 0x56c   :  { %v11589_v40 = vpop.eup %11588 }
 0x56d   :  { %v665_v41 = vsel %vm226_vm2, %v11589_v40, 0.0 }
 0x56e   :  { %666 = vadd.xlane.f32.xlu1 %v665_v41 }
 0x57f   :  { %560 = vrot.lane.b32.xlu1 %v12249_v18, %s12079_s22 }
 0x583   :  { %771 = vrot.lane.b32.xlu1 %v12249_v18, %s12080_s29 }
 0x587   :  { %769 = vrot.lane.b32.xlu1 %v12251_v19, %s12081_s3 }
 0x58b   :  { %880 = vrot.lane.b32.xlu1 %v12269_v25, %s12081_s3 }
 0x5f3   :  { %v556_v42 = vpop.xlane.xlu1 %555 }
 0x5f4   :  { %11590 = vrcp.f32 %v556_v42 }
 0x5fb   :  { %v667_v43 = vpop.xlane.xlu1 %666 }
 0x5fc   :  { %11592 = vrcp.f32 %v667_v43 }
 0x5fe   :  { %v11591_v44 = vpop.eup %11590 }
 0x5ff   :  { %v561_v45 = vpop.permute.xlu1 %560  ;;  %v558_v46 = vmul.f32 %v11591_v44, %v11587_v38 }
 0x600   :  { %v566_v47 = vsel %vm291_vm3, %v561_v45, 0 }
 0x601   :  { %10452 = vmatpush3.bf16.msra.mxu1 %v566_v47  ;;  %v559_v49 = vpack.c.bf16 %v558_v46, %v558_v46 }
 0x602   :  { %10463 = vmatprep.subr.bf16.mxu1 %v12074_v8 }
 0x603   :  { %v772_v50 = vpop.permute.xlu1 %771 }
 0x604   :  { %v777_v52 = vsel %vm226_vm2, %v772_v50, 0  ;;  %10454 = vmatmul.mubr.msk.bf16.vlgmr.msra.gmra.mrb[12].mxu1 %vm226_vm2, %v559_v49  ;;  %v11555_v49 = vld [vmem:[#allocation5 + $0x20] sm:$0xff]  }
 0x605   :  { %10464 = vmatpush3.bf16.msra.mxu1 %v677_v51  ;;  %10476 = vmatpush3.bf16.xpose.msra.mxu0 %v777_v52  ;;  %v11556_v52 = vld [vmem:[#allocation5 + $0x28] sm:$0xff]  }
 0x606   :  { %v11593_v53 = vpop.eup %11592  ;;  %10465 = vmatprep.mubr.msk.bf16.mxu1 %vm12075_vm1, %v12074_v8  ;;  %10469 = vmatprep.subr.bf16.mxu1 %v12074_v8 }
 0x607   :  { %v669_v54 = vmul.f32 %v11593_v53, %v11589_v40  ;;  %10481 = vmatprep.subr.bf16.mxu0 %v12074_v8  ;;  %v770_v56 = vpop.permute.xlu1 %769 }
 0x609   :  { %v670_v55 = vpack.c.bf16 %v669_v54, %v669_v54 }
 0x60b   :  { %v881_v15 = vpop.permute.xlu1 %880 }
 0x60c   :  { %10466 = vmatmul.mubr.msk.bf16.vlgmr.msra.gmra.mrb[16].mxu1 %vm226_vm2, %v670_v55  ;;  %10478 = vmatmul.mubr.msk.bf16.vlgmr.msra.gmra.mrb[20].mxu0 %vm226_vm2, %v770_v56 }
 0x60d   :  { %10471 = vmatprep.mubr.msk.bf16.mxu1 %vm12075_vm1, %v12074_v8  ;;  %10483 = vmatprep.mubr.msk.bf16.mxu0 %vm12075_vm1, %v12074_v8 }
 0x60e   :  { %10470 = vmatpush3.bf16.msra.mxu1 %v724_v58  ;;  %v132_v58 = vld [vmem:[#allocation8 + $0x8] sm:$0xf] }
 0x60f   :  { %10487 = vmatprep.subr.bf16.mxu1 %v12074_v8 }
 0x6d7   :  { %v602_v59 = vpop.f32.mrb[12].mxu1 }
 0x6d8   :  { %v10455_v60 = vpop.f32.mrb[13].mxu1 }
 0x6d9   :  { %v605_v61 = vpop.f32.mrb[14].mxu1 }
 0x6da   :  { %v10456_v62 = vpop.f32.mrb[15].mxu1 }
 0x6df   :  { %v713_v0 = vpop.f32.mrb[16].mxu1  ;;  %v813_v1 = vpop.f32.mrb[20].mxu0 }
 0x6e0   :  { %v719_v2 = vpack.c.bf16 %v713_v0, %v602_v59  ;;  %v10467_v3 = vpop.f32.mrb[17].mxu1  ;;  %v10479_v5 = vpop.f32.mrb[21].mxu0  ;;  %v819_v6 = vmul.f32 0.35355338, %v813_v1  ;;  %v996_v59 = vsel %vm291_vm3, %v132_v58, 0 }
 0x6e1   :  { %v716_v9 = vpop.f32.mrb[18].mxu1  ;;  %v816_v10 = vpop.f32.mrb[22].mxu0 }
 0x6e2   :  { %v10468_v12 = vpop.f32.mrb[19].mxu1  ;;  %10472 = vmatmul.mubr.msk.bf16.vlgmr.msra.gmra.mrb[8].mxu1 %vm226_vm2, %v719_v2  ;;  %v10480_v13 = vpop.f32.mrb[23].mxu0  ;;  %v820_v14 = vsel %vm226_vm2, %v819_v6, -inf  ;;  %v9870_v10 = vld [vmem:[#allocation7 + $0x2] ss:$0 sm:$0xff] }
 0x6e3   :  { %10488 = vmatpush3.bf16.xpose.msra.mxu1 %v888_v11  ;;  %821 = vmax.xlane.f32.xlu0 %v820_v14 }
 0x6e4   :  { %10489 = vmatprep.mubr.msk.bf16.mxu1 %vm12075_vm1, %v12074_v8  ;;  %10499 = vmatprep.subr.bf16.mxu1 %v12074_v8 }
 0x6ea   :  { %10490 = vmatmul.mubr.msk.bf16.vlgmr.msra.gmra.mrb[20].mxu1 %vm226_vm2, %v881_v15 }
 0x6eb   :  { %10501 = vmatprep.mubr.msk.bf16.mxu1 %vm12075_vm1, %v12074_v8  ;;  %10500 = vmatpush3.bf16.msra.mxu1 %v996_v59 }
 0x6ec   :  { %10511 = vmatprep.subr.bf16.mxu1 %v12074_v8 }
 0x770   :  { %v822_v16 = vpop.xlane.xlu0 %821 }
 0x771   :  { %v823_v17 = vsub.f32 %v819_v6, %v822_v16 }
 0x773   :  { %v824_v21 = vmul.f32 1.442695, %v823_v17 }
 0x775   :  { %11594 = vpow2.f32 %v824_v21 }
 0x77f   :  { %v11595_v22 = vpop.eup %11594 }
 0x780   :  { %v826_v23 = vsel %vm226_vm2, %v11595_v22, 0.0 }
 0x781   :  { %827 = vadd.xlane.f32.xlu0 %v826_v23 }
 0x7bd   :  { %v924_v24 = vpop.f32.mrb[20].mxu1 }
 0x7be   :  { %v10491_v26 = vpop.f32.mrb[21].mxu1  ;;  %v930_v27 = vmul.f32 0.35355338, %v924_v24 }
 0x7bf   :  { %v927_v28 = vpop.f32.mrb[22].mxu1 }
 0x7c0   :  { %v10492_v29 = vpop.f32.mrb[23].mxu1  ;;  %v931_v30 = vsel %vm226_vm2, %v930_v27, -inf }
 0x7c1   :  { %932 = vmax.xlane.f32.xlu1 %v931_v30 }
 0x7d2   :  { %832 = vrot.lane.b32.xlu1 %v12249_v18, %s12082_s27 }
 0x7d6   :  { %1043 = vrot.lane.b32.xlu1 %v12249_v18, %s12083_s30 }
 0x7da   :  { %1041 = vrot.lane.b32.xlu1 %v12251_v19, %s12084_s15 }
 0x7de   :  { %1152 = vrot.lane.b32.xlu1 %v12269_v25, %s12084_s15 }
 0x80e   :  { %v828_v31 = vpop.xlane.xlu0 %827 }
 0x80f   :  { %11596 = vrcp.f32 %v828_v31 }
 0x819   :  { %v11597_v32 = vpop.eup %11596 }
 0x81a   :  { %v830_v36 = vmul.f32 %v11597_v32, %v11595_v22 }
 0x81c   :  { %v831_v39 = vpack.c.bf16 %v830_v36, %v830_v36 }
 0x84e   :  { %v933_v33 = vpop.xlane.xlu1 %932 }
 0x84f   :  { %v934_v34 = vsub.f32 %v930_v27, %v933_v33 }
 0x851   :  { %v935_v35 = vmul.f32 1.442695, %v934_v34 }
 0x852   :  { %v833_v37 = vpop.permute.xlu1 %832 }
 0x853   :  { %11598 = vpow2.f32 %v935_v35  ;;  %v838_v38 = vsel %vm291_vm3, %v833_v37, 0 }
 0x854   :  { %10482 = vmatpush3.bf16.msra.mxu0 %v838_v38 }
 0x855   :  { %10493 = vmatprep.subr.bf16.mxu0 %v12074_v8 }
 0x856   :  { %v1044_v45 = vpop.permute.xlu1 %1043 }
 0x857   :  { %10484 = vmatmul.mubr.msk.bf16.vlgmr.msra.gmra.mrb[24].mxu0 %vm226_vm2, %v831_v39  ;;  %v1049_v47 = vsel %vm226_vm2, %v1044_v45, 0 }
 0x858   :  { %10495 = vmatprep.mubr.msk.bf16.mxu0 %vm12075_vm1, %v12074_v8 }
 0x85a   :  { %v1042_v50 = vpop.permute.xlu1 %1041 }
 0x85d   :  { %v11599_v19 = vpop.eup %11598 }
 0x85e   :  { %v937_v25 = vsel %vm226_vm2, %v11599_v19, 0.0  ;;  %v1153_v53 = vpop.permute.xlu1 %1152 }
 0x85f   :  { %938 = vadd.xlane.f32.xlu0 %v937_v25 }
 0x875   :  { %943 = vrot.lane.b32.xlu0 %v12256_v20, %s12082_s27 }
 0x879   :  { %1154 = vrot.lane.b32.xlu0 %v12256_v20, %s12083_s30 }
 0x8ec   :  { %v939_v40 = vpop.xlane.xlu0 %938 }
 0x8ed   :  { %11600 = vrcp.f32 %v939_v40 }
 0x8f0   :  { %v944_v41 = vpop.permute.xlu0 %943 }
 0x8f1   :  { %v949_v42 = vsel %vm291_vm3, %v944_v41, 0 }
 0x8f2   :  { %10494 = vmatpush3.bf16.msra.mxu0 %v949_v42 }
 0x8f3   :  { %10505 = vmatprep.subr.bf16.mxu0 %v12074_v8 }
 0x8f4   :  { %v1155_v48 = vpop.permute.xlu0 %1154 }
 0x8f5   :  { %v1160_v51 = vsel %vm226_vm2, %v1155_v48, 0 }
 0x8f7   :  { %v11601_v43 = vpop.eup %11600 }
 0x8f8   :  { %v941_v44 = vmul.f32 %v11601_v43, %v11599_v19 }
 0x8fa   :  { %v942_v46 = vpack.c.bf16 %v941_v44, %v941_v44 }
 0x8fc   :  { %10496 = vmatmul.mubr.msk.bf16.vlgmr.msra.gmra.mrb[28].mxu0 %vm226_vm2, %v942_v46 }
 0x8fd   :  { %10506 = vmatpush3.bf16.xpose.msra.mxu0 %v1049_v47  ;;  %10507 = vmatprep.mubr.msk.bf16.mxu0 %vm12075_vm1, %v12074_v8 }
 0x8fe   :  { %10517 = vmatprep.subr.bf16.mxu0 %v12074_v8 }
 0x904   :  { %10508 = vmatmul.mubr.msk.bf16.vlgmr.msra.gmra.mrb[32].mxu0 %vm226_vm2, %v1042_v50 }
 0x905   :  { %10518 = vmatpush3.bf16.xpose.msra.mxu0 %v1160_v51  ;;  %10519 = vmatprep.mubr.msk.bf16.mxu0 %vm12075_vm1, %v12074_v8 }
 0x906   :  { %10535 = vmatprep.subr.bf16.mxu0 %v11555_v49 }
 0x90c   :  { %10520 = vmatmul.mubr.msk.bf16.vlgmr.msra.gmra.mrb[36].mxu0 %vm226_vm2, %v1153_v53 }
 0x90d   :  { %10536 = vmatpush3.bf16.msra.mxu0 %v11555_v49  ;;  %10539 = vmatprep.mubr.msk.bf16.mxu0 %vm149_vm0, %v12239_v7 }
 0x90e   :  { %10537 = vmatprep.subr.bf16.mxu0 %v11556_v52 }
 0x911   :  { %10538 = vmatpush3.bf16.msra.mxu0 %v11556_v52 }
 0x912   :  { %10543 = vmatprep.subr.bf16.mxu0 %v12074_v8 }
 0x914   :  { %10540 = vmatmul.mubr.msk.bf16.vlgmr.msra.gmra.mrb[40].mxu0 %vm149_vm0, %v12235_v4 }
 0x915   :  { %10545 = vmatprep.mubr.msk.bf16.mxu0 %vm12075_vm1, %v12074_v8 }
 0x92a   :  { %v874_v54 = vpop.f32.mrb[24].mxu0 }
 0x92b   :  { %v10485_v55 = vpop.f32.mrb[25].mxu0 }
 0x92c   :  { %v877_v56 = vpop.f32.mrb[26].mxu0 }
 0x92d   :  { %v10486_v57 = vpop.f32.mrb[27].mxu0 }
 0x9cf   :  { %v985_v7 = vpop.f32.mrb[28].mxu0 }
 0x9d0   :  { %v991_v60 = vpack.c.bf16 %v985_v7, %v874_v54  ;;  %v10497_v61 = vpop.f32.mrb[29].mxu0 }
 0x9d1   :  { %v988_v62 = vpop.f32.mrb[30].mxu0 }
 0x9d2   :  { %v10498_v63 = vpop.f32.mrb[31].mxu0  ;;  %10502 = vmatmul.mubr.msk.bf16.vlgmr.msra.gmra.mrb[8].mxu1 %vm226_vm2, %v991_v60 }
 0x9d3   :  { %10513 = vmatprep.mubr.msk.bf16.mxu1 %vm12075_vm1, %v12074_v8 }
 0x9d7   :  { %v1085_v4 = vpop.f32.mrb[32].mxu0 }
 0x9d8   :  { %v10509_v0 = vpop.f32.mrb[33].mxu0  ;;  %v1091_v26 = vmul.f32 0.35355338, %v1085_v4  ;;  %v133_v4 = vld [vmem:[#allocation8 + $0xc] sm:$0xf] }
 0x9d9   :  { %v1088_v1 = vpop.f32.mrb[34].mxu0  ;;  %v1268_v0 = vsel %vm291_vm3, %v133_v4, 0 }
 0x9da   :  { %v10510_v2 = vpop.f32.mrb[35].mxu0  ;;  %v1092_v27 = vsel %vm226_vm2, %v1091_v26, -inf }
 0x9df   :  { %v1196_v3 = vpop.f32.mrb[36].mxu0 }
 0x9e0   :  { %v10521_v5 = vpop.f32.mrb[37].mxu0  ;;  %v1202_v28 = vmul.f32 0.35355338, %v1196_v3 }
 0x9e1   :  { %v1199_v6 = vpop.f32.mrb[38].mxu0 }
 0x9e2   :  { %v10522_v9 = vpop.f32.mrb[39].mxu0  ;;  %v1203_v29 = vsel %vm226_vm2, %v1202_v28, -inf }
 0x9e7   :  { %v10541_v11 = vpop.f32.mrb[40].mxu0 }
 0x9e8   :  { %v1373_v12 = vpop.f32.mrb[41].mxu0  ;;  %v1396_v15 = vadd.f32 %v10541_v11, %v9870_v10 }
 0x9e9   :  { %v1394_v13 = vadd.f32 %v9870_v10, %v1373_v12  ;;  %v10542_v14 = vpop.f32.mrb[42].mxu0 }
 0x9ea   :  { %v1397_v16 = vadd.f32 %v10542_v14, %v9870_v10  ;;  %v1376_v17 = vpop.f32.mrb[43].mxu0 }
 0x9eb   :  { %v1395_v21 = vadd.f32 %v9870_v10, %v1376_v17 }
 0x9ec   :  { %v12402_v22 = vpack.c.bf16 %v1397_v16, %v1396_v15 }
 0x9ed   :  { %v12404_v23 = vpack.c.bf16 %v1395_v21, %v1394_v13 }
 0x9ee   :  { %1407 = vrot.lane.b32.xlu0 %v12402_v22, %s12076_s0  ;;  %v12409_v24 = vrot.slane %v12402_v22, 4 }
 0x9f0   :  { %1519 = vrot.lane.b32.xlu1 %v12409_v24, %s12076_s0 }
 0xa0d   :  { %1093 = vmax.xlane.f32.xlu0 %v1092_v27 }
 0xa14   :  { %1204 = vmax.xlane.f32.xlu1 %v1203_v29 }
 0xa25   :  { %1104 = vrot.lane.b32.xlu1 %v12249_v18, %s12085_s16  ;;  %v12426_v18 = vrot.slane %v12404_v23, 4 }
 0xa60   :  { %v1408_v30 = vpop.permute.xlu0 %1407 }
 0xa61   :  { %v1413_v31 = vsel %vm226_vm2, %v1408_v30, 0 }
 0xa62   :  { %10544 = vmatpush3.bf16.xpose.msra.mxu0 %v1413_v31  ;;  %v1520_v32 = vpop.permute.xlu1 %1519 }
 0xa63   :  { %10555 = vmatprep.subr.bf16.mxu0 %v12074_v8  ;;  %v1525_v33 = vsel %vm226_vm2, %v1520_v32, 0 }
 0xa69   :  { %10546 = vmatmul.mubr.msk.bf16.vlgmr.msra.gmra.mrb[44].mxu0 %vm226_vm2, %v12404_v23 }
 0xa6a   :  { %10556 = vmatpush3.bf16.xpose.msra.mxu0 %v1525_v33  ;;  %10557 = vmatprep.mubr.msk.bf16.mxu0 %vm12075_vm1, %v12074_v8 }
 0xa6b   :  { %10567 = vmatprep.subr.bf16.mxu0 %v12074_v8 }
 0xa71   :  { %10558 = vmatmul.mubr.msk.bf16.vlgmr.msra.gmra.mrb[48].mxu0 %vm226_vm2, %v12426_v18 }
 0xa72   :  { %10569 = vmatprep.mubr.msk.bf16.mxu0 %vm12075_vm1, %v12074_v8 }
 0xa9a   :  { %v1094_v34 = vpop.xlane.xlu0 %1093 }
 0xa9b   :  { %v1095_v35 = vsub.f32 %v1091_v26, %v1094_v34 }
 0xa9d   :  { %v1096_v36 = vmul.f32 1.442695, %v1095_v35 }
 0xa9f   :  { %11602 = vpow2.f32 %v1096_v36 }
 0xaa1   :  { %v1205_v37 = vpop.xlane.xlu1 %1204 }
 0xaa2   :  { %v1206_v38 = vsub.f32 %v1202_v28, %v1205_v37 }
 0xaa4   :  { %v1207_v39 = vmul.f32 1.442695, %v1206_v38 }
 0xaa5   :  { %v1105_v19 = vpop.permute.xlu1 %1104 }
 0xaa6   :  { %11604 = vpow2.f32 %v1207_v39  ;;  %v1110_v25 = vsel %vm291_vm3, %v1105_v19, 0 }
 0xaa7   :  { %10512 = vmatpush3.bf16.msra.mxu1 %v1110_v25 }
 0xaa8   :  { %10523 = vmatprep.subr.bf16.mxu1 %v12074_v8 }
 0xaa9   :  { %v11603_v40 = vpop.eup %11602 }
 0xaaa   :  { %v1098_v41 = vsel %vm226_vm2, %v11603_v40, 0.0 }
 0xaab   :  { %1099 = vadd.xlane.f32.xlu0 %v1098_v41 }
 0xab0   :  { %v11605_v42 = vpop.eup %11604 }
 0xab1   :  { %v1209_v43 = vsel %vm226_vm2, %v11605_v42, 0.0 }
 0xab2   :  { %1210 = vadd.xlane.f32.xlu0 %v1209_v43 }
 0xac8   :  { %1215 = vrot.lane.b32.xlu0 %v12256_v20, %s12085_s16 }
 0xb38   :  { %v1100_v44 = vpop.xlane.xlu0 %1099 }
 0xb39   :  { %11606 = vrcp.f32 %v1100_v44 }
 0xb3c   :  { %v1449_v45 = vpop.f32.mrb[44].mxu0 }
 0xb3d   :  { %v1455_v46 = vmul.f32 0.35355338, %v1449_v45  ;;  %v10547_v47 = vpop.f32.mrb[45].mxu0 }
 0xb3e   :  { %v1452_v48 = vpop.f32.mrb[46].mxu0 }
 0xb3f   :  { %v1211_v49 = vpop.xlane.xlu0 %1210  ;;  %v10548_v50 = vpop.f32.mrb[47].mxu0  ;;  %v1456_v51 = vsel %vm226_vm2, %v1455_v46, -inf  ;;  %v9844_v48 = vld [vmem:[%s13709_s5] ss:$0 sm:$0xff] }
 0xb40   :  { %11608 = vrcp.f32 %v1211_v49  ;;  %1457 = vmax.xlane.f32.xlu1 %v1456_v51 }
 0xb43   :  { %v11607_v52 = vpop.eup %11606  ;;  %v1216_v55 = vpop.permute.xlu0 %1215 }
 0xb44   :  { %v1561_v53 = vpop.f32.mrb[48].mxu0  ;;  %v1102_v54 = vmul.f32 %v11607_v52, %v11603_v40  ;;  %v1221_v60 = vsel %vm291_vm3, %v1216_v55, 0 }
 0xb45   :  { %v1567_v56 = vmul.f32 0.35355338, %v1561_v53  ;;  %v10559_v57 = vpop.f32.mrb[49].mxu0 }
 0xb46   :  { %v1564_v58 = vpop.f32.mrb[50].mxu0  ;;  %v1103_v20 = vpack.c.bf16 %v1102_v54, %v1102_v54 }
 0xb47   :  { %v10560_v59 = vpop.f32.mrb[51].mxu0  ;;  %v1568_v7 = vsel %vm226_vm2, %v1567_v56, -inf }
 0xb48   :  { %10514 = vmatmul.mubr.msk.bf16.vlgmr.msra.gmra.mrb[24].mxu1 %vm226_vm2, %v1103_v20  ;;  %1569 = vmax.xlane.f32.xlu0 %v1568_v7 }
 0xb49   :  { %10524 = vmatpush3.bf16.msra.mxu1 %v1221_v60  ;;  %10525 = vmatprep.mubr.msk.bf16.mxu1 %vm12075_vm1, %v12074_v8 }
 0xb4a   :  { %v11609_v61 = vpop.eup %11608  ;;  %10529 = vmatprep.subr.bf16.mxu1 %v12074_v8 }
 0xb4b   :  { %v1213_v62 = vmul.f32 %v11609_v61, %v11605_v42 }
 0xb4d   :  { %v1214_v63 = vpack.c.bf16 %v1213_v62, %v1213_v62 }
 0xb50   :  { %10526 = vmatmul.mubr.msk.bf16.vlgmr.msra.gmra.mrb[28].mxu1 %vm226_vm2, %v1214_v63 }
 0xb51   :  { %10531 = vmatprep.mubr.msk.bf16.mxu1 %vm12075_vm1, %v12074_v8  ;;  %10530 = vmatpush3.bf16.msra.mxu1 %v1268_v0 }
 0xb52   :  { %10549 = vmatprep.subr.bf16.mxu1 %v12074_v8 }
 0xbcd   :  { %v1458_v1 = vpop.xlane.xlu1 %1457 }
 0xbce   :  { %v1459_v2 = vsub.f32 %v1455_v46, %v1458_v1  ;;  %v1321_v46 = vld [vmem:[#allocation8 + $0x20] sm:$0xf] }
 0xbcf   :  { %v1633_v47 = vsel %vm291_vm3, %v1321_v46, 0 }
 0xbd0   :  { %v1460_v3 = vmul.f32 1.442695, %v1459_v2  ;;  %10568 = vmatpush3.bf16.msra.mxu0 %v1633_v47 }
 0xbd1   :  { %10579 = vmatprep.subr.bf16.mxu0 %v12074_v8 }
 0xbd2   :  { %11610 = vpow2.f32 %v1460_v3 }
 0xbd5   :  { %v1570_v5 = vpop.xlane.xlu0 %1569 }
 0xbd6   :  { %v1571_v6 = vsub.f32 %v1567_v56, %v1570_v5 }
 0xbd8   :  { %v1572_v9 = vmul.f32 1.442695, %v1571_v6 }
 0xbda   :  { %11612 = vpow2.f32 %v1572_v9 }
 0xbdc   :  { %v11611_v10 = vpop.eup %11610 }
 0xbdd   :  { %v1462_v11 = vsel %vm226_vm2, %v11611_v10, 0.0 }
 0xbde   :  { %1463 = vadd.xlane.f32.xlu1 %v1462_v11 }
 0xbe4   :  { %v11613_v12 = vpop.eup %11612 }
 0xbe5   :  { %v1574_v13 = vsel %vm226_vm2, %v11613_v12, 0.0 }
 0xbe6   :  { %1575 = vadd.xlane.f32.xlu0 %v1574_v13 }
 0xbef   :  { %1468 = vrot.lane.b32.xlu1 %v12402_v22, %s12063_s13 }
 0xbf3   :  { %1680 = vrot.lane.b32.xlu1 %v12402_v22, %s12077_s9 }
 0xbf7   :  { %1678 = vrot.lane.b32.xlu1 %v12404_v23, %s12078_s14 }
 0xbfb   :  { %1789 = vrot.lane.b32.xlu1 %v12426_v18, %s12078_s14 }
 0xbfc   :  { %1580 = vrot.lane.b32.xlu0 %v12409_v24, %s12063_s13 }
 0xc00   :  { %1791 = vrot.lane.b32.xlu0 %v12409_v24, %s12077_s9 }
 0xc1b   :  { %v1146_v14 = vpop.f32.mrb[24].mxu1 }
 0xc1c   :  { %v10515_v15 = vpop.f32.mrb[25].mxu1 }
 0xc1d   :  { %v1149_v16 = vpop.f32.mrb[26].mxu1 }
 0xc1e   :  { %v10516_v17 = vpop.f32.mrb[27].mxu1 }
 0xc23   :  { %v1257_v21 = vpop.f32.mrb[28].mxu1 }
 0xc24   :  { %v1263_v26 = vpack.c.bf16 %v1257_v21, %v1146_v14  ;;  %v10527_v27 = vpop.f32.mrb[29].mxu1 }
 0xc25   :  { %v1260_v28 = vpop.f32.mrb[30].mxu1 }
 0xc26   :  { %v10528_v29 = vpop.f32.mrb[31].mxu1  ;;  %10532 = vmatmul.mubr.msk.bf16.vlgmr.msra.gmra.mrb[8].mxu1 %vm226_vm2, %v1263_v26 }
 0xc27   :  { %10551 = vmatprep.mubr.msk.bf16.mxu1 %vm12075_vm1, %v12074_v8 }
 0xc6b   :  { %v1464_v30 = vpop.xlane.xlu1 %1463 }
 0xc6c   :  { %11614 = vrcp.f32 %v1464_v30 }
 0xc6f   :  { %v1469_v31 = vpop.permute.xlu1 %1468 }
 0xc70   :  { %v1474_v32 = vsel %vm291_vm3, %v1469_v31, 0 }
 0xc71   :  { %10550 = vmatpush3.bf16.msra.mxu1 %v1474_v32 }
 0xc72   :  { %10561 = vmatprep.subr.bf16.mxu1 %v12074_v8 }
 0xc73   :  { %v1576_v33 = vpop.xlane.xlu0 %1575  ;;  %v1681_v25 = vpop.permute.xlu1 %1680 }
 0xc74   :  { %11616 = vrcp.f32 %v1576_v33  ;;  %v1686_v41 = vsel %vm226_vm2, %v1681_v25, 0 }
 0xc76   :  { %v11615_v34 = vpop.eup %11614 }
 0xc77   :  { %v1466_v35 = vmul.f32 %v11615_v34, %v11611_v10  ;;  %v1581_v36 = vpop.permute.xlu0 %1580  ;;  %v1679_v43 = vpop.permute.xlu1 %1678 }
 0xc78   :  { %v1586_v38 = vsel %vm291_vm3, %v1581_v36, 0 }
 0xc79   :  { %v1467_v37 = vpack.c.bf16 %v1466_v35, %v1466_v35 }
 0xc7b   :  { %10552 = vmatmul.mubr.msk.bf16.vlgmr.msra.gmra.mrb[32].mxu1 %vm226_vm2, %v1467_v37  ;;  %v1792_v42 = vpop.permute.xlu0 %1791  ;;  %v1790_v45 = vpop.permute.xlu1 %1789 }
 0xc7c   :  { %10562 = vmatpush3.bf16.msra.mxu1 %v1586_v38  ;;  %10563 = vmatprep.mubr.msk.bf16.mxu1 %vm12075_vm1, %v12074_v8  ;;  %v1797_v44 = vsel %vm226_vm2, %v1792_v42, 0 }
 0xc7d   :  { %10573 = vmatprep.subr.bf16.mxu1 %v12074_v8 }
 0xc7e   :  { %v11617_v39 = vpop.eup %11616 }
 0xc7f   :  { %v1578_v19 = vmul.f32 %v11617_v39, %v11613_v12 }
 0xc81   :  { %v1579_v40 = vpack.c.bf16 %v1578_v19, %v1578_v19 }
 0xc83   :  { %10564 = vmatmul.mubr.msk.bf16.vlgmr.msra.gmra.mrb[36].mxu1 %vm226_vm2, %v1579_v40 }
 0xc84   :  { %10575 = vmatprep.mubr.msk.bf16.mxu1 %vm12075_vm1, %v12074_v8 }
 0xc85   :  { %10574 = vmatpush3.bf16.xpose.msra.mxu1 %v1686_v41 }
 0xc86   :  { %10585 = vmatprep.subr.bf16.mxu1 %v12074_v8 }
 0xc8c   :  { %10576 = vmatmul.mubr.msk.bf16.vlgmr.msra.gmra.mrb[40].mxu1 %vm226_vm2, %v1679_v43 }
 0xc8d   :  { %10586 = vmatpush3.bf16.xpose.msra.mxu1 %v1797_v44  ;;  %10587 = vmatprep.mubr.msk.bf16.mxu1 %vm12075_vm1, %v12074_v8 }
 0xc8e   :  { %10603 = vmatprep.subr.bf16.mxu1 %v12074_v8 }
 0xc94   :  { %10588 = vmatmul.mubr.msk.bf16.vlgmr.msra.gmra.mrb[44].mxu1 %vm226_vm2, %v1790_v45 }
 0xc95   :  { %10605 = vmatprep.mubr.msk.bf16.mxu1 %vm12075_vm1, %v12074_v8 }
 0xcf9   :  { %v1304_v49 = vpop.f32.mrb[8].mxu1 }
 0xcfa   :  { %v10533_v50 = vpop.f32.mrb[9].mxu1  ;;  %v12492_v52 = vadd.f32 %v9844_v48, %v1304_v49  ;;  %v1322_v49 = vld [vmem:[#allocation8 + $0x24] sm:$0xf] }
 0xcfb   :  { %v1307_v51 = vpop.f32.mrb[10].mxu1  ;;  %v1905_v50 = vsel %vm291_vm3, %v1322_v49, 0 }
 0xcfc   :  { %v12494_v53 = vadd.f32 %v9844_v48, %v1307_v51  ;;  %v10534_v54 = vpop.f32.mrb[11].mxu1 }
 0xcfe   :  { %v2508_v55 = vpack.c.bf16 %v12494_v53, %v12492_v52 }
 0xd4e   :  { %v1510_v56 = vpop.f32.mrb[32].mxu1 }
 0xd4f   :  { %v10553_v57 = vpop.f32.mrb[33].mxu1 }
 0xd50   :  { %v1513_v58 = vpop.f32.mrb[34].mxu1 }
 0xd51   :  { %v10554_v20 = vpop.f32.mrb[35].mxu1 }
 0xd56   :  { %v1622_v59 = vpop.f32.mrb[36].mxu1 }
 0xd57   :  { %v1628_v7 = vpack.c.bf16 %v1622_v59, %v1510_v56  ;;  %v10565_v60 = vpop.f32.mrb[37].mxu1 }
 0xd58   :  { %v1625_v61 = vpop.f32.mrb[38].mxu1 }
 0xd59   :  { %v10566_v62 = vpop.f32.mrb[39].mxu1  ;;  %10570 = vmatmul.mubr.msk.bf16.vlgmr.msra.gmra.mrb[52].mxu0 %vm226_vm2, %v1628_v7 }
 0xd5a   :  { %10581 = vmatprep.mubr.msk.bf16.mxu0 %vm12075_vm1, %v12074_v8 }
 0xd5f   :  { %v1722_v63 = vpop.f32.mrb[40].mxu1 }
 0xd60   :  { %v1728_v4 = vmul.f32 0.35355338, %v1722_v63  ;;  %v10577_v0 = vpop.f32.mrb[41].mxu1 }
 0xd61   :  { %v1725_v1 = vpop.f32.mrb[42].mxu1 }
 0xd62   :  { %v10578_v2 = vpop.f32.mrb[43].mxu1  ;;  %v1729_v3 = vsel %vm226_vm2, %v1728_v4, -inf }
 0xd63   :  { %1730 = vmax.xlane.f32.xlu0 %v1729_v3 }
 0xd67   :  { %v1833_v5 = vpop.f32.mrb[44].mxu1 }
 0xd68   :  { %v1839_v6 = vmul.f32 0.35355338, %v1833_v5  ;;  %v10589_v9 = vpop.f32.mrb[45].mxu1 }
 0xd69   :  { %v1836_v10 = vpop.f32.mrb[46].mxu1 }
 0xd6a   :  { %v10590_v11 = vpop.f32.mrb[47].mxu1  ;;  %v1840_v12 = vsel %vm226_vm2, %v1839_v6, -inf }
 0xd6b   :  { %1841 = vmax.xlane.f32.xlu1 %v1840_v12 }
 0xd7c   :  { %1741 = vrot.lane.b32.xlu1 %v12402_v22, %s12079_s22 }
 0xd80   :  { %1952 = vrot.lane.b32.xlu1 %v12402_v22, %s12080_s29 }
 0xd84   :  { %1950 = vrot.lane.b32.xlu1 %v12404_v23, %s12081_s3 }
 0xd88   :  { %2061 = vrot.lane.b32.xlu1 %v12426_v18, %s12081_s3 }
 0xdf0   :  { %v1731_v13 = vpop.xlane.xlu0 %1730 }
 0xdf1   :  { %v1732_v14 = vsub.f32 %v1728_v4, %v1731_v13  ;;  %v11558_v13 = vld [vmem:[#allocation5 + $0x48] sm:$0xff]  }
 0xdf3   :  { %v1733_v15 = vmul.f32 1.442695, %v1732_v14 }
 0xdf5   :  { %11618 = vpow2.f32 %v1733_v15 }
 0xdf8   :  { %v1842_v16 = vpop.xlane.xlu1 %1841 }
 0xdf9   :  { %v1843_v17 = vsub.f32 %v1839_v6, %v1842_v16 }
 0xdfb   :  { %v1844_v21 = vmul.f32 1.442695, %v1843_v17 }
 0xdfc   :  { %v1742_v26 = vpop.permute.xlu1 %1741 }
 0xdfd   :  { %11620 = vpow2.f32 %v1844_v21  ;;  %v1747_v27 = vsel %vm291_vm3, %v1742_v26, 0 }
 0xdfe   :  { %10580 = vmatpush3.bf16.msra.mxu0 %v1747_v27 }
 0xdff   :  { %v11619_v28 = vpop.eup %11618  ;;  %10591 = vmatprep.subr.bf16.mxu0 %v12074_v8 }
 0xe00   :  { %v1953_v29 = vpop.permute.xlu1 %1952  ;;  %v1735_v30 = vsel %vm226_vm2, %v11619_v28, 0.0 }
 0xe01   :  { %v1958_v31 = vsel %vm226_vm2, %v1953_v29, 0  ;;  %1736 = vadd.xlane.f32.xlu0 %v1735_v30  ;;  %v11557_v30 = vld [vmem:[#allocation5 + $0x40] sm:$0xff]  }
 0xe02   :  { %10604 = vmatpush3.bf16.xpose.msra.mxu1 %v1958_v31  ;;  %v12565_v31 = vld [vmem:[#allocation7 + $0x4] ss:$0 sm:$0xff] }
 0xe03   :  { %10609 = vmatprep.subr.bf16.mxu1 %v12074_v8 }
 0xe04   :  { %v1951_v33 = vpop.permute.xlu1 %1950 }
 0xe07   :  { %v11621_v32 = vpop.eup %11620 }
 0xe08   :  { %v1846_v34 = vsel %vm226_vm2, %v11621_v32, 0.0  ;;  %v2062_v3 = vpop.permute.xlu1 %2061 }
 0xe09   :  { %1847 = vadd.xlane.f32.xlu0 %v1846_v34  ;;  %10606 = vmatmul.mubr.msk.bf16.vlgmr.msra.gmra.mrb[48].mxu1 %vm226_vm2, %v1951_v33 }
 0xe0a   :  { %10611 = vmatprep.mubr.msk.bf16.mxu1 %vm12075_vm1, %v12074_v8 }
 0xe1f   :  { %1852 = vrot.lane.b32.xlu0 %v12409_v24, %s12079_s22 }
 0xe23   :  { %2063 = vrot.lane.b32.xlu0 %v12409_v24, %s12080_s29 }
 0xe8e   :  { %v1737_v35 = vpop.xlane.xlu0 %1736 }
 0xe8f   :  { %11622 = vrcp.f32 %v1737_v35 }
 0xe96   :  { %v1848_v36 = vpop.xlane.xlu0 %1847 }
 0xe97   :  { %11624 = vrcp.f32 %v1848_v36 }
 0xe99   :  { %v11623_v37 = vpop.eup %11622 }
 0xe9a   :  { %v1739_v38 = vmul.f32 %v11623_v37, %v11619_v28  ;;  %v1853_v39 = vpop.permute.xlu0 %1852 }
 0xe9b   :  { %v1858_v25 = vsel %vm291_vm3, %v1853_v39, 0 }
 0xe9c   :  { %v1740_v19 = vpack.c.bf16 %v1739_v38, %v1739_v38 }
 0xe9e   :  { %10582 = vmatmul.mubr.msk.bf16.vlgmr.msra.gmra.mrb[56].mxu0 %vm226_vm2, %v1740_v19  ;;  %v2064_v51 = vpop.permute.xlu0 %2063 }
 0xe9f   :  { %10592 = vmatpush3.bf16.msra.mxu0 %v1858_v25  ;;  %10593 = vmatprep.mubr.msk.bf16.mxu0 %vm12075_vm1, %v12074_v8  ;;  %v2069_v0 = vsel %vm226_vm2, %v2064_v51, 0 }
 0xea0   :  { %10597 = vmatprep.subr.bf16.mxu0 %v12074_v8 }
 0xea1   :  { %v11625_v40 = vpop.eup %11624 }
 0xea2   :  { %v1850_v41 = vmul.f32 %v11625_v40, %v11621_v32 }
 0xea4   :  { %v1851_v42 = vpack.c.bf16 %v1850_v41, %v1850_v41 }
 0xea6   :  { %10594 = vmatmul.mubr.msk.bf16.vlgmr.msra.gmra.mrb[60].mxu0 %vm226_vm2, %v1851_v42 }
 0xea7   :  { %10599 = vmatprep.mubr.msk.bf16.mxu0 %vm12075_vm1, %v12074_v8  ;;  %10598 = vmatpush3.bf16.msra.mxu0 %v1905_v50 }
 0xea8   :  { %10615 = vmatprep.subr.bf16.mxu0 %v12074_v8 }
 0xedc   :  { %v1994_v43 = vpop.f32.mrb[48].mxu1 }
 0xedd   :  { %v2000_v44 = vmul.f32 0.35355338, %v1994_v43  ;;  %v10607_v45 = vpop.f32.mrb[49].mxu1 }
 0xede   :  { %v1997_v46 = vpop.f32.mrb[50].mxu1 }
 0xedf   :  { %v10608_v47 = vpop.f32.mrb[51].mxu1  ;;  %v2001_v48 = vsel %vm226_vm2, %v2000_v44, -inf }
 0xee0   :  { %2002 = vmax.xlane.f32.xlu0 %v2001_v48  ;;  %v1323_v48 = vld [vmem:[#allocation8 + $0x28] sm:$0xf] }
 0xee1   :  { %v2177_v49 = vsel %vm291_vm3, %v1323_v48, 0 }
 0xf6d   :  { %v2003_v54 = vpop.xlane.xlu0 %2002 }
 0xf6e   :  { %v2004_v56 = vsub.f32 %v2000_v44, %v2003_v54 }
 0xf70   :  { %v2005_v57 = vmul.f32 1.442695, %v2004_v56 }
 0xf71   :  { %v1783_v58 = vpop.f32.mrb[56].mxu0 }
 0xf72   :  { %11626 = vpow2.f32 %v2005_v57  ;;  %v10583_v20 = vpop.f32.mrb[57].mxu0 }
 0xf73   :  { %v1786_v59 = vpop.f32.mrb[58].mxu0 }
 0xf74   :  { %v10584_v7 = vpop.f32.mrb[59].mxu0 }
 0xf79   :  { %v1894_v60 = vpop.f32.mrb[60].mxu0 }
 0xf7a   :  { %v1900_v61 = vpack.c.bf16 %v1894_v60, %v1783_v58  ;;  %v10595_v62 = vpop.f32.mrb[61].mxu0 }
 0xf7b   :  { %v1897_v63 = vpop.f32.mrb[62].mxu0 }
 0xf7c   :  { %v11627_v4 = vpop.eup %11626  ;;  %v10596_v1 = vpop.f32.mrb[63].mxu0  ;;  %10600 = vmatmul.mubr.msk.bf16.vlgmr.msra.gmra.mrb[52].mxu0 %vm226_vm2, %v1900_v61 }
 0xf7d   :  { %10616 = vmatpush3.bf16.xpose.msra.mxu0 %v2069_v0  ;;  %v2007_v2 = vsel %vm226_vm2, %v11627_v4, 0.0  ;;  %10617 = vmatprep.mubr.msk.bf16.mxu0 %vm12075_vm1, %v12074_v8 }
 0xf7e   :  { %2008 = vadd.xlane.f32.xlu0 %v2007_v2  ;;  %10627 = vmatprep.subr.bf16.mxu0 %v12074_v8 }
 0xf84   :  { %10618 = vmatmul.mubr.msk.bf16.vlgmr.msra.gmra.mrb[64].mxu0 %vm226_vm2, %v2062_v3 }
 0xf85   :  { %10629 = vmatprep.mubr.msk.bf16.mxu0 %vm12075_vm1, %v12074_v8  ;;  %10628 = vmatpush3.bf16.msra.mxu0 %v2177_v49 }
 0xf86   :  { %10639 = vmatprep.subr.bf16.mxu0 %v12074_v8 }
0x100b   :  { %v2009_v14 = vpop.xlane.xlu0 %2008 }
0x100c   :  { %11628 = vrcp.f32 %v2009_v14 }
0x1016   :  { %v11629_v15 = vpop.eup %11628 }
0x1017   :  { %v2011_v26 = vmul.f32 %v11629_v15, %v11627_v4 }
0x1019   :  { %v2012_v29 = vpack.c.bf16 %v2011_v26, %v2011_v26 }
0x1057   :  { %v2105_v5 = vpop.f32.mrb[64].mxu0 }
0x1058   :  { %v2111_v6 = vmul.f32 0.35355338, %v2105_v5  ;;  %v10619_v9 = vpop.f32.mrb[65].mxu0 }
0x1059   :  { %v2108_v10 = vpop.f32.mrb[66].mxu0 }
0x105a   :  { %v10620_v11 = vpop.f32.mrb[67].mxu0  ;;  %v2112_v12 = vsel %vm226_vm2, %v2111_v6, -inf }
0x105b   :  { %2113 = vmax.xlane.f32.xlu1 %v2112_v12  ;;  %v12606_v12 = vpack.c.bf16 %v12565_v31, %v12565_v31 }
0x106c   :  { %2013 = vrot.lane.b32.xlu1 %v12402_v22, %s12082_s27 }
0x1070   :  { %2224 = vrot.lane.b32.xlu1 %v12402_v22, %s12083_s30 }
0x1074   :  { %2222 = vrot.lane.b32.xlu1 %v12404_v23, %s12084_s15 }
0x1078   :  { %2333 = vrot.lane.b32.xlu1 %v12426_v18, %s12084_s15 }
0x107c   :  { %2526 = vrot.lane.b32.xlu1 %v11558_v13, %s12076_s0 }
0x10e8   :  { %v2114_v16 = vpop.xlane.xlu1 %2113 }
0x10e9   :  { %v2115_v17 = vsub.f32 %v2111_v6, %v2114_v16 }
0x10eb   :  { %v2116_v21 = vmul.f32 1.442695, %v2115_v17 }
0x10ec   :  { %v2014_v27 = vpop.permute.xlu1 %2013 }
0x10ed   :  { %11630 = vpow2.f32 %v2116_v21  ;;  %v2019_v28 = vsel %vm291_vm3, %v2014_v27, 0 }
0x10ee   :  { %10610 = vmatpush3.bf16.msra.mxu1 %v2019_v28 }
0x10ef   :  { %10621 = vmatprep.subr.bf16.mxu1 %v12074_v8 }
0x10f0   :  { %v2225_v37 = vpop.permute.xlu1 %2224 }
0x10f1   :  { %10612 = vmatmul.mubr.msk.bf16.vlgmr.msra.gmra.mrb[52].mxu1 %vm226_vm2, %v2012_v29  ;;  %v2230_v39 = vsel %vm226_vm2, %v2225_v37, 0 }
0x10f2   :  { %10623 = vmatprep.mubr.msk.bf16.mxu1 %vm12075_vm1, %v12074_v8 }
0x10f4   :  { %v2223_v25 = vpop.permute.xlu1 %2222 }
0x10f7   :  { %v11631_v23 = vpop.eup %11630 }
0x10f8   :  { %v2118_v18 = vsel %vm226_vm2, %v11631_v23, 0.0  ;;  %v2334_v41 = vpop.permute.xlu1 %2333 }
0x10f9   :  { %2119 = vadd.xlane.f32.xlu0 %v2118_v18 }
0x10fc   :  { %v2527_v43 = vpop.permute.xlu1 %2526 }
0x110f   :  { %2124 = vrot.lane.b32.xlu0 %v12409_v24, %s12082_s27 }
0x1113   :  { %2335 = vrot.lane.b32.xlu0 %v12409_v24, %s12083_s30 }
0x1117   :  { %2524 = vrot.lane.b32.xlu0 %v11557_v30, %s12076_s0 }
0x111b   :  { %2530 = vrot.lane.b32.xlu0 %v12565_v31, %s12076_s0 }
0x1186   :  { %v2120_v32 = vpop.xlane.xlu0 %2119 }
0x1187   :  { %11632 = vrcp.f32 %v2120_v32 }
0x118a   :  { %v2125_v33 = vpop.permute.xlu0 %2124 }
0x118b   :  { %v2130_v34 = vsel %vm291_vm3, %v2125_v33, 0 }
0x118c   :  { %10622 = vmatpush3.bf16.msra.mxu1 %v2130_v34 }
0x118d   :  { %10633 = vmatprep.subr.bf16.mxu1 %v12074_v8 }
0x118e   :  { %v2336_v19 = vpop.permute.xlu0 %2335 }
0x118f   :  { %v2341_v40 = vsel %vm226_vm2, %v2336_v19, 0 }
0x1191   :  { %v11633_v35 = vpop.eup %11632 }
0x1192   :  { %v2122_v36 = vmul.f32 %v11633_v35, %v11631_v23  ;;  %v2525_v42 = vpop.permute.xlu0 %2524 }
0x1194   :  { %v2123_v38 = vpack.c.bf16 %v2122_v36, %v2122_v36 }
0x1196   :  { %10624 = vmatmul.mubr.msk.bf16.vlgmr.msra.gmra.mrb[56].mxu1 %vm226_vm2, %v2123_v38  ;;  %v2531_v0 = vpop.permute.xlu0 %2530 }
0x1197   :  { %10634 = vmatpush3.bf16.xpose.msra.mxu1 %v2230_v39  ;;  %10635 = vmatprep.mubr.msk.bf16.mxu1 %vm12075_vm1, %v12074_v8 }
0x1198   :  { %10645 = vmatprep.subr.bf16.mxu1 %v12074_v8 }
0x119e   :  { %10636 = vmatmul.mubr.msk.bf16.vlgmr.msra.gmra.mrb[60].mxu1 %vm226_vm2, %v2223_v25 }
0x119f   :  { %10646 = vmatpush3.bf16.xpose.msra.mxu1 %v2341_v40  ;;  %10647 = vmatprep.mubr.msk.bf16.mxu1 %vm12075_vm1, %v12074_v8 }
0x11a0   :  { %10663 = vmatprep.subr.bf16.mxu1 %v12074_v8 }
0x11a6   :  { %10648 = vmatmul.mubr.msk.bf16.vlgmr.msra.gmra.mrb[64].mxu1 %vm226_vm2, %v2334_v41 }
0x11a7   :  { %10664 = vmatpush3.bf16.msra.mxu1 %v2525_v42  ;;  %10667 = vmatprep.mubr.msk.bf16.mxu1 %vm12075_vm1, %v12074_v8 }
0x11a8   :  { %10665 = vmatprep.subr.bf16.mxu1 %v12074_v8 }
0x11ab   :  { %10666 = vmatpush3.bf16.msra.mxu1 %v2527_v43 }
0x11ac   :  { %10671 = vmatprep.subr.bf16.mxu1 %v12074_v8 }
0x11ae   :  { %10668 = vmatmul.mubr.msk.bf16.vlgmr.msra.gmra.mrb[68].mxu1 %vm149_vm0, %v2508_v55 }
0x11af   :  { %10673 = vmatprep.mubr.msk.bf16.mxu1 %vm12075_vm1, %v12074_v8 }
0x11c4   :  { %v2055_v44 = vpop.f32.mrb[52].mxu1 }
0x11c5   :  { %v10613_v45 = vpop.f32.mrb[53].mxu1 }
0x11c6   :  { %v2058_v46 = vpop.f32.mrb[54].mxu1 }
0x11c7   :  { %v10614_v47 = vpop.f32.mrb[55].mxu1 }
0x1269   :  { %v2166_v50 = vpop.f32.mrb[56].mxu1 }
0x126a   :  { %v2172_v51 = vpack.c.bf16 %v2166_v50, %v2055_v44  ;;  %v10625_v54 = vpop.f32.mrb[57].mxu1 }
0x126b   :  { %v2169_v56 = vpop.f32.mrb[58].mxu1 }
0x126c   :  { %v10626_v52 = vpop.f32.mrb[59].mxu1  ;;  %10630 = vmatmul.mubr.msk.bf16.vlgmr.msra.gmra.mrb[52].mxu0 %vm226_vm2, %v2172_v51 }
0x126d   :  { %10641 = vmatprep.mubr.msk.bf16.mxu0 %vm12075_vm1, %v12074_v8 }
0x1271   :  { %v2266_v53 = vpop.f32.mrb[60].mxu1 }
0x1272   :  { %v2272_v55 = vmul.f32 0.35355338, %v2266_v53  ;;  %v10637_v57 = vpop.f32.mrb[61].mxu1 }
0x1273   :  { %v2269_v58 = vpop.f32.mrb[62].mxu1 }
0x1274   :  { %v10638_v20 = vpop.f32.mrb[63].mxu1  ;;  %v2273_v59 = vsel %vm226_vm2, %v2272_v55, -inf  ;;  %v1324_v58 = vld [vmem:[#allocation8 + $0x2c] sm:$0xf] }
0x1275   :  { %2274 = vmax.xlane.f32.xlu1 %v2273_v59  ;;  %v2449_v59 = vsel %vm291_vm3, %v1324_v58, 0 }
0x1279   :  { %v2377_v7 = vpop.f32.mrb[64].mxu1 }
0x127a   :  { %v2383_v60 = vmul.f32 0.35355338, %v2377_v7  ;;  %v10649_v61 = vpop.f32.mrb[65].mxu1 }
0x127b   :  { %v2380_v62 = vpop.f32.mrb[66].mxu1 }
0x127c   :  { %v10650_v63 = vpop.f32.mrb[67].mxu1  ;;  %v2384_v4 = vsel %vm226_vm2, %v2383_v60, -inf }
0x127d   :  { %2385 = vmax.xlane.f32.xlu0 %v2384_v4 }
0x1281   :  { %v2570_v1 = vpop.f32.mrb[68].mxu1 }
0x1282   :  { %v10669_v2 = vpop.f32.mrb[69].mxu1  ;;  %v2571_v5 = vadd.f32 %v2570_v1, %v2531_v0 }
0x1283   :  { %v2573_v3 = vpop.f32.mrb[70].mxu1 }
0x1284   :  { %v2574_v6 = vadd.f32 %v2573_v3, %v2531_v0  ;;  %v10670_v9 = vpop.f32.mrb[71].mxu1 }
0x1286   :  { %v12599_v10 = vpack.c.bf16 %v2574_v6, %v2571_v5 }
0x1288   :  { %v2590_v11 = vsel %vm226_vm2, %v12599_v10, 0  ;;  %v12609_v13 = vrot.slane %v12599_v10, 4 }
0x1289   :  { %10672 = vmatpush3.bf16.xpose.msra.mxu1 %v2590_v11 }
0x128a   :  { %10683 = vmatprep.subr.bf16.mxu1 %v12074_v8  ;;  %v2697_v14 = vsel %vm226_vm2, %v12609_v13, 0 }
0x1290   :  { %10674 = vmatmul.mubr.msk.bf16.vlgmr.msra.gmra.mrb[72].mxu1 %vm226_vm2, %v12606_v12 }
0x1291   :  { %10684 = vmatpush3.bf16.xpose.msra.mxu1 %v2697_v14  ;;  %10685 = vmatprep.mubr.msk.bf16.mxu1 %vm12075_vm1, %v12074_v8 }
0x1292   :  { %10695 = vmatprep.subr.bf16.mxu1 %v12074_v8 }
0x1298   :  { %10686 = vmatmul.mubr.msk.bf16.vlgmr.msra.gmra.mrb[76].mxu1 %vm226_vm2, %v12606_v12 }
0x1299   :  { %10697 = vmatprep.mubr.msk.bf16.mxu1 %vm12075_vm1, %v12074_v8 }
0x1302   :  { %v2275_v15 = vpop.xlane.xlu1 %2274 }
0x1303   :  { %v2276_v16 = vsub.f32 %v2272_v55, %v2275_v15 }
0x1305   :  { %v2277_v17 = vmul.f32 1.442695, %v2276_v16 }
0x1307   :  { %11634 = vpow2.f32 %v2277_v17 }
0x130a   :  { %v2386_v21 = vpop.xlane.xlu0 %2385 }
0x130b   :  { %v2387_v26 = vsub.f32 %v2383_v60, %v2386_v21 }
0x130d   :  { %v2388_v27 = vmul.f32 1.442695, %v2387_v26 }
0x130f   :  { %11636 = vpow2.f32 %v2388_v27 }
0x1311   :  { %v11635_v28 = vpop.eup %11634 }
0x1312   :  { %v2279_v29 = vsel %vm226_vm2, %v11635_v28, 0.0 }
0x1313   :  { %2280 = vadd.xlane.f32.xlu0 %v2279_v29 }
0x1319   :  { %v11637_v23 = vpop.eup %11636 }
0x131a   :  { %v2390_v18 = vsel %vm226_vm2, %v11637_v23, 0.0 }
0x131b   :  { %2391 = vadd.xlane.f32.xlu1 %v2390_v18 }
0x1329   :  { %2285 = vrot.lane.b32.xlu0 %v12402_v22, %s12085_s16 }
0x132c   :  { %2396 = vrot.lane.b32.xlu1 %v12409_v24, %s12085_s16 }
0x1363   :  { %v2626_v30 = vpop.f32.mrb[72].mxu1 }
0x1364   :  { %v2632_v31 = vmul.f32 0.35355338, %v2626_v30  ;;  %v10675_v32 = vpop.f32.mrb[73].mxu1 }
0x1365   :  { %v2629_v33 = vpop.f32.mrb[74].mxu1  ;;  %v2502_v32 = vld [vmem:[#allocation8 + $0x40] sm:$0xf] }
0x1366   :  { %v2634_v34 = vsel %vm2633_vm4, %v2632_v31, -inf  ;;  %v10676_v35 = vpop.f32.mrb[75].mxu1  ;;  %v2810_v33 = vsel %vm291_vm3, %v2502_v32, 0 }
0x1367   :  { %2635 = vmax.xlane.f32.xlu1 %v2634_v34  ;;  %10696 = vmatpush3.bf16.msra.mxu1 %v2810_v33  ;;  %v9871_v34 = vld [vmem:[%s13709_s5 + $0x2] ss:$0 sm:$0xff] }
0x1368   :  { %10707 = vmatprep.subr.bf16.mxu1 %v12074_v8 }
0x136b   :  { %v2733_v36 = vpop.f32.mrb[76].mxu1 }
0x136c   :  { %v2739_v37 = vmul.f32 0.35355338, %v2733_v36  ;;  %v10687_v38 = vpop.f32.mrb[77].mxu1 }
0x136d   :  { %v2736_v39 = vpop.f32.mrb[78].mxu1 }
0x136e   :  { %v2740_v19 = vsel %vm2633_vm4, %v2739_v37, -inf  ;;  %v10688_v25 = vpop.f32.mrb[79].mxu1 }
0x136f   :  { %2741 = vmax.xlane.f32.xlu0 %v2740_v19 }
0x1378   :  { %2752 = vrot.lane.b32.xlu1 %v12609_v13, %s12076_s0 }
0x13a0   :  { %v2281_v22 = vpop.xlane.xlu0 %2280 }
0x13a1   :  { %11638 = vrcp.f32 %v2281_v22 }
0x13a4   :  { %v2286_v24 = vpop.permute.xlu0 %2285 }
0x13a5   :  { %v2291_v40 = vsel %vm291_vm3, %v2286_v24, 0 }
0x13a6   :  { %10640 = vmatpush3.bf16.msra.mxu0 %v2291_v40 }
0x13a7   :  { %10651 = vmatprep.subr.bf16.mxu0 %v12074_v8 }
0x13a8   :  { %v2392_v41 = vpop.xlane.xlu1 %2391 }
0x13a9   :  { %11640 = vrcp.f32 %v2392_v41 }
0x13ab   :  { %v11639_v42 = vpop.eup %11638 }
0x13ac   :  { %v2283_v43 = vmul.f32 %v11639_v42, %v11635_v28  ;;  %v2397_v44 = vpop.permute.xlu1 %2396 }
0x13ad   :  { %v2402_v46 = vsel %vm291_vm3, %v2397_v44, 0 }
0x13ae   :  { %v2284_v45 = vpack.c.bf16 %v2283_v43, %v2283_v43 }
0x13b0   :  { %10642 = vmatmul.mubr.msk.bf16.vlgmr.msra.gmra.mrb[68].mxu0 %vm226_vm2, %v2284_v45 }
0x13b1   :  { %10652 = vmatpush3.bf16.msra.mxu0 %v2402_v46  ;;  %10653 = vmatprep.mubr.msk.bf16.mxu0 %vm12075_vm1, %v12074_v8 }
0x13b2   :  { %10657 = vmatprep.subr.bf16.mxu0 %v12074_v8 }
0x13b3   :  { %v11641_v47 = vpop.eup %11640 }
0x13b4   :  { %v2394_v48 = vmul.f32 %v11641_v47, %v11637_v23 }
0x13b6   :  { %v2395_v49 = vpack.c.bf16 %v2394_v48, %v2394_v48 }
0x13b8   :  { %10654 = vmatmul.mubr.msk.bf16.vlgmr.msra.gmra.mrb[72].mxu0 %vm226_vm2, %v2395_v49 }
0x13b9   :  { %10659 = vmatprep.mubr.msk.bf16.mxu0 %vm12075_vm1, %v12074_v8  ;;  %10658 = vmatpush3.bf16.msra.mxu0 %v2449_v59 }
0x13ba   :  { %10677 = vmatprep.subr.bf16.mxu0 %v12074_v8 }
0x13f4   :  { %v2636_v50 = vpop.xlane.xlu1 %2635 }
0x13f5   :  { %v2637_v51 = vsub.f32 %v2632_v31, %v2636_v50 }
0x13f7   :  { %v2638_v54 = vmul.f32 1.442695, %v2637_v51 }
0x13f8   :  { %v2753_v6 = vpop.permute.xlu1 %2752 }
0x13f9   :  { %11642 = vpow2.f32 %v2638_v54  ;;  %v2758_v21 = vsel %vm291_vm3, %v2753_v6, 0 }
0x13fc   :  { %v2742_v56 = vpop.xlane.xlu0 %2741 }
0x13fd   :  { %v2743_v52 = vsub.f32 %v2739_v37, %v2742_v56 }
0x13ff   :  { %v2744_v53 = vmul.f32 1.442695, %v2743_v52 }
0x1401   :  { %11644 = vpow2.f32 %v2744_v53 }
0x1403   :  { %v11643_v55 = vpop.eup %11642 }
0x1404   :  { %v2640_v57 = vsel %vm2633_vm4, %v11643_v55, 0.0 }
0x1405   :  { %2641 = vadd.xlane.f32.xlu0 %v2640_v57 }
0x140b   :  { %v11645_v20 = vpop.eup %11644 }
0x140c   :  { %v2746_v7 = vsel %vm2633_vm4, %v11645_v20, 0.0 }
0x140d   :  { %2747 = vadd.xlane.f32.xlu1 %v2746_v7 }
0x141b   :  { %2647 = vrot.lane.b32.xlu0 %v12599_v10, %s12076_s0 }
0x141e   :  { %2856 = vrot.lane.b32.xlu1 %v12599_v10, %s12078_s14 }
0x141f   :  { %2854 = vrot.lane.b32.xlu0 %v12606_v12, %s12078_s14 }
0x1422   :  { %2965 = vrot.lane.b32.xlu1 %v12609_v13, %s12078_s14 }
0x1483   :  { %v2327_v60 = vpop.f32.mrb[68].mxu0 }
0x1484   :  { %v10643_v61 = vpop.f32.mrb[69].mxu0 }
0x1485   :  { %v2330_v62 = vpop.f32.mrb[70].mxu0 }
0x1486   :  { %v10644_v63 = vpop.f32.mrb[71].mxu0 }
0x148b   :  { %v2438_v4 = vpop.f32.mrb[72].mxu0 }
0x148c   :  { %v2444_v0 = vpack.c.bf16 %v2438_v4, %v2327_v60  ;;  %v10655_v1 = vpop.f32.mrb[73].mxu0 }
0x148d   :  { %v2441_v2 = vpop.f32.mrb[74].mxu0 }
0x148e   :  { %v10656_v3 = vpop.f32.mrb[75].mxu0  ;;  %10660 = vmatmul.mubr.msk.bf16.vlgmr.msra.gmra.mrb[52].mxu0 %vm226_vm2, %v2444_v0 }
0x148f   :  { %10679 = vmatprep.mubr.msk.bf16.mxu0 %vm12075_vm1, %v12074_v8 }
0x1492   :  { %v2642_v5 = vpop.xlane.xlu0 %2641 }
0x1493   :  { %11646 = vrcp.f32 %v2642_v5 }
0x1496   :  { %v2648_v9 = vpop.permute.xlu0 %2647 }
0x1497   :  { %v2653_v11 = vsel %vm291_vm3, %v2648_v9, 0 }
0x1498   :  { %10678 = vmatpush3.bf16.msra.mxu0 %v2653_v11 }
0x1499   :  { %10689 = vmatprep.subr.bf16.mxu0 %v12074_v8 }
0x149a   :  { %v2748_v14 = vpop.xlane.xlu1 %2747  ;;  %v2855_v30 = vpop.permute.xlu0 %2854 }
0x149b   :  { %11648 = vrcp.f32 %v2748_v14 }
0x149d   :  { %v11647_v15 = vpop.eup %11646 }
0x149e   :  { %v2644_v16 = vmul.f32 %v11647_v15, %v11643_v55  ;;  %v2857_v28 = vpop.permute.xlu1 %2856 }
0x149f   :  { %v2862_v23 = vsel %vm226_vm2, %v2857_v28, 0 }
0x14a0   :  { %v2645_v17 = vpack.c.bf16 %v2644_v16, %v2644_v16 }
0x14a2   :  { %10680 = vmatmul.mubr.msk.bf16.vlgmr.msra.gmra.mrb[76].mxu0 %vm226_vm2, %v2645_v17  ;;  %v2966_v18 = vpop.permute.xlu1 %2965 }
0x14a3   :  { %10690 = vmatpush3.bf16.msra.mxu0 %v2758_v21  ;;  %10691 = vmatprep.mubr.msk.bf16.mxu0 %vm12075_vm1, %v12074_v8  ;;  %v2968_v31 = vsel %vm226_vm2, %v2966_v18, 0 }
0x14a4   :  { %10701 = vmatprep.subr.bf16.mxu0 %v12074_v8 }
0x14a5   :  { %v11649_v26 = vpop.eup %11648 }
0x14a6   :  { %v2750_v27 = vmul.f32 %v11649_v26, %v11645_v20 }
0x14a8   :  { %v2751_v29 = vpack.c.bf16 %v2750_v27, %v2750_v27 }
0x14aa   :  { %10692 = vmatmul.mubr.msk.bf16.vlgmr.msra.gmra.mrb[80].mxu0 %vm226_vm2, %v2751_v29 }
0x14ab   :  { %10703 = vmatprep.mubr.msk.bf16.mxu0 %vm12075_vm1, %v12074_v8 }
0x14ac   :  { %10702 = vmatpush3.bf16.xpose.msra.mxu0 %v2862_v23 }
0x14ad   :  { %10713 = vmatprep.subr.bf16.mxu0 %v12074_v8 }
0x14b3   :  { %10704 = vmatmul.mubr.msk.bf16.vlgmr.msra.gmra.mrb[84].mxu0 %vm226_vm2, %v2855_v30 }
0x14b4   :  { %10714 = vmatpush3.bf16.xpose.msra.mxu0 %v2968_v31  ;;  %10715 = vmatprep.mubr.msk.bf16.mxu0 %vm12075_vm1, %v12074_v8 }
0x14b5   :  { %10731 = vmatprep.subr.bf16.mxu0 %v12074_v8 }
0x14bb   :  { %10716 = vmatmul.mubr.msk.bf16.vlgmr.msra.gmra.mrb[88].mxu0 %vm226_vm2, %v2855_v30 }
0x14bc   :  { %10733 = vmatprep.mubr.msk.bf16.mxu0 %vm12075_vm1, %v12074_v8 }
0x1561   :  { %v2485_v35 = vpop.f32.mrb[52].mxu0 }
0x1562   :  { %v10661_v36 = vpop.f32.mrb[53].mxu0  ;;  %v12682_v38 = vadd.f32 %v9871_v34, %v2485_v35 }
0x1563   :  { %v2488_v37 = vpop.f32.mrb[54].mxu0  ;;  %v2503_v36 = vld [vmem:[#allocation8 + $0x44] sm:$0xf] }
0x1564   :  { %v12684_v39 = vadd.f32 %v9871_v34, %v2488_v37  ;;  %v10662_v19 = vpop.f32.mrb[55].mxu0  ;;  %v3080_v37 = vsel %vm291_vm3, %v2503_v36, 0 }
0x1566   :  { %v3675_v25 = vpack.c.bf16 %v12684_v39, %v12682_v38 }
0x1575   :  { %v2689_v22 = vpop.f32.mrb[76].mxu0 }
0x1576   :  { %v10681_v24 = vpop.f32.mrb[77].mxu0 }
0x1577   :  { %v2692_v40 = vpop.f32.mrb[78].mxu0 }
0x1578   :  { %v10682_v41 = vpop.f32.mrb[79].mxu0 }
0x157d   :  { %v2794_v42 = vpop.f32.mrb[80].mxu0 }
0x157e   :  { %v2801_v43 = vrot.slane %v2794_v42, 7  ;;  %v10693_v44 = vpop.f32.mrb[81].mxu0 }
0x157f   :  { %v2797_v45 = vpop.f32.mrb[82].mxu0 }
0x1580   :  { %v2804_v46 = vsel %vm2803_vm5, %v2689_v22, %v2801_v43  ;;  %v10694_v47 = vpop.f32.mrb[83].mxu0 }
0x1581   :  { %v2805_v48 = vpack.c.bf16 %v2804_v46, %v2804_v46 }
0x1583   :  { %10698 = vmatmul.mubr.msk.bf16.vlgmr.msra.gmra.mrb[80].mxu1 %vm226_vm2, %v2805_v48 }
0x1584   :  { %10709 = vmatprep.mubr.msk.bf16.mxu1 %vm12075_vm1, %v12074_v8 }
0x1586   :  { %v2898_v49 = vpop.f32.mrb[84].mxu0 }
0x1587   :  { %v2904_v50 = vmul.f32 0.35355338, %v2898_v49  ;;  %v10705_v51 = vpop.f32.mrb[85].mxu0 }
0x1588   :  { %v2901_v54 = vpop.f32.mrb[86].mxu0 }
0x1589   :  { %v2905_v56 = vsel %vm2633_vm4, %v2904_v50, -inf  ;;  %v10706_v52 = vpop.f32.mrb[87].mxu0 }
0x158a   :  { %2906 = vmax.xlane.f32.xlu0 %v2905_v56 }
0x158e   :  { %v3004_v53 = vpop.f32.mrb[88].mxu0 }
0x158f   :  { %v3010_v55 = vmul.f32 0.35355338, %v3004_v53  ;;  %v10717_v57 = vpop.f32.mrb[89].mxu0 }
0x1590   :  { %v3007_v58 = vpop.f32.mrb[90].mxu0 }
0x1591   :  { %v10718_v20 = vpop.f32.mrb[91].mxu0  ;;  %v3011_v59 = vsel %vm2633_vm4, %v3010_v55, -inf }
0x1592   :  { %3012 = vmax.xlane.f32.xlu1 %v3011_v59 }
0x15a3   :  { %2917 = vrot.lane.b32.xlu1 %v12599_v10, %s12077_s9 }
0x15a7   :  { %3125 = vrot.lane.b32.xlu1 %v12599_v10, %s12081_s3 }
0x15ab   :  { %3123 = vrot.lane.b32.xlu1 %v12606_v12, %s12081_s3 }
0x1617   :  { %v2907_v7 = vpop.xlane.xlu0 %2906 }
0x1618   :  { %v2908_v60 = vsub.f32 %v2904_v50, %v2907_v7  ;;  %v11559_v7 = vld [vmem:[#allocation5 + $0x60] sm:$0xff]  }
0x161a   :  { %v2909_v61 = vmul.f32 1.442695, %v2908_v60 }
0x161c   :  { %11650 = vpow2.f32 %v2909_v61 }
0x161f   :  { %v3013_v62 = vpop.xlane.xlu1 %3012 }
0x1620   :  { %v3014_v63 = vsub.f32 %v3010_v55, %v3013_v62 }
0x1622   :  { %v3015_v4 = vmul.f32 1.442695, %v3014_v63 }
0x1623   :  { %v2918_v0 = vpop.permute.xlu1 %2917 }
0x1624   :  { %11652 = vpow2.f32 %v3015_v4  ;;  %v2923_v1 = vsel %vm291_vm3, %v2918_v0, 0 }
0x1625   :  { %10708 = vmatpush3.bf16.msra.mxu1 %v2923_v1 }
0x1626   :  { %v11651_v2 = vpop.eup %11650  ;;  %10719 = vmatprep.subr.bf16.mxu1 %v12074_v8 }
0x1627   :  { %v3126_v3 = vpop.permute.xlu1 %3125  ;;  %v2911_v5 = vsel %vm2633_vm4, %v11651_v2, 0.0 }
0x1628   :  { %v3131_v6 = vsel %vm226_vm2, %v3126_v3, 0  ;;  %2912 = vadd.xlane.f32.xlu0 %v2911_v5 }
0x1629   :  { %10732 = vmatpush3.bf16.xpose.msra.mxu0 %v3131_v6 }
0x162a   :  { %10737 = vmatprep.subr.bf16.mxu0 %v12074_v8 }
0x162b   :  { %v3124_v9 = vpop.permute.xlu1 %3123 }
0x162e   :  { %v11653_v11 = vpop.eup %11652 }
0x162f   :  { %v3017_v14 = vsel %vm2633_vm4, %v11653_v11, 0.0 }
0x1630   :  { %3018 = vadd.xlane.f32.xlu0 %v3017_v14  ;;  %10734 = vmatmul.mubr.msk.bf16.vlgmr.msra.gmra.mrb[92].mxu0 %vm226_vm2, %v3124_v9  ;;  %v12755_v14 = vld [vmem:[#allocation7 + $0x6] ss:$0 sm:$0xff] }
0x1631   :  { %10739 = vmatprep.mubr.msk.bf16.mxu0 %vm12075_vm1, %v12074_v8 }
0x1646   :  { %3023 = vrot.lane.b32.xlu0 %v12609_v13, %s12077_s9 }
0x164a   :  { %3234 = vrot.lane.b32.xlu0 %v12609_v13, %s12081_s3 }
0x16b5   :  { %v2913_v15 = vpop.xlane.xlu0 %2912 }
0x16b6   :  { %11654 = vrcp.f32 %v2913_v15 }
0x16bd   :  { %v3019_v16 = vpop.xlane.xlu0 %3018 }
0x16be   :  { %11656 = vrcp.f32 %v3019_v16 }
0x16c0   :  { %v11655_v17 = vpop.eup %11654 }
0x16c1   :  { %v2915_v21 = vmul.f32 %v11655_v17, %v11651_v2  ;;  %v3024_v26 = vpop.permute.xlu0 %3023 }
0x16c2   :  { %v3029_v28 = vsel %vm291_vm3, %v3024_v26, 0 }
0x16c3   :  { %v2916_v27 = vpack.c.bf16 %v2915_v21, %v2915_v21 }
0x16c5   :  { %10710 = vmatmul.mubr.msk.bf16.vlgmr.msra.gmra.mrb[84].mxu1 %vm226_vm2, %v2916_v27  ;;  %v3235_v45 = vpop.permute.xlu0 %3234 }
0x16c6   :  { %10720 = vmatpush3.bf16.msra.mxu1 %v3029_v28  ;;  %10721 = vmatprep.mubr.msk.bf16.mxu1 %vm12075_vm1, %v12074_v8  ;;  %v3237_v49 = vsel %vm226_vm2, %v3235_v45, 0 }
0x16c7   :  { %10725 = vmatprep.subr.bf16.mxu1 %v12074_v8 }
0x16c8   :  { %v11657_v29 = vpop.eup %11656 }
0x16c9   :  { %v3021_v23 = vmul.f32 %v11657_v29, %v11653_v11  ;;  %v11560_v11 = vld [vmem:[#allocation5 + $0x68] sm:$0xff]  }
0x16cb   :  { %v3022_v18 = vpack.c.bf16 %v3021_v23, %v3021_v23 }
0x16cd   :  { %10722 = vmatmul.mubr.msk.bf16.vlgmr.msra.gmra.mrb[88].mxu1 %vm226_vm2, %v3022_v18 }
0x16ce   :  { %10727 = vmatprep.mubr.msk.bf16.mxu1 %vm12075_vm1, %v12074_v8  ;;  %10726 = vmatpush3.bf16.msra.mxu1 %v3080_v37 }
0x16cf   :  { %10743 = vmatprep.subr.bf16.mxu1 %v12074_v8 }
0x1703   :  { %v3167_v30 = vpop.f32.mrb[92].mxu0 }
0x1704   :  { %v3173_v31 = vmul.f32 0.35355338, %v3167_v30  ;;  %v10735_v32 = vpop.f32.mrb[93].mxu0 }
0x1705   :  { %v3170_v33 = vpop.f32.mrb[94].mxu0 }
0x1706   :  { %v3174_v34 = vsel %vm2633_vm4, %v3173_v31, -inf  ;;  %v10736_v35 = vpop.f32.mrb[95].mxu0 }
0x1707   :  { %3175 = vmax.xlane.f32.xlu1 %v3174_v34  ;;  %v2504_v35 = vld [vmem:[#allocation8 + $0x48] sm:$0xf] }
0x1708   :  { %v3349_v36 = vsel %vm291_vm3, %v2504_v35, 0 }
0x1718   :  { %3292 = vrot.lane.b32.xlu1 %v12609_v13, %s12080_s29 }
0x1794   :  { %v3176_v50 = vpop.xlane.xlu1 %3175 }
0x1795   :  { %v3177_v51 = vsub.f32 %v3173_v31, %v3176_v50 }
0x1797   :  { %v3178_v54 = vmul.f32 1.442695, %v3177_v51 }
0x1798   :  { %v2959_v19 = vpop.f32.mrb[84].mxu1  ;;  %v3293_v5 = vpop.permute.xlu1 %3292 }
0x1799   :  { %v10711_v22 = vpop.f32.mrb[85].mxu1  ;;  %11658 = vpow2.f32 %v3178_v54 }
0x179a   :  { %v2962_v24 = vpop.f32.mrb[86].mxu1 }
0x179b   :  { %v10712_v40 = vpop.f32.mrb[87].mxu1 }
0x17a0   :  { %v3065_v41 = vpop.f32.mrb[88].mxu1 }
0x17a1   :  { %v3072_v42 = vrot.slane %v3065_v41, 7  ;;  %v10723_v43 = vpop.f32.mrb[89].mxu1 }
0x17a2   :  { %v3068_v44 = vpop.f32.mrb[90].mxu1 }
0x17a3   :  { %v3074_v46 = vsel %vm2803_vm5, %v2959_v19, %v3072_v42  ;;  %v10724_v47 = vpop.f32.mrb[91].mxu1  ;;  %v11659_v55 = vpop.eup %11658 }
0x17a4   :  { %v3075_v48 = vpack.c.bf16 %v3074_v46, %v3074_v46  ;;  %v3180_v59 = vsel %vm2633_vm4, %v11659_v55, 0.0 }
0x17a6   :  { %10728 = vmatmul.mubr.msk.bf16.vlgmr.msra.gmra.mrb[80].mxu1 %vm226_vm2, %v3075_v48 }
0x17a7   :  { %10744 = vmatpush3.bf16.xpose.msra.mxu1 %v3237_v49  ;;  %10745 = vmatprep.mubr.msk.bf16.mxu1 %vm12075_vm1, %v12074_v8 }
0x17a8   :  { %10755 = vmatprep.subr.bf16.mxu1 %v12074_v8 }
0x17ae   :  { %10746 = vmatmul.mubr.msk.bf16.vlgmr.msra.gmra.mrb[92].mxu1 %vm226_vm2, %v3124_v9  ;;  %v3298_v9 = vsel %vm291_vm3, %v3293_v5, 0 }
0x17af   :  { %10757 = vmatprep.mubr.msk.bf16.mxu1 %vm12075_vm1, %v12074_v8  ;;  %10756 = vmatpush3.bf16.msra.mxu1 %v3349_v36 }
0x17b0   :  { %10767 = vmatprep.subr.bf16.mxu1 %v12074_v8 }
0x1881   :  { %v3273_v56 = vpop.f32.mrb[92].mxu1 }
0x1882   :  { %v3279_v52 = vmul.f32 0.35355338, %v3273_v56  ;;  %v10747_v53 = vpop.f32.mrb[93].mxu1 }
0x1883   :  { %v3276_v57 = vpop.f32.mrb[94].mxu1 }
0x1884   :  { %v10748_v58 = vpop.f32.mrb[95].mxu1  ;;  %v3280_v20 = vsel %vm2633_vm4, %v3279_v52, -inf }
0x1885   :  { %3281 = vmax.xlane.f32.xlu0 %v3280_v20 }
0x1889   :  { %3181 = vadd.xlane.f32.xlu0 %v3180_v59 }
0x189f   :  { %3186 = vrot.lane.b32.xlu0 %v12599_v10, %s12080_s29 }
0x18a3   :  { %3392 = vrot.lane.b32.xlu0 %v12606_v12, %s12084_s15 }
0x18a7   :  { %3691 = vrot.lane.b32.xlu0 %v11559_v7, %s12076_s0  ;;  %v12795_v7 = vpack.c.bf16 %v12755_v14, %v12755_v14 }
0x18ab   :  { %3697 = vrot.lane.b32.xlu0 %v12755_v14, %s12076_s0 }
0x1912   :  { %v3282_v60 = vpop.xlane.xlu0 %3281 }
0x1913   :  { %v3283_v61 = vsub.f32 %v3279_v52, %v3282_v60 }
0x1915   :  { %v3284_v62 = vmul.f32 1.442695, %v3283_v61 }
0x1916   :  { %v3182_v63 = vpop.xlane.xlu0 %3181 }
0x1917   :  { %11660 = vpow2.f32 %v3284_v62 }
0x1918   :  { %11662 = vrcp.f32 %v3182_v63 }
0x191a   :  { %v3187_v4 = vpop.permute.xlu0 %3186 }
0x191b   :  { %v3192_v0 = vsel %vm291_vm3, %v3187_v4, 0 }
0x191c   :  { %10738 = vmatpush3.bf16.msra.mxu0 %v3192_v0 }
0x191d   :  { %10749 = vmatprep.subr.bf16.mxu0 %v12074_v8 }
0x191e   :  { %v3393_v29 = vpop.permute.xlu0 %3392 }
0x1921   :  { %v11661_v1 = vpop.eup %11660 }
0x1922   :  { %v11663_v2 = vpop.eup %11662  ;;  %v3286_v3 = vsel %vm2633_vm4, %v11661_v1, 0.0  ;;  %v3692_v18 = vpop.permute.xlu0 %3691 }
0x1923   :  { %3287 = vadd.xlane.f32.xlu1 %v3286_v3  ;;  %v3184_v12 = vmul.f32 %v11663_v2, %v11659_v55 }
0x1925   :  { %v3185_v6 = vpack.c.bf16 %v3184_v12, %v3184_v12 }
0x1926   :  { %v3698_v56 = vpop.permute.xlu0 %3697 }
0x1927   :  { %10740 = vmatmul.mubr.msk.bf16.vlgmr.msra.gmra.mrb[96].mxu0 %vm226_vm2, %v3185_v6 }
0x1928   :  { %10750 = vmatpush3.bf16.msra.mxu0 %v3298_v9  ;;  %10751 = vmatprep.mubr.msk.bf16.mxu0 %vm12075_vm1, %v12074_v8 }
0x1929   :  { %10761 = vmatprep.subr.bf16.mxu0 %v12074_v8 }
0x1934   :  { %3394 = vrot.lane.b32.xlu1 %v12599_v10, %s12084_s15 }
0x1938   :  { %3503 = vrot.lane.b32.xlu1 %v12609_v13, %s12084_s15 }
0x193c   :  { %3693 = vrot.lane.b32.xlu1 %v11560_v11, %s12076_s0 }
0x19b0   :  { %v3288_v15 = vpop.xlane.xlu1 %3287 }
0x19b1   :  { %11664 = vrcp.f32 %v3288_v15 }
0x19b4   :  { %v3395_v21 = vpop.permute.xlu1 %3394 }
0x19b5   :  { %v3400_v27 = vsel %vm226_vm2, %v3395_v21, 0 }
0x19b8   :  { %v3504_v28 = vpop.permute.xlu1 %3503 }
0x19b9   :  { %v3506_v23 = vsel %vm226_vm2, %v3504_v28, 0 }
0x19bb   :  { %v11665_v16 = vpop.eup %11664 }
0x19bc   :  { %v3290_v17 = vmul.f32 %v11665_v16, %v11661_v1  ;;  %v3694_v30 = vpop.permute.xlu1 %3693 }
0x19be   :  { %v3291_v26 = vpack.c.bf16 %v3290_v17, %v3290_v17 }
0x19c0   :  { %10752 = vmatmul.mubr.msk.bf16.vlgmr.msra.gmra.mrb[100].mxu0 %vm226_vm2, %v3291_v26 }
0x19c1   :  { %10762 = vmatpush3.bf16.xpose.msra.mxu0 %v3400_v27  ;;  %10763 = vmatprep.mubr.msk.bf16.mxu0 %vm12075_vm1, %v12074_v8 }
0x19c2   :  { %10773 = vmatprep.subr.bf16.mxu0 %v12074_v8 }
0x19c8   :  { %10764 = vmatmul.mubr.msk.bf16.vlgmr.msra.gmra.mrb[104].mxu0 %vm226_vm2, %v3393_v29 }
0x19c9   :  { %10774 = vmatpush3.bf16.xpose.msra.mxu0 %v3506_v23  ;;  %10775 = vmatprep.mubr.msk.bf16.mxu0 %vm12075_vm1, %v12074_v8 }
0x19ca   :  { %10791 = vmatprep.subr.bf16.mxu0 %v12074_v8 }
0x19d0   :  { %10776 = vmatmul.mubr.msk.bf16.vlgmr.msra.gmra.mrb[108].mxu0 %vm226_vm2, %v3393_v29 }
0x19d1   :  { %10792 = vmatpush3.bf16.msra.mxu0 %v3692_v18  ;;  %10795 = vmatprep.mubr.msk.bf16.mxu0 %vm12075_vm1, %v12074_v8 }
0x19d2   :  { %10793 = vmatprep.subr.bf16.mxu0 %v12074_v8 }
0x19d5   :  { %10794 = vmatpush3.bf16.msra.mxu0 %v3694_v30 }
0x19d6   :  { %10799 = vmatprep.subr.bf16.mxu0 %v12074_v8 }
0x19d8   :  { %10796 = vmatmul.mubr.msk.bf16.vlgmr.msra.gmra.mrb[112].mxu0 %vm149_vm0, %v3675_v25 }
0x19d9   :  { %10801 = vmatprep.mubr.msk.bf16.mxu0 %vm12075_vm1, %v12074_v8 }
0x19fa   :  { %v3228_v31 = vpop.f32.mrb[96].mxu0 }
0x19fb   :  { %v10741_v32 = vpop.f32.mrb[97].mxu0 }
0x19fc   :  { %v3231_v33 = vpop.f32.mrb[98].mxu0 }
0x19fd   :  { %v10742_v34 = vpop.f32.mrb[99].mxu0 }
0x1a93   :  { %v3334_v37 = vpop.f32.mrb[100].mxu0 }
0x1a94   :  { %v3341_v19 = vrot.slane %v3334_v37, 7  ;;  %v10753_v22 = vpop.f32.mrb[101].mxu0 }
0x1a95   :  { %v3337_v24 = vpop.f32.mrb[102].mxu0 }
0x1a96   :  { %v3343_v38 = vsel %vm2803_vm5, %v3228_v31, %v3341_v19  ;;  %v10754_v39 = vpop.f32.mrb[103].mxu0 }
0x1a97   :  { %v3344_v25 = vpack.c.bf16 %v3343_v38, %v3343_v38 }
0x1a99   :  { %10758 = vmatmul.mubr.msk.bf16.vlgmr.msra.gmra.mrb[80].mxu1 %vm226_vm2, %v3344_v25 }
0x1a9a   :  { %10769 = vmatprep.mubr.msk.bf16.mxu1 %vm12075_vm1, %v12074_v8 }
0x1a9b   :  { %v3436_v40 = vpop.f32.mrb[104].mxu0 }
0x1a9c   :  { %v3442_v41 = vmul.f32 0.35355338, %v3436_v40  ;;  %v10765_v42 = vpop.f32.mrb[105].mxu0 }
0x1a9d   :  { %v3439_v43 = vpop.f32.mrb[106].mxu0 }
0x1a9e   :  { %v3443_v44 = vsel %vm2633_vm4, %v3442_v41, -inf  ;;  %v10766_v45 = vpop.f32.mrb[107].mxu0 }
0x1a9f   :  { %3444 = vmax.xlane.f32.xlu1 %v3443_v44  ;;  %v2505_v45 = vld [vmem:[#allocation8 + $0x4c] sm:$0xf] }
0x1aa3   :  { %v3542_v46 = vpop.f32.mrb[108].mxu0 }
0x1aa4   :  { %v3548_v47 = vmul.f32 0.35355338, %v3542_v46  ;;  %v10777_v48 = vpop.f32.mrb[109].mxu0  ;;  %v3618_v46 = vsel %vm291_vm3, %v2505_v45, 0 }
0x1aa5   :  { %v3545_v49 = vpop.f32.mrb[110].mxu0 }
0x1aa6   :  { %v10778_v50 = vpop.f32.mrb[111].mxu0  ;;  %v3549_v51 = vsel %vm2633_vm4, %v3548_v47, -inf }
0x1aa7   :  { %3550 = vmax.xlane.f32.xlu0 %v3549_v51 }
0x1aab   :  { %v3737_v54 = vpop.f32.mrb[112].mxu0 }
0x1aac   :  { %v10797_v52 = vpop.f32.mrb[113].mxu0  ;;  %v3738_v55 = vadd.f32 %v3737_v54, %v3698_v56 }
0x1aad   :  { %v3740_v53 = vpop.f32.mrb[114].mxu0 }
0x1aae   :  { %v3741_v57 = vadd.f32 %v3740_v53, %v3698_v56  ;;  %v10798_v58 = vpop.f32.mrb[115].mxu0 }
0x1ab0   :  { %v12788_v20 = vpack.c.bf16 %v3741_v57, %v3738_v55 }
0x1ab2   :  { %v3757_v59 = vsel %vm226_vm2, %v12788_v20, 0  ;;  %v12798_v60 = vrot.slane %v12788_v20, 4 }
0x1ab3   :  { %10800 = vmatpush3.bf16.xpose.msra.mxu0 %v3757_v59 }
0x1ab4   :  { %10811 = vmatprep.subr.bf16.mxu0 %v12074_v8  ;;  %v3863_v61 = vsel %vm226_vm2, %v12798_v60, 0 }
0x1aba   :  { %10802 = vmatmul.mubr.msk.bf16.vlgmr.msra.gmra.mrb[116].mxu0 %vm226_vm2, %v12795_v7 }
0x1abb   :  { %10812 = vmatpush3.bf16.xpose.msra.mxu0 %v3863_v61  ;;  %10813 = vmatprep.mubr.msk.bf16.mxu0 %vm12075_vm1, %v12074_v8 }
0x1abc   :  { %10823 = vmatprep.subr.bf16.mxu0 %v12074_v8 }
0x1ac2   :  { %10814 = vmatmul.mubr.msk.bf16.vlgmr.msra.gmra.mrb[120].mxu0 %vm226_vm2, %v12795_v7 }
0x1ac3   :  { %10825 = vmatprep.mubr.msk.bf16.mxu0 %vm12075_vm1, %v12074_v8 }
0x1b2c   :  { %v3445_v62 = vpop.xlane.xlu1 %3444 }
0x1b2d   :  { %v3446_v63 = vsub.f32 %v3442_v41, %v3445_v62 }
0x1b2f   :  { %v3447_v4 = vmul.f32 1.442695, %v3446_v63 }
0x1b31   :  { %11666 = vpow2.f32 %v3447_v4 }
0x1b34   :  { %v3551_v0 = vpop.xlane.xlu0 %3550 }
0x1b35   :  { %v3552_v1 = vsub.f32 %v3548_v47, %v3551_v0 }
0x1b37   :  { %v3553_v2 = vmul.f32 1.442695, %v3552_v1 }
0x1b39   :  { %11668 = vpow2.f32 %v3553_v2 }
0x1b3b   :  { %v11667_v3 = vpop.eup %11666 }
0x1b3c   :  { %v3449_v12 = vsel %vm2633_vm4, %v11667_v3, 0.0 }
0x1b3d   :  { %3450 = vadd.xlane.f32.xlu0 %v3449_v12 }
0x1b43   :  { %v11669_v5 = vpop.eup %11668 }
0x1b44   :  { %v3555_v6 = vsel %vm2633_vm4, %v11669_v5, 0.0 }
0x1b45   :  { %3556 = vadd.xlane.f32.xlu1 %v3555_v6 }
0x1b53   :  { %3455 = vrot.lane.b32.xlu0 %v12599_v10, %s12083_s30 }
0x1b56   :  { %3561 = vrot.lane.b32.xlu1 %v12609_v13, %s12083_s30 }
0x1b8d   :  { %v3793_v9 = vpop.f32.mrb[116].mxu0 }
0x1b8e   :  { %v3799_v11 = vmul.f32 0.35355338, %v3793_v9  ;;  %v10803_v14 = vpop.f32.mrb[117].mxu0 }
0x1b8f   :  { %v3796_v15 = vpop.f32.mrb[118].mxu0 }
0x1b90   :  { %v10804_v16 = vpop.f32.mrb[119].mxu0  ;;  %v3800_v17 = vsel %vm2633_vm4, %v3799_v11, -inf }
0x1b91   :  { %3801 = vmax.xlane.f32.xlu1 %v3800_v17  ;;  %v3669_v16 = vld [vmem:[#allocation8 + $0x60] sm:$0xf] }
0x1b92   :  { %v3975_v17 = vsel %vm291_vm3, %v3669_v16, 0  ;;  %v3670_v16 = vld [vmem:[#allocation8 + $0x64] sm:$0xf] }
0x1b93   :  { %10824 = vmatpush3.bf16.msra.mxu0 %v3975_v17  ;;  %v4245_v17 = vsel %vm291_vm3, %v3670_v16, 0 }
0x1b94   :  { %10835 = vmatprep.subr.bf16.mxu0 %v12074_v8 }
0x1b95   :  { %v3899_v21 = vpop.f32.mrb[120].mxu0 }
0x1b96   :  { %v3905_v26 = vmul.f32 0.35355338, %v3899_v21  ;;  %v10815_v27 = vpop.f32.mrb[121].mxu0 }
0x1b97   :  { %v3902_v28 = vpop.f32.mrb[122].mxu0 }
0x1b98   :  { %v3906_v29 = vsel %vm2633_vm4, %v3905_v26, -inf  ;;  %v10816_v23 = vpop.f32.mrb[123].mxu0 }
0x1b99   :  { %3907 = vmax.xlane.f32.xlu0 %v3906_v29 }
0x1ba2   :  { %3918 = vrot.lane.b32.xlu1 %v12798_v60, %s12076_s0 }
0x1bca   :  { %v3451_v10 = vpop.xlane.xlu0 %3450 }
0x1bcb   :  { %11670 = vrcp.f32 %v3451_v10 }
0x1bce   :  { %v3456_v13 = vpop.permute.xlu0 %3455 }
0x1bcf   :  { %v3461_v18 = vsel %vm291_vm3, %v3456_v13, 0 }
0x1bd0   :  { %10768 = vmatpush3.bf16.msra.mxu1 %v3461_v18 }
0x1bd1   :  { %10779 = vmatprep.subr.bf16.mxu1 %v12074_v8 }
0x1bd2   :  { %v3557_v30 = vpop.xlane.xlu1 %3556 }
0x1bd3   :  { %11672 = vrcp.f32 %v3557_v30 }
0x1bd5   :  { %v11671_v31 = vpop.eup %11670 }
0x1bd6   :  { %v3453_v32 = vmul.f32 %v11671_v31, %v11667_v3  ;;  %v3562_v33 = vpop.permute.xlu1 %3561 }
0x1bd7   :  { %v3567_v35 = vsel %vm291_vm3, %v3562_v33, 0 }
0x1bd8   :  { %v3454_v34 = vpack.c.bf16 %v3453_v32, %v3453_v32 }
0x1bda   :  { %10770 = vmatmul.mubr.msk.bf16.vlgmr.msra.gmra.mrb[96].mxu1 %vm226_vm2, %v3454_v34 }
0x1bdb   :  { %10780 = vmatpush3.bf16.msra.mxu1 %v3567_v35  ;;  %10781 = vmatprep.mubr.msk.bf16.mxu1 %vm12075_vm1, %v12074_v8 }
0x1bdc   :  { %10785 = vmatprep.subr.bf16.mxu1 %v12074_v8 }
0x1bdd   :  { %v11673_v36 = vpop.eup %11672 }
0x1bde   :  { %v3559_v37 = vmul.f32 %v11673_v36, %v11669_v5 }
0x1be0   :  { %v3560_v19 = vpack.c.bf16 %v3559_v37, %v3559_v37 }
0x1be2   :  { %10782 = vmatmul.mubr.msk.bf16.vlgmr.msra.gmra.mrb[100].mxu1 %vm226_vm2, %v3560_v19 }
0x1be3   :  { %10787 = vmatprep.mubr.msk.bf16.mxu1 %vm12075_vm1, %v12074_v8  ;;  %10786 = vmatpush3.bf16.msra.mxu1 %v3618_v46 }
0x1be4   :  { %10805 = vmatprep.subr.bf16.mxu1 %v12074_v8 }
0x1c1e   :  { %v3802_v22 = vpop.xlane.xlu1 %3801 }
0x1c1f   :  { %v3803_v24 = vsub.f32 %v3799_v11, %v3802_v22 }
0x1c21   :  { %v3804_v38 = vmul.f32 1.442695, %v3803_v24 }
0x1c22   :  { %v3919_v59 = vpop.permute.xlu1 %3918 }
0x1c23   :  { %11674 = vpow2.f32 %v3804_v38  ;;  %v3924_v2 = vsel %vm291_vm3, %v3919_v59, 0 }
0x1c26   :  { %v3908_v39 = vpop.xlane.xlu0 %3907 }
0x1c27   :  { %v3909_v25 = vsub.f32 %v3905_v26, %v3908_v39 }
0x1c29   :  { %v3910_v40 = vmul.f32 1.442695, %v3909_v25 }
0x1c2b   :  { %11676 = vpow2.f32 %v3910_v40 }
0x1c2d   :  { %v11675_v41 = vpop.eup %11674 }
0x1c2e   :  { %v3806_v42 = vsel %vm2633_vm4, %v11675_v41, 0.0 }
0x1c2f   :  { %3807 = vadd.xlane.f32.xlu0 %v3806_v42 }
0x1c35   :  { %v11677_v43 = vpop.eup %11676 }
0x1c36   :  { %v3912_v44 = vsel %vm2633_vm4, %v11677_v43, 0.0 }
0x1c37   :  { %3913 = vadd.xlane.f32.xlu1 %v3912_v44 }
0x1c45   :  { %3813 = vrot.lane.b32.xlu0 %v12788_v20, %s12076_s0 }
0x1c48   :  { %4021 = vrot.lane.b32.xlu1 %v12788_v20, %s12078_s14 }
0x1c49   :  { %4019 = vrot.lane.b32.xlu0 %v12795_v7, %s12078_s14 }
0x1c4c   :  { %4130 = vrot.lane.b32.xlu1 %v12798_v60, %s12078_s14 }
0x1cad   :  { %v3497_v47 = vpop.f32.mrb[96].mxu1 }
0x1cae   :  { %v10771_v48 = vpop.f32.mrb[97].mxu1 }
0x1caf   :  { %v3500_v49 = vpop.f32.mrb[98].mxu1 }
0x1cb0   :  { %v10772_v50 = vpop.f32.mrb[99].mxu1 }
0x1cb5   :  { %v3603_v51 = vpop.f32.mrb[100].mxu1 }
0x1cb6   :  { %v3610_v54 = vrot.slane %v3603_v51, 7  ;;  %v10783_v56 = vpop.f32.mrb[101].mxu1 }
0x1cb7   :  { %v3606_v52 = vpop.f32.mrb[102].mxu1 }
0x1cb8   :  { %v3612_v53 = vsel %vm2803_vm5, %v3497_v47, %v3610_v54  ;;  %v10784_v55 = vpop.f32.mrb[103].mxu1 }
0x1cb9   :  { %v3613_v57 = vpack.c.bf16 %v3612_v53, %v3612_v53 }
0x1cbb   :  { %10788 = vmatmul.mubr.msk.bf16.vlgmr.msra.gmra.mrb[80].mxu1 %vm226_vm2, %v3613_v57 }
0x1cbc   :  { %v3808_v58 = vpop.xlane.xlu0 %3807  ;;  %10807 = vmatprep.mubr.msk.bf16.mxu1 %vm12075_vm1, %v12074_v8 }
0x1cbd   :  { %11678 = vrcp.f32 %v3808_v58 }
0x1cc0   :  { %v3814_v61 = vpop.permute.xlu0 %3813 }
0x1cc1   :  { %v3819_v62 = vsel %vm291_vm3, %v3814_v61, 0 }
0x1cc2   :  { %10806 = vmatpush3.bf16.msra.mxu1 %v3819_v62 }
0x1cc3   :  { %10817 = vmatprep.subr.bf16.mxu1 %v12074_v8 }
0x1cc4   :  { %v3914_v63 = vpop.xlane.xlu1 %3913  ;;  %v4020_v14 = vpop.permute.xlu0 %4019 }
0x1cc5   :  { %11680 = vrcp.f32 %v3914_v63 }
0x1cc7   :  { %v11679_v4 = vpop.eup %11678 }
0x1cc8   :  { %v3810_v0 = vmul.f32 %v11679_v4, %v11675_v41  ;;  %v4022_v5 = vpop.permute.xlu1 %4021 }
0x1cc9   :  { %v4027_v9 = vsel %vm226_vm2, %v4022_v5, 0 }
0x1cca   :  { %v3811_v1 = vpack.c.bf16 %v3810_v0, %v3810_v0 }
0x1ccc   :  { %10808 = vmatmul.mubr.msk.bf16.vlgmr.msra.gmra.mrb[104].mxu1 %vm226_vm2, %v3811_v1  ;;  %v4131_v11 = vpop.permute.xlu1 %4130 }
0x1ccd   :  { %10818 = vmatpush3.bf16.msra.mxu1 %v3924_v2  ;;  %10819 = vmatprep.mubr.msk.bf16.mxu1 %vm12075_vm1, %v12074_v8  ;;  %v4133_v15 = vsel %vm226_vm2, %v4131_v11, 0 }
0x1cce   :  { %10829 = vmatprep.subr.bf16.mxu1 %v12074_v8 }
0x1ccf   :  { %v11681_v3 = vpop.eup %11680 }
0x1cd0   :  { %v3916_v12 = vmul.f32 %v11681_v3, %v11677_v43 }
0x1cd2   :  { %v3917_v6 = vpack.c.bf16 %v3916_v12, %v3916_v12 }
0x1cd4   :  { %10820 = vmatmul.mubr.msk.bf16.vlgmr.msra.gmra.mrb[108].mxu1 %vm226_vm2, %v3917_v6 }
0x1cd5   :  { %10831 = vmatprep.mubr.msk.bf16.mxu1 %vm12075_vm1, %v12074_v8 }
0x1cd6   :  { %10830 = vmatpush3.bf16.xpose.msra.mxu1 %v4027_v9 }
0x1cd7   :  { %10841 = vmatprep.subr.bf16.mxu1 %v12074_v8 }
0x1cdd   :  { %10832 = vmatmul.mubr.msk.bf16.vlgmr.msra.gmra.mrb[112].mxu1 %vm226_vm2, %v4020_v14 }
0x1cde   :  { %10842 = vmatpush3.bf16.xpose.msra.mxu1 %v4133_v15  ;;  %10843 = vmatprep.mubr.msk.bf16.mxu1 %vm12075_vm1, %v12074_v8 }
0x1cdf   :  { %10859 = vmatprep.subr.bf16.mxu1 %v12074_v8 }
0x1ce5   :  { %10844 = vmatmul.mubr.msk.bf16.vlgmr.msra.gmra.mrb[116].mxu1 %vm226_vm2, %v4020_v14 }
0x1ce6   :  { %10861 = vmatprep.mubr.msk.bf16.mxu1 %vm12075_vm1, %v12074_v8 }
0x1d8e   :  { %v12869_v21 = vpop.f32.mrb[80].mxu1 }
0x1d8f   :  { %v10789_v26 = vpop.f32.mrb[81].mxu1 }
0x1d90   :  { %v3657_v27 = vpop.f32.mrb[82].mxu1 }
0x1d91   :  { %v10790_v28 = vpop.f32.mrb[83].mxu1 }
0x1d9f   :  { %v3855_v29 = vpop.f32.mrb[104].mxu1 }
0x1da0   :  { %v10809_v23 = vpop.f32.mrb[105].mxu1 }
0x1da1   :  { %v3858_v10 = vpop.f32.mrb[106].mxu1 }
0x1da2   :  { %v10810_v13 = vpop.f32.mrb[107].mxu1 }
0x1da7   :  { %v3960_v18 = vpop.f32.mrb[108].mxu1 }
0x1da8   :  { %v3967_v30 = vrot.slane %v3960_v18, 7  ;;  %v10821_v31 = vpop.f32.mrb[109].mxu1 }
0x1da9   :  { %v3963_v32 = vpop.f32.mrb[110].mxu1 }
0x1daa   :  { %v3969_v33 = vsel %vm2803_vm5, %v3855_v29, %v3967_v30  ;;  %v10822_v34 = vpop.f32.mrb[111].mxu1 }
0x1dab   :  { %v3970_v35 = vpack.c.bf16 %v3969_v33, %v3969_v33 }
0x1dad   :  { %10826 = vmatmul.mubr.msk.bf16.vlgmr.msra.gmra.mrb[124].mxu0 %vm226_vm2, %v3970_v35 }
0x1dae   :  { %10837 = vmatprep.mubr.msk.bf16.mxu0 %vm12075_vm1, %v12074_v8 }
0x1db0   :  { %v4063_v36 = vpop.f32.mrb[112].mxu1 }
0x1db1   :  { %v4069_v37 = vmul.f32 0.35355338, %v4063_v36  ;;  %v10833_v19 = vpop.f32.mrb[113].mxu1 }
0x1db2   :  { %v4066_v22 = vpop.f32.mrb[114].mxu1 }
0x1db3   :  { %v4070_v24 = vsel %vm2633_vm4, %v4069_v37, -inf  ;;  %v10834_v38 = vpop.f32.mrb[115].mxu1 }
0x1db4   :  { %4071 = vmax.xlane.f32.xlu0 %v4070_v24 }
0x1db8   :  { %v4169_v39 = vpop.f32.mrb[116].mxu1 }
0x1db9   :  { %v4175_v25 = vmul.f32 0.35355338, %v4169_v39  ;;  %v10845_v40 = vpop.f32.mrb[117].mxu1 }
0x1dba   :  { %v4172_v41 = vpop.f32.mrb[118].mxu1 }
0x1dbb   :  { %v10846_v42 = vpop.f32.mrb[119].mxu1  ;;  %v4176_v43 = vsel %vm2633_vm4, %v4175_v25, -inf }
0x1dbc   :  { %4177 = vmax.xlane.f32.xlu1 %v4176_v43 }
0x1dcd   :  { %4082 = vrot.lane.b32.xlu1 %v12788_v20, %s12077_s9 }
0x1dd1   :  { %4290 = vrot.lane.b32.xlu1 %v12788_v20, %s12081_s3 }
0x1dd5   :  { %4288 = vrot.lane.b32.xlu1 %v12795_v7, %s12081_s3 }
0x1e41   :  { %v4072_v44 = vpop.xlane.xlu0 %4071 }
0x1e42   :  { %v4073_v45 = vsub.f32 %v4069_v37, %v4072_v44 }
0x1e44   :  { %v4074_v46 = vmul.f32 1.442695, %v4073_v45 }
0x1e46   :  { %11682 = vpow2.f32 %v4074_v46 }
0x1e49   :  { %v4178_v47 = vpop.xlane.xlu1 %4177 }
0x1e4a   :  { %v4179_v48 = vsub.f32 %v4175_v25, %v4178_v47 }
0x1e4c   :  { %v4180_v49 = vmul.f32 1.442695, %v4179_v48 }
0x1e4d   :  { %v4083_v50 = vpop.permute.xlu1 %4082 }
0x1e4e   :  { %11684 = vpow2.f32 %v4180_v49  ;;  %v4088_v51 = vsel %vm291_vm3, %v4083_v50, 0 }
0x1e4f   :  { %10836 = vmatpush3.bf16.msra.mxu0 %v4088_v51 }
0x1e50   :  { %v11683_v54 = vpop.eup %11682  ;;  %10847 = vmatprep.subr.bf16.mxu0 %v12074_v8 }
0x1e51   :  { %v4291_v56 = vpop.permute.xlu1 %4290  ;;  %v4076_v52 = vsel %vm2633_vm4, %v11683_v54, 0.0 }
0x1e52   :  { %v4296_v53 = vsel %vm226_vm2, %v4291_v56, 0  ;;  %4077 = vadd.xlane.f32.xlu0 %v4076_v52 }
0x1e53   :  { %10860 = vmatpush3.bf16.xpose.msra.mxu1 %v4296_v53 }
0x1e54   :  { %10865 = vmatprep.subr.bf16.mxu1 %v12074_v8 }
0x1e55   :  { %v4289_v55 = vpop.permute.xlu1 %4288 }
0x1e58   :  { %v11685_v57 = vpop.eup %11684 }
0x1e59   :  { %v4182_v58 = vsel %vm2633_vm4, %v11685_v57, 0.0 }
0x1e5a   :  { %4183 = vadd.xlane.f32.xlu0 %v4182_v58  ;;  %10862 = vmatmul.mubr.msk.bf16.vlgmr.msra.gmra.mrb[120].mxu1 %vm226_vm2, %v4289_v55 }
0x1e5b   :  { %10867 = vmatprep.mubr.msk.bf16.mxu1 %vm12075_vm1, %v12074_v8 }
0x1e70   :  { %4188 = vrot.lane.b32.xlu0 %v12798_v60, %s12077_s9 }
0x1e74   :  { %4399 = vrot.lane.b32.xlu0 %v12798_v60, %s12081_s3 }
0x1edf   :  { %v4078_v59 = vpop.xlane.xlu0 %4077 }
0x1ee0   :  { %11686 = vrcp.f32 %v4078_v59 }
0x1ee7   :  { %v4184_v61 = vpop.xlane.xlu0 %4183 }
0x1ee8   :  { %11688 = vrcp.f32 %v4184_v61 }
0x1eea   :  { %v11687_v62 = vpop.eup %11686 }
0x1eeb   :  { %v4080_v63 = vmul.f32 %v11687_v62, %v11683_v54  ;;  %v4189_v4 = vpop.permute.xlu0 %4188 }
0x1eec   :  { %v4194_v1 = vsel %vm291_vm3, %v4189_v4, 0 }
0x1eed   :  { %v4081_v0 = vpack.c.bf16 %v4080_v63, %v4080_v63 }
0x1eef   :  { %10838 = vmatmul.mubr.msk.bf16.vlgmr.msra.gmra.mrb[128].mxu0 %vm226_vm2, %v4081_v0  ;;  %v4400_v30 = vpop.permute.xlu0 %4399 }
0x1ef0   :  { %10848 = vmatpush3.bf16.msra.mxu0 %v4194_v1  ;;  %10849 = vmatprep.mubr.msk.bf16.mxu0 %vm12075_vm1, %v12074_v8  ;;  %v4402_v34 = vsel %vm226_vm2, %v4400_v30, 0 }
0x1ef1   :  { %10853 = vmatprep.subr.bf16.mxu0 %v12074_v8 }
0x1ef2   :  { %v11689_v2 = vpop.eup %11688 }
0x1ef3   :  { %v4186_v3 = vmul.f32 %v11689_v2, %v11685_v57 }
0x1ef5   :  { %v4187_v12 = vpack.c.bf16 %v4186_v3, %v4186_v3  ;;  %v3671_v3 = vld [vmem:[#allocation8 + $0x68] sm:$0xf] }
0x1ef7   :  { %10850 = vmatmul.mubr.msk.bf16.vlgmr.msra.gmra.mrb[132].mxu0 %vm226_vm2, %v4187_v12  ;;  %v4514_v12 = vsel %vm291_vm3, %v3671_v3, 0 }
0x1ef8   :  { %10855 = vmatprep.mubr.msk.bf16.mxu0 %vm12075_vm1, %v12074_v8  ;;  %10854 = vmatpush3.bf16.msra.mxu0 %v4245_v17 }
0x1ef9   :  { %10871 = vmatprep.subr.bf16.mxu0 %v12074_v8 }
0x1f2d   :  { %v4332_v5 = vpop.f32.mrb[120].mxu1 }
0x1f2e   :  { %v4338_v6 = vmul.f32 0.35355338, %v4332_v5  ;;  %v10863_v9 = vpop.f32.mrb[121].mxu1 }
0x1f2f   :  { %v4335_v11 = vpop.f32.mrb[122].mxu1 }
0x1f30   :  { %v4339_v14 = vsel %vm2633_vm4, %v4338_v6, -inf  ;;  %v10864_v15 = vpop.f32.mrb[123].mxu1 }
0x1f31   :  { %4340 = vmax.xlane.f32.xlu1 %v4339_v14 }
0x1f42   :  { %4457 = vrot.lane.b32.xlu1 %v12798_v60, %s12080_s29 }
0x1fbe   :  { %v4341_v35 = vpop.xlane.xlu1 %4340 }
0x1fbf   :  { %v4342_v36 = vsub.f32 %v4338_v6, %v4341_v35 }
0x1fc1   :  { %v4343_v37 = vmul.f32 1.442695, %v4342_v36 }
0x1fc2   :  { %v4124_v26 = vpop.f32.mrb[128].mxu0  ;;  %v4458_v54 = vpop.permute.xlu1 %4457 }
0x1fc3   :  { %v10839_v27 = vpop.f32.mrb[129].mxu0  ;;  %11690 = vpow2.f32 %v4343_v37  ;;  %v4463_v56 = vsel %vm291_vm3, %v4458_v54, 0 }
0x1fc4   :  { %v4127_v28 = vpop.f32.mrb[130].mxu0 }
0x1fc5   :  { %v10840_v29 = vpop.f32.mrb[131].mxu0 }
0x1fca   :  { %v4230_v23 = vpop.f32.mrb[132].mxu0 }
0x1fcb   :  { %v4237_v10 = vrot.slane %v4230_v23, 7  ;;  %v10851_v13 = vpop.f32.mrb[133].mxu0 }
0x1fcc   :  { %v4233_v18 = vpop.f32.mrb[134].mxu0 }
0x1fcd   :  { %v4239_v31 = vsel %vm2803_vm5, %v4124_v26, %v4237_v10  ;;  %v10852_v32 = vpop.f32.mrb[135].mxu0  ;;  %v11691_v38 = vpop.eup %11690 }
0x1fce   :  { %v4240_v33 = vpack.c.bf16 %v4239_v31, %v4239_v31  ;;  %v4345_v41 = vsel %vm2633_vm4, %v11691_v38, 0.0 }
0x1fd0   :  { %10856 = vmatmul.mubr.msk.bf16.vlgmr.msra.gmra.mrb[124].mxu0 %vm226_vm2, %v4240_v33 }
0x1fd1   :  { %10872 = vmatpush3.bf16.xpose.msra.mxu0 %v4402_v34  ;;  %10873 = vmatprep.mubr.msk.bf16.mxu0 %vm12075_vm1, %v12074_v8 }
0x1fd2   :  { %10883 = vmatprep.subr.bf16.mxu0 %v12074_v8 }
0x1fd8   :  { %10874 = vmatmul.mubr.msk.bf16.vlgmr.msra.gmra.mrb[136].mxu0 %vm226_vm2, %v4289_v55 }
0x1fd9   :  { %10885 = vmatprep.mubr.msk.bf16.mxu0 %vm12075_vm1, %v12074_v8  ;;  %10884 = vmatpush3.bf16.msra.mxu0 %v4514_v12 }
0x1fda   :  { %10895 = vmatprep.subr.bf16.mxu0 %v12074_v8 }
0x20ab   :  { %v4438_v19 = vpop.f32.mrb[136].mxu0 }
0x20ac   :  { %v4444_v22 = vmul.f32 0.35355338, %v4438_v19  ;;  %v10875_v24 = vpop.f32.mrb[137].mxu0 }
0x20ad   :  { %v4441_v39 = vpop.f32.mrb[138].mxu0 }
0x20ae   :  { %v10876_v25 = vpop.f32.mrb[139].mxu0  ;;  %v4445_v40 = vsel %vm2633_vm4, %v4444_v22, -inf }
0x20af   :  { %4446 = vmax.xlane.f32.xlu0 %v4445_v40 }
0x20b3   :  { %4346 = vadd.xlane.f32.xlu0 %v4345_v41 }
0x20c9   :  { %4351 = vrot.lane.b32.xlu0 %v12788_v20, %s12080_s29 }
0x20cd   :  { %4557 = vrot.lane.b32.xlu0 %v12795_v7, %s12084_s15 }
0x213c   :  { %v4447_v42 = vpop.xlane.xlu0 %4446 }
0x213d   :  { %v4448_v43 = vsub.f32 %v4444_v22, %v4447_v42 }
0x213f   :  { %v4449_v44 = vmul.f32 1.442695, %v4448_v43 }
0x2140   :  { %v4347_v45 = vpop.xlane.xlu0 %4346 }
0x2141   :  { %11692 = vpow2.f32 %v4449_v44 }
0x2142   :  { %11694 = vrcp.f32 %v4347_v45 }
0x2144   :  { %v4352_v46 = vpop.permute.xlu0 %4351 }
0x2145   :  { %v4357_v47 = vsel %vm291_vm3, %v4352_v46, 0 }
0x2146   :  { %10866 = vmatpush3.bf16.msra.mxu1 %v4357_v47 }
0x2147   :  { %10877 = vmatprep.subr.bf16.mxu1 %v12074_v8 }
0x2148   :  { %v4558_v62 = vpop.permute.xlu0 %4557 }
0x214b   :  { %v11693_v48 = vpop.eup %11692 }
0x214c   :  { %v11695_v49 = vpop.eup %11694  ;;  %v4451_v50 = vsel %vm2633_vm4, %v11693_v48, 0.0 }
0x214d   :  { %4452 = vadd.xlane.f32.xlu1 %v4451_v50  ;;  %v4349_v51 = vmul.f32 %v11695_v49, %v11691_v38  ;;  %v3672_v49 = vld [vmem:[#allocation8 + $0x6c] sm:$0xf] }
0x214e   :  { %v4783_v50 = vsel %vm291_vm3, %v3672_v49, 0 }
0x214f   :  { %v4350_v7 = vpack.c.bf16 %v4349_v51, %v4349_v51 }
0x2151   :  { %10868 = vmatmul.mubr.msk.bf16.vlgmr.msra.gmra.mrb[124].mxu1 %vm226_vm2, %v4350_v7 }
0x2152   :  { %10878 = vmatpush3.bf16.msra.mxu1 %v4463_v56  ;;  %10879 = vmatprep.mubr.msk.bf16.mxu1 %vm12075_vm1, %v12074_v8 }
0x2153   :  { %10889 = vmatprep.subr.bf16.mxu1 %v12074_v8 }
0x215e   :  { %4559 = vrot.lane.b32.xlu1 %v12788_v20, %s12084_s15 }
0x2162   :  { %4668 = vrot.lane.b32.xlu1 %v12798_v60, %s12084_s15 }
0x21da   :  { %v4453_v52 = vpop.xlane.xlu1 %4452 }
0x21db   :  { %11696 = vrcp.f32 %v4453_v52 }
0x21de   :  { %v4560_v57 = vpop.permute.xlu1 %4559 }
0x21df   :  { %v4565_v59 = vsel %vm226_vm2, %v4560_v57, 0 }
0x21e2   :  { %v4669_v61 = vpop.permute.xlu1 %4668 }
0x21e3   :  { %v4671_v63 = vsel %vm226_vm2, %v4669_v61, 0 }
0x21e5   :  { %v11697_v53 = vpop.eup %11696 }
0x21e6   :  { %v4455_v55 = vmul.f32 %v11697_v53, %v11693_v48 }
0x21e8   :  { %v4456_v58 = vpack.c.bf16 %v4455_v55, %v4455_v55 }
0x21ea   :  { %10880 = vmatmul.mubr.msk.bf16.vlgmr.msra.gmra.mrb[128].mxu1 %vm226_vm2, %v4456_v58 }
0x21eb   :  { %10890 = vmatpush3.bf16.xpose.msra.mxu1 %v4565_v59  ;;  %10891 = vmatprep.mubr.msk.bf16.mxu1 %vm12075_vm1, %v12074_v8 }
0x21ec   :  { %10901 = vmatprep.subr.bf16.mxu1 %v12074_v8 }
0x21f2   :  { %10892 = vmatmul.mubr.msk.bf16.vlgmr.msra.gmra.mrb[132].mxu1 %vm226_vm2, %v4558_v62 }
0x21f3   :  { %10902 = vmatpush3.bf16.xpose.msra.mxu1 %v4671_v63  ;;  %10903 = vmatprep.mubr.msk.bf16.mxu1 %vm12075_vm1, %v12074_v8  ;;  %v11562_v63 = vld [vmem:[#allocation5 + $0x18] sm:$0xff]  }
0x21f4   :  { %10919 = vmatprep.subr.bf16.mxu1 %v12074_v8 }
0x21fa   :  { %10904 = vmatmul.mubr.msk.bf16.vlgmr.msra.gmra.mrb[136].mxu1 %vm226_vm2, %v4558_v62  ;;  %v11561_v62 = vld [vmem:[#allocation5 + $0x10] sm:$0xff]  }
0x21fb   :  { %10923 = vmatprep.mubr.msk.bf16.mxu1 %vm12075_vm1, %v12074_v8  ;;  %10920 = vmatpush3.bf16.msra.mxu1 %v11561_v62 }
0x21fc   :  { %10921 = vmatprep.subr.bf16.mxu1 %v12074_v8 }
0x21ff   :  { %10922 = vmatpush3.bf16.msra.mxu1 %v11562_v63 }
0x2200   :  { %10927 = vmatprep.subr.bf16.mxu1 %v12074_v8 }
0x2224   :  { %v4393_v4 = vpop.f32.mrb[124].mxu1 }
0x2225   :  { %v10869_v0 = vpop.f32.mrb[125].mxu1 }
0x2226   :  { %v4396_v1 = vpop.f32.mrb[126].mxu1  ;;  %v9923_v0 = vld [vmem:[%s13709_s5 + $0x6] ss:$0 sm:$0xff] }
0x2227   :  { %v10870_v2 = vpop.f32.mrb[127].mxu1 }
0x22bd   :  { %v4499_v5 = vpop.f32.mrb[128].mxu1 }
0x22be   :  { %v4506_v6 = vrot.slane %v4499_v5, 7  ;;  %v10881_v9 = vpop.f32.mrb[129].mxu1 }
0x22bf   :  { %v4502_v11 = vpop.f32.mrb[130].mxu1 }
0x22c0   :  { %v4508_v14 = vsel %vm2803_vm5, %v4393_v4, %v4506_v6  ;;  %v10882_v15 = vpop.f32.mrb[131].mxu1  ;;  %v9897_v4 = vld [vmem:[%s13709_s5 + $0x4] ss:$0 sm:$0xff] }
0x22c1   :  { %v4509_v16 = vpack.c.bf16 %v4508_v14, %v4508_v14  ;;  %v11425_v2 = vadd.f32 %v9897_v4, %v12869_v21 }
0x22c3   :  { %10886 = vmatmul.mubr.msk.bf16.vlgmr.msra.gmra.mrb[124].mxu0 %vm226_vm2, %v4509_v16  ;;  %v12990_v11 = vpack.c.bf16 %v11425_v2, %v11425_v2  ;;  %v9948_v16 = vld [vmem:[#allocation7 + $0x1] ss:$0 sm:$0xff] }
0x22c4   :  { %10897 = vmatprep.mubr.msk.bf16.mxu0 %vm12075_vm1, %v12074_v8 }
0x22c5   :  { %v4601_v17 = vpop.f32.mrb[132].mxu1 }
0x22c6   :  { %v4607_v26 = vmul.f32 0.35355338, %v4601_v17  ;;  %v10893_v27 = vpop.f32.mrb[133].mxu1 }
0x22c7   :  { %v4604_v28 = vpop.f32.mrb[134].mxu1 }
0x22c8   :  { %v4608_v29 = vsel %vm2633_vm4, %v4607_v26, -inf  ;;  %v10894_v23 = vpop.f32.mrb[135].mxu1 }
0x22c9   :  { %4609 = vmax.xlane.f32.xlu0 %v4608_v29 }
0x22cd   :  { %v4707_v10 = vpop.f32.mrb[136].mxu1 }
0x22ce   :  { %v4713_v13 = vmul.f32 0.35355338, %v4707_v10  ;;  %v10905_v18 = vpop.f32.mrb[137].mxu1 }
0x22cf   :  { %v4710_v30 = vpop.f32.mrb[138].mxu1 }
0x22d0   :  { %v10906_v31 = vpop.f32.mrb[139].mxu1  ;;  %v4714_v32 = vsel %vm2633_vm4, %v4713_v13, -inf }
0x22d1   :  { %4715 = vmax.xlane.f32.xlu1 %v4714_v32 }
0x22e2   :  { %4620 = vrot.lane.b32.xlu1 %v12788_v20, %s12083_s30 }
0x2356   :  { %v4610_v33 = vpop.xlane.xlu0 %4609 }
0x2357   :  { %v4611_v34 = vsub.f32 %v4607_v26, %v4610_v33 }
0x2359   :  { %v4612_v35 = vmul.f32 1.442695, %v4611_v34 }
0x235b   :  { %11698 = vpow2.f32 %v4612_v35 }
0x235e   :  { %v4716_v36 = vpop.xlane.xlu1 %4715 }
0x235f   :  { %v4717_v37 = vsub.f32 %v4713_v13, %v4716_v36 }
0x2361   :  { %v4718_v19 = vmul.f32 1.442695, %v4717_v37 }
0x2362   :  { %v4621_v22 = vpop.permute.xlu1 %4620 }
0x2363   :  { %11700 = vpow2.f32 %v4718_v19  ;;  %v4626_v24 = vsel %vm291_vm3, %v4621_v22, 0  ;;  %v12086_v22 = vmov 0  }
0x2364   :  { %10896 = vmatpush3.bf16.msra.mxu0 %v4626_v24  ;;  %v13009_v24 = vsel %vm2803_vm5, 65535, %v12086_v22 }
0x2365   :  { %v11699_v38 = vpop.eup %11698  ;;  %10907 = vmatprep.subr.bf16.mxu0 %v12074_v8 }
0x2366   :  { %v4614_v39 = vsel %vm2633_vm4, %v11699_v38, 0.0 }
0x2367   :  { %4615 = vadd.xlane.f32.xlu0 %v4614_v39 }
0x236d   :  { %v11701_v25 = vpop.eup %11700 }
0x236e   :  { %v4720_v20 = vsel %vm2633_vm4, %v11701_v25, 0.0 }
0x236f   :  { %4721 = vadd.xlane.f32.xlu0 %v4720_v20 }
0x2385   :  { %4726 = vrot.lane.b32.xlu0 %v12798_v60, %s12083_s30 }
0x23f4   :  { %v4616_v40 = vpop.xlane.xlu0 %4615 }
0x23f5   :  { %11702 = vrcp.f32 %v4616_v40 }
0x23fc   :  { %v4722_v41 = vpop.xlane.xlu0 %4721 }
0x23fd   :  { %11704 = vrcp.f32 %v4722_v41 }
0x23ff   :  { %v11703_v42 = vpop.eup %11702 }
0x2400   :  { %v4618_v43 = vmul.f32 %v11703_v42, %v11699_v38  ;;  %v4727_v44 = vpop.permute.xlu0 %4726 }
0x2401   :  { %v4732_v46 = vsel %vm291_vm3, %v4727_v44, 0 }
0x2402   :  { %v4619_v45 = vpack.c.bf16 %v4618_v43, %v4618_v43 }
0x2404   :  { %10898 = vmatmul.mubr.msk.bf16.vlgmr.msra.gmra.mrb[140].mxu0 %vm226_vm2, %v4619_v45 }
0x2405   :  { %10908 = vmatpush3.bf16.msra.mxu0 %v4732_v46  ;;  %10909 = vmatprep.mubr.msk.bf16.mxu0 %vm12075_vm1, %v12074_v8 }
0x2406   :  { %10913 = vmatprep.subr.bf16.mxu0 %v12074_v8 }
0x2407   :  { %v11705_v47 = vpop.eup %11704 }
0x2408   :  { %v4724_v60 = vmul.f32 %v11705_v47, %v11701_v25 }
0x240a   :  { %v4725_v48 = vpack.c.bf16 %v4724_v60, %v4724_v60 }
0x240c   :  { %10910 = vmatmul.mubr.msk.bf16.vlgmr.msra.gmra.mrb[144].mxu0 %vm226_vm2, %v4725_v48 }
0x240d   :  { %10915 = vmatprep.mubr.msk.bf16.mxu0 %vm12075_vm1, %v12074_v8  ;;  %10914 = vmatpush3.bf16.msra.mxu0 %v4783_v50 }
0x240e   :  { %10933 = vmatprep.subr.bf16.mxu0 %v12074_v8 }
0x24d7   :  { %v4662_v51 = vpop.f32.mrb[140].mxu0 }
0x24d8   :  { %v10899_v54 = vpop.f32.mrb[141].mxu0 }
0x24d9   :  { %v4665_v7 = vpop.f32.mrb[142].mxu0 }
0x24da   :  { %v10900_v56 = vpop.f32.mrb[143].mxu0 }
0x24df   :  { %v4768_v52 = vpop.f32.mrb[144].mxu0 }
0x24e0   :  { %v4775_v53 = vrot.slane %v4768_v52, 7  ;;  %v10911_v55 = vpop.f32.mrb[145].mxu0 }
0x24e1   :  { %v4771_v57 = vpop.f32.mrb[146].mxu0 }
0x24e2   :  { %v4777_v58 = vsel %vm2803_vm5, %v4662_v51, %v4775_v53  ;;  %v10912_v59 = vpop.f32.mrb[147].mxu0  ;;  %v4834_v57 = vld [vmem:[#allocation8 + $0x10] sm:$0xf] }
0x24e3   :  { %v4778_v61 = vpack.c.bf16 %v4777_v58, %v4777_v58  ;;  %v5062_v58 = vsel %vm291_vm3, %v4834_v57, 0 }
0x24e5   :  { %10916 = vmatmul.mubr.msk.bf16.vlgmr.msra.gmra.mrb[124].mxu0 %vm226_vm2, %v4778_v61 }
0x24e6   :  { %10935 = vmatprep.mubr.msk.bf16.mxu0 %vm12075_vm1, %v12074_v8 }
0x25b8   :  { %v4819_v1 = vpop.f32.mrb[124].mxu0 }
0x25b9   :  { %v11426_v3 = vadd.f32 %v9923_v0, %v4819_v1  ;;  %v10917_v12 = vpop.f32.mrb[125].mxu0 }
0x25ba   :  { %v4822_v5 = vpop.f32.mrb[126].mxu0 }
0x25bb   :  { %v12988_v6 = vpack.c.bf16 %v11426_v3, %v11426_v3  ;;  %v10918_v9 = vpop.f32.mrb[127].mxu0 }
0x25bd   :  { %v4843_v14 = vrot.slane %v12988_v6, 7 }
0x25bf   :  { %v4846_v15 = vsel %vm2803_vm5, %v12990_v11, %v4843_v14 }
0x25c0   :  { %10924 = vmatmul.mubr.msk.bf16.vlgmr.msra.gmra.mrb[140].mxu1 %vm149_vm0, %v4846_v15 }
0x25c1   :  { %10929 = vmatprep.mubr.msk.bf16.mxu1 %vm12075_vm1, %v12074_v8 }
0x2693   :  { %v4895_v21 = vpop.f32.mrb[140].mxu1 }
0x2694   :  { %v4907_v17 = vadd.f32 %v9948_v16, %v4895_v21  ;;  %v10925_v26 = vpop.f32.mrb[141].mxu1 }
0x2695   :  { %v4898_v27 = vpop.f32.mrb[142].mxu1 }
0x2696   :  { %v4908_v28 = vpack.c.bf16 %v4907_v17, %v4907_v17  ;;  %v10926_v29 = vpop.f32.mrb[143].mxu1 }
0x2698   :  { %v4915_v23 = vunpack.c.l.bf16 %v4908_v28  ;;  %v4934_v32 = vrot.slane %v4908_v28, 1  ;;  %v5002_v33 = vshrl.u32 %v4908_v28, 16 }
0x269a   :  { %v4917_v10 = vrot.slane %v4915_v23, 2  ;;  %v13002_v34 = vrot.slane %v5002_v33, 1 }
0x269c   :  { %4918 = vrot.lane.b32.xlu1 %v4917_v10, %s12076_s0 }
0x270e   :  { %v4919_v13 = vpop.permute.xlu1 %4918 }
0x270f   :  { %v4921_v18 = vmul.f32 %v4919_v13, %v4915_v23 }
0x2711   :  { %v4987_v30 = vsel %vm4986_vm6, %v4921_v18, 0.0  ;;  %v4922_v31 = vsel %vm2633_vm4, %v4921_v18, 0.0 }
0x2712   :  { %4988 = vadd.xlane.f32.xlu1 %v4987_v30  ;;  %4923 = vadd.xlane.f32.xlu0 %v4922_v31 }
0x2723   :  { %4935 = vrot.lane.b32.xlu1 %v4934_v32, %s12063_s13 }
0x2727   :  { %5106 = vrot.lane.b32.xlu1 %v4921_v18, %s12078_s14 }
0x2728   :  { %5005 = vrot.lane.b32.xlu0 %v13002_v34, %s12063_s13 }
0x272c   :  { %5282 = vrot.lane.b32.xlu0 %v4921_v18, %s12081_s3 }
0x279f   :  { %v4989_v35 = vpop.xlane.xlu1 %4988  ;;  %v4924_v36 = vpop.xlane.xlu0 %4923 }
0x27a0   :  { %v4990_v37 = vmul.f32 0.35355338, %v4989_v35  ;;  %v4925_v19 = vmul.f32 0.35355338, %v4924_v36 }
0x27a2   :  { %v4991_v38 = vsub.f32 %v4990_v37, %v4990_v37  ;;  %v4926_v39 = vsub.f32 %v4925_v19, %v4925_v19 }
0x27a3   :  { %v4936_v25 = vpop.permute.xlu1 %4935  ;;  %v5006_v20 = vpop.permute.xlu0 %5005 }
0x27a4   :  { %v4992_v40 = vmul.f32 1.442695, %v4991_v38  ;;  %v4927_v41 = vmul.f32 1.442695, %v4926_v39  ;;  %v4944_v42 = vand.u32 %v13009_v24, %v4936_v25  ;;  %v5011_v43 = vand.u32 %v5006_v20, %v13009_v24 }
0x27a6   :  { %11706 = vpow2.f32 %v4992_v40  ;;  %10928 = vmatpush3.bf16.msra.mxu1 %v4944_v42  ;;  %10934 = vmatpush3.bf16.msra.mxu0 %v5011_v43 }
0x27a7   :  { %11708 = vpow2.f32 %v4927_v41  ;;  %v5107_v44 = vpop.permute.xlu1 %5106  ;;  %10945 = vmatprep.subr.bf16.mxu0 %v12074_v8  ;;  %10939 = vmatprep.subr.bf16.mxu1 %v12074_v8  ;;  %v5283_v47 = vpop.permute.xlu0 %5282 }
0x27a8   :  { %v5109_v45 = vsel %vm2633_vm4, %v5107_v44, 0.0  ;;  %v5168_v46 = vsel %vm4986_vm6, %v5107_v44, 0.0  ;;  %v5285_v60 = vsel %vm2633_vm4, %v5283_v47, 0.0  ;;  %v5344_v49 = vsel %vm4986_vm6, %v5283_v47, 0.0 }
0x27a9   :  { %5110 = vadd.xlane.f32.xlu1 %v5109_v45  ;;  %5169 = vadd.xlane.f32.xlu0 %v5168_v46 }
0x27ad   :  { %5286 = vadd.xlane.f32.xlu0 %v5285_v60 }
0x27b0   :  { %v11707_v48 = vpop.eup %11706 }
0x27b1   :  { %v11709_v50 = vpop.eup %11708  ;;  %11710 = vrcp.f32 %v11707_v48  ;;  %5345 = vadd.xlane.f32.xlu0 %v5344_v49 }
0x27b2   :  { %11712 = vrcp.f32 %v11709_v50 }
0x27ba   :  { %5458 = vrot.lane.b32.xlu1 %v4921_v18, %s12084_s15 }
0x27bb   :  { %v11711_v51 = vpop.eup %11710 }
0x27bc   :  { %v11713_v54 = vpop.eup %11712  ;;  %v4996_v7 = vmul.f32 %v11711_v51, %v11707_v48 }
0x27bd   :  { %v4931_v56 = vmul.f32 %v11713_v54, %v11709_v50 }
0x27be   :  { %5182 = vrot.lane.b32.xlu1 %v13002_v34, %s12079_s22  ;;  %v4997_v52 = vpack.c.bf16 %v4996_v7, %v4996_v7 }
0x27bf   :  { %v4932_v53 = vpack.c.bf16 %v4931_v56, %v4931_v56 }
0x27c0   :  { %v4999_v55 = vshrl.u32 %v4997_v52, 16 }
0x27c1   :  { %10930 = vmatmul.mubr.msk.bf16.vlgmr.msra.gmra.mrb[144].mxu1 %vm4937_vm7, %v4932_v53 }
0x27c2   :  { %5296 = vrot.lane.b32.xlu1 %v4934_v32, %s12082_s27  ;;  %10936 = vmatmul.mubr.msk.bf16.vlgmr.msra.gmra.mrb[148].mxu0 %vm4937_vm7, %v4999_v55 }
0x27c3   :  { %10947 = vmatprep.mubr.msk.bf16.mxu0 %vm12075_vm1, %v12074_v8  ;;  %10941 = vmatprep.mubr.msk.bf16.mxu1 %vm12075_vm1, %v12074_v8 }
0x27c4   :  { %10940 = vmatpush3.bf16.msra.mxu1 %v5062_v58 }
0x27c5   :  { %10951 = vmatprep.subr.bf16.mxu1 %v12074_v8 }
0x27c6   :  { %5358 = vrot.lane.b32.xlu1 %v13002_v34, %s12082_s27 }
0x27c7   :  { %5120 = vrot.lane.b32.xlu0 %v4934_v32, %s12079_s22 }
0x27ca   :  { %5472 = vrot.lane.b32.xlu1 %v4934_v32, %s12085_s16 }
0x2836   :  { %v5111_v59 = vpop.xlane.xlu1 %5110  ;;  %v5170_v61 = vpop.xlane.xlu0 %5169 }
0x2837   :  { %v5112_v62 = vmul.f32 0.35355338, %v5111_v59  ;;  %v5171_v20 = vmul.f32 0.35355338, %v5170_v61 }
0x2839   :  { %v5113_v63 = vsub.f32 %v5112_v62, %v5112_v62  ;;  %v5172_v40 = vsub.f32 %v5171_v20, %v5171_v20 }
0x283a   :  { %v5459_v4 = vpop.permute.xlu1 %5458  ;;  %v5287_v0 = vpop.xlane.xlu0 %5286 }
0x283b   :  { %v5114_v1 = vmul.f32 1.442695, %v5113_v63  ;;  %v5288_v2 = vmul.f32 0.35355338, %v5287_v0  ;;  %v5520_v3 = vsel %vm4986_vm6, %v5459_v4, 0.0  ;;  %v5461_v12 = vsel %vm2633_vm4, %v5459_v4, 0.0 }
0x283c   :  { %5521 = vadd.xlane.f32.xlu1 %v5520_v3  ;;  %5462 = vadd.xlane.f32.xlu0 %v5461_v12  ;;  %v5173_v41 = vmul.f32 1.442695, %v5172_v40  ;;  %v11563_v0 = vld [vmem:[#allocation5 + $0x30] sm:$0xff]   ;;  %v5649_v3 = vrot.slane %v12990_v11, 7 }
0x283d   :  { %11714 = vpow2.f32 %v5114_v1  ;;  %v5289_v5 = vsub.f32 %v5288_v2, %v5288_v2  ;;  %v11564_v2 = vld [vmem:[#allocation5 + $0x38] sm:$0xff]  }
0x283e   :  { %v5346_v9 = vpop.xlane.xlu0 %5345  ;;  %v5183_v29 = vpop.permute.xlu1 %5182  ;;  %v5652_v12 = vsel %vm2803_vm5, %v12988_v6, %v5649_v3 }
0x283f   :  { %v5290_v14 = vmul.f32 1.442695, %v5289_v5  ;;  %v5347_v15 = vmul.f32 0.35355338, %v5346_v9  ;;  %v5188_v52 = vand.u32 %v5183_v29, %v13009_v24  ;;  %v4835_v5 = vld [vmem:[#allocation8 + $0x14] sm:$0xf] }
0x2840   :  { %v5239_v9 = vsel %vm291_vm3, %v4835_v5, 0 }
0x2841   :  { %11716 = vpow2.f32 %v5290_v14  ;;  %v5348_v16 = vsub.f32 %v5347_v15, %v5347_v15 }
0x2842   :  { %v5121_v21 = vpop.permute.xlu0 %5120  ;;  %v5297_v13 = vpop.permute.xlu1 %5296 }
0x2843   :  { %v5349_v17 = vmul.f32 1.442695, %v5348_v16  ;;  %v5126_v26 = vand.u32 %v5121_v21, %v13009_v24  ;;  %v5302_v32 = vand.u32 %v5297_v13, %v13009_v24 }
0x2845   :  { %11718 = vpow2.f32 %v5349_v17  ;;  %10946 = vmatpush3.bf16.msra.mxu0 %v5126_v26 }
0x2846   :  { %10963 = vmatprep.subr.bf16.mxu0 %v12074_v8  ;;  %v5359_v36 = vpop.permute.xlu1 %5358 }
0x2847   :  { %v11715_v27 = vpop.eup %11714 }
0x2848   :  { %11720 = vrcp.f32 %v11715_v27 }
0x284a   :  { %v5473_v38 = vpop.permute.xlu1 %5472 }
0x284b   :  { %v11717_v28 = vpop.eup %11716  ;;  %v5478_v25 = vand.u32 %v5473_v38, %v13009_v24 }
0x284c   :  { %11722 = vrcp.f32 %v11717_v28 }
0x284f   :  { %v11719_v23 = vpop.eup %11718 }
0x2850   :  { %11724 = vrcp.f32 %v11719_v23 }
0x2851   :  { %11726 = vpow2.f32 %v5173_v41 }
0x2852   :  { %v11721_v10 = vpop.eup %11720  ;;  %5534 = vrot.lane.b32.xlu0 %v13002_v34, %s12085_s16  ;;  %v5364_v34 = vand.u32 %v5359_v36, %v13009_v24 }
0x2853   :  { %v5118_v18 = vmul.f32 %v11721_v10, %v11715_v27 }
0x2855   :  { %v5119_v30 = vpack.c.bf16 %v5118_v18, %v5118_v18 }
0x2856   :  { %v11723_v31 = vpop.eup %11722 }
0x2857   :  { %10948 = vmatmul.mubr.msk.bf16.vlgmr.msra.gmra.mrb[152].mxu0 %vm4937_vm7, %v5119_v30  ;;  %v5294_v33 = vmul.f32 %v11723_v31, %v11717_v28 }
0x2858   :  { %10964 = vmatpush3.bf16.msra.mxu0 %v5302_v32  ;;  %10965 = vmatprep.mubr.msk.bf16.mxu0 %vm12075_vm1, %v12074_v8 }
0x2859   :  { %10969 = vmatprep.subr.bf16.mxu0 %v12074_v8  ;;  %v5295_v37 = vpack.c.bf16 %v5294_v33, %v5294_v33 }
0x285a   :  { %v11725_v35 = vpop.eup %11724 }
0x285b   :  { %v5353_v19 = vmul.f32 %v11725_v35, %v11719_v23  ;;  %v11727_v42 = vpop.eup %11726 }
0x285c   :  { %11728 = vrcp.f32 %v11727_v42 }
0x285d   :  { %v5354_v22 = vpack.c.bf16 %v5353_v19, %v5353_v19  ;;  %v4836_v19 = vld [vmem:[#allocation8 + $0x18] sm:$0xf] }
0x285f   :  { %10966 = vmatmul.mubr.msk.bf16.vlgmr.msra.gmra.mrb[156].mxu0 %vm4937_vm7, %v5295_v37  ;;  %v5356_v39 = vshrl.u32 %v5354_v22, 16 }
0x2860   :  { %10970 = vmatpush3.bf16.msra.mxu0 %v5364_v34  ;;  %10971 = vmatprep.mubr.msk.bf16.mxu0 %vm12075_vm1, %v12074_v8 }
0x2861   :  { %10981 = vmatprep.subr.bf16.mxu0 %v12074_v8 }
0x2866   :  { %v11729_v46 = vpop.eup %11728 }
0x2867   :  { %10972 = vmatmul.mubr.msk.bf16.vlgmr.msra.gmra.mrb[160].mxu0 %vm4937_vm7, %v5356_v39  ;;  %v5177_v56 = vmul.f32 %v11729_v46, %v11727_v42 }
0x2868   :  { %10982 = vmatpush3.bf16.msra.mxu0 %v5478_v25  ;;  %10983 = vmatprep.mubr.msk.bf16.mxu0 %vm12075_vm1, %v12074_v8  ;;  %v5415_v25 = vsel %vm291_vm3, %v4836_v19, 0 }
0x2869   :  { %10999 = vmatprep.subr.bf16.mxu0 %v12074_v8  ;;  %v5178_v53 = vpack.c.bf16 %v5177_v56, %v5177_v56 }
0x286b   :  { %v5180_v55 = vshrl.u32 %v5178_v53, 16 }
0x2894   :  { %v4980_v43 = vpop.f32.mrb[144].mxu1 }
0x2895   :  { %v10931_v44 = vpop.f32.mrb[145].mxu1  ;;  %v5047_v45 = vpop.f32.mrb[148].mxu0 }
0x2896   :  { %v4983_v47 = vpop.f32.mrb[146].mxu1  ;;  %v5054_v60 = vrot.slane %v5047_v45, 7  ;;  %v10937_v48 = vpop.f32.mrb[149].mxu0 }
0x2897   :  { %v10932_v49 = vpop.f32.mrb[147].mxu1  ;;  %v5050_v50 = vpop.f32.mrb[150].mxu0 }
0x2898   :  { %v5056_v51 = vsel %vm2803_vm5, %v4980_v43, %v5054_v60  ;;  %v10938_v54 = vpop.f32.mrb[151].mxu0  ;;  %v9966_v49 = vld [vmem:[#allocation7 + $0x3] ss:$0 sm:$0xff] }
0x2899   :  { %v5057_v7 = vpack.c.bf16 %v5056_v51, %v5056_v51 }
0x289b   :  { %10942 = vmatmul.mubr.msk.bf16.vlgmr.msra.gmra.mrb[148].mxu1 %vm226_vm2, %v5057_v7 }
0x289c   :  { %10952 = vmatpush3.bf16.msra.mxu1 %v5188_v52  ;;  %10953 = vmatprep.mubr.msk.bf16.mxu1 %vm12075_vm1, %v12074_v8 }
0x289d   :  { %10957 = vmatprep.subr.bf16.mxu1 %v12074_v8 }
0x28a3   :  { %10954 = vmatmul.mubr.msk.bf16.vlgmr.msra.gmra.mrb[152].mxu1 %vm4937_vm7, %v5180_v55 }
0x28a4   :  { %10959 = vmatprep.mubr.msk.bf16.mxu1 %vm12075_vm1, %v12074_v8  ;;  %10958 = vmatpush3.bf16.msra.mxu1 %v5239_v9 }
0x28a5   :  { %10975 = vmatprep.subr.bf16.mxu1 %v12074_v8 }
0x28c9   :  { %v5463_v57 = vpop.xlane.xlu0 %5462  ;;  %v5522_v18 = vpop.xlane.xlu1 %5521 }
0x28ca   :  { %v5464_v58 = vmul.f32 0.35355338, %v5463_v57  ;;  %v5523_v30 = vmul.f32 0.35355338, %v5522_v18  ;;  %v4837_v57 = vld [vmem:[#allocation8 + $0x1c] sm:$0xf] }
0x28cc   :  { %v5465_v59 = vsub.f32 %v5464_v58, %v5464_v58  ;;  %v5524_v31 = vsub.f32 %v5523_v30, %v5523_v30  ;;  %v5591_v58 = vsel %vm291_vm3, %v4837_v57, 0 }
0x28cd   :  { %v5535_v40 = vpop.permute.xlu0 %5534 }
0x28ce   :  { %v5466_v61 = vmul.f32 1.442695, %v5465_v59  ;;  %v5525_v32 = vmul.f32 1.442695, %v5524_v31  ;;  %v5540_v43 = vand.u32 %v5535_v40, %v13009_v24 }
0x28d0   :  { %11730 = vpow2.f32 %v5466_v61 }
0x28da   :  { %v11731_v62 = vpop.eup %11730 }
0x28db   :  { %11732 = vrcp.f32 %v11731_v62 }
0x28dc   :  { %11734 = vpow2.f32 %v5525_v32 }
0x28e5   :  { %v11733_v63 = vpop.eup %11732 }
0x28e6   :  { %v5470_v4 = vmul.f32 %v11733_v63, %v11731_v62  ;;  %v11735_v33 = vpop.eup %11734 }
0x28e7   :  { %11736 = vrcp.f32 %v11735_v33 }
0x28e8   :  { %v5471_v1 = vpack.c.bf16 %v5470_v4, %v5470_v4 }
0x28ea   :  { %10984 = vmatmul.mubr.msk.bf16.vlgmr.msra.gmra.mrb[164].mxu0 %vm4937_vm7, %v5471_v1 }
0x28eb   :  { %11000 = vmatpush3.bf16.msra.mxu0 %v11563_v0  ;;  %11003 = vmatprep.mubr.msk.bf16.mxu0 %vm12075_vm1, %v12074_v8 }
0x28ec   :  { %11001 = vmatprep.subr.bf16.mxu0 %v12074_v8 }
0x28ef   :  { %11002 = vmatpush3.bf16.msra.mxu0 %v11564_v2 }
0x28f0   :  { %11007 = vmatprep.subr.bf16.mxu0 %v12074_v8 }
0x28f1   :  { %v11737_v20 = vpop.eup %11736 }
0x28f2   :  { %11004 = vmatmul.mubr.msk.bf16.vlgmr.msra.gmra.mrb[168].mxu0 %vm149_vm0, %v5652_v12  ;;  %v5529_v42 = vmul.f32 %v11737_v20, %v11735_v33 }
0x28f3   :  { %11009 = vmatprep.mubr.msk.bf16.mxu0 %vm12075_vm1, %v12074_v8 }
0x28f4   :  { %v5530_v44 = vpack.c.bf16 %v5529_v42, %v5529_v42 }
0x28f6   :  { %v5532_v45 = vshrl.u32 %v5530_v44, 16  ;;  %v5642_v44 = vld [vmem:[#allocation8 + $0x30] sm:$0xf] }
0x292a   :  { %v5162_v14 = vpop.f32.mrb[152].mxu0 }
0x292b   :  { %v10949_v15 = vpop.f32.mrb[153].mxu0 }
0x292c   :  { %v5165_v11 = vpop.f32.mrb[154].mxu0 }
0x292d   :  { %v10950_v16 = vpop.f32.mrb[155].mxu0 }
0x2932   :  { %v5338_v21 = vpop.f32.mrb[156].mxu0 }
0x2933   :  { %v10967_v17 = vpop.f32.mrb[157].mxu0 }
0x2934   :  { %v5341_v26 = vpop.f32.mrb[158].mxu0 }
0x2935   :  { %v10968_v27 = vpop.f32.mrb[159].mxu0 }
0x293a   :  { %v5400_v6 = vpop.f32.mrb[160].mxu0 }
0x293b   :  { %v5407_v28 = vrot.slane %v5400_v6, 7  ;;  %v10973_v29 = vpop.f32.mrb[161].mxu0 }
0x293c   :  { %v5403_v23 = vpop.f32.mrb[162].mxu0 }
0x293d   :  { %v5409_v10 = vsel %vm2803_vm5, %v5338_v21, %v5407_v28  ;;  %v10974_v13 = vpop.f32.mrb[163].mxu0 }
0x293e   :  { %v5410_v41 = vpack.c.bf16 %v5409_v10, %v5409_v10 }
0x2976   :  { %v5224_v35 = vpop.f32.mrb[152].mxu1 }
0x2977   :  { %v5231_v36 = vrot.slane %v5224_v35, 7  ;;  %v10955_v37 = vpop.f32.mrb[153].mxu1 }
0x2978   :  { %v5227_v34 = vpop.f32.mrb[154].mxu1 }
0x2979   :  { %v5233_v22 = vsel %vm2803_vm5, %v5162_v14, %v5231_v36  ;;  %v10956_v38 = vpop.f32.mrb[155].mxu1 }
0x297a   :  { %v5234_v39 = vpack.c.bf16 %v5233_v22, %v5233_v22 }
0x297c   :  { %10960 = vmatmul.mubr.msk.bf16.vlgmr.msra.gmra.mrb[148].mxu1 %vm226_vm2, %v5234_v39 }
0x297d   :  { %10976 = vmatpush3.bf16.msra.mxu1 %v5415_v25  ;;  %10977 = vmatprep.mubr.msk.bf16.mxu1 %vm12075_vm1, %v12074_v8 }
0x297e   :  { %10987 = vmatprep.subr.bf16.mxu1 %v12074_v8 }
0x2988   :  { %10978 = vmatmul.mubr.msk.bf16.vlgmr.msra.gmra.mrb[148].mxu1 %vm226_vm2, %v5410_v41 }
0x2989   :  { %10988 = vmatpush3.bf16.msra.mxu1 %v5540_v43  ;;  %10989 = vmatprep.mubr.msk.bf16.mxu1 %vm12075_vm1, %v12074_v8 }
0x298a   :  { %10993 = vmatprep.subr.bf16.mxu1 %v12074_v8 }
0x2990   :  { %10990 = vmatmul.mubr.msk.bf16.vlgmr.msra.gmra.mrb[156].mxu1 %vm4937_vm7, %v5532_v45  ;;  %v5864_v45 = vsel %vm291_vm3, %v5642_v44, 0 }
0x2991   :  { %10995 = vmatprep.mubr.msk.bf16.mxu1 %vm12075_vm1, %v12074_v8  ;;  %10994 = vmatpush3.bf16.msra.mxu1 %v5591_v58 }
0x2992   :  { %11013 = vmatprep.subr.bf16.mxu1 %v12074_v8 }
0x29bd   :  { %v5514_v46 = vpop.f32.mrb[164].mxu0 }
0x29be   :  { %v10985_v47 = vpop.f32.mrb[165].mxu0 }
0x29bf   :  { %v5517_v60 = vpop.f32.mrb[166].mxu0 }
0x29c0   :  { %v10986_v48 = vpop.f32.mrb[167].mxu0 }
0x29c5   :  { %v5701_v50 = vpop.f32.mrb[168].mxu0 }
0x29c6   :  { %v5713_v51 = vadd.f32 %v9966_v49, %v5701_v50  ;;  %v11005_v54 = vpop.f32.mrb[169].mxu0 }
0x29c7   :  { %v5704_v7 = vpop.f32.mrb[170].mxu0 }
0x29c8   :  { %v5714_v56 = vpack.c.bf16 %v5713_v51, %v5713_v51  ;;  %v11006_v52 = vpop.f32.mrb[171].mxu0 }
0x29ca   :  { %v5721_v53 = vunpack.c.l.bf16 %v5714_v56  ;;  %v13098_v4 = vrot.slane %v5714_v56, 1  ;;  %v5804_v0 = vshrl.u32 %v5714_v56, 16 }
0x29cc   :  { %v5723_v55 = vrot.slane %v5721_v53, 2  ;;  %v13102_v1 = vrot.slane %v5804_v0, 1 }
0x29ce   :  { %5724 = vrot.lane.b32.xlu1 %v5723_v55, %s12076_s0 }
0x2a40   :  { %v5725_v59 = vpop.permute.xlu1 %5724 }
0x2a41   :  { %v5727_v61 = vmul.f32 %v5725_v59, %v5721_v53 }
0x2a43   :  { %v5789_v62 = vsel %vm4986_vm6, %v5727_v61, 0.0  ;;  %v5728_v63 = vsel %vm2633_vm4, %v5727_v61, 0.0 }
0x2a44   :  { %5790 = vadd.xlane.f32.xlu0 %v5789_v62  ;;  %5729 = vadd.xlane.f32.xlu1 %v5728_v63 }
0x2a55   :  { %5741 = vrot.lane.b32.xlu1 %v13098_v4, %s12063_s13 }
0x2a5a   :  { %5807 = vrot.lane.b32.xlu0 %v13102_v1, %s12063_s13 }
0x2a5e   :  { %5908 = vrot.lane.b32.xlu0 %v5727_v61, %s12078_s14 }
0x2a62   :  { %6084 = vrot.lane.b32.xlu0 %v5727_v61, %s12081_s3 }
0x2a63   :  { %v5576_v2 = vpop.f32.mrb[156].mxu1 }
0x2a64   :  { %v5583_v3 = vrot.slane %v5576_v2, 7  ;;  %v10991_v12 = vpop.f32.mrb[157].mxu1 }
0x2a65   :  { %v5579_v5 = vpop.f32.mrb[158].mxu1 }
0x2a66   :  { %v5585_v9 = vsel %vm2803_vm5, %v5514_v46, %v5583_v3  ;;  %v10992_v14 = vpop.f32.mrb[159].mxu1 }
0x2a67   :  { %v5586_v15 = vpack.c.bf16 %v5585_v9, %v5585_v9 }
0x2a69   :  { %10996 = vmatmul.mubr.msk.bf16.vlgmr.msra.gmra.mrb[148].mxu1 %vm226_vm2, %v5586_v15 }
0x2a6a   :  { %11015 = vmatprep.mubr.msk.bf16.mxu1 %vm12075_vm1, %v12074_v8 }
0x2ad1   :  { %v5730_v11 = vpop.xlane.xlu1 %5729  ;;  %v5791_v16 = vpop.xlane.xlu0 %5790 }
0x2ad2   :  { %v5731_v21 = vmul.f32 0.35355338, %v5730_v11  ;;  %v5792_v17 = vmul.f32 0.35355338, %v5791_v16 }
0x2ad4   :  { %v5732_v26 = vsub.f32 %v5731_v21, %v5731_v21  ;;  %v5793_v27 = vsub.f32 %v5792_v17, %v5792_v17 }
0x2ad5   :  { %v5742_v6 = vpop.permute.xlu1 %5741  ;;  %v5808_v28 = vpop.permute.xlu0 %5807 }
0x2ad6   :  { %v5733_v29 = vmul.f32 1.442695, %v5732_v26  ;;  %v5794_v23 = vmul.f32 1.442695, %v5793_v27  ;;  %v5747_v10 = vand.u32 %v5742_v6, %v13009_v24  ;;  %v5813_v13 = vand.u32 %v5808_v28, %v13009_v24 }
0x2ad8   :  { %11738 = vpow2.f32 %v5733_v29  ;;  %11008 = vmatpush3.bf16.msra.mxu0 %v5747_v10  ;;  %11014 = vmatpush3.bf16.msra.mxu1 %v5813_v13 }
0x2ad9   :  { %11740 = vpow2.f32 %v5794_v23  ;;  %v5909_v18 = vpop.permute.xlu0 %5908  ;;  %11025 = vmatprep.subr.bf16.mxu1 %v12074_v8  ;;  %11019 = vmatprep.subr.bf16.mxu0 %v12074_v8 }
0x2ada   :  { %v5970_v30 = vsel %vm4986_vm6, %v5909_v18, 0.0  ;;  %v5911_v31 = vsel %vm2633_vm4, %v5909_v18, 0.0 }
0x2adb   :  { %5971 = vadd.xlane.f32.xlu0 %v5970_v30  ;;  %5912 = vadd.xlane.f32.xlu1 %v5911_v31 }
0x2add   :  { %v6085_v32 = vpop.permute.xlu0 %6084 }
0x2ade   :  { %v6087_v33 = vsel %vm2633_vm4, %v6085_v32, 0.0  ;;  %v6146_v20 = vsel %vm4986_vm6, %v6085_v32, 0.0 }
0x2adf   :  { %6088 = vadd.xlane.f32.xlu0 %v6087_v33 }
0x2ae2   :  { %v11739_v35 = vpop.eup %11738 }
0x2ae3   :  { %v11741_v36 = vpop.eup %11740  ;;  %11742 = vrcp.f32 %v11739_v35 }
0x2ae4   :  { %11744 = vrcp.f32 %v11741_v36 }
0x2aec   :  { %5922 = vrot.lane.b32.xlu1 %v13098_v4, %s12079_s22 }
0x2aed   :  { %v11743_v37 = vpop.eup %11742 }
0x2aee   :  { %v11745_v19 = vpop.eup %11744  ;;  %v5737_v34 = vmul.f32 %v11743_v37, %v11739_v35 }
0x2aef   :  { %v5798_v22 = vmul.f32 %v11745_v19, %v11741_v36 }
0x2af0   :  { %v5738_v38 = vpack.c.bf16 %v5737_v34, %v5737_v34 }
0x2af1   :  { %v5799_v39 = vpack.c.bf16 %v5798_v22, %v5798_v22 }
0x2af2   :  { %11010 = vmatmul.mubr.msk.bf16.vlgmr.msra.gmra.mrb[172].mxu0 %vm4937_vm7, %v5738_v38 }
0x2af3   :  { %v5801_v25 = vshrl.u32 %v5799_v39, 16  ;;  %11021 = vmatprep.mubr.msk.bf16.mxu0 %vm12075_vm1, %v12074_v8  ;;  %11020 = vmatpush3.bf16.msra.mxu0 %v5864_v45 }
0x2af4   :  { %11031 = vmatprep.subr.bf16.mxu0 %v12074_v8 }
0x2af5   :  { %11016 = vmatmul.mubr.msk.bf16.vlgmr.msra.gmra.mrb[160].mxu1 %vm4937_vm7, %v5801_v25  ;;  %6260 = vrot.lane.b32.xlu0 %v5727_v61, %s12084_s15 }
0x2af6   :  { %11027 = vmatprep.mubr.msk.bf16.mxu1 %vm12075_vm1, %v12074_v8 }
0x2af9   :  { %6098 = vrot.lane.b32.xlu0 %v13098_v4, %s12082_s27 }
0x2b10   :  { %6147 = vadd.xlane.f32.xlu1 %v6146_v20 }
0x2b21   :  { %5984 = vrot.lane.b32.xlu1 %v13102_v1, %s12079_s22 }
0x2b25   :  { %6160 = vrot.lane.b32.xlu1 %v13102_v1, %s12082_s27 }
0x2b29   :  { %6274 = vrot.lane.b32.xlu1 %v13098_v4, %s12085_s16 }
0x2b3c   :  { %v13137_v40 = vpop.f32.mrb[148].mxu1 }
0x2b3d   :  { %v10997_v41 = vpop.f32.mrb[149].mxu1 }
0x2b3e   :  { %v5630_v42 = vpop.f32.mrb[150].mxu1 }
0x2b3f   :  { %v10998_v43 = vpop.f32.mrb[151].mxu1 }
0x2b68   :  { %v5913_v46 = vpop.xlane.xlu1 %5912  ;;  %v5972_v47 = vpop.xlane.xlu0 %5971 }
0x2b69   :  { %v5914_v60 = vmul.f32 0.35355338, %v5913_v46  ;;  %v5973_v16 = vmul.f32 0.35355338, %v5972_v47 }
0x2b6b   :  { %v5915_v48 = vsub.f32 %v5914_v60, %v5914_v60  ;;  %v5974_v17 = vsub.f32 %v5973_v16, %v5973_v16 }
0x2b6c   :  { %v5923_v49 = vpop.permute.xlu1 %5922  ;;  %v6089_v50 = vpop.xlane.xlu0 %6088 }
0x2b6d   :  { %v5916_v51 = vmul.f32 1.442695, %v5915_v48  ;;  %v5928_v54 = vand.u32 %v5923_v49, %v13009_v24  ;;  %v6090_v7 = vmul.f32 0.35355338, %v6089_v50  ;;  %v5975_v27 = vmul.f32 1.442695, %v5974_v17 }
0x2b6e   :  { %v11565_v49 = vld [vmem:[#allocation5 + $0x50] sm:$0xff]  }
0x2b6f   :  { %11746 = vpow2.f32 %v5916_v51  ;;  %v6091_v56 = vsub.f32 %v6090_v7, %v6090_v7  ;;  %11026 = vmatpush3.bf16.msra.mxu1 %v5928_v54  ;;  %v9949_v51 = vld [vmem:[%s13709_s5 + $0x1] ss:$0 sm:$0xff]  ;;  %v11566_v54 = vld [vmem:[#allocation5 + $0x58] sm:$0xff]  }
0x2b70   :  { %v6261_v52 = vpop.permute.xlu0 %6260  ;;  %11043 = vmatprep.subr.bf16.mxu1 %v12074_v8  ;;  %v11427_v7 = vadd.f32 %v9949_v51, %v13137_v40 }
0x2b71   :  { %v6092_v53 = vmul.f32 1.442695, %v6091_v56  ;;  %v6322_v55 = vsel %vm4986_vm6, %v6261_v52, 0.0  ;;  %v6263_v57 = vsel %vm2633_vm4, %v6261_v52, 0.0  ;;  %v5643_v52 = vld [vmem:[#allocation8 + $0x34] sm:$0xf] }
0x2b72   :  { %6323 = vadd.xlane.f32.xlu1 %v6322_v55  ;;  %6264 = vadd.xlane.f32.xlu0 %v6263_v57  ;;  %v6450_v56 = vpack.c.bf16 %v11427_v7, %v11427_v7 }
0x2b73   :  { %11748 = vpow2.f32 %v6092_v53  ;;  %v6041_v53 = vsel %vm291_vm3, %v5643_v52, 0 }
0x2b74   :  { %v6099_v62 = vpop.permute.xlu0 %6098 }
0x2b75   :  { %v6104_v2 = vand.u32 %v6099_v62, %v13009_v24 }
0x2b79   :  { %v11747_v58 = vpop.eup %11746 }
0x2b7a   :  { %11750 = vrcp.f32 %v11747_v58 }
0x2b7d   :  { %v11749_v59 = vpop.eup %11748 }
0x2b7e   :  { %11752 = vrcp.f32 %v11749_v59 }
0x2b84   :  { %v11751_v61 = vpop.eup %11750 }
0x2b85   :  { %v5920_v63 = vmul.f32 %v11751_v61, %v11747_v58 }
0x2b87   :  { %v5921_v4 = vpack.c.bf16 %v5920_v63, %v5920_v63 }
0x2b88   :  { %v11753_v0 = vpop.eup %11752  ;;  %6336 = vrot.lane.b32.xlu0 %v13102_v1, %s12085_s16 }
0x2b89   :  { %11028 = vmatmul.mubr.msk.bf16.vlgmr.msra.gmra.mrb[164].mxu1 %vm4937_vm7, %v5921_v4  ;;  %v6096_v3 = vmul.f32 %v11753_v0, %v11749_v59 }
0x2b8a   :  { %11044 = vmatpush3.bf16.msra.mxu1 %v6104_v2  ;;  %11045 = vmatprep.mubr.msk.bf16.mxu1 %vm12075_vm1, %v12074_v8 }
0x2b8b   :  { %11049 = vmatprep.subr.bf16.mxu1 %v12074_v8  ;;  %v6097_v12 = vpack.c.bf16 %v6096_v3, %v6096_v3 }
0x2b91   :  { %11046 = vmatmul.mubr.msk.bf16.vlgmr.msra.gmra.mrb[168].mxu1 %vm4937_vm7, %v6097_v12 }
0x2b92   :  { %11051 = vmatprep.mubr.msk.bf16.mxu1 %vm12075_vm1, %v12074_v8 }
0x2b9d   :  { %v6148_v5 = vpop.xlane.xlu1 %6147 }
0x2b9e   :  { %v6149_v9 = vmul.f32 0.35355338, %v6148_v5 }
0x2ba0   :  { %v6150_v14 = vsub.f32 %v6149_v9, %v6149_v9 }
0x2ba1   :  { %v5985_v15 = vpop.permute.xlu1 %5984 }
0x2ba2   :  { %v6151_v1 = vmul.f32 1.442695, %v6150_v14  ;;  %v5990_v20 = vand.u32 %v5985_v15, %v13009_v24 }
0x2ba4   :  { %11754 = vpow2.f32 %v6151_v1 }
0x2ba5   :  { %v6161_v11 = vpop.permute.xlu1 %6160 }
0x2ba6   :  { %v6166_v21 = vand.u32 %v6161_v11, %v13009_v24 }
0x2ba8   :  { %11050 = vmatpush3.bf16.msra.mxu1 %v6166_v21 }
0x2ba9   :  { %11061 = vmatprep.subr.bf16.mxu1 %v12074_v8  ;;  %v6275_v23 = vpop.permute.xlu1 %6274 }
0x2baa   :  { %v6280_v18 = vand.u32 %v6275_v23, %v13009_v24 }
0x2bae   :  { %v11755_v26 = vpop.eup %11754 }
0x2baf   :  { %11756 = vrcp.f32 %v11755_v26 }
0x2bb0   :  { %11758 = vpow2.f32 %v5975_v27 }
0x2bb9   :  { %v11757_v6 = vpop.eup %11756 }
0x2bba   :  { %v6155_v28 = vmul.f32 %v11757_v6, %v11755_v26  ;;  %v11759_v29 = vpop.eup %11758  ;;  %v5644_v26 = vld [vmem:[#allocation8 + $0x38] sm:$0xf] }
0x2bbb   :  { %11760 = vrcp.f32 %v11759_v29  ;;  %v6217_v23 = vsel %vm291_vm3, %v5644_v26, 0 }
0x2bbc   :  { %v6156_v10 = vpack.c.bf16 %v6155_v28, %v6155_v28 }
0x2bbe   :  { %v6158_v13 = vshrl.u32 %v6156_v10, 16 }
0x2bc0   :  { %11052 = vmatmul.mubr.msk.bf16.vlgmr.msra.gmra.mrb[172].mxu1 %vm4937_vm7, %v6158_v13 }
0x2bc1   :  { %11062 = vmatpush3.bf16.msra.mxu1 %v6280_v18  ;;  %11063 = vmatprep.mubr.msk.bf16.mxu1 %vm12075_vm1, %v12074_v8 }
0x2bc2   :  { %11079 = vmatprep.subr.bf16.mxu1 %v12074_v8 }
0x2bc5   :  { %v5783_v30 = vpop.f32.mrb[172].mxu0  ;;  %v11761_v36 = vpop.eup %11760 }
0x2bc6   :  { %v11011_v31 = vpop.f32.mrb[173].mxu0  ;;  %v5979_v25 = vmul.f32 %v11761_v36, %v11759_v29 }
0x2bc7   :  { %v5786_v32 = vpop.f32.mrb[174].mxu0 }
0x2bc8   :  { %v5849_v33 = vpop.f32.mrb[160].mxu1  ;;  %v11012_v35 = vpop.f32.mrb[175].mxu0  ;;  %v5980_v41 = vpack.c.bf16 %v5979_v25, %v5979_v25 }
0x2bc9   :  { %v5856_v37 = vrot.slane %v5849_v33, 7  ;;  %v11017_v19 = vpop.f32.mrb[161].mxu1 }
0x2bca   :  { %v5852_v34 = vpop.f32.mrb[162].mxu1  ;;  %v5982_v42 = vshrl.u32 %v5980_v41, 16 }
0x2bcb   :  { %v5858_v22 = vsel %vm2803_vm5, %v5783_v30, %v5856_v37  ;;  %v11018_v38 = vpop.f32.mrb[163].mxu1  ;;  %v9981_v34 = vld [vmem:[#allocation7 + $0x5] ss:$0 sm:$0xff] }
0x2bcc   :  { %v5859_v39 = vpack.c.bf16 %v5858_v22, %v5858_v22 }
0x2bce   :  { %11022 = vmatmul.mubr.msk.bf16.vlgmr.msra.gmra.mrb[176].mxu0 %vm226_vm2, %v5859_v39 }
0x2bcf   :  { %11032 = vmatpush3.bf16.msra.mxu0 %v5990_v20  ;;  %11033 = vmatprep.mubr.msk.bf16.mxu0 %vm12075_vm1, %v12074_v8 }
0x2bd0   :  { %11037 = vmatprep.subr.bf16.mxu0 %v12074_v8 }
0x2bd6   :  { %11034 = vmatmul.mubr.msk.bf16.vlgmr.msra.gmra.mrb[180].mxu0 %vm4937_vm7, %v5982_v42 }
0x2bd7   :  { %11039 = vmatprep.mubr.msk.bf16.mxu0 %vm12075_vm1, %v12074_v8  ;;  %11038 = vmatpush3.bf16.msra.mxu0 %v6041_v53 }
0x2bd8   :  { %11055 = vmatprep.subr.bf16.mxu0 %v12074_v8 }
0x2bff   :  { %v6265_v43 = vpop.xlane.xlu0 %6264  ;;  %v6324_v4 = vpop.xlane.xlu1 %6323 }
0x2c00   :  { %v6266_v44 = vmul.f32 0.35355338, %v6265_v43  ;;  %v6325_v0 = vmul.f32 0.35355338, %v6324_v4  ;;  %v5645_v43 = vld [vmem:[#allocation8 + $0x3c] sm:$0xf] }
0x2c02   :  { %v6267_v45 = vsub.f32 %v6266_v44, %v6266_v44  ;;  %v6326_v15 = vsub.f32 %v6325_v0, %v6325_v0  ;;  %v6393_v44 = vsel %vm291_vm3, %v5645_v43, 0 }
0x2c03   :  { %v6337_v13 = vpop.permute.xlu0 %6336 }
0x2c04   :  { %v6268_v46 = vmul.f32 1.442695, %v6267_v45  ;;  %v6327_v1 = vmul.f32 1.442695, %v6326_v15  ;;  %v6342_v31 = vand.u32 %v6337_v13, %v13009_v24 }
0x2c06   :  { %11762 = vpow2.f32 %v6268_v46 }
0x2c10   :  { %v11763_v47 = vpop.eup %11762 }
0x2c11   :  { %11764 = vrcp.f32 %v11763_v47 }
0x2c12   :  { %11766 = vpow2.f32 %v6327_v1 }
0x2c1b   :  { %v11765_v60 = vpop.eup %11764 }
0x2c1c   :  { %v6272_v48 = vmul.f32 %v11765_v60, %v11763_v47  ;;  %v11767_v11 = vpop.eup %11766 }
0x2c1d   :  { %11768 = vrcp.f32 %v11767_v11 }
0x2c1e   :  { %v6273_v50 = vpack.c.bf16 %v6272_v48, %v6272_v48 }
0x2c20   :  { %11064 = vmatmul.mubr.msk.bf16.vlgmr.msra.gmra.mrb[176].mxu1 %vm4937_vm7, %v6273_v50 }
0x2c21   :  { %11080 = vmatpush3.bf16.msra.mxu1 %v11565_v49  ;;  %11083 = vmatprep.mubr.msk.bf16.mxu1 %vm12075_vm1, %v12074_v8 }
0x2c22   :  { %11081 = vmatprep.subr.bf16.mxu1 %v12074_v8 }
0x2c25   :  { %11082 = vmatpush3.bf16.msra.mxu1 %v11566_v54 }
0x2c26   :  { %11087 = vmatprep.subr.bf16.mxu1 %v12074_v8 }
0x2c27   :  { %v11769_v10 = vpop.eup %11768 }
0x2c28   :  { %11084 = vmatmul.mubr.msk.bf16.vlgmr.msra.gmra.mrb[180].mxu1 %vm149_vm0, %v6450_v56  ;;  %v6331_v30 = vmul.f32 %v11769_v10, %v11767_v11 }
0x2c29   :  { %11089 = vmatprep.mubr.msk.bf16.mxu1 %vm12075_vm1, %v12074_v8 }
0x2c2a   :  { %v6332_v32 = vpack.c.bf16 %v6331_v30, %v6331_v30 }
0x2c2c   :  { %v6334_v33 = vshrl.u32 %v6332_v32, 16 }
0x2c5c   :  { %v5964_v55 = vpop.f32.mrb[164].mxu1 }
0x2c5d   :  { %v11029_v57 = vpop.f32.mrb[165].mxu1 }
0x2c5e   :  { %v5967_v40 = vpop.f32.mrb[166].mxu1 }
0x2c5f   :  { %v11030_v58 = vpop.f32.mrb[167].mxu1 }
0x2c64   :  { %v6140_v59 = vpop.f32.mrb[168].mxu1 }
0x2c65   :  { %v11047_v61 = vpop.f32.mrb[169].mxu1 }
0x2c66   :  { %v6143_v62 = vpop.f32.mrb[170].mxu1 }
0x2c67   :  { %v11048_v63 = vpop.f32.mrb[171].mxu1 }
0x2c93   :  { %v6202_v2 = vpop.f32.mrb[172].mxu1 }
0x2c94   :  { %v6209_v3 = vrot.slane %v6202_v2, 7  ;;  %v11053_v12 = vpop.f32.mrb[173].mxu1 }
0x2c95   :  { %v6205_v5 = vpop.f32.mrb[174].mxu1 }
0x2c96   :  { %v6211_v9 = vsel %vm2803_vm5, %v6140_v59, %v6209_v3  ;;  %v11054_v14 = vpop.f32.mrb[175].mxu1 }
0x2c97   :  { %v6212_v18 = vpack.c.bf16 %v6211_v9, %v6211_v9 }
0x2ca9   :  { %v6026_v16 = vpop.f32.mrb[180].mxu0 }
0x2caa   :  { %v6033_v21 = vrot.slane %v6026_v16, 7  ;;  %v11035_v17 = vpop.f32.mrb[181].mxu0 }
0x2cab   :  { %v6029_v27 = vpop.f32.mrb[182].mxu0 }
0x2cac   :  { %v6035_v6 = vsel %vm2803_vm5, %v5964_v55, %v6033_v21  ;;  %v11036_v28 = vpop.f32.mrb[183].mxu0 }
0x2cad   :  { %v6036_v29 = vpack.c.bf16 %v6035_v6, %v6035_v6 }
0x2caf   :  { %11040 = vmatmul.mubr.msk.bf16.vlgmr.msra.gmra.mrb[176].mxu0 %vm226_vm2, %v6036_v29 }
0x2cb0   :  { %11056 = vmatpush3.bf16.msra.mxu0 %v6217_v23  ;;  %11057 = vmatprep.mubr.msk.bf16.mxu0 %vm12075_vm1, %v12074_v8 }
0x2cb1   :  { %11067 = vmatprep.subr.bf16.mxu0 %v12074_v8 }
0x2cbb   :  { %11058 = vmatmul.mubr.msk.bf16.vlgmr.msra.gmra.mrb[176].mxu0 %vm226_vm2, %v6212_v18  ;;  %v6444_v18 = vld [vmem:[#allocation8 + $0x50] sm:$0xf] }
0x2cbc   :  { %11068 = vmatpush3.bf16.msra.mxu0 %v6342_v31  ;;  %11069 = vmatprep.mubr.msk.bf16.mxu0 %vm12075_vm1, %v12074_v8  ;;  %v6659_v30 = vsel %vm291_vm3, %v6444_v18, 0 }
0x2cbd   :  { %11073 = vmatprep.subr.bf16.mxu0 %v12074_v8 }
0x2cc3   :  { %11070 = vmatmul.mubr.msk.bf16.vlgmr.msra.gmra.mrb[184].mxu0 %vm4937_vm7, %v6334_v33 }
0x2cc4   :  { %11075 = vmatprep.mubr.msk.bf16.mxu0 %vm12075_vm1, %v12074_v8  ;;  %11074 = vmatpush3.bf16.msra.mxu0 %v6393_v44 }
0x2cc5   :  { %11093 = vmatprep.subr.bf16.mxu0 %v12074_v8 }
0x2cf3   :  { %v6316_v35 = vpop.f32.mrb[176].mxu1 }
0x2cf4   :  { %v11065_v36 = vpop.f32.mrb[177].mxu1 }
0x2cf5   :  { %v6319_v37 = vpop.f32.mrb[178].mxu1 }
0x2cf6   :  { %v11066_v19 = vpop.f32.mrb[179].mxu1 }
0x2cfb   :  { %v6506_v22 = vpop.f32.mrb[180].mxu1 }
0x2cfc   :  { %v6507_v38 = vadd.f32 %v9981_v34, %v6506_v22  ;;  %v11085_v39 = vpop.f32.mrb[181].mxu1 }
0x2cfd   :  { %v6509_v25 = vpop.f32.mrb[182].mxu1 }
0x2cfe   :  { %v13200_v20 = vpack.c.bf16 %v6507_v38, %v6507_v38  ;;  %v11086_v41 = vpop.f32.mrb[183].mxu1 }
0x2d00   :  { %v6519_v42 = vunpack.c.l.bf16 %v13200_v20  ;;  %v13211_v48 = vshrl.u32 %v13200_v20, 16 }
0x2d02   :  { %6521 = vrot.lane.b32.xlu1 %v6519_v42, %s12076_s0 }
0x2d74   :  { %v6522_v45 = vpop.permute.xlu1 %6521 }
0x2d75   :  { %v6524_v46 = vmul.f32 %v6522_v45, %v6519_v42 }
0x2d77   :  { %v6585_v47 = vsel %vm4986_vm6, %v6524_v46, 0.0  ;;  %v6525_v60 = vsel %vm2633_vm4, %v6524_v46, 0.0 }
0x2d78   :  { %6586 = vadd.xlane.f32.xlu0 %v6585_v47  ;;  %6526 = vadd.xlane.f32.xlu1 %v6525_v60 }
0x2d89   :  { %6537 = vrot.lane.b32.xlu1 %v13200_v20, %s12063_s13 }
0x2d8e   :  { %6602 = vrot.lane.b32.xlu0 %v13211_v48, %s12063_s13 }
0x2d92   :  { %6703 = vrot.lane.b32.xlu0 %v6524_v46, %s12078_s14 }
0x2d96   :  { %v6378_v49 = vpop.f32.mrb[184].mxu0  ;;  %6879 = vrot.lane.b32.xlu0 %v6524_v46, %s12081_s3 }
0x2d97   :  { %v6385_v50 = vrot.slane %v6378_v49, 7  ;;  %v11071_v51 = vpop.f32.mrb[185].mxu0 }
0x2d98   :  { %v6381_v54 = vpop.f32.mrb[186].mxu0 }
0x2d99   :  { %v6387_v7 = vsel %vm2803_vm5, %v6316_v35, %v6385_v50  ;;  %v11072_v56 = vpop.f32.mrb[187].mxu0 }
0x2d9a   :  { %v6388_v52 = vpack.c.bf16 %v6387_v7, %v6387_v7 }
0x2d9c   :  { %11076 = vmatmul.mubr.msk.bf16.vlgmr.msra.gmra.mrb[176].mxu0 %vm226_vm2, %v6388_v52 }
0x2d9d   :  { %11095 = vmatprep.mubr.msk.bf16.mxu0 %vm12075_vm1, %v12074_v8 }
0x2e05   :  { %v6587_v53 = vpop.xlane.xlu0 %6586  ;;  %v6527_v55 = vpop.xlane.xlu1 %6526 }
0x2e06   :  { %v6588_v57 = vmul.f32 0.35355338, %v6587_v53  ;;  %v6528_v40 = vmul.f32 0.35355338, %v6527_v55 }
0x2e08   :  { %v6589_v58 = vsub.f32 %v6588_v57, %v6588_v57  ;;  %v6529_v59 = vsub.f32 %v6528_v40, %v6528_v40 }
0x2e09   :  { %v6603_v61 = vpop.permute.xlu0 %6602  ;;  %v6538_v62 = vpop.permute.xlu1 %6537 }
0x2e0a   :  { %v6590_v63 = vmul.f32 1.442695, %v6589_v58  ;;  %v6530_v4 = vmul.f32 1.442695, %v6529_v59  ;;  %v6608_v0 = vand.u32 %v6603_v61, %v13009_v24  ;;  %v6543_v2 = vand.u32 %v6538_v62, %v13009_v24 }
0x2e0c   :  { %11770 = vpow2.f32 %v6590_v63  ;;  %11088 = vmatpush3.bf16.msra.mxu1 %v6543_v2  ;;  %11094 = vmatpush3.bf16.msra.mxu0 %v6608_v0 }
0x2e0d   :  { %11772 = vpow2.f32 %v6530_v4  ;;  %v6704_v3 = vpop.permute.xlu0 %6703  ;;  %11105 = vmatprep.subr.bf16.mxu0 %v12074_v8  ;;  %11099 = vmatprep.subr.bf16.mxu1 %v12074_v8 }
0x2e0e   :  { %v6765_v12 = vsel %vm4986_vm6, %v6704_v3, 0.0  ;;  %v6706_v5 = vsel %vm2633_vm4, %v6704_v3, 0.0 }
0x2e0f   :  { %6766 = vadd.xlane.f32.xlu0 %v6765_v12  ;;  %6707 = vadd.xlane.f32.xlu1 %v6706_v5 }
0x2e11   :  { %v6880_v9 = vpop.permute.xlu0 %6879 }
0x2e12   :  { %v6882_v14 = vsel %vm2633_vm4, %v6880_v9, 0.0  ;;  %v6941_v28 = vsel %vm4986_vm6, %v6880_v9, 0.0 }
0x2e13   :  { %6883 = vadd.xlane.f32.xlu0 %v6882_v14 }
0x2e16   :  { %v11771_v15 = vpop.eup %11770 }
0x2e17   :  { %v11773_v1 = vpop.eup %11772  ;;  %11774 = vrcp.f32 %v11771_v15 }
0x2e18   :  { %11776 = vrcp.f32 %v11773_v1 }
0x2e20   :  { %6717 = vrot.lane.b32.xlu1 %v13200_v20, %s12079_s22 }
0x2e21   :  { %v11775_v11 = vpop.eup %11774 }
0x2e22   :  { %v11777_v16 = vpop.eup %11776  ;;  %v6594_v21 = vmul.f32 %v11775_v11, %v11771_v15 }
0x2e23   :  { %v6534_v17 = vmul.f32 %v11777_v16, %v11773_v1 }
0x2e24   :  { %v6595_v26 = vpack.c.bf16 %v6594_v21, %v6594_v21 }
0x2e25   :  { %v6535_v27 = vpack.c.bf16 %v6534_v17, %v6534_v17 }
0x2e26   :  { %v6597_v6 = vshrl.u32 %v6595_v26, 16 }
0x2e27   :  { %11090 = vmatmul.mubr.msk.bf16.vlgmr.msra.gmra.mrb[184].mxu1 %vm4937_vm7, %v6535_v27 }
0x2e28   :  { %11096 = vmatmul.mubr.msk.bf16.vlgmr.msra.gmra.mrb[188].mxu0 %vm4937_vm7, %v6597_v6  ;;  %11101 = vmatprep.mubr.msk.bf16.mxu1 %vm12075_vm1, %v12074_v8 }
0x2e29   :  { %7055 = vrot.lane.b32.xlu0 %v6524_v46, %s12084_s15  ;;  %11107 = vmatprep.mubr.msk.bf16.mxu0 %vm12075_vm1, %v12074_v8 }
0x2e2a   :  { %11100 = vmatpush3.bf16.msra.mxu1 %v6659_v30 }
0x2e2b   :  { %11111 = vmatprep.subr.bf16.mxu1 %v12074_v8 }
0x2e2d   :  { %6893 = vrot.lane.b32.xlu0 %v13200_v20, %s12082_s27 }
0x2e44   :  { %6942 = vadd.xlane.f32.xlu1 %v6941_v28 }
0x2e55   :  { %6779 = vrot.lane.b32.xlu1 %v13211_v48, %s12079_s22 }
0x2e59   :  { %6955 = vrot.lane.b32.xlu1 %v13211_v48, %s12082_s27 }
0x2e5d   :  { %7069 = vrot.lane.b32.xlu1 %v13200_v20, %s12085_s16 }
0x2e6f   :  { %v13246_v29 = vpop.f32.mrb[176].mxu0 }
0x2e70   :  { %v11077_v23 = vpop.f32.mrb[177].mxu0 }
0x2e71   :  { %v6432_v10 = vpop.f32.mrb[178].mxu0 }
0x2e72   :  { %v11078_v13 = vpop.f32.mrb[179].mxu0 }
0x2e9c   :  { %v6767_v31 = vpop.xlane.xlu0 %6766  ;;  %v6708_v32 = vpop.xlane.xlu1 %6707 }
0x2e9d   :  { %v6709_v33 = vmul.f32 0.35355338, %v6708_v32  ;;  %v6768_v53 = vmul.f32 0.35355338, %v6767_v31 }
0x2e9f   :  { %v6710_v35 = vsub.f32 %v6709_v33, %v6709_v33  ;;  %v6769_v40 = vsub.f32 %v6768_v53, %v6768_v53 }
0x2ea0   :  { %v6884_v36 = vpop.xlane.xlu0 %6883  ;;  %v6718_v37 = vpop.permute.xlu1 %6717 }
0x2ea1   :  { %v6711_v19 = vmul.f32 1.442695, %v6710_v35  ;;  %v6885_v34 = vmul.f32 0.35355338, %v6884_v36  ;;  %v6723_v22 = vand.u32 %v6718_v37, %v13009_v24  ;;  %v6770_v58 = vmul.f32 1.442695, %v6769_v40 }
0x2ea2   :  { %v11567_v36 = vld [vmem:[#allocation5 + $0x70] sm:$0xff]  }
0x2ea3   :  { %v6886_v38 = vsub.f32 %v6885_v34, %v6885_v34  ;;  %11106 = vmatpush3.bf16.msra.mxu0 %v6723_v22  ;;  %11778 = vpow2.f32 %v6711_v19  ;;  %v9967_v19 = vld [vmem:[%s13709_s5 + $0x3] ss:$0 sm:$0xff]  ;;  %v11568_v34 = vld [vmem:[#allocation5 + $0x78] sm:$0xff]  }
0x2ea4   :  { %v7056_v39 = vpop.permute.xlu0 %7055  ;;  %11123 = vmatprep.subr.bf16.mxu0 %v12074_v8  ;;  %v11428_v22 = vadd.f32 %v9967_v19, %v13246_v29 }
0x2ea5   :  { %v6887_v25 = vmul.f32 1.442695, %v6886_v38  ;;  %v7058_v20 = vsel %vm2633_vm4, %v7056_v39, 0.0  ;;  %v7117_v41 = vsel %vm4986_vm6, %v7056_v39, 0.0  ;;  %v6445_v39 = vld [vmem:[#allocation8 + $0x54] sm:$0xf] }
0x2ea6   :  { %7059 = vadd.xlane.f32.xlu0 %v7058_v20  ;;  %7118 = vadd.xlane.f32.xlu1 %v7117_v41  ;;  %v7245_v38 = vpack.c.bf16 %v11428_v22, %v11428_v22 }
0x2ea7   :  { %11780 = vpow2.f32 %v6887_v25  ;;  %v6836_v25 = vsel %vm291_vm3, %v6445_v39, 0 }
0x2ea8   :  { %v6894_v45 = vpop.permute.xlu0 %6893 }
0x2ea9   :  { %v6899_v49 = vand.u32 %v6894_v45, %v13009_v24 }
0x2ead   :  { %v11779_v42 = vpop.eup %11778 }
0x2eae   :  { %11782 = vrcp.f32 %v11779_v42 }
0x2eb1   :  { %v11781_v43 = vpop.eup %11780 }
0x2eb2   :  { %11784 = vrcp.f32 %v11781_v43 }
0x2eb8   :  { %v11783_v44 = vpop.eup %11782 }
0x2eb9   :  { %v6715_v46 = vmul.f32 %v11783_v44, %v11779_v42 }
0x2ebb   :  { %v6716_v47 = vpack.c.bf16 %v6715_v46, %v6715_v46 }
0x2ebc   :  { %7131 = vrot.lane.b32.xlu0 %v13211_v48, %s12085_s16  ;;  %v11785_v60 = vpop.eup %11784 }
0x2ebd   :  { %11108 = vmatmul.mubr.msk.bf16.vlgmr.msra.gmra.mrb[192].mxu0 %vm4937_vm7, %v6716_v47  ;;  %v6891_v50 = vmul.f32 %v11785_v60, %v11781_v43 }
0x2ebe   :  { %11124 = vmatpush3.bf16.msra.mxu0 %v6899_v49  ;;  %11125 = vmatprep.mubr.msk.bf16.mxu0 %vm12075_vm1, %v12074_v8 }
0x2ebf   :  { %11129 = vmatprep.subr.bf16.mxu0 %v12074_v8  ;;  %v6892_v51 = vpack.c.bf16 %v6891_v50, %v6891_v50 }
0x2ec5   :  { %11126 = vmatmul.mubr.msk.bf16.vlgmr.msra.gmra.mrb[196].mxu0 %vm4937_vm7, %v6892_v51 }
0x2ec6   :  { %11131 = vmatprep.mubr.msk.bf16.mxu0 %vm12075_vm1, %v12074_v8 }
0x2ed1   :  { %v6943_v48 = vpop.xlane.xlu1 %6942 }
0x2ed2   :  { %v6944_v54 = vmul.f32 0.35355338, %v6943_v48 }
0x2ed4   :  { %v6945_v7 = vsub.f32 %v6944_v54, %v6944_v54 }
0x2ed5   :  { %v6780_v56 = vpop.permute.xlu1 %6779 }
0x2ed6   :  { %v6946_v52 = vmul.f32 1.442695, %v6945_v7  ;;  %v6785_v28 = vand.u32 %v6780_v56, %v13009_v24 }
0x2ed8   :  { %11786 = vpow2.f32 %v6946_v52 }
0x2ed9   :  { %v6956_v55 = vpop.permute.xlu1 %6955 }
0x2eda   :  { %v6961_v57 = vand.u32 %v6956_v55, %v13009_v24 }
0x2edc   :  { %11130 = vmatpush3.bf16.msra.mxu0 %v6961_v57 }
0x2edd   :  { %11141 = vmatprep.subr.bf16.mxu0 %v12074_v8  ;;  %v7070_v4 = vpop.permute.xlu1 %7069 }
0x2ede   :  { %v7075_v3 = vand.u32 %v7070_v4, %v13009_v24 }
0x2ee2   :  { %v11787_v59 = vpop.eup %11786 }
0x2ee3   :  { %11788 = vrcp.f32 %v11787_v59 }
0x2ee4   :  { %11790 = vpow2.f32 %v6770_v58  ;;  %v6446_v58 = vld [vmem:[#allocation8 + $0x58] sm:$0xf] }
0x2ee5   :  { %v7012_v4 = vsel %vm291_vm3, %v6446_v58, 0 }
0x2eed   :  { %v11789_v61 = vpop.eup %11788 }
0x2eee   :  { %v6950_v62 = vmul.f32 %v11789_v61, %v11787_v59  ;;  %v11791_v63 = vpop.eup %11790 }
0x2eef   :  { %11792 = vrcp.f32 %v11791_v63 }
0x2ef0   :  { %v6951_v0 = vpack.c.bf16 %v6950_v62, %v6950_v62 }
0x2ef2   :  { %v6953_v2 = vshrl.u32 %v6951_v0, 16 }
0x2ef4   :  { %11132 = vmatmul.mubr.msk.bf16.vlgmr.msra.gmra.mrb[200].mxu0 %vm4937_vm7, %v6953_v2 }
0x2ef5   :  { %11142 = vmatpush3.bf16.msra.mxu0 %v7075_v3  ;;  %11143 = vmatprep.mubr.msk.bf16.mxu0 %vm12075_vm1, %v12074_v8 }
0x2ef6   :  { %11159 = vmatprep.subr.bf16.mxu0 %v12074_v8 }
0x2ef9   :  { %v11793_v14 = vpop.eup %11792 }
0x2efa   :  { %v6579_v12 = vpop.f32.mrb[184].mxu1  ;;  %v6774_v6 = vmul.f32 %v11793_v14, %v11791_v63 }
0x2efb   :  { %v11091_v5 = vpop.f32.mrb[185].mxu1  ;;  %v6644_v9 = vpop.f32.mrb[188].mxu0 }
0x2efc   :  { %v6582_v15 = vpop.f32.mrb[186].mxu1  ;;  %v6651_v1 = vrot.slane %v6644_v9, 7  ;;  %v11097_v11 = vpop.f32.mrb[189].mxu0  ;;  %v6775_v23 = vpack.c.bf16 %v6774_v6, %v6774_v6 }
0x2efd   :  { %v11092_v16 = vpop.f32.mrb[187].mxu1  ;;  %v6647_v21 = vpop.f32.mrb[190].mxu0 }
0x2efe   :  { %v6653_v17 = vsel %vm2803_vm5, %v6579_v12, %v6651_v1  ;;  %v11098_v26 = vpop.f32.mrb[191].mxu0  ;;  %v6777_v10 = vshrl.u32 %v6775_v23, 16  ;;  %v9999_v21 = vld [vmem:[#allocation7 + $0x7] ss:$0 sm:$0xff] }
0x2eff   :  { %v6654_v27 = vpack.c.bf16 %v6653_v17, %v6653_v17 }
0x2f01   :  { %11102 = vmatmul.mubr.msk.bf16.vlgmr.msra.gmra.mrb[188].mxu1 %vm226_vm2, %v6654_v27 }
0x2f02   :  { %11112 = vmatpush3.bf16.msra.mxu1 %v6785_v28  ;;  %11113 = vmatprep.mubr.msk.bf16.mxu1 %vm12075_vm1, %v12074_v8 }
0x2f03   :  { %11117 = vmatprep.subr.bf16.mxu1 %v12074_v8 }
0x2f09   :  { %11114 = vmatmul.mubr.msk.bf16.vlgmr.msra.gmra.mrb[192].mxu1 %vm4937_vm7, %v6777_v10 }
0x2f0a   :  { %11119 = vmatprep.mubr.msk.bf16.mxu1 %vm12075_vm1, %v12074_v8  ;;  %11118 = vmatpush3.bf16.msra.mxu1 %v6836_v25 }
0x2f0b   :  { %11135 = vmatprep.subr.bf16.mxu1 %v12074_v8 }
0x2f33   :  { %v7060_v13 = vpop.xlane.xlu0 %7059  ;;  %v7119_v47 = vpop.xlane.xlu1 %7118 }
0x2f34   :  { %v7061_v18 = vmul.f32 0.35355338, %v7060_v13  ;;  %v7120_v60 = vmul.f32 0.35355338, %v7119_v47  ;;  %v6447_v13 = vld [vmem:[#allocation8 + $0x5c] sm:$0xf] }
0x2f36   :  { %v7062_v30 = vsub.f32 %v7061_v18, %v7061_v18  ;;  %v7121_v54 = vsub.f32 %v7120_v60, %v7120_v60  ;;  %v7188_v18 = vsel %vm291_vm3, %v6447_v13, 0 }
0x2f37   :  { %v7132_v2 = vpop.permute.xlu0 %7131 }
0x2f38   :  { %v7063_v31 = vmul.f32 1.442695, %v7062_v30  ;;  %v7122_v52 = vmul.f32 1.442695, %v7121_v54  ;;  %v7137_v5 = vand.u32 %v7132_v2, %v13009_v24 }
0x2f3a   :  { %11794 = vpow2.f32 %v7063_v31 }
0x2f44   :  { %v11795_v32 = vpop.eup %11794 }
0x2f45   :  { %11796 = vrcp.f32 %v11795_v32 }
0x2f46   :  { %11798 = vpow2.f32 %v7122_v52 }
0x2f4f   :  { %v11797_v33 = vpop.eup %11796 }
0x2f50   :  { %v7067_v35 = vmul.f32 %v11797_v33, %v11795_v32  ;;  %v11799_v53 = vpop.eup %11798 }
0x2f51   :  { %11800 = vrcp.f32 %v11799_v53 }
0x2f52   :  { %v7068_v37 = vpack.c.bf16 %v7067_v35, %v7067_v35 }
0x2f54   :  { %11144 = vmatmul.mubr.msk.bf16.vlgmr.msra.gmra.mrb[204].mxu0 %vm4937_vm7, %v7068_v37 }
0x2f55   :  { %11160 = vmatpush3.bf16.msra.mxu0 %v11567_v36  ;;  %11163 = vmatprep.mubr.msk.bf16.mxu0 %vm12075_vm1, %v12074_v8 }
0x2f56   :  { %11161 = vmatprep.subr.bf16.mxu0 %v12074_v8 }
0x2f59   :  { %11162 = vmatpush3.bf16.msra.mxu0 %v11568_v34 }
0x2f5a   :  { %11167 = vmatprep.subr.bf16.mxu0 %v12074_v8 }
0x2f5b   :  { %v11801_v0 = vpop.eup %11800 }
0x2f5c   :  { %11164 = vmatmul.mubr.msk.bf16.vlgmr.msra.gmra.mrb[208].mxu0 %vm149_vm0, %v7245_v38  ;;  %v7126_v12 = vmul.f32 %v11801_v0, %v11799_v53 }
0x2f5d   :  { %11169 = vmatprep.mubr.msk.bf16.mxu0 %vm12075_vm1, %v12074_v8 }
0x2f5e   :  { %v7127_v9 = vpack.c.bf16 %v7126_v12, %v7126_v12 }
0x2f60   :  { %v7129_v14 = vshrl.u32 %v7127_v9, 16 }
0x2f90   :  { %v6759_v20 = vpop.f32.mrb[192].mxu0 }
0x2f91   :  { %v11109_v41 = vpop.f32.mrb[193].mxu0 }
0x2f92   :  { %v6762_v29 = vpop.f32.mrb[194].mxu0 }
0x2f93   :  { %v11110_v42 = vpop.f32.mrb[195].mxu0 }
0x2f98   :  { %v6935_v43 = vpop.f32.mrb[196].mxu0 }
0x2f99   :  { %v11127_v44 = vpop.f32.mrb[197].mxu0 }
0x2f9a   :  { %v6938_v45 = vpop.f32.mrb[198].mxu0 }
0x2f9b   :  { %v11128_v46 = vpop.f32.mrb[199].mxu0 }
0x2fc7   :  { %v6997_v49 = vpop.f32.mrb[200].mxu0 }
0x2fc8   :  { %v7004_v50 = vrot.slane %v6997_v49, 7  ;;  %v11133_v51 = vpop.f32.mrb[201].mxu0 }
0x2fc9   :  { %v7000_v48 = vpop.f32.mrb[202].mxu0 }
0x2fca   :  { %v7006_v7 = vsel %vm2803_vm5, %v6935_v43, %v7004_v50  ;;  %v11134_v56 = vpop.f32.mrb[203].mxu0 }
0x2fcb   :  { %v7007_v3 = vpack.c.bf16 %v7006_v7, %v7006_v7 }
0x2fdc   :  { %v6821_v55 = vpop.f32.mrb[192].mxu1 }
0x2fdd   :  { %v6828_v57 = vrot.slane %v6821_v55, 7  ;;  %v11115_v40 = vpop.f32.mrb[193].mxu1 }
0x2fde   :  { %v6824_v59 = vpop.f32.mrb[194].mxu1 }
0x2fdf   :  { %v6830_v61 = vsel %vm2803_vm5, %v6759_v20, %v6828_v57  ;;  %v11116_v62 = vpop.f32.mrb[195].mxu1 }
0x2fe0   :  { %v6831_v63 = vpack.c.bf16 %v6830_v61, %v6830_v61 }
0x2fe2   :  { %11120 = vmatmul.mubr.msk.bf16.vlgmr.msra.gmra.mrb[188].mxu1 %vm226_vm2, %v6831_v63 }
0x2fe3   :  { %11136 = vmatpush3.bf16.msra.mxu1 %v7012_v4  ;;  %11137 = vmatprep.mubr.msk.bf16.mxu1 %vm12075_vm1, %v12074_v8 }
0x2fe4   :  { %11147 = vmatprep.subr.bf16.mxu1 %v12074_v8 }
0x2fee   :  { %11138 = vmatmul.mubr.msk.bf16.vlgmr.msra.gmra.mrb[188].mxu1 %vm226_vm2, %v7007_v3  ;;  %v7239_v3 = vld [vmem:[#allocation8 + $0x70] sm:$0xf] }
0x2fef   :  { %11148 = vmatpush3.bf16.msra.mxu1 %v7137_v5  ;;  %11149 = vmatprep.mubr.msk.bf16.mxu1 %vm12075_vm1, %v12074_v8  ;;  %v7454_v12 = vsel %vm291_vm3, %v7239_v3, 0 }
0x2ff0   :  { %11153 = vmatprep.subr.bf16.mxu1 %v12074_v8 }
0x2ff6   :  { %11150 = vmatmul.mubr.msk.bf16.vlgmr.msra.gmra.mrb[196].mxu1 %vm4937_vm7, %v7129_v14 }
0x2ff7   :  { %11155 = vmatprep.mubr.msk.bf16.mxu1 %vm12075_vm1, %v12074_v8  ;;  %11154 = vmatpush3.bf16.msra.mxu1 %v7188_v18 }
0x2ff8   :  { %11173 = vmatprep.subr.bf16.mxu1 %v12074_v8 }
0x3027   :  { %v7111_v15 = vpop.f32.mrb[204].mxu0 }
0x3028   :  { %v11145_v1 = vpop.f32.mrb[205].mxu0 }
0x3029   :  { %v7114_v11 = vpop.f32.mrb[206].mxu0 }
0x302a   :  { %v11146_v16 = vpop.f32.mrb[207].mxu0 }
0x302f   :  { %v7301_v17 = vpop.f32.mrb[208].mxu0 }
0x3030   :  { %v7302_v26 = vadd.f32 %v9999_v21, %v7301_v17  ;;  %v11165_v27 = vpop.f32.mrb[209].mxu0 }
0x3031   :  { %v7304_v6 = vpop.f32.mrb[210].mxu0 }
0x3032   :  { %v13309_v28 = vpack.c.bf16 %v7302_v26, %v7302_v26  ;;  %v11166_v23 = vpop.f32.mrb[211].mxu0 }
0x3034   :  { %v7314_v10 = vunpack.c.l.bf16 %v13309_v28  ;;  %v13324_v35 = vshrl.u32 %v13309_v28, 16 }
0x3036   :  { %7316 = vrot.lane.b32.xlu1 %v7314_v10, %s12076_s0 }
0x30a8   :  { %v7317_v30 = vpop.permute.xlu1 %7316 }
0x30a9   :  { %v13315_v31 = vmul.f32 %v7317_v30, %v7314_v10 }
0x30ab   :  { %v7380_v32 = vsel %vm4986_vm6, %v13315_v31, 0.0  ;;  %v7320_v33 = vsel %vm2633_vm4, %v13315_v31, 0.0 }
0x30ac   :  { %7381 = vadd.xlane.f32.xlu0 %v7380_v32  ;;  %7321 = vadd.xlane.f32.xlu1 %v7320_v33 }
0x30bd   :  { %7332 = vrot.lane.b32.xlu1 %v13309_v28, %s12063_s13 }
0x30c2   :  { %7397 = vrot.lane.b32.xlu0 %v13324_v35, %s12063_s13 }
0x30c6   :  { %7498 = vrot.lane.b32.xlu0 %v13315_v31, %s12078_s14 }
0x30c9   :  { %v7173_v36 = vpop.f32.mrb[196].mxu1 }
0x30ca   :  { %v7180_v37 = vrot.slane %v7173_v36, 7  ;;  %7674 = vrot.lane.b32.xlu0 %v13315_v31, %s12081_s3  ;;  %v11151_v19 = vpop.f32.mrb[197].mxu1 }
0x30cb   :  { %v7176_v34 = vpop.f32.mrb[198].mxu1 }
0x30cc   :  { %v7182_v22 = vsel %vm2803_vm5, %v7111_v15, %v7180_v37  ;;  %v11152_v38 = vpop.f32.mrb[199].mxu1 }
0x30cd   :  { %v7183_v39 = vpack.c.bf16 %v7182_v22, %v7182_v22 }
0x30cf   :  { %11156 = vmatmul.mubr.msk.bf16.vlgmr.msra.gmra.mrb[188].mxu1 %vm226_vm2, %v7183_v39 }
0x30d0   :  { %11175 = vmatprep.mubr.msk.bf16.mxu1 %vm12075_vm1, %v12074_v8 }
0x3139   :  { %v7382_v25 = vpop.xlane.xlu0 %7381  ;;  %v7322_v20 = vpop.xlane.xlu1 %7321 }
0x313a   :  { %v7383_v41 = vmul.f32 0.35355338, %v7382_v25  ;;  %v7323_v29 = vmul.f32 0.35355338, %v7322_v20 }
0x313c   :  { %v7384_v42 = vsub.f32 %v7383_v41, %v7383_v41  ;;  %v7324_v43 = vsub.f32 %v7323_v29, %v7323_v29 }
0x313d   :  { %v7398_v44 = vpop.permute.xlu0 %7397  ;;  %v7333_v45 = vpop.permute.xlu1 %7332 }
0x313e   :  { %v7385_v46 = vmul.f32 1.442695, %v7384_v42  ;;  %v7325_v47 = vmul.f32 1.442695, %v7324_v43  ;;  %v7403_v60 = vand.u32 %v7398_v44, %v13009_v24  ;;  %v7338_v49 = vand.u32 %v7333_v45, %v13009_v24 }
0x3140   :  { %11802 = vpow2.f32 %v7385_v46  ;;  %11168 = vmatpush3.bf16.msra.mxu0 %v7338_v49  ;;  %11174 = vmatpush3.bf16.msra.mxu1 %v7403_v60 }
0x3141   :  { %11804 = vpow2.f32 %v7325_v47  ;;  %v7499_v50 = vpop.permute.xlu0 %7498  ;;  %11185 = vmatprep.subr.bf16.mxu1 %v12074_v8  ;;  %11179 = vmatprep.subr.bf16.mxu0 %v12074_v8 }
0x3142   :  { %v7560_v51 = vsel %vm4986_vm6, %v7499_v50, 0.0  ;;  %v7501_v48 = vsel %vm2633_vm4, %v7499_v50, 0.0 }
0x3143   :  { %7561 = vadd.xlane.f32.xlu0 %v7560_v51  ;;  %7502 = vadd.xlane.f32.xlu1 %v7501_v48 }
0x3145   :  { %v7675_v54 = vpop.permute.xlu0 %7674 }
0x3146   :  { %v7677_v7 = vsel %vm2633_vm4, %v7675_v54, 0.0  ;;  %v7736_v62 = vsel %vm4986_vm6, %v7675_v54, 0.0 }
0x3147   :  { %7678 = vadd.xlane.f32.xlu0 %v7677_v7 }
0x314a   :  { %v11803_v56 = vpop.eup %11802 }
0x314b   :  { %v11805_v52 = vpop.eup %11804  ;;  %11806 = vrcp.f32 %v11803_v56 }
0x314c   :  { %11808 = vrcp.f32 %v11805_v52 }
0x3154   :  { %7574 = vrot.lane.b32.xlu1 %v13324_v35, %s12079_s22 }
0x3155   :  { %v11807_v53 = vpop.eup %11806 }
0x3156   :  { %v11809_v55 = vpop.eup %11808  ;;  %v7389_v57 = vmul.f32 %v11807_v53, %v11803_v56 }
0x3157   :  { %v7329_v40 = vmul.f32 %v11809_v55, %v11805_v52 }
0x3158   :  { %v7390_v58 = vpack.c.bf16 %v7389_v57, %v7389_v57 }
0x3159   :  { %v7330_v59 = vpack.c.bf16 %v7329_v40, %v7329_v40 }
0x315a   :  { %v7392_v61 = vshrl.u32 %v7390_v58, 16 }
0x315b   :  { %11170 = vmatmul.mubr.msk.bf16.vlgmr.msra.gmra.mrb[212].mxu0 %vm4937_vm7, %v7330_v59 }
0x315c   :  { %11176 = vmatmul.mubr.msk.bf16.vlgmr.msra.gmra.mrb[200].mxu1 %vm4937_vm7, %v7392_v61  ;;  %11181 = vmatprep.mubr.msk.bf16.mxu0 %vm12075_vm1, %v12074_v8 }
0x315d   :  { %7512 = vrot.lane.b32.xlu0 %v13309_v28, %s12079_s22  ;;  %11187 = vmatprep.mubr.msk.bf16.mxu1 %vm12075_vm1, %v12074_v8 }
0x315e   :  { %11180 = vmatpush3.bf16.msra.mxu0 %v7454_v12 }
0x315f   :  { %11191 = vmatprep.subr.bf16.mxu0 %v12074_v8 }
0x3161   :  { %7750 = vrot.lane.b32.xlu0 %v13324_v35, %s12082_s27 }
0x3178   :  { %7737 = vadd.xlane.f32.xlu1 %v7736_v62 }
0x3189   :  { %7688 = vrot.lane.b32.xlu1 %v13309_v28, %s12082_s27 }
0x318d   :  { %7850 = vrot.lane.b32.xlu1 %v13315_v31, %s12084_s15 }
0x31a2   :  { %v13360_v63 = vpop.f32.mrb[188].mxu1 }
0x31a3   :  { %v11157_v4 = vpop.f32.mrb[189].mxu1 }
0x31a4   :  { %v7227_v0 = vpop.f32.mrb[190].mxu1  ;;  %v7240_v4 = vld [vmem:[#allocation8 + $0x74] sm:$0xf] }
0x31a5   :  { %v11158_v2 = vpop.f32.mrb[191].mxu1  ;;  %v7631_v0 = vsel %vm291_vm3, %v7240_v4, 0 }
0x31d0   :  { %v7562_v5 = vpop.xlane.xlu0 %7561  ;;  %v7503_v9 = vpop.xlane.xlu1 %7502 }
0x31d1   :  { %v7504_v14 = vmul.f32 0.35355338, %v7503_v9  ;;  %v7563_v39 = vmul.f32 0.35355338, %v7562_v5 }
0x31d3   :  { %v7505_v15 = vsub.f32 %v7504_v14, %v7504_v14  ;;  %v7564_v43 = vsub.f32 %v7563_v39, %v7563_v39 }
0x31d4   :  { %v7679_v1 = vpop.xlane.xlu0 %7678  ;;  %v7575_v30 = vpop.permute.xlu1 %7574 }
0x31d5   :  { %v7506_v11 = vmul.f32 1.442695, %v7505_v15  ;;  %v7680_v26 = vmul.f32 0.35355338, %v7679_v1  ;;  %v7565_v44 = vmul.f32 1.442695, %v7564_v43  ;;  %v7580_v59 = vand.u32 %v7575_v30, %v13009_v24 }
0x31d7   :  { %11810 = vpow2.f32 %v7506_v11  ;;  %v7681_v27 = vsub.f32 %v7680_v26, %v7680_v26 }
0x31d8   :  { %v7513_v16 = vpop.permute.xlu0 %7512 }
0x31d9   :  { %v7518_v21 = vand.u32 %v7513_v16, %v13009_v24  ;;  %v7682_v6 = vmul.f32 1.442695, %v7681_v27 }
0x31db   :  { %11186 = vmatpush3.bf16.msra.mxu1 %v7518_v21 }
0x31dc   :  { %11203 = vmatprep.subr.bf16.mxu1 %v12074_v8  ;;  %v7751_v38 = vpop.permute.xlu0 %7750 }
0x31dd   :  { %v7756_v42 = vand.u32 %v7751_v38, %v13009_v24 }
0x31e1   :  { %v11811_v17 = vpop.eup %11810 }
0x31e2   :  { %11812 = vrcp.f32 %v11811_v17 }
0x31e3   :  { %11814 = vpow2.f32 %v7682_v6 }
0x31ec   :  { %v11813_v23 = vpop.eup %11812 }
0x31ed   :  { %v7510_v10 = vmul.f32 %v11813_v23, %v11811_v17  ;;  %v11815_v18 = vpop.eup %11814 }
0x31ee   :  { %11816 = vrcp.f32 %v11815_v18 }
0x31ef   :  { %v7511_v13 = vpack.c.bf16 %v7510_v10, %v7510_v10 }
0x31f1   :  { %11188 = vmatmul.mubr.msk.bf16.vlgmr.msra.gmra.mrb[204].mxu1 %vm4937_vm7, %v7511_v13 }
0x31f2   :  { %11205 = vmatprep.mubr.msk.bf16.mxu1 %vm12075_vm1, %v12074_v8 }
0x31f8   :  { %v11817_v33 = vpop.eup %11816 }
0x31f9   :  { %v7686_v22 = vmul.f32 %v11817_v33, %v11815_v18 }
0x31fb   :  { %v7687_v29 = vpack.c.bf16 %v7686_v22, %v7686_v22 }
0x3205   :  { %v7738_v31 = vpop.xlane.xlu1 %7737 }
0x3206   :  { %v7739_v32 = vmul.f32 0.35355338, %v7738_v31 }
0x3208   :  { %v7740_v36 = vsub.f32 %v7739_v32, %v7739_v32 }
0x3209   :  { %v7689_v37 = vpop.permute.xlu1 %7688 }
0x320a   :  { %v7741_v19 = vmul.f32 1.442695, %v7740_v36  ;;  %v7694_v34 = vand.u32 %v7689_v37, %v13009_v24 }
0x320c   :  { %11818 = vpow2.f32 %v7741_v19  ;;  %11204 = vmatpush3.bf16.msra.mxu1 %v7694_v34 }
0x320d   :  { %v7851_v25 = vpop.permute.xlu1 %7850  ;;  %11209 = vmatprep.subr.bf16.mxu1 %v12074_v8 }
0x320e   :  { %v7912_v20 = vsel %vm4986_vm6, %v7851_v25, 0.0  ;;  %v7853_v41 = vsel %vm2633_vm4, %v7851_v25, 0.0 }
0x320f   :  { %7913 = vadd.xlane.f32.xlu0 %v7912_v20  ;;  %7854 = vadd.xlane.f32.xlu1 %v7853_v41  ;;  %v7241_v41 = vld [vmem:[#allocation8 + $0x78] sm:$0xf] }
0x3210   :  { %11206 = vmatmul.mubr.msk.bf16.vlgmr.msra.gmra.mrb[208].mxu1 %vm4937_vm7, %v7687_v29 }
0x3211   :  { %11210 = vmatpush3.bf16.msra.mxu1 %v7756_v42  ;;  %11211 = vmatprep.mubr.msk.bf16.mxu1 %vm12075_vm1, %v12074_v8 }
0x3212   :  { %11221 = vmatprep.subr.bf16.mxu1 %v12074_v8 }
0x3216   :  { %v11819_v45 = vpop.eup %11818 }
0x3217   :  { %11820 = vrcp.f32 %v11819_v45 }
0x3218   :  { %11822 = vpow2.f32 %v7565_v44 }
0x3220   :  { %7864 = vrot.lane.b32.xlu1 %v13309_v28, %s12085_s16 }
0x3221   :  { %v11821_v46 = vpop.eup %11820 }
0x3222   :  { %v7745_v47 = vmul.f32 %v11821_v46, %v11819_v45  ;;  %v11823_v60 = vpop.eup %11822  ;;  %v7807_v45 = vsel %vm291_vm3, %v7241_v41, 0 }
0x3223   :  { %11824 = vrcp.f32 %v11823_v60 }
0x3224   :  { %v7746_v49 = vpack.c.bf16 %v7745_v47, %v7745_v47 }
0x3225   :  { %7926 = vrot.lane.b32.xlu0 %v13324_v35, %s12085_s16 }
0x3226   :  { %v7748_v50 = vshrl.u32 %v7746_v49, 16 }
0x3228   :  { %11212 = vmatmul.mubr.msk.bf16.vlgmr.msra.gmra.mrb[212].mxu1 %vm4937_vm7, %v7748_v50 }
0x3229   :  { %11223 = vmatprep.mubr.msk.bf16.mxu1 %vm12075_vm1, %v12074_v8 }
0x322d   :  { %v11825_v7 = vpop.eup %11824 }
0x322e   :  { %v7374_v51 = vpop.f32.mrb[212].mxu0  ;;  %v7569_v58 = vmul.f32 %v11825_v7, %v11823_v60 }
0x322f   :  { %v11171_v48 = vpop.f32.mrb[213].mxu0  ;;  %v7439_v54 = vpop.f32.mrb[200].mxu1 }
0x3230   :  { %v7377_v56 = vpop.f32.mrb[214].mxu0  ;;  %v7446_v28 = vrot.slane %v7439_v54, 7  ;;  %v11177_v52 = vpop.f32.mrb[201].mxu1  ;;  %v7570_v61 = vpack.c.bf16 %v7569_v58, %v7569_v58  ;;  %v7242_v54 = vld [vmem:[#allocation8 + $0x7c] sm:$0xf] }
0x3231   :  { %v11172_v53 = vpop.f32.mrb[215].mxu0  ;;  %v7442_v55 = vpop.f32.mrb[202].mxu1  ;;  %v7983_v7 = vsel %vm291_vm3, %v7242_v54, 0  ;;  %v11569_v56 = vld [vmem:[#allocation5 + $0x80] sm:$0xff]  }
0x3232   :  { %v7448_v57 = vsel %vm2803_vm5, %v7374_v51, %v7446_v28  ;;  %v11178_v40 = vpop.f32.mrb[203].mxu1  ;;  %v7572_v62 = vshrl.u32 %v7570_v61, 16  ;;  %v11570_v28 = vld [vmem:[#allocation5 + $0x88] sm:$0xff]   ;;  %8057 = vrot.lane.b32.xlu0 %v11569_v56, %s12076_s0 }
0x3233   :  { %v7449_v35 = vpack.c.bf16 %v7448_v57, %v7448_v57  ;;  %8059 = vrot.lane.b32.xlu1 %v11570_v28, %s12076_s0 }
0x3235   :  { %11182 = vmatmul.mubr.msk.bf16.vlgmr.msra.gmra.mrb[216].mxu0 %vm226_vm2, %v7449_v35 }
0x3236   :  { %11192 = vmatpush3.bf16.msra.mxu0 %v7580_v59  ;;  %11193 = vmatprep.mubr.msk.bf16.mxu0 %vm12075_vm1, %v12074_v8 }
0x3237   :  { %11197 = vmatprep.subr.bf16.mxu0 %v12074_v8 }
0x323d   :  { %11194 = vmatmul.mubr.msk.bf16.vlgmr.msra.gmra.mrb[220].mxu0 %vm4937_vm7, %v7572_v62 }
0x323e   :  { %11199 = vmatprep.mubr.msk.bf16.mxu0 %vm12075_vm1, %v12074_v8  ;;  %11198 = vmatpush3.bf16.msra.mxu0 %v7631_v0 }
0x323f   :  { %11215 = vmatprep.subr.bf16.mxu0 %v12074_v8 }
0x329c   :  { %v7855_v2 = vpop.xlane.xlu1 %7854  ;;  %v7914_v18 = vpop.xlane.xlu0 %7913 }
0x329d   :  { %v7856_v3 = vmul.f32 0.35355338, %v7855_v2  ;;  %v7915_v30 = vmul.f32 0.35355338, %v7914_v18 }
0x329f   :  { %v7857_v12 = vsub.f32 %v7856_v3, %v7856_v3  ;;  %v7916_v37 = vsub.f32 %v7915_v30, %v7915_v30  ;;  %v10017_v3 = vld [vmem:[#allocation7 + $0x8] ss:$0 sm:$0xff] }
0x32a0   :  { %v7865_v5 = vpop.permute.xlu1 %7864  ;;  %v7927_v47 = vpop.permute.xlu0 %7926  ;;  %8063 = vrot.lane.b32.xlu0 %v10017_v3, %s12076_s0 }
0x32a1   :  { %v7858_v9 = vmul.f32 1.442695, %v7857_v12  ;;  %v7870_v14 = vand.u32 %v7865_v5, %v13009_v24  ;;  %v7917_v22 = vmul.f32 1.442695, %v7916_v37  ;;  %v7932_v50 = vand.u32 %v7927_v47, %v13009_v24  ;;  %v9985_v12 = vld [vmem:[%s13709_s5 + $0x5] ss:$0 sm:$0xff] }
0x32a2   :  { %v10003_v5 = vld [vmem:[%s13709_s5 + $0x7] ss:$0 sm:$0xff] }
0x32a3   :  { %11222 = vmatpush3.bf16.msra.mxu1 %v7870_v14  ;;  %11826 = vpow2.f32 %v7858_v9  ;;  %v11429_v14 = vadd.f32 %v9985_v12, %v13360_v63 }
0x32a4   :  { %11239 = vmatprep.subr.bf16.mxu1 %v12074_v8  ;;  %v8058_v40 = vpop.permute.xlu0 %8057 }
0x32a5   :  { %v8060_v2 = vpop.permute.xlu1 %8059 }
0x32ad   :  { %v11827_v15 = vpop.eup %11826 }
0x32ae   :  { %11828 = vrcp.f32 %v11827_v15 }
0x32af   :  { %11830 = vpow2.f32 %v7917_v22 }
0x32b8   :  { %v11829_v1 = vpop.eup %11828 }
0x32b9   :  { %v7862_v11 = vmul.f32 %v11829_v1, %v11827_v15  ;;  %v11831_v38 = vpop.eup %11830 }
0x32ba   :  { %11832 = vrcp.f32 %v11831_v38 }
0x32bb   :  { %v7863_v16 = vpack.c.bf16 %v7862_v11, %v7862_v11 }
0x32bd   :  { %11224 = vmatmul.mubr.msk.bf16.vlgmr.msra.gmra.mrb[216].mxu1 %vm4937_vm7, %v7863_v16 }
0x32be   :  { %11243 = vmatprep.mubr.msk.bf16.mxu1 %vm12075_vm1, %v12074_v8  ;;  %11240 = vmatpush3.bf16.msra.mxu1 %v8058_v40 }
0x32bf   :  { %11241 = vmatprep.subr.bf16.mxu1 %v12074_v8 }
0x32c2   :  { %11242 = vmatpush3.bf16.msra.mxu1 %v8060_v2 }
0x32c3   :  { %11247 = vmatprep.subr.bf16.mxu1 %v12074_v8 }
0x32c4   :  { %v7554_v21 = vpop.f32.mrb[204].mxu1  ;;  %v11833_v46 = vpop.eup %11832 }
0x32c5   :  { %v11189_v17 = vpop.f32.mrb[205].mxu1  ;;  %v7921_v49 = vmul.f32 %v11833_v46, %v11831_v38 }
0x32c6   :  { %v7557_v26 = vpop.f32.mrb[206].mxu1 }
0x32c7   :  { %v11190_v27 = vpop.f32.mrb[207].mxu1  ;;  %v7922_v51 = vpack.c.bf16 %v7921_v49, %v7921_v49 }
0x32c8   :  { %v8110_v27 = vpack.c.bf16 %v10017_v3, %v10017_v3 }
0x32c9   :  { %v7924_v48 = vshrl.u32 %v7922_v51, 16 }
0x32e3   :  { %v7730_v6 = vpop.f32.mrb[208].mxu1 }
0x32e4   :  { %v11207_v23 = vpop.f32.mrb[209].mxu1 }
0x32e5   :  { %v7733_v10 = vpop.f32.mrb[210].mxu1 }
0x32e6   :  { %v11208_v13 = vpop.f32.mrb[211].mxu1 }
0x32e7   :  { %v8118_v13 = vunpack.c.l.bf16 %v8110_v27 }
0x32fb   :  { %v7792_v31 = vpop.f32.mrb[212].mxu1 }
0x32fc   :  { %v7799_v32 = vrot.slane %v7792_v31, 7  ;;  %v11213_v33 = vpop.f32.mrb[213].mxu1 }
0x32fd   :  { %v7795_v36 = vpop.f32.mrb[214].mxu1 }
0x32fe   :  { %v7801_v19 = vsel %vm2803_vm5, %v7730_v6, %v7799_v32  ;;  %v11214_v34 = vpop.f32.mrb[215].mxu1 }
0x32ff   :  { %v7802_v60 = vpack.c.bf16 %v7801_v19, %v7801_v19 }
0x3310   :  { %v7616_v39 = vpop.f32.mrb[220].mxu0 }
0x3311   :  { %v7623_v25 = vrot.slane %v7616_v39, 7  ;;  %v11195_v20 = vpop.f32.mrb[221].mxu0 }
0x3312   :  { %v7619_v29 = vpop.f32.mrb[222].mxu0  ;;  %v8064_v26 = vpop.permute.xlu0 %8063 }
0x3313   :  { %v7625_v42 = vsel %vm2803_vm5, %v7554_v21, %v7623_v25  ;;  %v11196_v43 = vpop.f32.mrb[223].mxu0 }
0x3314   :  { %v7626_v44 = vpack.c.bf16 %v7625_v42, %v7625_v42 }
0x3316   :  { %11200 = vmatmul.mubr.msk.bf16.vlgmr.msra.gmra.mrb[216].mxu0 %vm226_vm2, %v7626_v44 }
0x3317   :  { %11216 = vmatpush3.bf16.msra.mxu0 %v7807_v45  ;;  %11217 = vmatprep.mubr.msk.bf16.mxu0 %vm12075_vm1, %v12074_v8 }
0x3318   :  { %11227 = vmatprep.subr.bf16.mxu0 %v12074_v8 }
0x3322   :  { %11218 = vmatmul.mubr.msk.bf16.vlgmr.msra.gmra.mrb[216].mxu0 %vm226_vm2, %v7802_v60 }
0x3323   :  { %11228 = vmatpush3.bf16.msra.mxu0 %v7932_v50  ;;  %11229 = vmatprep.mubr.msk.bf16.mxu0 %vm12075_vm1, %v12074_v8 }
0x3324   :  { %11233 = vmatprep.subr.bf16.mxu0 %v12074_v8 }
0x332a   :  { %11230 = vmatmul.mubr.msk.bf16.vlgmr.msra.gmra.mrb[224].mxu0 %vm4937_vm7, %v7924_v48 }
0x332b   :  { %11235 = vmatprep.mubr.msk.bf16.mxu0 %vm12075_vm1, %v12074_v8  ;;  %11234 = vmatpush3.bf16.msra.mxu0 %v7983_v7 }
0x332c   :  { %11253 = vmatprep.subr.bf16.mxu0 %v12074_v8 }
0x3390   :  { %v7906_v52 = vpop.f32.mrb[216].mxu1 }
0x3391   :  { %v11225_v53 = vpop.f32.mrb[217].mxu1 }
0x3392   :  { %v7909_v55 = vpop.f32.mrb[218].mxu1 }
0x3393   :  { %v11226_v57 = vpop.f32.mrb[219].mxu1 }
0x33fd   :  { %v7968_v35 = vpop.f32.mrb[224].mxu0 }
0x33fe   :  { %v7975_v58 = vrot.slane %v7968_v35, 7  ;;  %v11231_v59 = vpop.f32.mrb[225].mxu0 }
0x33ff   :  { %v7971_v61 = vpop.f32.mrb[226].mxu0 }
0x3400   :  { %v7977_v62 = vsel %vm2803_vm5, %v7906_v52, %v7975_v58  ;;  %v11232_v4 = vpop.f32.mrb[227].mxu0  ;;  %v8035_v52 = vld [vmem:[#allocation8 + $0x80] sm:$0xf] }
0x3401   :  { %v7978_v0 = vpack.c.bf16 %v7977_v62, %v7977_v62  ;;  %v8255_v53 = vsel %vm291_vm3, %v8035_v52, 0 }
0x3403   :  { %11236 = vmatmul.mubr.msk.bf16.vlgmr.msra.gmra.mrb[216].mxu0 %vm226_vm2, %v7978_v0 }
0x3404   :  { %11255 = vmatprep.mubr.msk.bf16.mxu0 %vm12075_vm1, %v12074_v8 }
0x34d6   :  { %v8019_v9 = vpop.f32.mrb[216].mxu0 }
0x34d7   :  { %v11430_v15 = vadd.f32 %v10003_v5, %v8019_v9  ;;  %v11237_v1 = vpop.f32.mrb[217].mxu0 }
0x34d8   :  { %v8022_v11 = vpop.f32.mrb[218].mxu0 }
0x34d9   :  { %v13434_v16 = vmul.f32 %v11430_v15, %v11429_v14  ;;  %v11238_v21 = vpop.f32.mrb[219].mxu0 }
0x34db   :  { %v8041_v17 = vpack.c.bf16 %v13434_v16, %v13434_v16 }
0x34dd   :  { %11244 = vmatmul.mubr.msk.bf16.vlgmr.msra.gmra.mrb[220].mxu1 %vm149_vm0, %v8041_v17 }
0x34de   :  { %11249 = vmatprep.mubr.msk.bf16.mxu1 %vm12075_vm1, %v12074_v8 }
0x35b0   :  { %v8103_v6 = vpop.f32.mrb[220].mxu1 }
0x35b1   :  { %v8104_v23 = vadd.f32 %v8103_v6, %v8064_v26  ;;  %v11245_v10 = vpop.f32.mrb[221].mxu1 }
0x35b2   :  { %v8106_v63 = vpop.f32.mrb[222].mxu1 }
0x35b3   :  { %v13441_v18 = vpack.c.bf16 %v8104_v23, %v8104_v23  ;;  %v11246_v30 = vpop.f32.mrb[223].mxu1 }
0x35b5   :  { %v8119_v31 = vunpack.c.l.bf16 %v13441_v18  ;;  %v13453_v37 = vshrl.u32 %v13441_v18, 16 }
0x35b7   :  { %v13444_v32 = vmul.f32 %v8119_v31, %v8118_v13 }
0x35b9   :  { %v8181_v33 = vsel %vm4986_vm6, %v13444_v32, 0.0  ;;  %v8121_v36 = vsel %vm2633_vm4, %v13444_v32, 0.0 }
0x35ba   :  { %8182 = vadd.xlane.f32.xlu1 %v8181_v33  ;;  %8122 = vadd.xlane.f32.xlu0 %v8121_v36 }
0x35cb   :  { %8133 = vrot.lane.b32.xlu1 %v13441_v18, %s12076_s0 }
0x35cf   :  { %8299 = vrot.lane.b32.xlu1 %v13444_v32, %s12078_s14 }
0x35d0   :  { %8198 = vrot.lane.b32.xlu0 %v13453_v37, %s12076_s0 }
0x3647   :  { %v8183_v19 = vpop.xlane.xlu1 %8182  ;;  %v8123_v34 = vpop.xlane.xlu0 %8122 }
0x3648   :  { %v8184_v22 = vmul.f32 0.35355338, %v8183_v19  ;;  %v8124_v38 = vmul.f32 0.35355338, %v8123_v34 }
0x364a   :  { %v8185_v39 = vsub.f32 %v8184_v22, %v8184_v22  ;;  %v8125_v25 = vsub.f32 %v8124_v38, %v8124_v38 }
0x364b   :  { %v8134_v20 = vpop.permute.xlu1 %8133  ;;  %v8199_v41 = vpop.permute.xlu0 %8198 }
0x364c   :  { %v8186_v29 = vmul.f32 1.442695, %v8185_v39  ;;  %v8126_v42 = vmul.f32 1.442695, %v8125_v25  ;;  %v8139_v43 = vand.u32 %v8134_v20, %v13009_v24  ;;  %v8204_v44 = vand.u32 %v8199_v41, %v13009_v24 }
0x364e   :  { %11834 = vpow2.f32 %v8186_v29  ;;  %11248 = vmatpush3.bf16.msra.mxu1 %v8139_v43  ;;  %11254 = vmatpush3.bf16.msra.mxu0 %v8204_v44 }
0x364f   :  { %11836 = vpow2.f32 %v8126_v42  ;;  %v8300_v45 = vpop.permute.xlu1 %8299  ;;  %11265 = vmatprep.subr.bf16.mxu0 %v12074_v8  ;;  %11259 = vmatprep.subr.bf16.mxu1 %v12074_v8 }
0x3650   :  { %v8302_v46 = vsel %vm2633_vm4, %v8300_v45, 0.0  ;;  %v8361_v47 = vsel %vm4986_vm6, %v8300_v45, 0.0 }
0x3651   :  { %8303 = vadd.xlane.f32.xlu1 %v8302_v46  ;;  %8362 = vadd.xlane.f32.xlu0 %v8361_v47 }
0x3658   :  { %v11835_v60 = vpop.eup %11834 }
0x3659   :  { %v11837_v49 = vpop.eup %11836  ;;  %11838 = vrcp.f32 %v11835_v60 }
0x365a   :  { %11840 = vrcp.f32 %v11837_v49 }
0x3662   :  { %8313 = vrot.lane.b32.xlu1 %v13441_v18, %s12077_s9 }
0x3663   :  { %v11839_v50 = vpop.eup %11838 }
0x3664   :  { %v11841_v51 = vpop.eup %11840  ;;  %v8190_v48 = vmul.f32 %v11839_v50, %v11835_v60 }
0x3665   :  { %v8130_v54 = vmul.f32 %v11841_v51, %v11837_v49  ;;  %v8036_v49 = vld [vmem:[#allocation8 + $0x84] sm:$0xf] }
0x3666   :  { %v8191_v7 = vpack.c.bf16 %v8190_v48, %v8190_v48  ;;  %v8432_v50 = vsel %vm291_vm3, %v8036_v49, 0 }
0x3667   :  { %8375 = vrot.lane.b32.xlu0 %v13453_v37, %s12077_s9  ;;  %v8131_v56 = vpack.c.bf16 %v8130_v54, %v8130_v54 }
0x3668   :  { %v8193_v28 = vshrl.u32 %v8191_v7, 16 }
0x3669   :  { %11250 = vmatmul.mubr.msk.bf16.vlgmr.msra.gmra.mrb[224].mxu1 %vm4937_vm7, %v8131_v56 }
0x366a   :  { %11256 = vmatmul.mubr.msk.bf16.vlgmr.msra.gmra.mrb[228].mxu0 %vm4937_vm7, %v8193_v28  ;;  %11261 = vmatprep.mubr.msk.bf16.mxu1 %vm12075_vm1, %v12074_v8 }
0x366b   :  { %8475 = vrot.lane.b32.xlu0 %v13444_v32, %s12081_s3  ;;  %11267 = vmatprep.mubr.msk.bf16.mxu0 %vm12075_vm1, %v12074_v8 }
0x366c   :  { %11260 = vmatpush3.bf16.msra.mxu1 %v8255_v53 }
0x366d   :  { %11271 = vmatprep.subr.bf16.mxu1 %v12074_v8 }
0x36de   :  { %v8304_v55 = vpop.xlane.xlu1 %8303  ;;  %v8363_v57 = vpop.xlane.xlu0 %8362 }
0x36df   :  { %v8305_v40 = vmul.f32 0.35355338, %v8304_v55  ;;  %v8364_v14 = vmul.f32 0.35355338, %v8363_v57 }
0x36e1   :  { %v8306_v35 = vsub.f32 %v8305_v40, %v8305_v40  ;;  %v8365_v15 = vsub.f32 %v8364_v14, %v8364_v14 }
0x36e2   :  { %v8314_v58 = vpop.permute.xlu1 %8313  ;;  %v8376_v59 = vpop.permute.xlu0 %8375 }
0x36e3   :  { %v8307_v61 = vmul.f32 1.442695, %v8306_v35  ;;  %v8319_v62 = vand.u32 %v8314_v58, %v13009_v24  ;;  %v8366_v1 = vmul.f32 1.442695, %v8365_v15  ;;  %v8381_v36 = vand.u32 %v8376_v59, %v13009_v24 }
0x36e5   :  { %11842 = vpow2.f32 %v8307_v61  ;;  %11266 = vmatpush3.bf16.msra.mxu0 %v8319_v62 }
0x36e6   :  { %v8476_v4 = vpop.permute.xlu0 %8475  ;;  %11277 = vmatprep.subr.bf16.mxu0 %v12074_v8 }
0x36e7   :  { %v8537_v0 = vsel %vm4986_vm6, %v8476_v4, 0.0  ;;  %v8478_v2 = vsel %vm2633_vm4, %v8476_v4, 0.0 }
0x36e8   :  { %8538 = vadd.xlane.f32.xlu1 %v8537_v0  ;;  %8479 = vadd.xlane.f32.xlu0 %v8478_v2 }
0x36ef   :  { %v11843_v3 = vpop.eup %11842 }
0x36f0   :  { %11844 = vrcp.f32 %v11843_v3 }
0x36f1   :  { %11846 = vpow2.f32 %v8366_v1 }
0x36f9   :  { %8489 = vrot.lane.b32.xlu1 %v13441_v18, %s12080_s29 }
0x36fa   :  { %v11845_v12 = vpop.eup %11844 }
0x36fb   :  { %v8311_v5 = vmul.f32 %v11845_v12, %v11843_v3  ;;  %v11847_v11 = vpop.eup %11846 }
0x36fc   :  { %11848 = vrcp.f32 %v11847_v11 }
0x36fd   :  { %8651 = vrot.lane.b32.xlu1 %v13444_v32, %s12084_s15  ;;  %v8312_v9 = vpack.c.bf16 %v8311_v5, %v8311_v5 }
0x36fe   :  { %8551 = vrot.lane.b32.xlu0 %v13453_v37, %s12080_s29 }
0x36ff   :  { %11268 = vmatmul.mubr.msk.bf16.vlgmr.msra.gmra.mrb[232].mxu0 %vm4937_vm7, %v8312_v9 }
0x3700   :  { %11279 = vmatprep.mubr.msk.bf16.mxu0 %vm12075_vm1, %v12074_v8  ;;  %11278 = vmatpush3.bf16.msra.mxu0 %v8432_v50 }
0x3701   :  { %11289 = vmatprep.subr.bf16.mxu0 %v12074_v8 }
0x3706   :  { %v11849_v27 = vpop.eup %11848 }
0x3707   :  { %v8370_v33 = vmul.f32 %v11849_v27, %v11847_v11 }
0x3709   :  { %v8371_v19 = vpack.c.bf16 %v8370_v33, %v8370_v33 }
0x370b   :  { %v8373_v34 = vshrl.u32 %v8371_v19, 16 }
0x373c   :  { %v8175_v21 = vpop.f32.mrb[224].mxu1 }
0x373d   :  { %v11251_v17 = vpop.f32.mrb[225].mxu1  ;;  %v8240_v26 = vpop.f32.mrb[228].mxu0 }
0x373e   :  { %v8178_v6 = vpop.f32.mrb[226].mxu1  ;;  %v8247_v23 = vrot.slane %v8240_v26, 7  ;;  %v11257_v10 = vpop.f32.mrb[229].mxu0 }
0x373f   :  { %v11252_v63 = vpop.f32.mrb[227].mxu1  ;;  %v8243_v13 = vpop.f32.mrb[230].mxu0 }
0x3740   :  { %v8249_v30 = vsel %vm2803_vm5, %v8175_v21, %v8247_v23  ;;  %v11258_v31 = vpop.f32.mrb[231].mxu0 }
0x3741   :  { %v8250_v32 = vpack.c.bf16 %v8249_v30, %v8249_v30  ;;  %v8037_v31 = vld [vmem:[#allocation8 + $0x88] sm:$0xf] }
0x3743   :  { %11262 = vmatmul.mubr.msk.bf16.vlgmr.msra.gmra.mrb[228].mxu1 %vm226_vm2, %v8250_v32  ;;  %v8608_v32 = vsel %vm291_vm3, %v8037_v31, 0 }
0x3744   :  { %11272 = vmatpush3.bf16.msra.mxu1 %v8381_v36  ;;  %11273 = vmatprep.mubr.msk.bf16.mxu1 %vm12075_vm1, %v12074_v8 }
0x3745   :  { %11283 = vmatprep.subr.bf16.mxu1 %v12074_v8 }
0x374b   :  { %11274 = vmatmul.mubr.msk.bf16.vlgmr.msra.gmra.mrb[232].mxu1 %vm4937_vm7, %v8373_v34 }
0x374c   :  { %11285 = vmatprep.mubr.msk.bf16.mxu1 %vm12075_vm1, %v12074_v8 }
0x3775   :  { %v8539_v22 = vpop.xlane.xlu1 %8538  ;;  %v8480_v38 = vpop.xlane.xlu0 %8479 }
0x3776   :  { %v8481_v39 = vmul.f32 0.35355338, %v8480_v38  ;;  %v8540_v7 = vmul.f32 0.35355338, %v8539_v22  ;;  %v10021_v38 = vld [vmem:[%s13709_s5 + $0x8] ss:$0 sm:$0xff] }
0x3778   :  { %v8482_v25 = vsub.f32 %v8481_v39, %v8481_v39  ;;  %v8541_v56 = vsub.f32 %v8540_v7, %v8540_v7 }
0x3779   :  { %v8490_v20 = vpop.permute.xlu1 %8489  ;;  %v8552_v3 = vpop.permute.xlu0 %8551 }
0x377a   :  { %v8483_v41 = vmul.f32 1.442695, %v8482_v25  ;;  %v8495_v29 = vand.u32 %v8490_v20, %v13009_v24  ;;  %v8542_v28 = vmul.f32 1.442695, %v8541_v56  ;;  %v8557_v1 = vand.u32 %v8552_v3, %v13009_v24 }
0x377c   :  { %11284 = vmatpush3.bf16.msra.mxu1 %v8495_v29  ;;  %11850 = vpow2.f32 %v8483_v41 }
0x377d   :  { %v8652_v42 = vpop.permute.xlu1 %8651  ;;  %11295 = vmatprep.subr.bf16.mxu1 %v12074_v8 }
0x377e   :  { %v8654_v43 = vsel %vm2633_vm4, %v8652_v42, 0.0  ;;  %v8713_v44 = vsel %vm4986_vm6, %v8652_v42, 0.0 }
0x377f   :  { %8655 = vadd.xlane.f32.xlu1 %v8654_v43  ;;  %8714 = vadd.xlane.f32.xlu0 %v8713_v44 }
0x3786   :  { %v11851_v45 = vpop.eup %11850 }
0x3787   :  { %11852 = vrcp.f32 %v11851_v45 }
0x3788   :  { %11854 = vpow2.f32 %v8542_v28 }
0x3790   :  { %8665 = vrot.lane.b32.xlu1 %v13441_v18, %s12083_s30 }
0x3791   :  { %v11853_v46 = vpop.eup %11852 }
0x3792   :  { %v8487_v47 = vmul.f32 %v11853_v46, %v11851_v45  ;;  %v11855_v57 = vpop.eup %11854 }
0x3794   :  { %v8488_v60 = vpack.c.bf16 %v8487_v47, %v8487_v47 }
0x3795   :  { %8727 = vrot.lane.b32.xlu0 %v13453_v37, %s12083_s30 }
0x3796   :  { %11286 = vmatmul.mubr.msk.bf16.vlgmr.msra.gmra.mrb[236].mxu1 %vm4937_vm7, %v8488_v60 }
0x3797   :  { %11297 = vmatprep.mubr.msk.bf16.mxu1 %vm12075_vm1, %v12074_v8  ;;  %11296 = vmatpush3.bf16.msra.mxu1 %v8608_v32 }
0x3798   :  { %11307 = vmatprep.subr.bf16.mxu1 %v12074_v8 }
0x37d2   :  { %v8355_v51 = vpop.f32.mrb[232].mxu0 }
0x37d3   :  { %v11269_v48 = vpop.f32.mrb[233].mxu0 }
0x37d4   :  { %v8358_v18 = vpop.f32.mrb[234].mxu0 }
0x37d5   :  { %v11270_v54 = vpop.f32.mrb[235].mxu0 }
0x380c   :  { %v8656_v37 = vpop.xlane.xlu1 %8655  ;;  %v8715_v33 = vpop.xlane.xlu0 %8714 }
0x380d   :  { %v8657_v52 = vmul.f32 0.35355338, %v8656_v37  ;;  %v8716_v36 = vmul.f32 0.35355338, %v8715_v33 }
0x380f   :  { %v8658_v53 = vsub.f32 %v8657_v52, %v8657_v52  ;;  %v8717_v19 = vsub.f32 %v8716_v36, %v8716_v36 }
0x3810   :  { %v8666_v21 = vpop.permute.xlu1 %8665  ;;  %v8728_v47 = vpop.permute.xlu0 %8727 }
0x3811   :  { %v8659_v55 = vmul.f32 1.442695, %v8658_v53  ;;  %v8671_v27 = vand.u32 %v8666_v21, %v13009_v24  ;;  %v8718_v34 = vmul.f32 1.442695, %v8717_v19  ;;  %v8733_v18 = vand.u32 %v8728_v47, %v13009_v24  ;;  %v8038_v53 = vld [vmem:[#allocation8 + $0x8c] sm:$0xf] }
0x3813   :  { %11856 = vpow2.f32 %v8659_v55  ;;  %v8784_v55 = vsel %vm291_vm3, %v8038_v53, 0 }
0x3814   :  { %11858 = vrcp.f32 %v11855_v57 }
0x3816   :  { %v8291_v40 = vpop.f32.mrb[228].mxu1 }
0x3817   :  { %v11263_v35 = vpop.f32.mrb[229].mxu1  ;;  %v8297_v39 = vadd.f32 %v10021_v38, %v8291_v40 }
0x3818   :  { %v8294_v58 = vpop.f32.mrb[230].mxu1 }
0x3819   :  { %v11264_v59 = vpop.f32.mrb[231].mxu1 }
0x381d   :  { %v11857_v61 = vpop.eup %11856 }
0x381e   :  { %v8417_v62 = vpop.f32.mrb[232].mxu1  ;;  %v11859_v4 = vpop.eup %11858  ;;  %11860 = vrcp.f32 %v11857_v61 }
0x381f   :  { %v8424_v0 = vrot.slane %v8417_v62, 7  ;;  %v11275_v2 = vpop.f32.mrb[233].mxu1  ;;  %v8546_v15 = vmul.f32 %v11859_v4, %v11855_v57  ;;  %11862 = vpow2.f32 %v8718_v34 }
0x3820   :  { %v8420_v12 = vpop.f32.mrb[234].mxu1 }
0x3821   :  { %v8426_v5 = vsel %vm2803_vm5, %v8355_v51, %v8424_v0  ;;  %v11276_v9 = vpop.f32.mrb[235].mxu1  ;;  %v8547_v11 = vpack.c.bf16 %v8546_v15, %v8546_v15 }
0x3822   :  { %v8427_v14 = vpack.c.bf16 %v8426_v5, %v8426_v5  ;;  %v11571_v5 = vld [vmem:[#allocation5 + $0x90] sm:$0xff]   ;;  %v11572_v9 = vld [vmem:[#allocation5 + $0x98] sm:$0xff]  }
0x3823   :  { %v8549_v17 = vshrl.u32 %v8547_v11, 16 }
0x3824   :  { %11280 = vmatmul.mubr.msk.bf16.vlgmr.msra.gmra.mrb[236].mxu0 %vm226_vm2, %v8427_v14 }
0x3825   :  { %11290 = vmatpush3.bf16.msra.mxu0 %v8557_v1  ;;  %11291 = vmatprep.mubr.msk.bf16.mxu0 %vm12075_vm1, %v12074_v8 }
0x3826   :  { %11301 = vmatprep.subr.bf16.mxu0 %v12074_v8 }
0x3828   :  { %v11861_v26 = vpop.eup %11860 }
0x3829   :  { %v8663_v6 = vmul.f32 %v11861_v26, %v11857_v61  ;;  %v11863_v22 = vpop.eup %11862 }
0x382a   :  { %11864 = vrcp.f32 %v11863_v22 }
0x382b   :  { %v8664_v23 = vpack.c.bf16 %v8663_v6, %v8663_v6 }
0x382c   :  { %11292 = vmatmul.mubr.msk.bf16.vlgmr.msra.gmra.mrb[240].mxu0 %vm4937_vm7, %v8549_v17 }
0x382d   :  { %11302 = vmatpush3.bf16.msra.mxu0 %v8671_v27  ;;  %11303 = vmatprep.mubr.msk.bf16.mxu0 %vm12075_vm1, %v12074_v8  ;;  %v10035_v27 = vld [vmem:[#allocation7 + $0x9] ss:$0 sm:$0xff] }
0x382e   :  { %11313 = vmatprep.subr.bf16.mxu0 %v12074_v8 }
0x3834   :  { %11304 = vmatmul.mubr.msk.bf16.vlgmr.msra.gmra.mrb[244].mxu0 %vm4937_vm7, %v8664_v23  ;;  %v11865_v44 = vpop.eup %11864 }
0x3835   :  { %11315 = vmatprep.mubr.msk.bf16.mxu0 %vm12075_vm1, %v12074_v8  ;;  %v8722_v48 = vmul.f32 %v11865_v44, %v11863_v22  ;;  %11314 = vmatpush3.bf16.msra.mxu0 %v8784_v55 }
0x3836   :  { %11327 = vmatprep.subr.bf16.mxu0 %v12074_v8 }
0x3837   :  { %v8723_v7 = vpack.c.bf16 %v8722_v48, %v8722_v48 }
0x3839   :  { %v8725_v52 = vshrl.u32 %v8723_v7, 16 }
0x3869   :  { %v8531_v10 = vpop.f32.mrb[236].mxu1 }
0x386a   :  { %v11287_v63 = vpop.f32.mrb[237].mxu1 }
0x386b   :  { %v8534_v13 = vpop.f32.mrb[238].mxu1 }
0x386c   :  { %v11288_v30 = vpop.f32.mrb[239].mxu1 }
0x38f7   :  { %v8468_v25 = vpop.f32.mrb[236].mxu0 }
0x38f8   :  { %v8474_v20 = vadd.f32 %v8468_v25, %v8297_v39  ;;  %v11281_v41 = vpop.f32.mrb[237].mxu0 }
0x38f9   :  { %v8471_v29 = vpop.f32.mrb[238].mxu0 }
0x38fa   :  { %v11282_v42 = vpop.f32.mrb[239].mxu0 }
0x38ff   :  { %v8593_v43 = vpop.f32.mrb[240].mxu0 }
0x3900   :  { %v8600_v45 = vrot.slane %v8593_v43, 7  ;;  %v11293_v46 = vpop.f32.mrb[241].mxu0 }
0x3901   :  { %v8596_v60 = vpop.f32.mrb[242].mxu0 }
0x3902   :  { %v8602_v49 = vsel %vm2803_vm5, %v8531_v10, %v8600_v45  ;;  %v11294_v50 = vpop.f32.mrb[243].mxu0 }
0x3903   :  { %v8603_v51 = vpack.c.bf16 %v8602_v49, %v8602_v49 }
0x3905   :  { %11298 = vmatmul.mubr.msk.bf16.vlgmr.msra.gmra.mrb[240].mxu1 %vm226_vm2, %v8603_v51 }
0x3906   :  { %11308 = vmatpush3.bf16.msra.mxu1 %v8733_v18  ;;  %11309 = vmatprep.mubr.msk.bf16.mxu1 %vm12075_vm1, %v12074_v8 }
0x3907   :  { %v8707_v54 = vpop.f32.mrb[244].mxu0  ;;  %11319 = vmatprep.subr.bf16.mxu1 %v12074_v8 }
0x3908   :  { %v11305_v56 = vpop.f32.mrb[245].mxu0 }
0x3909   :  { %v8710_v28 = vpop.f32.mrb[246].mxu0 }
0x390a   :  { %v11306_v37 = vpop.f32.mrb[247].mxu0 }
0x390b   :  { %v8836_v37 = vld [vmem:[#allocation8 + $0x90] sm:$0xf] }
0x390d   :  { %11310 = vmatmul.mubr.msk.bf16.vlgmr.msra.gmra.mrb[244].mxu1 %vm4937_vm7, %v8725_v52  ;;  %v9051_v52 = vsel %vm291_vm3, %v8836_v37, 0 }
0x390e   :  { %11323 = vmatprep.mubr.msk.bf16.mxu1 %vm12075_vm1, %v12074_v8  ;;  %11320 = vmatpush3.bf16.msra.mxu1 %v11571_v5 }
0x390f   :  { %11321 = vmatprep.subr.bf16.mxu1 %v12074_v8 }
0x3912   :  { %11322 = vmatpush3.bf16.msra.mxu1 %v11572_v9 }
0x3913   :  { %11333 = vmatprep.subr.bf16.mxu1 %v12074_v8 }
0x39d8   :  { %v8644_v57 = vpop.f32.mrb[240].mxu1 }
0x39d9   :  { %v8650_v40 = vadd.f32 %v8644_v57, %v8474_v20  ;;  %v11299_v35 = vpop.f32.mrb[241].mxu1 }
0x39da   :  { %v8647_v58 = vpop.f32.mrb[242].mxu1 }
0x39db   :  { %v11300_v59 = vpop.f32.mrb[243].mxu1 }
0x39e0   :  { %v8769_v61 = vpop.f32.mrb[244].mxu1 }
0x39e1   :  { %v8776_v62 = vrot.slane %v8769_v61, 7  ;;  %v11311_v4 = vpop.f32.mrb[245].mxu1 }
0x39e2   :  { %v8772_v0 = vpop.f32.mrb[246].mxu1 }
0x39e3   :  { %v8778_v2 = vsel %vm2803_vm5, %v8707_v54, %v8776_v62  ;;  %v11312_v3 = vpop.f32.mrb[247].mxu1 }
0x39e4   :  { %v8779_v12 = vpack.c.bf16 %v8778_v2, %v8778_v2 }
0x39e6   :  { %11316 = vmatmul.mubr.msk.bf16.vlgmr.msra.gmra.mrb[248].mxu0 %vm226_vm2, %v8779_v12 }
0x39e7   :  { %11329 = vmatprep.mubr.msk.bf16.mxu0 %vm12075_vm1, %v12074_v8 }
0x3ab9   :  { %v8820_v14 = vpop.f32.mrb[248].mxu0 }
0x3aba   :  { %v8826_v15 = vadd.f32 %v8820_v14, %v8650_v40  ;;  %v11317_v1 = vpop.f32.mrb[249].mxu0 }
0x3abb   :  { %v8823_v11 = vpop.f32.mrb[250].mxu0 }
0x3abc   :  { %v13551_v21 = vadd.f32 %v8826_v15, %v13434_v16  ;;  %v11318_v17 = vpop.f32.mrb[251].mxu0 }
0x3abe   :  { %v8842_v26 = vpack.c.bf16 %v13551_v21, %v13551_v21 }
0x3ac0   :  { %11324 = vmatmul.mubr.msk.bf16.vlgmr.msra.gmra.mrb[248].mxu1 %vm149_vm0, %v8842_v26 }
0x3ac1   :  { %11335 = vmatprep.mubr.msk.bf16.mxu1 %vm12075_vm1, %v12074_v8 }
0x3b93   :  { %v8898_v6 = vpop.f32.mrb[248].mxu1 }
0x3b94   :  { %v8899_v23 = vadd.f32 %v10035_v27, %v8898_v6  ;;  %v11325_v10 = vpop.f32.mrb[249].mxu1 }
0x3b95   :  { %v8901_v63 = vpop.f32.mrb[250].mxu1 }
0x3b96   :  { %v13558_v13 = vpack.c.bf16 %v8899_v23, %v8899_v23  ;;  %v11326_v30 = vpop.f32.mrb[251].mxu1 }
0x3b98   :  { %v8911_v16 = vunpack.c.l.bf16 %v13558_v13  ;;  %v13571_v19 = vshrl.u32 %v13558_v13, 16 }
0x3b9a   :  { %8913 = vrot.lane.b32.xlu0 %v8911_v16, %s12076_s0 }
0x3c0c   :  { %v8914_v31 = vpop.permute.xlu0 %8913 }
0x3c0d   :  { %v13562_v32 = vmul.f32 %v8914_v31, %v8911_v16 }
0x3c0f   :  { %v8977_v33 = vsel %vm4986_vm6, %v13562_v32, 0.0  ;;  %v8917_v36 = vsel %vm2633_vm4, %v13562_v32, 0.0 }
0x3c10   :  { %8978 = vadd.xlane.f32.xlu1 %v8977_v33  ;;  %8918 = vadd.xlane.f32.xlu0 %v8917_v36 }
0x3c21   :  { %8929 = vrot.lane.b32.xlu1 %v13558_v13, %s12063_s13 }
0x3c25   :  { %9095 = vrot.lane.b32.xlu1 %v13562_v32, %s12078_s14 }
0x3c26   :  { %8994 = vrot.lane.b32.xlu0 %v13571_v19, %s12063_s13 }
0x3c9d   :  { %v8979_v34 = vpop.xlane.xlu1 %8978  ;;  %v8919_v22 = vpop.xlane.xlu0 %8918 }
0x3c9e   :  { %v8980_v38 = vmul.f32 0.35355338, %v8979_v34  ;;  %v8920_v39 = vmul.f32 0.35355338, %v8919_v22 }
0x3ca0   :  { %v8981_v25 = vsub.f32 %v8980_v38, %v8980_v38  ;;  %v8921_v20 = vsub.f32 %v8920_v39, %v8920_v39 }
0x3ca1   :  { %v8930_v41 = vpop.permute.xlu1 %8929  ;;  %v8995_v29 = vpop.permute.xlu0 %8994 }
0x3ca2   :  { %v8982_v42 = vmul.f32 1.442695, %v8981_v25  ;;  %v8922_v43 = vmul.f32 1.442695, %v8921_v20  ;;  %v8935_v44 = vand.u32 %v8930_v41, %v13009_v24  ;;  %v9000_v45 = vand.u32 %v8995_v29, %v13009_v24 }
0x3ca4   :  { %11866 = vpow2.f32 %v8982_v42  ;;  %11328 = vmatpush3.bf16.msra.mxu0 %v8935_v44  ;;  %11334 = vmatpush3.bf16.msra.mxu1 %v9000_v45 }
0x3ca5   :  { %11868 = vpow2.f32 %v8922_v43  ;;  %v9096_v46 = vpop.permute.xlu1 %9095  ;;  %11345 = vmatprep.subr.bf16.mxu1 %v12074_v8  ;;  %11339 = vmatprep.subr.bf16.mxu0 %v12074_v8 }
0x3ca6   :  { %v9098_v47 = vsel %vm2633_vm4, %v9096_v46, 0.0  ;;  %v9157_v60 = vsel %vm4986_vm6, %v9096_v46, 0.0 }
0x3ca7   :  { %9099 = vadd.xlane.f32.xlu1 %v9098_v47  ;;  %9158 = vadd.xlane.f32.xlu0 %v9157_v60 }
0x3cae   :  { %v11867_v49 = vpop.eup %11866 }
0x3caf   :  { %v11869_v50 = vpop.eup %11868  ;;  %11870 = vrcp.f32 %v11867_v49 }
0x3cb0   :  { %11872 = vrcp.f32 %v11869_v50 }
0x3cb8   :  { %9109 = vrot.lane.b32.xlu1 %v13558_v13, %s12079_s22 }
0x3cb9   :  { %v11871_v51 = vpop.eup %11870 }
0x3cba   :  { %v11873_v48 = vpop.eup %11872  ;;  %v8986_v18 = vmul.f32 %v11871_v51, %v11867_v49 }
0x3cbb   :  { %v8926_v54 = vmul.f32 %v11873_v48, %v11869_v50  ;;  %v8837_v50 = vld [vmem:[#allocation8 + $0x94] sm:$0xf] }
0x3cbc   :  { %v8987_v7 = vpack.c.bf16 %v8986_v18, %v8986_v18  ;;  %v9228_v51 = vsel %vm291_vm3, %v8837_v50, 0 }
0x3cbd   :  { %9171 = vrot.lane.b32.xlu0 %v13571_v19, %s12079_s22  ;;  %v8927_v56 = vpack.c.bf16 %v8926_v54, %v8926_v54 }
0x3cbe   :  { %v8989_v28 = vshrl.u32 %v8987_v7, 16 }
0x3cbf   :  { %11330 = vmatmul.mubr.msk.bf16.vlgmr.msra.gmra.mrb[252].mxu0 %vm4937_vm7, %v8927_v56 }
0x3cc0   :  { %11336 = vmatmul.mubr.msk.bf16.vlgmr.msra.gmra.mrb[252].mxu1 %vm4937_vm7, %v8989_v28  ;;  %11341 = vmatprep.mubr.msk.bf16.mxu0 %vm12075_vm1, %v12074_v8 }
0x3cc1   :  { %9271 = vrot.lane.b32.xlu0 %v13562_v32, %s12081_s3  ;;  %11347 = vmatprep.mubr.msk.bf16.mxu1 %vm12075_vm1, %v12074_v8 }
0x3cc2   :  { %11340 = vmatpush3.bf16.msra.mxu0 %v9051_v52 }
0x3cc3   :  { %11351 = vmatprep.subr.bf16.mxu0 %v12074_v8 }
0x3d34   :  { %v9100_v53 = vpop.xlane.xlu1 %9099  ;;  %v9159_v55 = vpop.xlane.xlu0 %9158 }
0x3d35   :  { %v9101_v57 = vmul.f32 0.35355338, %v9100_v53  ;;  %v9160_v9 = vmul.f32 0.35355338, %v9159_v55 }
0x3d37   :  { %v9102_v40 = vsub.f32 %v9101_v57, %v9101_v57  ;;  %v9161_v14 = vsub.f32 %v9160_v9, %v9160_v9 }
0x3d38   :  { %v9110_v35 = vpop.permute.xlu1 %9109  ;;  %v9172_v58 = vpop.permute.xlu0 %9171 }
0x3d39   :  { %v9103_v59 = vmul.f32 1.442695, %v9102_v40  ;;  %v9115_v61 = vand.u32 %v9110_v35, %v13009_v24  ;;  %v9162_v15 = vmul.f32 1.442695, %v9161_v14  ;;  %v9177_v36 = vand.u32 %v9172_v58, %v13009_v24 }
0x3d3b   :  { %11874 = vpow2.f32 %v9103_v59  ;;  %11346 = vmatpush3.bf16.msra.mxu1 %v9115_v61 }
0x3d3c   :  { %v9272_v62 = vpop.permute.xlu0 %9271  ;;  %11357 = vmatprep.subr.bf16.mxu1 %v12074_v8 }
0x3d3d   :  { %v9333_v4 = vsel %vm4986_vm6, %v9272_v62, 0.0  ;;  %v9274_v0 = vsel %vm2633_vm4, %v9272_v62, 0.0 }
0x3d3e   :  { %9334 = vadd.xlane.f32.xlu1 %v9333_v4  ;;  %9275 = vadd.xlane.f32.xlu0 %v9274_v0 }
0x3d45   :  { %v11875_v2 = vpop.eup %11874 }
0x3d46   :  { %11876 = vrcp.f32 %v11875_v2 }
0x3d47   :  { %11878 = vpow2.f32 %v9162_v15 }
0x3d4f   :  { %9285 = vrot.lane.b32.xlu1 %v13558_v13, %s12082_s27 }
0x3d50   :  { %v11877_v3 = vpop.eup %11876 }
0x3d51   :  { %v9107_v12 = vmul.f32 %v11877_v3, %v11875_v2  ;;  %v11879_v1 = vpop.eup %11878 }
0x3d52   :  { %11880 = vrcp.f32 %v11879_v1 }
0x3d53   :  { %v9108_v5 = vpack.c.bf16 %v9107_v12, %v9107_v12  ;;  %9447 = vrot.lane.b32.xlu1 %v13562_v32, %s12084_s15 }
0x3d54   :  { %9347 = vrot.lane.b32.xlu0 %v13571_v19, %s12082_s27 }
0x3d55   :  { %11348 = vmatmul.mubr.msk.bf16.vlgmr.msra.gmra.mrb[0].mxu1 %vm4937_vm7, %v9108_v5 }
0x3d56   :  { %11359 = vmatprep.mubr.msk.bf16.mxu1 %vm12075_vm1, %v12074_v8  ;;  %11358 = vmatpush3.bf16.msra.mxu1 %v9228_v51 }
0x3d57   :  { %11369 = vmatprep.subr.bf16.mxu1 %v12074_v8 }
0x3d5c   :  { %v11881_v27 = vpop.eup %11880 }
0x3d5d   :  { %v9166_v32 = vmul.f32 %v11881_v27, %v11879_v1 }
0x3d5f   :  { %v9167_v34 = vpack.c.bf16 %v9166_v32, %v9166_v32 }
0x3d61   :  { %v9169_v22 = vshrl.u32 %v9167_v34, 16 }
0x3d92   :  { %v8971_v11 = vpop.f32.mrb[252].mxu0 }
0x3d93   :  { %v11331_v17 = vpop.f32.mrb[253].mxu0  ;;  %v9036_v26 = vpop.f32.mrb[252].mxu1 }
0x3d94   :  { %v8974_v6 = vpop.f32.mrb[254].mxu0  ;;  %v9043_v23 = vrot.slane %v9036_v26, 7  ;;  %v11337_v10 = vpop.f32.mrb[253].mxu1 }
0x3d95   :  { %v11332_v63 = vpop.f32.mrb[255].mxu0  ;;  %v9039_v30 = vpop.f32.mrb[254].mxu1 }
0x3d96   :  { %v9045_v16 = vsel %vm2803_vm5, %v8971_v11, %v9043_v23  ;;  %v11338_v31 = vpop.f32.mrb[255].mxu1 }
0x3d97   :  { %v9046_v33 = vpack.c.bf16 %v9045_v16, %v9045_v16  ;;  %v8838_v31 = vld [vmem:[#allocation8 + $0x98] sm:$0xf] }
0x3d98   :  { %v9404_v32 = vsel %vm291_vm3, %v8838_v31, 0 }
0x3d99   :  { %11342 = vmatmul.mubr.msk.bf16.vlgmr.msra.gmra.mrb[0].mxu0 %vm226_vm2, %v9046_v33 }
0x3d9a   :  { %11352 = vmatpush3.bf16.msra.mxu0 %v9177_v36  ;;  %11353 = vmatprep.mubr.msk.bf16.mxu0 %vm12075_vm1, %v12074_v8 }
0x3d9b   :  { %11363 = vmatprep.subr.bf16.mxu0 %v12074_v8 }
0x3da1   :  { %11354 = vmatmul.mubr.msk.bf16.vlgmr.msra.gmra.mrb[4].mxu0 %vm4937_vm7, %v9169_v22 }
0x3da2   :  { %11365 = vmatprep.mubr.msk.bf16.mxu0 %vm12075_vm1, %v12074_v8 }
0x3dcb   :  { %v9335_v38 = vpop.xlane.xlu1 %9334  ;;  %v9276_v39 = vpop.xlane.xlu0 %9275 }
0x3dcc   :  { %v9277_v25 = vmul.f32 0.35355338, %v9276_v39  ;;  %v9336_v7 = vmul.f32 0.35355338, %v9335_v38  ;;  %v10039_v39 = vld [vmem:[%s13709_s5 + $0x9] ss:$0 sm:$0xff] }
0x3dce   :  { %v9278_v20 = vsub.f32 %v9277_v25, %v9277_v25  ;;  %v9337_v56 = vsub.f32 %v9336_v7, %v9336_v7 }
0x3dcf   :  { %v9286_v41 = vpop.permute.xlu1 %9285  ;;  %v9348_v2 = vpop.permute.xlu0 %9347 }
0x3dd0   :  { %v9279_v29 = vmul.f32 1.442695, %v9278_v20  ;;  %v9291_v42 = vand.u32 %v9286_v41, %v13009_v24  ;;  %v9338_v28 = vmul.f32 1.442695, %v9337_v56  ;;  %v9353_v15 = vand.u32 %v9348_v2, %v13009_v24 }
0x3dd2   :  { %11364 = vmatpush3.bf16.msra.mxu0 %v9291_v42  ;;  %11882 = vpow2.f32 %v9279_v29 }
0x3dd3   :  { %v9448_v43 = vpop.permute.xlu1 %9447  ;;  %11375 = vmatprep.subr.bf16.mxu0 %v12074_v8 }
0x3dd4   :  { %v9450_v44 = vsel %vm2633_vm4, %v9448_v43, 0.0  ;;  %v9509_v45 = vsel %vm4986_vm6, %v9448_v43, 0.0 }
0x3dd5   :  { %9451 = vadd.xlane.f32.xlu1 %v9450_v44  ;;  %9510 = vadd.xlane.f32.xlu0 %v9509_v45 }
0x3ddc   :  { %v11883_v46 = vpop.eup %11882 }
0x3ddd   :  { %11884 = vrcp.f32 %v11883_v46 }
0x3dde   :  { %11886 = vpow2.f32 %v9338_v28 }
0x3de6   :  { %9461 = vrot.lane.b32.xlu1 %v13558_v13, %s12085_s16 }
0x3de7   :  { %v11885_v47 = vpop.eup %11884 }
0x3de8   :  { %v9283_v60 = vmul.f32 %v11885_v47, %v11883_v46  ;;  %v11887_v55 = vpop.eup %11886 }
0x3dea   :  { %v9284_v49 = vpack.c.bf16 %v9283_v60, %v9283_v60 }
0x3deb   :  { %9523 = vrot.lane.b32.xlu0 %v13571_v19, %s12085_s16 }
0x3dec   :  { %11366 = vmatmul.mubr.msk.bf16.vlgmr.msra.gmra.mrb[8].mxu0 %vm4937_vm7, %v9284_v49 }
0x3ded   :  { %11377 = vmatprep.mubr.msk.bf16.mxu0 %vm12075_vm1, %v12074_v8  ;;  %11376 = vmatpush3.bf16.msra.mxu0 %v9404_v32  ;;  %v11577_v32 = vld [vmem:[%s13714_s10] sm:$0xff]   ;;  %s12030_s10 = scalar_lea.vmem %s9828_s23, 32 }
0x3dee   :  { %11387 = vmatprep.subr.bf16.mxu0 %v12074_v8  ;;  %p12031_p6 = scmp.ne.s32.totalorder %s9828_s23, %s12030_s10  ;;  %p12036_p8 = scmp.lt.s32.totalorder %s12030_s10, %s12030_s10 }
0x3df0   :  { %p12037_p9 = por %p12036_p8, %p12035_p7 }
0x3df2   :  { %p12038_p10 = pnand %p12037_p9, %p12031_p6 }
0x3e28   :  { %v9151_v48 = vpop.f32.mrb[0].mxu1 }
0x3e29   :  { %v11349_v18 = vpop.f32.mrb[1].mxu1 }
0x3e2a   :  { %v9154_v13 = vpop.f32.mrb[2].mxu1 }
0x3e2b   :  { %v11350_v54 = vpop.f32.mrb[3].mxu1 }
0x3e62   :  { %v9452_v19 = vpop.xlane.xlu1 %9451  ;;  %v9511_v33 = vpop.xlane.xlu0 %9510 }
0x3e63   :  { %v9453_v37 = vmul.f32 0.35355338, %v9452_v19  ;;  %v9512_v36 = vmul.f32 0.35355338, %v9511_v33 }
0x3e65   :  { %v9454_v52 = vsub.f32 %v9453_v37, %v9453_v37  ;;  %v9513_v34 = vsub.f32 %v9512_v36, %v9512_v36 }
0x3e66   :  { %v9462_v11 = vpop.permute.xlu1 %9461  ;;  %v9524_v60 = vpop.permute.xlu0 %9523 }
0x3e67   :  { %v9455_v53 = vmul.f32 1.442695, %v9454_v52  ;;  %v9467_v27 = vand.u32 %v9462_v11, %v13009_v24  ;;  %v9514_v22 = vmul.f32 1.442695, %v9513_v34  ;;  %v9529_v13 = vand.u32 %v9524_v60, %v13009_v24  ;;  %v8839_v24 = vld [vmem:[#allocation8 + $0x9c] sm:$0xf] }
0x3e68   :  { %v9580_v52 = vsel %vm291_vm3, %v8839_v24, 0 }
0x3e69   :  { %11888 = vpow2.f32 %v9455_v53 }
0x3e6a   :  { %11890 = vrcp.f32 %v11887_v55 }
0x3e6c   :  { %v9087_v57 = vpop.f32.mrb[0].mxu0 }
0x3e6d   :  { %v11343_v40 = vpop.f32.mrb[1].mxu0  ;;  %v9093_v25 = vadd.f32 %v10039_v39, %v9087_v57 }
0x3e6e   :  { %v9090_v35 = vpop.f32.mrb[2].mxu0 }
0x3e6f   :  { %v11344_v58 = vpop.f32.mrb[3].mxu0 }
0x3e73   :  { %v11889_v59 = vpop.eup %11888 }
0x3e74   :  { %v9213_v61 = vpop.f32.mrb[4].mxu0  ;;  %v11891_v62 = vpop.eup %11890  ;;  %11892 = vrcp.f32 %v11889_v59 }
0x3e75   :  { %v9220_v4 = vrot.slane %v9213_v61, 7  ;;  %v11355_v0 = vpop.f32.mrb[5].mxu0  ;;  %v9342_v9 = vmul.f32 %v11891_v62, %v11887_v55  ;;  %11894 = vpow2.f32 %v9514_v22 }
0x3e76   :  { %v9216_v3 = vpop.f32.mrb[6].mxu0 }
0x3e77   :  { %v9222_v12 = vsel %vm2803_vm5, %v9151_v48, %v9220_v4  ;;  %v11356_v5 = vpop.f32.mrb[7].mxu0  ;;  %v9343_v1 = vpack.c.bf16 %v9342_v9, %v9342_v9  ;;  %v11573_v3 = vld [vmem:[%s13710_s6] sm:$0xff]  }
0x3e78   :  { %v9223_v14 = vpack.c.bf16 %v9222_v12, %v9222_v12  ;;  %v11574_v12 = vld [vmem:[%s13710_s6 + $0x8] sm:$0xff]  }
0x3e79   :  { %v9345_v17 = vshrl.u32 %v9343_v1, 16 }
0x3e7a   :  { %11360 = vmatmul.mubr.msk.bf16.vlgmr.msra.gmra.mrb[4].mxu1 %vm226_vm2, %v9223_v14 }
0x3e7b   :  { %11370 = vmatpush3.bf16.msra.mxu1 %v9353_v15  ;;  %11371 = vmatprep.mubr.msk.bf16.mxu1 %vm12075_vm1, %v12074_v8 }
0x3e7c   :  { %11381 = vmatprep.subr.bf16.mxu1 %v12074_v8 }
0x3e7e   :  { %v11893_v26 = vpop.eup %11892 }
0x3e7f   :  { %v9459_v6 = vmul.f32 %v11893_v26, %v11889_v59  ;;  %v11895_v38 = vpop.eup %11894  ;;  %v11575_v26 = vld [vmem:[%s13712_s8] sm:$0xff]  }
0x3e80   :  { %11896 = vrcp.f32 %v11895_v38 }
0x3e81   :  { %v9460_v23 = vpack.c.bf16 %v9459_v6, %v9459_v6 }
0x3e82   :  { %11372 = vmatmul.mubr.msk.bf16.vlgmr.msra.gmra.mrb[12].mxu1 %vm4937_vm7, %v9345_v17 }
0x3e83   :  { %11382 = vmatpush3.bf16.msra.mxu1 %v9467_v27  ;;  %11383 = vmatprep.mubr.msk.bf16.mxu1 %vm12075_vm1, %v12074_v8  ;;  %v11576_v27 = vld [vmem:[%s13712_s8 + $0x8] sm:$0xff]  }
0x3e84   :  { %11393 = vmatprep.subr.bf16.mxu1 %v12074_v8 }
0x3e8a   :  { %11384 = vmatmul.mubr.msk.bf16.vlgmr.msra.gmra.mrb[16].mxu1 %vm4937_vm7, %v9460_v23  ;;  %v11897_v45 = vpop.eup %11896 }
0x3e8b   :  { %11395 = vmatprep.mubr.msk.bf16.mxu1 %vm12075_vm1, %v12074_v8  ;;  %v9518_v48 = vmul.f32 %v11897_v45, %v11895_v38  ;;  %11394 = vmatpush3.bf16.msra.mxu1 %v9580_v52 }
0x3e8c   :  { %11407 = vmatprep.subr.bf16.mxu1 %v12074_v8 }
0x3e8d   :  { %v9519_v54 = vpack.c.bf16 %v9518_v48, %v9518_v48 }
0x3e8f   :  { %v9521_v37 = vshrl.u32 %v9519_v54, 16 }
0x3ebf   :  { %v9327_v10 = vpop.f32.mrb[8].mxu0 }
0x3ec0   :  { %v11367_v63 = vpop.f32.mrb[9].mxu0 }
0x3ec1   :  { %v9330_v30 = vpop.f32.mrb[10].mxu0 }
0x3ec2   :  { %v11368_v16 = vpop.f32.mrb[11].mxu0 }
0x3f4d   :  { %v9264_v20 = vpop.f32.mrb[4].mxu1 }
0x3f4e   :  { %v9270_v41 = vadd.f32 %v9264_v20, %v9093_v25  ;;  %v11361_v29 = vpop.f32.mrb[5].mxu1  ;;  %v10060_v20 = vld [vmem:[%s13715_s11] ss:$0 sm:$0xff] }
0x3f4f   :  { %v9267_v42 = vpop.f32.mrb[6].mxu1 }
0x3f50   :  { %v11362_v43 = vpop.f32.mrb[7].mxu1 }
0x3f55   :  { %v9389_v44 = vpop.f32.mrb[12].mxu1 }
0x3f56   :  { %v9396_v46 = vrot.slane %v9389_v44, 7  ;;  %v11373_v47 = vpop.f32.mrb[13].mxu1 }
0x3f57   :  { %v9392_v49 = vpop.f32.mrb[14].mxu1 }
0x3f58   :  { %v9398_v50 = vsel %vm2803_vm5, %v9327_v10, %v9396_v46  ;;  %v11374_v51 = vpop.f32.mrb[15].mxu1 }
0x3f59   :  { %v9399_v18 = vpack.c.bf16 %v9398_v50, %v9398_v50 }
0x3f5b   :  { %11378 = vmatmul.mubr.msk.bf16.vlgmr.msra.gmra.mrb[12].mxu0 %vm226_vm2, %v9399_v18 }
0x3f5c   :  { %11388 = vmatpush3.bf16.msra.mxu0 %v9529_v13  ;;  %11389 = vmatprep.mubr.msk.bf16.mxu0 %vm12075_vm1, %v12074_v8 }
0x3f5d   :  { %v9503_v7 = vpop.f32.mrb[16].mxu1  ;;  %11399 = vmatprep.subr.bf16.mxu0 %v12074_v8 }
0x3f5e   :  { %v11385_v56 = vpop.f32.mrb[17].mxu1 }
0x3f5f   :  { %v9506_v28 = vpop.f32.mrb[18].mxu1 }
0x3f60   :  { %v11386_v19 = vpop.f32.mrb[19].mxu1 }
0x3f63   :  { %11390 = vmatmul.mubr.msk.bf16.vlgmr.msra.gmra.mrb[16].mxu0 %vm4937_vm7, %v9521_v37 }
0x3f64   :  { %11403 = vmatprep.mubr.msk.bf16.mxu0 %vm12075_vm1, %v12074_v8  ;;  %11400 = vmatpush3.bf16.msra.mxu0 %v11573_v3 }
0x3f65   :  { %11401 = vmatprep.subr.bf16.mxu0 %v12074_v8 }
0x3f68   :  { %11402 = vmatpush3.bf16.msra.mxu0 %v11574_v12 }
0x3f69   :  { %11415 = vmatprep.subr.bf16.mxu0 %v12074_v8 }
0x402e   :  { %v9440_v53 = vpop.f32.mrb[12].mxu0 }
0x402f   :  { %v9446_v55 = vadd.f32 %v9440_v53, %v9270_v41  ;;  %v11379_v57 = vpop.f32.mrb[13].mxu0 }
0x4030   :  { %v9443_v40 = vpop.f32.mrb[14].mxu0 }
0x4031   :  { %v11380_v35 = vpop.f32.mrb[15].mxu0 }
0x4036   :  { %v9565_v58 = vpop.f32.mrb[16].mxu0 }
0x4037   :  { %v9572_v59 = vrot.slane %v9565_v58, 7  ;;  %v11391_v61 = vpop.f32.mrb[17].mxu0 }
0x4038   :  { %v9568_v62 = vpop.f32.mrb[18].mxu0 }
0x4039   :  { %v9574_v4 = vsel %vm2803_vm5, %v9503_v7, %v9572_v59  ;;  %v11392_v0 = vpop.f32.mrb[19].mxu0 }
0x403a   :  { %v9575_v2 = vpack.c.bf16 %v9574_v4, %v9574_v4 }
0x403c   :  { %11396 = vmatmul.mubr.msk.bf16.vlgmr.msra.gmra.mrb[20].mxu1 %vm226_vm2, %v9575_v2 }
0x403d   :  { %11411 = vmatprep.mubr.msk.bf16.mxu1 %vm12075_vm1, %v12074_v8  ;;  %11408 = vmatpush3.bf16.msra.mxu1 %v11575_v26 }
0x403e   :  { %11409 = vmatprep.subr.bf16.mxu1 %v12074_v8 }
0x4041   :  { %11410 = vmatpush3.bf16.msra.mxu1 %v11576_v27 }
0x410f   :  { %v9616_v5 = vpop.f32.mrb[20].mxu1 }
0x4110   :  { %v9622_v9 = vadd.f32 %v9616_v5, %v9446_v55  ;;  %v11397_v14 = vpop.f32.mrb[21].mxu1 }
0x4111   :  { %v9619_v15 = vpop.f32.mrb[22].mxu1 }
0x4112   :  { %v9623_v1 = vadd.f32 %v9622_v9, %v13551_v21  ;;  %v11398_v11 = vpop.f32.mrb[23].mxu1  ;;  %v10052_v21 = vld [vmem:[#allocation10] ss:$0 sm:$0xff] }
0x4114   :  { %v9624_v17 = vpack.c.bf16 %v9623_v1, %v9623_v1 }
0x4116   :  { %11404 = vmatmul.mubr.msk.bf16.vlgmr.msra.gmra.mrb[20].mxu0 %vm149_vm0, %v9624_v17 }
0x4117   :  { %11417 = vmatprep.mubr.msk.bf16.mxu0 %vm12075_vm1, %v12074_v8  ;;  %11416 = vmatpush3.bf16.msra.mxu0 %v11577_v32  ;;  %v10056_v8 = vld [vmem:[#allocation11] ss:$0 sm:$0xff] }
0x41e9   :  { %v9685_v6 = vpop.f32.mrb[20].mxu0 }
0x41ea   :  { %v9686_v23 = vadd.f32 %v10052_v21, %v9685_v6  ;;  %v11405_v10 = vpop.f32.mrb[21].mxu0 }
0x41eb   :  { %v9688_v63 = vpop.f32.mrb[22].mxu0 }
0x41ec   :  { %v9691_v30 = vmax.f32 %v9686_v23, 0.0  ;;  %v11406_v16 = vpop.f32.mrb[23].mxu0 }
0x41ee   :  { %v9692_v31 = vpack.c.bf16 %v9691_v30, %v9691_v30 }
0x41f0   :  { %11412 = vmatmul.mubr.msk.bf16.vlgmr.msra.gmra.mrb[24].mxu1 %vm149_vm0, %v9692_v31 }
0x42c3   :  { %v9753_v33 = vpop.f32.mrb[24].mxu1 }
0x42c4   :  { %v9754_v36 = vadd.f32 %v10056_v8, %v9753_v33  ;;  %v11413_v34 = vpop.f32.mrb[25].mxu1 }
0x42c5   :  { %v9756_v22 = vpop.f32.mrb[26].mxu1 }
0x42c6   :  { %v9759_v38 = vmax.f32 %v9754_v36, 0.0  ;;  %v11414_v39 = vpop.f32.mrb[27].mxu1 }
0x42c8   :  { %v9760_v25 = vpack.c.bf16 %v9759_v38, %v9759_v38 }
0x42ca   :  { %11418 = vmatmul.mubr.msk.bf16.vlgmr.msra.gmra.mrb[24].mxu0 %vm9776_vm8, %v9760_v25 }
0x439d   :  { %v9814_v41 = vpop.f32.mrb[24].mxu0 }
0x439e   :  { %v9815_v29 = vadd.f32 %v10060_v20, %v9814_v41  ;;  %v11419_v42 = vpop.f32.mrb[25].mxu0 }
0x439f   :  { %v9817_v43 = vpop.f32.mrb[26].mxu0 }
0x43a0   :  { %9820 = vst [vmem:[#allocation13] sm:$0x3] %v9815_v29  ;;  %v11420_v44 = vpop.f32.mrb[27].mxu0 }
0x43a1   :  { %12041 = shalt.err (!%p12038_p10)
}
0x43a2   :  { %s12042_s11 = scalar_lea.hbm %s13716_s12, 32 }
0x43a3   :  { %p12043_p11 = scmp.ne.s32.totalorder %s13716_s12, %s12042_s11  ;;  %p12046_p12 = scmp.lt.u32.totalorder %s12042_s11, %s13716_s12 }
0x43a5   :  { %p12048_p13 = pnand %p12046_p12, %p12043_p11 }
0x43a7   :  { %12051 = shalt.err (!%p12048_p13)
}
0x43a8   :  { %9830 = dma.vmem_to_hbm [thread:$0]  %s9828_s23, 32, %s13716_s12, [#allocation4]  }
0x43a9   :  { %12060 = dma.done.wait [#allocation4], 32  }
0x43aa   :  { %12061 = vsyncadd [#allocation4], 4294967264 }
0x43ab   :  { %9834 = vsyncpa [#allocation3], 1 }
0x43ac   :  { %9835 = vsyncpa [#allocation6], 1 }
0x43ad   :  { %9836 = vsyncpa [#allocation9], 1 }
0x43ae   :  { %9837 = vsyncpa [#allocation12], 1 }
0x43af   :  { %9838 = vsyncpa [#allocation4], 1 }

</bundles_post_ra>
